<compile_context>
chip_gen: v5e
topology: v5e:2x2
jax: 0.10.0
libtpu: 0.0.40
codegen_flags: <defaults>
</compile_context>

<pallas_src>
import jax
import jax.numpy as jnp
from jax import lax
from jax.experimental import pallas as pl
from jax.experimental.pallas import tpu as pltpu


# ---------------------------------------------------------------------------
# helpers
# ---------------------------------------------------------------------------
def _round_up(x, m):
    return (x + m - 1) // m * m


def _pad_to(x, shape):
    return jnp.pad(x, [(0, s - d) for d, s in zip(x.shape, shape)])


def _pad_blocks(w, row_map, col_map, out_shape):
    """Place sub-blocks of `w` into a zero matrix of `out_shape`.
    row_map/col_map entries: (src_start, length, dst_start)."""
    out = jnp.zeros(out_shape, jnp.float32)
    for (rs, rl, rd) in row_map:
        for (cs, cl, cd) in col_map:
            out = out.at[rd:rd + rl, cd:cd + cl].set(w[rs:rs + rl, cs:cs + cl])
    return out


def _gru_from_gates(gi, gh, h, H):
    """PyTorch GRU gate math (r, z, n ordering) given precomputed gate inputs."""
    r = jax.nn.sigmoid(gi[:, :H] + gh[:, :H])
    z = jax.nn.sigmoid(gi[:, H:2 * H] + gh[:, H:2 * H])
    n = jnp.tanh(gi[:, 2 * H:] + r * gh[:, 2 * H:])
    return (1.0 - z) * n + z * h


def _gru_cell(x, h, w_ih_t, w_hh_t, b_ih, b_hh, H):
    gi = jnp.dot(x, w_ih_t, preferred_element_type=jnp.float32) + b_ih
    gh = jnp.dot(h, w_hh_t, preferred_element_type=jnp.float32) + b_hh
    return _gru_from_gates(gi, gh, h, H)


# ---------------------------------------------------------------------------
# Kernel 1: bidirectional GRU encoder (fwd/bwd fused, enc_proj epilogue)
# ---------------------------------------------------------------------------
def encoder_kernel(x_ref, wih_ref, whh_bd_ref, bih_ref, bhh_ref, wenc_ref,
                   out_ref, hfinal_ref, proj_ref, gi_ref):
    S, Bp, Ep = x_ref.shape
    Hp = proj_ref.shape[-1]
    H3 = 3 * Hp

    # One fused input-gate matmul for BOTH directions: [S*Bp, Ep] @ [Ep, 6Hp].
    x2d = x_ref[...].reshape(S * Bp, Ep)                    # bf16 operand
    gi_ref[...] = (jnp.dot(x2d, wih_ref[...], preferred_element_type=jnp.float32)
                   + bih_ref[...]).reshape(S, Bp, 6 * Hp)

    whh_bd = whh_bd_ref[...]                                 # [2Hp, 6Hp] block-diag, bf16
    bhh = bhh_ref[...]
    h0 = jnp.zeros((Bp, Hp), jnp.float32)

    # Interleave the two independent recurrences (fwd t=0..S-1, bwd t=S-1..0);
    # the two gh matmuls collapse into a single block-diagonal K=2Hp matmul.
    def body(i, carry):
        hf, hb = carry
        tb = S - 1 - i
        hcat = jnp.concatenate([hf, hb], axis=1).astype(jnp.bfloat16)   # [Bp, 2Hp]
        gh = jnp.dot(hcat, whh_bd, preferred_element_type=jnp.float32) + bhh
        hf = _gru_from_gates(gi_ref[i, :, :H3], gh[:, :H3], hf, Hp)
        hb = _gru_from_gates(gi_ref[tb, :, H3:], gh[:, H3:], hb, Hp)
        out_ref[i, :, :Hp] = hf                              # forward half of [S,Bp,2Hp]
        out_ref[tb, :, Hp:] = hb                             # backward half
        return hf, hb

    hf, hb = lax.fori_loop(0, S, body, (h0, h0), unroll=True)
    hfinal_ref[:, :Hp] = hf
    hfinal_ref[:, Hp:] = hb

    # Epilogue: attention encoder-projection while enc_hidden is VMEM-resident.
    out2d = out_ref[...].reshape(S * Bp, 2 * Hp).astype(jnp.bfloat16)
    proj_ref[...] = jnp.dot(out2d, wenc_ref[...],
                            preferred_element_type=jnp.float32).reshape(S, Bp, Hp)


# ---------------------------------------------------------------------------
# Kernel 2: attention decoder — single call, in-kernel loop over target steps
# ---------------------------------------------------------------------------
def decoder_kernel(gi_emb_ref, out_emb_ref, enc_hidden_ref, enc_proj_ref,
                   neg_mask_ref, enc_final_ref,
                   w_bridge_ref, b_bridge_ref, w_dh_ref, b_hh_ref,
                   w_energy_ref, w_ctx_ref, w_outh_ref,
                   logp_ref, h_ref):
    # TODO(synk): Decoder._forward_step is abstract in the spec; implemented as
    # the standard Bahdanau-attention GRU step (attention -> GRU -> linear
    # output over [prev_embed, hidden, context] -> log_softmax).
    T = gi_emb_ref.shape[0]
    Hp = h_ref.shape[-1]
    H3 = 3 * Hp

    # init_hidden = tanh(bridge(encoder_final))
    h0 = jnp.tanh(jnp.dot(enc_final_ref[...].astype(jnp.bfloat16), w_bridge_ref[...],
                          preferred_element_type=jnp.float32) + b_bridge_ref[...])

    def step(t, h):
        # Fused h-dependent matmul: [Bp,Hp] @ [Hp, Hp+3Hp] -> [attn query | GRU gh].
        hproj = jnp.dot(h.astype(jnp.bfloat16), w_dh_ref[...],
                        preferred_element_type=jnp.float32)
        dec = hproj[:, :Hp]
        gh = hproj[:, Hp:] + b_hh_ref[...]

        # Bahdanau MLP attention, batch-major: softmax over the lane (S) axis.
        e = jnp.tanh(dec[:, None, :] + enc_proj_ref[...])                 # [Bp, S, Hp]
        energies = (jnp.sum(e * w_energy_ref[...][None, :, :], axis=-1)
                    + neg_mask_ref[...])                                  # [Bp, S]
        m = jnp.max(energies, axis=-1, keepdims=True)
        p = jnp.exp(energies - m)
        alphas = p * pl.reciprocal(jnp.sum(p, axis=-1, keepdims=True), approx=True)
        context = jnp.sum(alphas[:, :, None] * enc_hidden_ref[...], axis=1)  # [Bp, 2Hp]

        # Fused context matmul: [Bp,2Hp] @ [2Hp, 3Hp+Vp] -> [GRU gi | logits part].
        cproj = jnp.dot(context.astype(jnp.bfloat16), w_ctx_ref[...],
                        preferred_element_type=jnp.float32)
        gi = gi_emb_ref[t] + cproj[:, :H3]           # prev_embed gates precomputed
        h_new = _gru_from_gates(gi, gh, h, Hp)

        # Output projection: prev_embed part (+ vocab-pad bias) precomputed in
        # the wrapper; no concat, just two adds and one small matmul.
        logits = (out_emb_ref[t] + cproj[:, H3:]
                  + jnp.dot(h_new.astype(jnp.bfloat16), w_outh_ref[...],
                            preferred_element_type=jnp.float32))
        x = logits - jnp.max(logits, axis=-1, keepdims=True)
        logp_ref[t] = x - jnp.log(jnp.sum(jnp.exp(x), axis=-1, keepdims=True))
        return h_new

    h_ref[...] = lax.fori_loop(0, T, step, h0, unroll=True)


# ---------------------------------------------------------------------------
# Pallas wrappers
# ---------------------------------------------------------------------------
_VMEM = pl.BlockSpec(memory_space=pltpu.MemorySpace.VMEM)


def _vmem_limit_bytes():
    # Stay below physical per-TC VMEM (64 MiB on v7x, 128 MiB on v5e/v6e).
    try:
        cap = int(pltpu.get_tpu_info().vmem_capacity_bytes)
    except Exception:
        cap = 64 * 1024 * 1024
    return max(32 * 1024 * 1024, min(cap * 3 // 4, 96 * 1024 * 1024))


def run_encoder(x, pp, S, Bp, Hp):
    inputs = (x, pp["enc_wih"], pp["enc_whh_bd"], pp["enc_bih"], pp["enc_bhh"],
              pp["w_enc"])
    out_shape = (jax.ShapeDtypeStruct((S, Bp, 2 * Hp), jnp.float32),   # enc_hidden
                 jax.ShapeDtypeStruct((Bp, 2 * Hp), jnp.float32),      # enc_final
                 jax.ShapeDtypeStruct((S, Bp, Hp), jnp.float32))       # enc_proj
    return pl.pallas_call(
        encoder_kernel,
        out_shape=out_shape,
        in_specs=[_VMEM] * len(inputs),
        out_specs=(_VMEM, _VMEM, _VMEM),
        scratch_shapes=[pltpu.VMEM((S, Bp, 6 * Hp), jnp.float32)],
        compiler_params=pltpu.CompilerParams(vmem_limit_bytes=_vmem_limit_bytes()),
    )(*inputs)


def run_decoder(gi_emb, out_emb, enc_hidden_b, enc_proj_b, neg_mask, enc_final, pp,
                T, Bp, Hp, Vp):
    inputs = (gi_emb, out_emb, enc_hidden_b, enc_proj_b, neg_mask, enc_final,
              pp["w_bridge"], pp["b_bridge"], pp["w_dh"], pp["b_hh"],
              pp["w_energy"], pp["w_ctx"], pp["w_outh"])
    out_shape = (jax.ShapeDtypeStruct((T, Bp, Vp), jnp.float32),       # logp
                 jax.ShapeDtypeStruct((Bp, Hp), jnp.float32))          # final hidden
    return pl.pallas_call(
        decoder_kernel,
        out_shape=out_shape,
        in_specs=[_VMEM] * len(inputs),
        out_specs=(_VMEM, _VMEM),
        compiler_params=pltpu.CompilerParams(vmem_limit_bytes=_vmem_limit_bytes()),
    )(*inputs)


# ---------------------------------------------------------------------------
# parameter padding / fusion to TPU-tile-aligned bf16 layouts
# ---------------------------------------------------------------------------
def _pad_params(params, Hp, Ep, Vp):
    H = params["hidden_size"]; E = params["emb_size"]
    V = params["w_out_t"].shape[1]
    gcols = [(g * H, H, g * Hp) for g in range(3)]        # r,z,n gates, 128-aligned
    col_h = [(0, H, 0)]
    col_v = [(0, V, 0)]
    row1 = [(0, 1, 0)]
    rows_e = [(0, E, 0)]
    rows_h = [(0, H, 0)]
    rows_2h = [(0, H, 0), (H, H, Hp)]                     # [fwd | bwd] halves

    def bf(x):
        return x.astype(jnp.bfloat16)

    pp = {}
    # --- encoder: both directions fused along N; recurrent weights block-diagonal ---
    wih_f = _pad_blocks(params["enc_wih_f_t"], rows_e, gcols, (Ep, 3 * Hp))
    wih_b = _pad_blocks(params["enc_wih_b_t"], rows_e, gcols, (Ep, 3 * Hp))
    pp["enc_wih"] = bf(jnp.concatenate([wih_f, wih_b], axis=1))           # [Ep, 6Hp]
    pp["enc_bih"] = jnp.concatenate(
        [_pad_blocks(params["enc_bih_f"], row1, gcols, (1, 3 * Hp)),
         _pad_blocks(params["enc_bih_b"], row1, gcols, (1, 3 * Hp))], axis=1)
    whh_f = _pad_blocks(params["enc_whh_f_t"], rows_h, gcols, (Hp, 3 * Hp))
    whh_b = _pad_blocks(params["enc_whh_b_t"], rows_h, gcols, (Hp, 3 * Hp))
    z = jnp.zeros((Hp, 3 * Hp), jnp.float32)
    pp["enc_whh_bd"] = bf(jnp.concatenate(                               # [2Hp, 6Hp]
        [jnp.concatenate([whh_f, z], axis=1),
         jnp.concatenate([z, whh_b], axis=1)], axis=0))
    pp["enc_bhh"] = jnp.concatenate(
        [_pad_blocks(params["enc_bhh_f"], row1, gcols, (1, 3 * Hp)),
         _pad_blocks(params["enc_bhh_b"], row1, gcols, (1, 3 * Hp))], axis=1)
    pp["w_enc"] = bf(_pad_blocks(params["w_enc_t"], rows_2h, col_h, (2 * Hp, Hp)))

    # --- bridge ---
    pp["w_bridge"] = bf(_pad_blocks(params["w_bridge_t"], rows_2h, col_h, (2 * Hp, Hp)))
    pp["b_bridge"] = _pad_blocks(params["b_bridge"], row1, col_h, (1, Hp))

    # --- decoder step: fused [w_dec | w_hh] and [w_ih_ctx | w_out_ctx] ---
    w_dec = _pad_blocks(params["w_dec_t"], rows_h, col_h, (Hp, Hp))
    w_hh = _pad_blocks(params["dec_whh_t"], rows_h, gcols, (Hp, 3 * Hp))
    pp["w_dh"] = bf(jnp.concatenate([w_dec, w_hh], axis=1))              # [Hp, 4Hp]
    pp["b_hh"] = _pad_blocks(params["dec_bhh"], row1, gcols, (1, 3 * Hp))
    pp["w_energy"] = _pad_blocks(params["w_energy"], row1, col_h, (1, Hp))

    w_ih = params["dec_wih_t"]                                           # [E+2H, 3H]
    pp["dec_wih_emb"] = bf(_pad_blocks(w_ih[:E], rows_e, gcols, (Ep, 3 * Hp)))
    pp["dec_bih"] = _pad_blocks(params["dec_bih"], row1, gcols, (1, 3 * Hp))
    w_ih_ctx = _pad_blocks(w_ih[E:], rows_2h, gcols, (2 * Hp, 3 * Hp))

    w_out = params["w_out_t"]                # rows: [embed | hidden | ctx_f | ctx_b]
    pp["w_out_emb"] = bf(_pad_blocks(w_out[:E], rows_e, col_v, (Ep, Vp)))
    pp["w_outh"] = bf(_pad_blocks(w_out[E:E + H], rows_h, col_v, (Hp, Vp)))
    w_out_ctx = _pad_blocks(w_out[E + H:], rows_2h, col_v, (2 * Hp, Vp))
    pp["w_ctx"] = bf(jnp.concatenate([w_ih_ctx, w_out_ctx], axis=1))     # [2Hp, 3Hp+Vp]
    return pp


# ---------------------------------------------------------------------------
# forward wrapper (PyTorch calling convention)
# ---------------------------------------------------------------------------
def seq2seq_forward(params, src, trg, src_length, trg_length):
    H = params["hidden_size"]; E = params["emb_size"]
    B, S = src.shape
    T = trg.shape[1]                     # static unroll length (== max(trg_length))
    V = params["w_out_t"].shape[1]
    Hp, Ep, Vp = _round_up(H, 128), _round_up(E, 128), _round_up(V, 128)
    Bp = _round_up(B, 8)
    # TODO(synk): at real deployment batch sizes keep the true B (M dim); every matmul
    # here is M=Bp and latency-bound at the demo shapes regardless of layout.

    pp = _pad_params(params, Hp, Ep, Vp)

    # ---- encoder (time-major, tile-padded, bf16 MXU operands) ----
    src_emb = jnp.take(params["src_emb"], src, axis=0)                   # [B,S,E]
    x = _pad_to(jnp.transpose(src_emb, (1, 0, 2)), (S, Bp, Ep)).astype(jnp.bfloat16)
    enc_hidden_tm, enc_final, enc_proj_tm = run_encoder(x, pp, S, Bp, Hp)

    # One-time batch-major relayout so every decoder-step softmax is lane-dense over S.
    enc_hidden_b = jnp.transpose(enc_hidden_tm, (1, 0, 2))               # [Bp,S,2Hp]
    enc_proj_b = jnp.transpose(enc_proj_tm, (1, 0, 2))                   # [Bp,S,Hp]

    srclen = src_length.astype(jnp.int32)
    if Bp > B:   # padded batch rows get length 1 so softmax rows stay finite
        srclen = jnp.concatenate([srclen, jnp.ones((Bp - B,), jnp.int32)])
    neg_mask = jnp.where(jnp.arange(S, dtype=jnp.int32)[None, :] < srclen[:, None],
                         0.0, -1e30).astype(jnp.float32)                 # [Bp,S]

    # ---- h-independent precomputes: one batched matmul each over all T steps ----
    trg_emb = jnp.take(params["trg_emb"], trg, axis=0)                   # [B,T,E]
    emb2d = _pad_to(jnp.transpose(trg_emb, (1, 0, 2)),
                    (T, Bp, Ep)).reshape(T * Bp, Ep).astype(jnp.bfloat16)
    gi_emb = (jnp.dot(emb2d, pp["dec_wih_emb"], preferred_element_type=jnp.float32)
              + pp["dec_bih"]).reshape(T, Bp, 3 * Hp)
    vocab_bias = jnp.where(jnp.arange(Vp) < V, 0.0, -1e30).astype(jnp.float32)[None, :]
    out_emb = (jnp.dot(emb2d, pp["w_out_emb"], preferred_element_type=jnp.float32)
               + vocab_bias).reshape(T, Bp, Vp)

    # ---- decoder: single pallas_call, in-kernel loop over T steps ----
    logp, h_final = run_decoder(gi_emb, out_emb, enc_hidden_b, enc_proj_b, neg_mask,
                                enc_final, pp, T, Bp, Hp, Vp)

    outputs = jnp.transpose(logp[:, :B, :V], (1, 0, 2))                  # [B,T,V]
    hidden = h_final[None, :B, :H]                                       # [1,B,H]
    return outputs, hidden


# ---------------------------------------------------------------------------
# deterministic parameter init (shapes follow the PyTorch module __init__)
# ---------------------------------------------------------------------------
def init_params(key, src_vocab, trg_vocab, emb_size, hidden_size):
    H, E = hidden_size, emb_size
    keys = jax.random.split(key, 20)

    def rnd(k, shape, scale=0.1):
        return (scale * jax.random.normal(k, shape)).astype(jnp.float32)

    p = {"hidden_size": H, "emb_size": E}
    p["src_emb"] = rnd(keys[0], (src_vocab, E)).at[0].set(0.0)   # padding_idx=0
    p["trg_emb"] = rnd(keys[1], (trg_vocab, E)).at[0].set(0.0)
    # encoder bidirectional GRU (weights pre-transposed to [in, 3H])
    p["enc_wih_f_t"] = rnd(keys[2], (E, 3 * H))
    p["enc_whh_f_t"] = rnd(keys[3], (H, 3 * H))
    p["enc_bih_f"] = rnd(keys[4], (1, 3 * H))
    p["enc_bhh_f"] = rnd(keys[5], (1, 3 * H))
    p["enc_wih_b_t"] = rnd(keys[6], (E, 3 * H))
    p["enc_whh_b_t"] = rnd(keys[7], (H, 3 * H))
    p["enc_bih_b"] = rnd(keys[8], (1, 3 * H))
    p["enc_bhh_b"] = rnd(keys[9], (1, 3 * H))
    # bridge: Linear(2H -> H, bias=True)
    p["w_bridge_t"] = rnd(keys[10], (2 * H, H))
    p["b_bridge"] = rnd(keys[11], (1, H))
    # attention: enc_state_layer(2H->H), dec_state_layer(H->H), energy_layer(H->1)
    p["w_enc_t"] = rnd(keys[12], (2 * H, H))
    p["w_dec_t"] = rnd(keys[13], (H, H))
    p["w_energy"] = rnd(keys[14], (1, H))
    # decoder GRU: input = emb + 2*hidden
    p["dec_wih_t"] = rnd(keys[15], (E + 2 * H, 3 * H))
    p["dec_whh_t"] = rnd(keys[16], (H, 3 * H))
    p["dec_bih"] = rnd(keys[17], (1, 3 * H))
    p["dec_bhh"] = rnd(keys[18], (1, 3 * H))
    # output layer (bias=False); row order matches cat([prev_embed, output, context])
    p["w_out_t"] = rnd(keys[19], (E + 3 * H, trg_vocab))
    return p


# ---------------------------------------------------------------------------
# pure-JAX f32 reference (mirrors the PyTorch forward) for validation
# ---------------------------------------------------------------------------
def reference_forward(params, src, trg, src_length, trg_length):
    H, E = params["hidden_size"], params["emb_size"]
    B, S = src.shape
    src_emb = jnp.take(params["src_emb"], src, axis=0)
    xs = jnp.transpose(src_emb, (1, 0, 2))

    def scan_gru(wih, whh, bih, bhh, seq):
        def f(h, x):
            h = _gru_cell(x, h, wih, whh, bih, bhh, H)
            return h, h
        return lax.scan(f, jnp.zeros((B, H), jnp.float32), seq)

    hf, ys_f = scan_gru(params["enc_wih_f_t"], params["enc_whh_f_t"],
                        params["enc_bih_f"], params["enc_bhh_f"], xs)
    hb, ys_b_rev = scan_gru(params["enc_wih_b_t"], params["enc_whh_b_t"],
                            params["enc_bih_b"], params["enc_bhh_b"], xs[::-1])
    ys_b = ys_b_rev[::-1]
    encoder_hidden = jnp.transpose(jnp.concatenate([ys_f, ys_b], -1), (1, 0, 2))
    encoder_final = jnp.concatenate([hf, hb], -1)

    h = jnp.tanh(encoder_final @ params["w_bridge_t"] + params["b_bridge"])
    enc_proj = (encoder_hidden.reshape(B * S, 2 * H) @ params["w_enc_t"]).reshape(B, S, H)
    neg_mask = jnp.where(jnp.arange(S)[None, :] < src_length[:, None], 0.0, -jnp.inf)
    trg_emb = jnp.take(params["trg_emb"], trg, axis=0)
    max_steps = trg.shape[1]
    outs = []
    for t in range(max_steps):
        prev_embed = trg_emb[:, t, :]
        dec = h @ params["w_dec_t"]
        e = jnp.tanh(dec[:, None, :] + enc_proj)
        energies = jnp.sum(e * params["w_energy"].reshape(1, 1, H), -1) + neg_mask
        alphas = jax.nn.softmax(energies, axis=-1)
        context = jnp.sum(alphas[:, :, None] * encoder_hidden, axis=1)
        gi = (prev_embed @ params["dec_wih_t"][:E]
              + context @ params["dec_wih_t"][E:] + params["dec_bih"])
        gh = h @ params["dec_whh_t"] + params["dec_bhh"]
        r = jax.nn.sigmoid(gi[:, :H] + gh[:, :H])
        z = jax.nn.sigmoid(gi[:, H:2 * H] + gh[:, H:2 * H])
        n = jnp.tanh(gi[:, 2 * H:] + r * gh[:, 2 * H:])
        h = (1.0 - z) * n + z * h
        logits = (prev_embed @ params["w_out_t"][:E]
                  + h @ params["w_out_t"][E:E + H]
                  + context @ params["w_out_t"][E + H:])
        outs.append(jax.nn.log_softmax(logits, axis=-1)[:, None, :])
    return jnp.concatenate(outs, axis=1), h[None]


# ---------------------------------------------------------------------------
if __name__ == "__main__":
    key = jax.random.PRNGKey(0)
    B, S, T = 2, 8, 8
    src_vocab, trg_vocab, E, H = 20, 24, 32, 32

    kp, kd1, kd2 = jax.random.split(key, 3)
    params = init_params(kp, src_vocab, trg_vocab, E, H)

    src_length = jnp.array([8, 5], dtype=jnp.int32)
    trg_length = jnp.array([8, 6], dtype=jnp.int32)   # max == T (static unroll)
    src = jax.random.randint(kd1, (B, S), 1, src_vocab, dtype=jnp.int32)
    trg = jax.random.randint(kd2, (B, T), 1, trg_vocab, dtype=jnp.int32)
    src = jnp.where(jnp.arange(S)[None, :] < src_length[:, None], src, 0)  # pad_idx=0
    trg = jnp.where(jnp.arange(T)[None, :] < trg_length[:, None], trg, 0)

    outputs, hidden = seq2seq_forward(params, src, trg, src_length, trg_length)
    outputs, hidden = jax.block_until_ready((outputs, hidden))

    ref_out, ref_hidden = reference_forward(params, src, trg, src_length, trg_length)

    assert outputs.shape == (B, T, trg_vocab), outputs.shape
    assert hidden.shape == (1, B, H), hidden.shape
    # bf16 MXU operands + approx softmax reciprocal -> bf16-level parity tolerance
    assert jnp.allclose(outputs, ref_out, atol=2e-2, rtol=2e-2), \
        float(jnp.max(jnp.abs(outputs - ref_out)))
    assert jnp.allclose(hidden, ref_hidden, atol=2e-2, rtol=2e-2), \
        float(jnp.max(jnp.abs(hidden - ref_hidden)))
    print("KERNEL_OK")
</pallas_src>

<mosaic_0001>
module attributes {stable_mosaic.version = 11 : i64} {
  func.func @encoder_kernel(%arg0: memref<8x8x128xbf16, #tpu.memory_space<vmem>>, %arg1: memref<128x768xbf16, #tpu.memory_space<vmem>>, %arg2: memref<256x768xbf16, #tpu.memory_space<vmem>>, %arg3: memref<1x768xf32, #tpu.memory_space<vmem>>, %arg4: memref<1x768xf32, #tpu.memory_space<vmem>>, %arg5: memref<256x128xbf16, #tpu.memory_space<vmem>>, %arg6: memref<8x8x256xf32, #tpu.memory_space<vmem>>, %arg7: memref<8x256xf32, #tpu.memory_space<vmem>>, %arg8: memref<8x8x128xf32, #tpu.memory_space<vmem>>, %arg9: memref<8x8x768xf32, #tpu.memory_space<vmem>>) attributes {dimension_semantics = [], scalar_prefetch = 0 : i64, scratch_operands = 1 : i64, tpu.core_type = #tpu.core_type<tc>} {
    %c0 = arith.constant 0 : index
    %c0_0 = arith.constant 0 : index
    %c0_1 = arith.constant 0 : index
    %0 = vector.load %arg0[%c0, %c0_0, %c0_1] : memref<8x8x128xbf16, #tpu.memory_space<vmem>>, vector<8x8x128xbf16>
    %1 = vector.shape_cast %0 : vector<8x8x128xbf16> to vector<64x128xbf16>
    %c0_2 = arith.constant 0 : index
    %c0_3 = arith.constant 0 : index
    %2 = vector.load %arg1[%c0_2, %c0_3] : memref<128x768xbf16, #tpu.memory_space<vmem>>, vector<128x768xbf16>
    %cst = arith.constant dense<0.000000e+00> : vector<64x768xf32>
    %3 = tpu.matmul %1, %2, %cst {dimension_numbers = #tpu.dot_dimension_numbers<[1], [0], [0], [1], [0, 0, 1, 1], [], []>} : vector<64x128xbf16>, vector<128x768xbf16>, vector<64x768xf32> -> vector<64x768xf32>
    %c0_4 = arith.constant 0 : index
    %c0_5 = arith.constant 0 : index
    %4 = vector.load %arg3[%c0_4, %c0_5] : memref<1x768xf32, #tpu.memory_space<vmem>>, vector<1x768xf32>
    %5 = vector.broadcast %4 : vector<1x768xf32> to vector<64x768xf32>
    %6 = arith.addf %3, %5 : vector<64x768xf32>
    %7 = vector.shape_cast %6 : vector<64x768xf32> to vector<8x8x768xf32>
    %c0_6 = arith.constant 0 : index
    %c0_7 = arith.constant 0 : index
    %c0_8 = arith.constant 0 : index
    %8 = vector.load %arg9[%c0_6, %c0_7, %c0_8] : memref<8x8x768xf32, #tpu.memory_space<vmem>>, vector<8x8x768xf32>
    tpu.vector_store %arg9[%c0_6, %c0_7, %c0_8], %7 {strides = array<i32>} : memref<8x8x768xf32, #tpu.memory_space<vmem>>, vector<8x8x768xf32>,
    %c0_9 = arith.constant 0 : index
    %c0_10 = arith.constant 0 : index
    %9 = vector.load %arg2[%c0_9, %c0_10] : memref<256x768xbf16, #tpu.memory_space<vmem>>, vector<256x768xbf16>
    %c0_11 = arith.constant 0 : index
    %c0_12 = arith.constant 0 : index
    %10 = vector.load %arg4[%c0_11, %c0_12] : memref<1x768xf32, #tpu.memory_space<vmem>>, vector<1x768xf32>
    %cst_13 = arith.constant 0.000000e+00 : f32
    %11 = vector.broadcast %cst_13 : f32 to vector<8x128xf32>
    %c0_i32 = arith.constant 0 : i32
    %c7_i32 = arith.constant 7 : i32
    %12 = arith.subi %c7_i32, %c0_i32 : i32
    %13 = tpu.concatenate %11, %11 in 1 : vector<8x128xf32>, vector<8x128xf32> -> vector<8x256xf32>
    %14 = arith.truncf %13 : vector<8x256xf32> to vector<8x256xbf16>
    %cst_14 = arith.constant dense<0.000000e+00> : vector<8x768xf32>
    %15 = tpu.matmul %14, %9, %cst_14 {dimension_numbers = #tpu.dot_dimension_numbers<[1], [0], [0], [1], [0, 0, 1, 1], [], []>} : vector<8x256xbf16>, vector<256x768xbf16>, vector<8x768xf32> -> vector<8x768xf32>
    %16 = vector.broadcast %10 : vector<1x768xf32> to vector<8x768xf32>
    %17 = arith.addf %15, %16 : vector<8x768xf32>
    %18 = arith.index_cast %c0_i32 : i32 to index
    %c0_15 = arith.constant 0 : index
    %c0_16 = arith.constant 0 : index
    %19 = vector.load %arg9[%18, %c0_15, %c0_16] : memref<8x8x768xf32, #tpu.memory_space<vmem>>, vector<1x8x384xf32>
    %20 = vector.shape_cast %19 : vector<1x8x384xf32> to vector<8x384xf32>
    %21 = vector.extract_strided_slice %17 {offsets = [0, 0], sizes = [8, 384], strides = [1, 1]} : vector<8x768xf32> to vector<8x384xf32>
    %22 = vector.extract_strided_slice %20 {offsets = [0, 0], sizes = [8, 128], strides = [1, 1]} : vector<8x384xf32> to vector<8x128xf32>
    %23 = vector.extract_strided_slice %21 {offsets = [0, 0], sizes = [8, 128], strides = [1, 1]} : vector<8x384xf32> to vector<8x128xf32>
    %24 = arith.addf %22, %23 : vector<8x128xf32>
    %25 = arith.negf %24 : vector<8x128xf32>
    %26 = math.exp %25 : vector<8x128xf32>
    %cst_17 = arith.constant 1.000000e+00 : f32
    %27 = vector.broadcast %cst_17 : f32 to vector<8x128xf32>
    %28 = arith.addf %27, %26 : vector<8x128xf32>
    %29 = arith.divf %27, %28 : vector<8x128xf32>
    %30 = vector.extract_strided_slice %20 {offsets = [0, 128], sizes = [8, 128], strides = [1, 1]} : vector<8x384xf32> to vector<8x128xf32>
    %31 = vector.extract_strided_slice %21 {offsets = [0, 128], sizes = [8, 128], strides = [1, 1]} : vector<8x384xf32> to vector<8x128xf32>
    %32 = arith.addf %30, %31 : vector<8x128xf32>
    %33 = arith.negf %32 : vector<8x128xf32>
    %34 = math.exp %33 : vector<8x128xf32>
    %cst_18 = arith.constant 1.000000e+00 : f32
    %35 = vector.broadcast %cst_18 : f32 to vector<8x128xf32>
    %36 = arith.addf %35, %34 : vector<8x128xf32>
    %37 = arith.divf %35, %36 : vector<8x128xf32>
    %38 = vector.extract_strided_slice %20 {offsets = [0, 256], sizes = [8, 128], strides = [1, 1]} : vector<8x384xf32> to vector<8x128xf32>
    %39 = vector.extract_strided_slice %21 {offsets = [0, 256], sizes = [8, 128], strides = [1, 1]} : vector<8x384xf32> to vector<8x128xf32>
    %40 = arith.mulf %29, %39 : vector<8x128xf32>
    %41 = arith.addf %38, %40 : vector<8x128xf32>
    %42 = math.tanh %41 : vector<8x128xf32>
    %cst_19 = arith.constant 1.000000e+00 : f32
    %43 = vector.broadcast %cst_19 : f32 to vector<8x128xf32>
    %44 = arith.subf %43, %37 : vector<8x128xf32>
    %45 = arith.mulf %44, %42 : vector<8x128xf32>
    %46 = arith.mulf %37, %11 : vector<8x128xf32>
    %47 = arith.addf %45, %46 : vector<8x128xf32>
    %48 = arith.index_cast %12 : i32 to index
    %c0_20 = arith.constant 0 : index
    %c384 = arith.constant 384 : index
    %49 = vector.load %arg9[%48, %c0_20, %c384] : memref<8x8x768xf32, #tpu.memory_space<vmem>>, vector<1x8x384xf32>
    %50 = vector.shape_cast %49 : vector<1x8x384xf32> to vector<8x384xf32>
    %51 = vector.extract_strided_slice %17 {offsets = [0, 384], sizes = [8, 384], strides = [1, 1]} : vector<8x768xf32> to vector<8x384xf32>
    %52 = vector.extract_strided_slice %50 {offsets = [0, 0], sizes = [8, 128], strides = [1, 1]} : vector<8x384xf32> to vector<8x128xf32>
    %53 = vector.extract_strided_slice %51 {offsets = [0, 0], sizes = [8, 128], strides = [1, 1]} : vector<8x384xf32> to vector<8x128xf32>
    %54 = arith.addf %52, %53 : vector<8x128xf32>
    %55 = arith.negf %54 : vector<8x128xf32>
    %56 = math.exp %55 : vector<8x128xf32>
    %cst_21 = arith.constant 1.000000e+00 : f32
    %57 = vector.broadcast %cst_21 : f32 to vector<8x128xf32>
    %58 = arith.addf %57, %56 : vector<8x128xf32>
    %59 = arith.divf %57, %58 : vector<8x128xf32>
    %60 = vector.extract_strided_slice %50 {offsets = [0, 128], sizes = [8, 128], strides = [1, 1]} : vector<8x384xf32> to vector<8x128xf32>
    %61 = vector.extract_strided_slice %51 {offsets = [0, 128], sizes = [8, 128], strides = [1, 1]} : vector<8x384xf32> to vector<8x128xf32>
    %62 = arith.addf %60, %61 : vector<8x128xf32>
    %63 = arith.negf %62 : vector<8x128xf32>
    %64 = math.exp %63 : vector<8x128xf32>
    %cst_22 = arith.constant 1.000000e+00 : f32
    %65 = vector.broadcast %cst_22 : f32 to vector<8x128xf32>
    %66 = arith.addf %65, %64 : vector<8x128xf32>
    %67 = arith.divf %65, %66 : vector<8x128xf32>
    %68 = vector.extract_strided_slice %50 {offsets = [0, 256], sizes = [8, 128], strides = [1, 1]} : vector<8x384xf32> to vector<8x128xf32>
    %69 = vector.extract_strided_slice %51 {offsets = [0, 256], sizes = [8, 128], strides = [1, 1]} : vector<8x384xf32> to vector<8x128xf32>
    %70 = arith.mulf %59, %69 : vector<8x128xf32>
    %71 = arith.addf %68, %70 : vector<8x128xf32>
    %72 = math.tanh %71 : vector<8x128xf32>
    %cst_23 = arith.constant 1.000000e+00 : f32
    %73 = vector.broadcast %cst_23 : f32 to vector<8x128xf32>
    %74 = arith.subf %73, %67 : vector<8x128xf32>
    %75 = arith.mulf %74, %72 : vector<8x128xf32>
    %76 = arith.mulf %67, %11 : vector<8x128xf32>
    %77 = arith.addf %75, %76 : vector<8x128xf32>
    %78 = arith.index_cast %c0_i32 : i32 to index
    %c0_24 = arith.constant 0 : index
    %c0_25 = arith.constant 0 : index
    %79 = vector.load %arg6[%78, %c0_24, %c0_25] : memref<8x8x256xf32, #tpu.memory_space<vmem>>, vector<1x8x128xf32>
    %80 = vector.shape_cast %79 : vector<1x8x128xf32> to vector<8x128xf32>
    %81 = vector.shape_cast %47 : vector<8x128xf32> to vector<1x8x128xf32>
    tpu.vector_store %arg6[%78, %c0_24, %c0_25], %81 {strides = array<i32>} : memref<8x8x256xf32, #tpu.memory_space<vmem>>, vector<1x8x128xf32>,
    %82 = arith.index_cast %12 : i32 to index
    %c0_26 = arith.constant 0 : index
    %c128 = arith.constant 128 : index
    %83 = vector.load %arg6[%82, %c0_26, %c128] : memref<8x8x256xf32, #tpu.memory_space<vmem>>, vector<1x8x128xf32>
    %84 = vector.shape_cast %83 : vector<1x8x128xf32> to vector<8x128xf32>
    %85 = vector.shape_cast %77 : vector<8x128xf32> to vector<1x8x128xf32>
    tpu.vector_store %arg6[%82, %c0_26, %c128], %85 {strides = array<i32>} : memref<8x8x256xf32, #tpu.memory_space<vmem>>, vector<1x8x128xf32>,
    %c1_i32 = arith.constant 1 : i32
    %c7_i32_27 = arith.constant 7 : i32
    %86 = arith.subi %c7_i32_27, %c1_i32 : i32
    %87 = tpu.concatenate %47, %77 in 1 : vector<8x128xf32>, vector<8x128xf32> -> vector<8x256xf32>
    %88 = arith.truncf %87 : vector<8x256xf32> to vector<8x256xbf16>
    %cst_28 = arith.constant dense<0.000000e+00> : vector<8x768xf32>
    %89 = tpu.matmul %88, %9, %cst_28 {dimension_numbers = #tpu.dot_dimension_numbers<[1], [0], [0], [1], [0, 0, 1, 1], [], []>} : vector<8x256xbf16>, vector<256x768xbf16>, vector<8x768xf32> -> vector<8x768xf32>
    %90 = vector.broadcast %10 : vector<1x768xf32> to vector<8x768xf32>
    %91 = arith.addf %89, %90 : vector<8x768xf32>
    %92 = arith.index_cast %c1_i32 : i32 to index
    %c0_29 = arith.constant 0 : index
    %c0_30 = arith.constant 0 : index
    %93 = vector.load %arg9[%92, %c0_29, %c0_30] : memref<8x8x768xf32, #tpu.memory_space<vmem>>, vector<1x8x384xf32>
    %94 = vector.shape_cast %93 : vector<1x8x384xf32> to vector<8x384xf32>
    %95 = vector.extract_strided_slice %91 {offsets = [0, 0], sizes = [8, 384], strides = [1, 1]} : vector<8x768xf32> to vector<8x384xf32>
    %96 = vector.extract_strided_slice %94 {offsets = [0, 0], sizes = [8, 128], strides = [1, 1]} : vector<8x384xf32> to vector<8x128xf32>
    %97 = vector.extract_strided_slice %95 {offsets = [0, 0], sizes = [8, 128], strides = [1, 1]} : vector<8x384xf32> to vector<8x128xf32>
    %98 = arith.addf %96, %97 : vector<8x128xf32>
    %99 = arith.negf %98 : vector<8x128xf32>
    %100 = math.exp %99 : vector<8x128xf32>
    %cst_31 = arith.constant 1.000000e+00 : f32
    %101 = vector.broadcast %cst_31 : f32 to vector<8x128xf32>
    %102 = arith.addf %101, %100 : vector<8x128xf32>
    %103 = arith.divf %101, %102 : vector<8x128xf32>
    %104 = vector.extract_strided_slice %94 {offsets = [0, 128], sizes = [8, 128], strides = [1, 1]} : vector<8x384xf32> to vector<8x128xf32>
    %105 = vector.extract_strided_slice %95 {offsets = [0, 128], sizes = [8, 128], strides = [1, 1]} : vector<8x384xf32> to vector<8x128xf32>
    %106 = arith.addf %104, %105 : vector<8x128xf32>
    %107 = arith.negf %106 : vector<8x128xf32>
    %108 = math.exp %107 : vector<8x128xf32>
    %cst_32 = arith.constant 1.000000e+00 : f32
    %109 = vector.broadcast %cst_32 : f32 to vector<8x128xf32>
    %110 = arith.addf %109, %108 : vector<8x128xf32>
    %111 = arith.divf %109, %110 : vector<8x128xf32>
    %112 = vector.extract_strided_slice %94 {offsets = [0, 256], sizes = [8, 128], strides = [1, 1]} : vector<8x384xf32> to vector<8x128xf32>
    %113 = vector.extract_strided_slice %95 {offsets = [0, 256], sizes = [8, 128], strides = [1, 1]} : vector<8x384xf32> to vector<8x128xf32>
    %114 = arith.mulf %103, %113 : vector<8x128xf32>
    %115 = arith.addf %112, %114 : vector<8x128xf32>
    %116 = math.tanh %115 : vector<8x128xf32>
    %cst_33 = arith.constant 1.000000e+00 : f32
    %117 = vector.broadcast %cst_33 : f32 to vector<8x128xf32>
    %118 = arith.subf %117, %111 : vector<8x128xf32>
    %119 = arith.mulf %118, %116 : vector<8x128xf32>
    %120 = arith.mulf %111, %47 : vector<8x128xf32>
    %121 = arith.addf %119, %120 : vector<8x128xf32>
    %122 = arith.index_cast %86 : i32 to index
    %c0_34 = arith.constant 0 : index
    %c384_35 = arith.constant 384 : index
    %123 = vector.load %arg9[%122, %c0_34, %c384_35] : memref<8x8x768xf32, #tpu.memory_space<vmem>>, vector<1x8x384xf32>
    %124 = vector.shape_cast %123 : vector<1x8x384xf32> to vector<8x384xf32>
    %125 = vector.extract_strided_slice %91 {offsets = [0, 384], sizes = [8, 384], strides = [1, 1]} : vector<8x768xf32> to vector<8x384xf32>
    %126 = vector.extract_strided_slice %124 {offsets = [0, 0], sizes = [8, 128], strides = [1, 1]} : vector<8x384xf32> to vector<8x128xf32>
    %127 = vector.extract_strided_slice %125 {offsets = [0, 0], sizes = [8, 128], strides = [1, 1]} : vector<8x384xf32> to vector<8x128xf32>
    %128 = arith.addf %126, %127 : vector<8x128xf32>
    %129 = arith.negf %128 : vector<8x128xf32>
    %130 = math.exp %129 : vector<8x128xf32>
    %cst_36 = arith.constant 1.000000e+00 : f32
    %131 = vector.broadcast %cst_36 : f32 to vector<8x128xf32>
    %132 = arith.addf %131, %130 : vector<8x128xf32>
    %133 = arith.divf %131, %132 : vector<8x128xf32>
    %134 = vector.extract_strided_slice %124 {offsets = [0, 128], sizes = [8, 128], strides = [1, 1]} : vector<8x384xf32> to vector<8x128xf32>
    %135 = vector.extract_strided_slice %125 {offsets = [0, 128], sizes = [8, 128], strides = [1, 1]} : vector<8x384xf32> to vector<8x128xf32>
    %136 = arith.addf %134, %135 : vector<8x128xf32>
    %137 = arith.negf %136 : vector<8x128xf32>
    %138 = math.exp %137 : vector<8x128xf32>
    %cst_37 = arith.constant 1.000000e+00 : f32
    %139 = vector.broadcast %cst_37 : f32 to vector<8x128xf32>
    %140 = arith.addf %139, %138 : vector<8x128xf32>
    %141 = arith.divf %139, %140 : vector<8x128xf32>
    %142 = vector.extract_strided_slice %124 {offsets = [0, 256], sizes = [8, 128], strides = [1, 1]} : vector<8x384xf32> to vector<8x128xf32>
    %143 = vector.extract_strided_slice %125 {offsets = [0, 256], sizes = [8, 128], strides = [1, 1]} : vector<8x384xf32> to vector<8x128xf32>
    %144 = arith.mulf %133, %143 : vector<8x128xf32>
    %145 = arith.addf %142, %144 : vector<8x128xf32>
    %146 = math.tanh %145 : vector<8x128xf32>
    %cst_38 = arith.constant 1.000000e+00 : f32
    %147 = vector.broadcast %cst_38 : f32 to vector<8x128xf32>
    %148 = arith.subf %147, %141 : vector<8x128xf32>
    %149 = arith.mulf %148, %146 : vector<8x128xf32>
    %150 = arith.mulf %141, %77 : vector<8x128xf32>
    %151 = arith.addf %149, %150 : vector<8x128xf32>
    %152 = arith.index_cast %c1_i32 : i32 to index
    %c0_39 = arith.constant 0 : index
    %c0_40 = arith.constant 0 : index
    %153 = vector.load %arg6[%152, %c0_39, %c0_40] : memref<8x8x256xf32, #tpu.memory_space<vmem>>, vector<1x8x128xf32>
    %154 = vector.shape_cast %153 : vector<1x8x128xf32> to vector<8x128xf32>
    %155 = vector.shape_cast %121 : vector<8x128xf32> to vector<1x8x128xf32>
    tpu.vector_store %arg6[%152, %c0_39, %c0_40], %155 {strides = array<i32>} : memref<8x8x256xf32, #tpu.memory_space<vmem>>, vector<1x8x128xf32>,
    %156 = arith.index_cast %86 : i32 to index
    %c0_41 = arith.constant 0 : index
    %c128_42 = arith.constant 128 : index
    %157 = vector.load %arg6[%156, %c0_41, %c128_42] : memref<8x8x256xf32, #tpu.memory_space<vmem>>, vector<1x8x128xf32>
    %158 = vector.shape_cast %157 : vector<1x8x128xf32> to vector<8x128xf32>
    %159 = vector.shape_cast %151 : vector<8x128xf32> to vector<1x8x128xf32>
    tpu.vector_store %arg6[%156, %c0_41, %c128_42], %159 {strides = array<i32>} : memref<8x8x256xf32, #tpu.memory_space<vmem>>, vector<1x8x128xf32>,
    %c2_i32 = arith.constant 2 : i32
    %c7_i32_43 = arith.constant 7 : i32
    %160 = arith.subi %c7_i32_43, %c2_i32 : i32
    %161 = tpu.concatenate %121, %151 in 1 : vector<8x128xf32>, vector<8x128xf32> -> vector<8x256xf32>
    %162 = arith.truncf %161 : vector<8x256xf32> to vector<8x256xbf16>
    %cst_44 = arith.constant dense<0.000000e+00> : vector<8x768xf32>
    %163 = tpu.matmul %162, %9, %cst_44 {dimension_numbers = #tpu.dot_dimension_numbers<[1], [0], [0], [1], [0, 0, 1, 1], [], []>} : vector<8x256xbf16>, vector<256x768xbf16>, vector<8x768xf32> -> vector<8x768xf32>
    %164 = vector.broadcast %10 : vector<1x768xf32> to vector<8x768xf32>
    %165 = arith.addf %163, %164 : vector<8x768xf32>
    %166 = arith.index_cast %c2_i32 : i32 to index
    %c0_45 = arith.constant 0 : index
    %c0_46 = arith.constant 0 : index
    %167 = vector.load %arg9[%166, %c0_45, %c0_46] : memref<8x8x768xf32, #tpu.memory_space<vmem>>, vector<1x8x384xf32>
    %168 = vector.shape_cast %167 : vector<1x8x384xf32> to vector<8x384xf32>
    %169 = vector.extract_strided_slice %165 {offsets = [0, 0], sizes = [8, 384], strides = [1, 1]} : vector<8x768xf32> to vector<8x384xf32>
    %170 = vector.extract_strided_slice %168 {offsets = [0, 0], sizes = [8, 128], strides = [1, 1]} : vector<8x384xf32> to vector<8x128xf32>
    %171 = vector.extract_strided_slice %169 {offsets = [0, 0], sizes = [8, 128], strides = [1, 1]} : vector<8x384xf32> to vector<8x128xf32>
    %172 = arith.addf %170, %171 : vector<8x128xf32>
    %173 = arith.negf %172 : vector<8x128xf32>
    %174 = math.exp %173 : vector<8x128xf32>
    %cst_47 = arith.constant 1.000000e+00 : f32
    %175 = vector.broadcast %cst_47 : f32 to vector<8x128xf32>
    %176 = arith.addf %175, %174 : vector<8x128xf32>
    %177 = arith.divf %175, %176 : vector<8x128xf32>
    %178 = vector.extract_strided_slice %168 {offsets = [0, 128], sizes = [8, 128], strides = [1, 1]} : vector<8x384xf32> to vector<8x128xf32>
    %179 = vector.extract_strided_slice %169 {offsets = [0, 128], sizes = [8, 128], strides = [1, 1]} : vector<8x384xf32> to vector<8x128xf32>
    %180 = arith.addf %178, %179 : vector<8x128xf32>
    %181 = arith.negf %180 : vector<8x128xf32>
    %182 = math.exp %181 : vector<8x128xf32>
    %cst_48 = arith.constant 1.000000e+00 : f32
    %183 = vector.broadcast %cst_48 : f32 to vector<8x128xf32>
    %184 = arith.addf %183, %182 : vector<8x128xf32>
    %185 = arith.divf %183, %184 : vector<8x128xf32>
    %186 = vector.extract_strided_slice %168 {offsets = [0, 256], sizes = [8, 128], strides = [1, 1]} : vector<8x384xf32> to vector<8x128xf32>
    %187 = vector.extract_strided_slice %169 {offsets = [0, 256], sizes = [8, 128], strides = [1, 1]} : vector<8x384xf32> to vector<8x128xf32>
    %188 = arith.mulf %177, %187 : vector<8x128xf32>
    %189 = arith.addf %186, %188 : vector<8x128xf32>
    %190 = math.tanh %189 : vector<8x128xf32>
    %cst_49 = arith.constant 1.000000e+00 : f32
    %191 = vector.broadcast %cst_49 : f32 to vector<8x128xf32>
    %192 = arith.subf %191, %185 : vector<8x128xf32>
    %193 = arith.mulf %192, %190 : vector<8x128xf32>
    %194 = arith.mulf %185, %121 : vector<8x128xf32>
    %195 = arith.addf %193, %194 : vector<8x128xf32>
    %196 = arith.index_cast %160 : i32 to index
    %c0_50 = arith.constant 0 : index
    %c384_51 = arith.constant 384 : index
    %197 = vector.load %arg9[%196, %c0_50, %c384_51] : memref<8x8x768xf32, #tpu.memory_space<vmem>>, vector<1x8x384xf32>
    %198 = vector.shape_cast %197 : vector<1x8x384xf32> to vector<8x384xf32>
    %199 = vector.extract_strided_slice %165 {offsets = [0, 384], sizes = [8, 384], strides = [1, 1]} : vector<8x768xf32> to vector<8x384xf32>
    %200 = vector.extract_strided_slice %198 {offsets = [0, 0], sizes = [8, 128], strides = [1, 1]} : vector<8x384xf32> to vector<8x128xf32>
    %201 = vector.extract_strided_slice %199 {offsets = [0, 0], sizes = [8, 128], strides = [1, 1]} : vector<8x384xf32> to vector<8x128xf32>
    %202 = arith.addf %200, %201 : vector<8x128xf32>
    %203 = arith.negf %202 : vector<8x128xf32>
    %204 = math.exp %203 : vector<8x128xf32>
    %cst_52 = arith.constant 1.000000e+00 : f32
    %205 = vector.broadcast %cst_52 : f32 to vector<8x128xf32>
    %206 = arith.addf %205, %204 : vector<8x128xf32>
    %207 = arith.divf %205, %206 : vector<8x128xf32>
    %208 = vector.extract_strided_slice %198 {offsets = [0, 128], sizes = [8, 128], strides = [1, 1]} : vector<8x384xf32> to vector<8x128xf32>
    %209 = vector.extract_strided_slice %199 {offsets = [0, 128], sizes = [8, 128], strides = [1, 1]} : vector<8x384xf32> to vector<8x128xf32>
    %210 = arith.addf %208, %209 : vector<8x128xf32>
    %211 = arith.negf %210 : vector<8x128xf32>
    %212 = math.exp %211 : vector<8x128xf32>
    %cst_53 = arith.constant 1.000000e+00 : f32
    %213 = vector.broadcast %cst_53 : f32 to vector<8x128xf32>
    %214 = arith.addf %213, %212 : vector<8x128xf32>
    %215 = arith.divf %213, %214 : vector<8x128xf32>
    %216 = vector.extract_strided_slice %198 {offsets = [0, 256], sizes = [8, 128], strides = [1, 1]} : vector<8x384xf32> to vector<8x128xf32>
    %217 = vector.extract_strided_slice %199 {offsets = [0, 256], sizes = [8, 128], strides = [1, 1]} : vector<8x384xf32> to vector<8x128xf32>
    %218 = arith.mulf %207, %217 : vector<8x128xf32>
    %219 = arith.addf %216, %218 : vector<8x128xf32>
    %220 = math.tanh %219 : vector<8x128xf32>
    %cst_54 = arith.constant 1.000000e+00 : f32
    %221 = vector.broadcast %cst_54 : f32 to vector<8x128xf32>
    %222 = arith.subf %221, %215 : vector<8x128xf32>
    %223 = arith.mulf %222, %220 : vector<8x128xf32>
    %224 = arith.mulf %215, %151 : vector<8x128xf32>
    %225 = arith.addf %223, %224 : vector<8x128xf32>
    %226 = arith.index_cast %c2_i32 : i32 to index
    %c0_55 = arith.constant 0 : index
    %c0_56 = arith.constant 0 : index
    %227 = vector.load %arg6[%226, %c0_55, %c0_56] : memref<8x8x256xf32, #tpu.memory_space<vmem>>, vector<1x8x128xf32>
    %228 = vector.shape_cast %227 : vector<1x8x128xf32> to vector<8x128xf32>
    %229 = vector.shape_cast %195 : vector<8x128xf32> to vector<1x8x128xf32>
    tpu.vector_store %arg6[%226, %c0_55, %c0_56], %229 {strides = array<i32>} : memref<8x8x256xf32, #tpu.memory_space<vmem>>, vector<1x8x128xf32>,
    %230 = arith.index_cast %160 : i32 to index
    %c0_57 = arith.constant 0 : index
    %c128_58 = arith.constant 128 : index
    %231 = vector.load %arg6[%230, %c0_57, %c128_58] : memref<8x8x256xf32, #tpu.memory_space<vmem>>, vector<1x8x128xf32>
    %232 = vector.shape_cast %231 : vector<1x8x128xf32> to vector<8x128xf32>
    %233 = vector.shape_cast %225 : vector<8x128xf32> to vector<1x8x128xf32>
    tpu.vector_store %arg6[%230, %c0_57, %c128_58], %233 {strides = array<i32>} : memref<8x8x256xf32, #tpu.memory_space<vmem>>, vector<1x8x128xf32>,
    %c3_i32 = arith.constant 3 : i32
    %c7_i32_59 = arith.constant 7 : i32
    %234 = arith.subi %c7_i32_59, %c3_i32 : i32
    %235 = tpu.concatenate %195, %225 in 1 : vector<8x128xf32>, vector<8x128xf32> -> vector<8x256xf32>
    %236 = arith.truncf %235 : vector<8x256xf32> to vector<8x256xbf16>
    %cst_60 = arith.constant dense<0.000000e+00> : vector<8x768xf32>
    %237 = tpu.matmul %236, %9, %cst_60 {dimension_numbers = #tpu.dot_dimension_numbers<[1], [0], [0], [1], [0, 0, 1, 1], [], []>} : vector<8x256xbf16>, vector<256x768xbf16>, vector<8x768xf32> -> vector<8x768xf32>
    %238 = vector.broadcast %10 : vector<1x768xf32> to vector<8x768xf32>
    %239 = arith.addf %237, %238 : vector<8x768xf32>
    %240 = arith.index_cast %c3_i32 : i32 to index
    %c0_61 = arith.constant 0 : index
    %c0_62 = arith.constant 0 : index
    %241 = vector.load %arg9[%240, %c0_61, %c0_62] : memref<8x8x768xf32, #tpu.memory_space<vmem>>, vector<1x8x384xf32>
    %242 = vector.shape_cast %241 : vector<1x8x384xf32> to vector<8x384xf32>
    %243 = vector.extract_strided_slice %239 {offsets = [0, 0], sizes = [8, 384], strides = [1, 1]} : vector<8x768xf32> to vector<8x384xf32>
    %244 = vector.extract_strided_slice %242 {offsets = [0, 0], sizes = [8, 128], strides = [1, 1]} : vector<8x384xf32> to vector<8x128xf32>
    %245 = vector.extract_strided_slice %243 {offsets = [0, 0], sizes = [8, 128], strides = [1, 1]} : vector<8x384xf32> to vector<8x128xf32>
    %246 = arith.addf %244, %245 : vector<8x128xf32>
    %247 = arith.negf %246 : vector<8x128xf32>
    %248 = math.exp %247 : vector<8x128xf32>
    %cst_63 = arith.constant 1.000000e+00 : f32
    %249 = vector.broadcast %cst_63 : f32 to vector<8x128xf32>
    %250 = arith.addf %249, %248 : vector<8x128xf32>
    %251 = arith.divf %249, %250 : vector<8x128xf32>
    %252 = vector.extract_strided_slice %242 {offsets = [0, 128], sizes = [8, 128], strides = [1, 1]} : vector<8x384xf32> to vector<8x128xf32>
    %253 = vector.extract_strided_slice %243 {offsets = [0, 128], sizes = [8, 128], strides = [1, 1]} : vector<8x384xf32> to vector<8x128xf32>
    %254 = arith.addf %252, %253 : vector<8x128xf32>
    %255 = arith.negf %254 : vector<8x128xf32>
    %256 = math.exp %255 : vector<8x128xf32>
    %cst_64 = arith.constant 1.000000e+00 : f32
    %257 = vector.broadcast %cst_64 : f32 to vector<8x128xf32>
    %258 = arith.addf %257, %256 : vector<8x128xf32>
    %259 = arith.divf %257, %258 : vector<8x128xf32>
    %260 = vector.extract_strided_slice %242 {offsets = [0, 256], sizes = [8, 128], strides = [1, 1]} : vector<8x384xf32> to vector<8x128xf32>
    %261 = vector.extract_strided_slice %243 {offsets = [0, 256], sizes = [8, 128], strides = [1, 1]} : vector<8x384xf32> to vector<8x128xf32>
    %262 = arith.mulf %251, %261 : vector<8x128xf32>
    %263 = arith.addf %260, %262 : vector<8x128xf32>
    %264 = math.tanh %263 : vector<8x128xf32>
    %cst_65 = arith.constant 1.000000e+00 : f32
    %265 = vector.broadcast %cst_65 : f32 to vector<8x128xf32>
    %266 = arith.subf %265, %259 : vector<8x128xf32>
    %267 = arith.mulf %266, %264 : vector<8x128xf32>
    %268 = arith.mulf %259, %195 : vector<8x128xf32>
    %269 = arith.addf %267, %268 : vector<8x128xf32>
    %270 = arith.index_cast %234 : i32 to index
    %c0_66 = arith.constant 0 : index
    %c384_67 = arith.constant 384 : index
    %271 = vector.load %arg9[%270, %c0_66, %c384_67] : memref<8x8x768xf32, #tpu.memory_space<vmem>>, vector<1x8x384xf32>
    %272 = vector.shape_cast %271 : vector<1x8x384xf32> to vector<8x384xf32>
    %273 = vector.extract_strided_slice %239 {offsets = [0, 384], sizes = [8, 384], strides = [1, 1]} : vector<8x768xf32> to vector<8x384xf32>
    %274 = vector.extract_strided_slice %272 {offsets = [0, 0], sizes = [8, 128], strides = [1, 1]} : vector<8x384xf32> to vector<8x128xf32>
    %275 = vector.extract_strided_slice %273 {offsets = [0, 0], sizes = [8, 128], strides = [1, 1]} : vector<8x384xf32> to vector<8x128xf32>
    %276 = arith.addf %274, %275 : vector<8x128xf32>
    %277 = arith.negf %276 : vector<8x128xf32>
    %278 = math.exp %277 : vector<8x128xf32>
    %cst_68 = arith.constant 1.000000e+00 : f32
    %279 = vector.broadcast %cst_68 : f32 to vector<8x128xf32>
    %280 = arith.addf %279, %278 : vector<8x128xf32>
    %281 = arith.divf %279, %280 : vector<8x128xf32>
    %282 = vector.extract_strided_slice %272 {offsets = [0, 128], sizes = [8, 128], strides = [1, 1]} : vector<8x384xf32> to vector<8x128xf32>
    %283 = vector.extract_strided_slice %273 {offsets = [0, 128], sizes = [8, 128], strides = [1, 1]} : vector<8x384xf32> to vector<8x128xf32>
    %284 = arith.addf %282, %283 : vector<8x128xf32>
    %285 = arith.negf %284 : vector<8x128xf32>
    %286 = math.exp %285 : vector<8x128xf32>
    %cst_69 = arith.constant 1.000000e+00 : f32
    %287 = vector.broadcast %cst_69 : f32 to vector<8x128xf32>
    %288 = arith.addf %287, %286 : vector<8x128xf32>
    %289 = arith.divf %287, %288 : vector<8x128xf32>
    %290 = vector.extract_strided_slice %272 {offsets = [0, 256], sizes = [8, 128], strides = [1, 1]} : vector<8x384xf32> to vector<8x128xf32>
    %291 = vector.extract_strided_slice %273 {offsets = [0, 256], sizes = [8, 128], strides = [1, 1]} : vector<8x384xf32> to vector<8x128xf32>
    %292 = arith.mulf %281, %291 : vector<8x128xf32>
    %293 = arith.addf %290, %292 : vector<8x128xf32>
    %294 = math.tanh %293 : vector<8x128xf32>
    %cst_70 = arith.constant 1.000000e+00 : f32
    %295 = vector.broadcast %cst_70 : f32 to vector<8x128xf32>
    %296 = arith.subf %295, %289 : vector<8x128xf32>
    %297 = arith.mulf %296, %294 : vector<8x128xf32>
    %298 = arith.mulf %289, %225 : vector<8x128xf32>
    %299 = arith.addf %297, %298 : vector<8x128xf32>
    %300 = arith.index_cast %c3_i32 : i32 to index
    %c0_71 = arith.constant 0 : index
    %c0_72 = arith.constant 0 : index
    %301 = vector.load %arg6[%300, %c0_71, %c0_72] : memref<8x8x256xf32, #tpu.memory_space<vmem>>, vector<1x8x128xf32>
    %302 = vector.shape_cast %301 : vector<1x8x128xf32> to vector<8x128xf32>
    %303 = vector.shape_cast %269 : vector<8x128xf32> to vector<1x8x128xf32>
    tpu.vector_store %arg6[%300, %c0_71, %c0_72], %303 {strides = array<i32>} : memref<8x8x256xf32, #tpu.memory_space<vmem>>, vector<1x8x128xf32>,
    %304 = arith.index_cast %234 : i32 to index
    %c0_73 = arith.constant 0 : index
    %c128_74 = arith.constant 128 : index
    %305 = vector.load %arg6[%304, %c0_73, %c128_74] : memref<8x8x256xf32, #tpu.memory_space<vmem>>, vector<1x8x128xf32>
    %306 = vector.shape_cast %305 : vector<1x8x128xf32> to vector<8x128xf32>
    %307 = vector.shape_cast %299 : vector<8x128xf32> to vector<1x8x128xf32>
    tpu.vector_store %arg6[%304, %c0_73, %c128_74], %307 {strides = array<i32>} : memref<8x8x256xf32, #tpu.memory_space<vmem>>, vector<1x8x128xf32>,
    %c4_i32 = arith.constant 4 : i32
    %c7_i32_75 = arith.constant 7 : i32
    %308 = arith.subi %c7_i32_75, %c4_i32 : i32
    %309 = tpu.concatenate %269, %299 in 1 : vector<8x128xf32>, vector<8x128xf32> -> vector<8x256xf32>
    %310 = arith.truncf %309 : vector<8x256xf32> to vector<8x256xbf16>
    %cst_76 = arith.constant dense<0.000000e+00> : vector<8x768xf32>
    %311 = tpu.matmul %310, %9, %cst_76 {dimension_numbers = #tpu.dot_dimension_numbers<[1], [0], [0], [1], [0, 0, 1, 1], [], []>} : vector<8x256xbf16>, vector<256x768xbf16>, vector<8x768xf32> -> vector<8x768xf32>
    %312 = vector.broadcast %10 : vector<1x768xf32> to vector<8x768xf32>
    %313 = arith.addf %311, %312 : vector<8x768xf32>
    %314 = arith.index_cast %c4_i32 : i32 to index
    %c0_77 = arith.constant 0 : index
    %c0_78 = arith.constant 0 : index
    %315 = vector.load %arg9[%314, %c0_77, %c0_78] : memref<8x8x768xf32, #tpu.memory_space<vmem>>, vector<1x8x384xf32>
    %316 = vector.shape_cast %315 : vector<1x8x384xf32> to vector<8x384xf32>
    %317 = vector.extract_strided_slice %313 {offsets = [0, 0], sizes = [8, 384], strides = [1, 1]} : vector<8x768xf32> to vector<8x384xf32>
    %318 = vector.extract_strided_slice %316 {offsets = [0, 0], sizes = [8, 128], strides = [1, 1]} : vector<8x384xf32> to vector<8x128xf32>
    %319 = vector.extract_strided_slice %317 {offsets = [0, 0], sizes = [8, 128], strides = [1, 1]} : vector<8x384xf32> to vector<8x128xf32>
    %320 = arith.addf %318, %319 : vector<8x128xf32>
    %321 = arith.negf %320 : vector<8x128xf32>
    %322 = math.exp %321 : vector<8x128xf32>
    %cst_79 = arith.constant 1.000000e+00 : f32
    %323 = vector.broadcast %cst_79 : f32 to vector<8x128xf32>
    %324 = arith.addf %323, %322 : vector<8x128xf32>
    %325 = arith.divf %323, %324 : vector<8x128xf32>
    %326 = vector.extract_strided_slice %316 {offsets = [0, 128], sizes = [8, 128], strides = [1, 1]} : vector<8x384xf32> to vector<8x128xf32>
    %327 = vector.extract_strided_slice %317 {offsets = [0, 128], sizes = [8, 128], strides = [1, 1]} : vector<8x384xf32> to vector<8x128xf32>
    %328 = arith.addf %326, %327 : vector<8x128xf32>
    %329 = arith.negf %328 : vector<8x128xf32>
    %330 = math.exp %329 : vector<8x128xf32>
    %cst_80 = arith.constant 1.000000e+00 : f32
    %331 = vector.broadcast %cst_80 : f32 to vector<8x128xf32>
    %332 = arith.addf %331, %330 : vector<8x128xf32>
    %333 = arith.divf %331, %332 : vector<8x128xf32>
    %334 = vector.extract_strided_slice %316 {offsets = [0, 256], sizes = [8, 128], strides = [1, 1]} : vector<8x384xf32> to vector<8x128xf32>
    %335 = vector.extract_strided_slice %317 {offsets = [0, 256], sizes = [8, 128], strides = [1, 1]} : vector<8x384xf32> to vector<8x128xf32>
    %336 = arith.mulf %325, %335 : vector<8x128xf32>
    %337 = arith.addf %334, %336 : vector<8x128xf32>
    %338 = math.tanh %337 : vector<8x128xf32>
    %cst_81 = arith.constant 1.000000e+00 : f32
    %339 = vector.broadcast %cst_81 : f32 to vector<8x128xf32>
    %340 = arith.subf %339, %333 : vector<8x128xf32>
    %341 = arith.mulf %340, %338 : vector<8x128xf32>
    %342 = arith.mulf %333, %269 : vector<8x128xf32>
    %343 = arith.addf %341, %342 : vector<8x128xf32>
    %344 = arith.index_cast %308 : i32 to index
    %c0_82 = arith.constant 0 : index
    %c384_83 = arith.constant 384 : index
    %345 = vector.load %arg9[%344, %c0_82, %c384_83] : memref<8x8x768xf32, #tpu.memory_space<vmem>>, vector<1x8x384xf32>
    %346 = vector.shape_cast %345 : vector<1x8x384xf32> to vector<8x384xf32>
    %347 = vector.extract_strided_slice %313 {offsets = [0, 384], sizes = [8, 384], strides = [1, 1]} : vector<8x768xf32> to vector<8x384xf32>
    %348 = vector.extract_strided_slice %346 {offsets = [0, 0], sizes = [8, 128], strides = [1, 1]} : vector<8x384xf32> to vector<8x128xf32>
    %349 = vector.extract_strided_slice %347 {offsets = [0, 0], sizes = [8, 128], strides = [1, 1]} : vector<8x384xf32> to vector<8x128xf32>
    %350 = arith.addf %348, %349 : vector<8x128xf32>
    %351 = arith.negf %350 : vector<8x128xf32>
    %352 = math.exp %351 : vector<8x128xf32>
    %cst_84 = arith.constant 1.000000e+00 : f32
    %353 = vector.broadcast %cst_84 : f32 to vector<8x128xf32>
    %354 = arith.addf %353, %352 : vector<8x128xf32>
    %355 = arith.divf %353, %354 : vector<8x128xf32>
    %356 = vector.extract_strided_slice %346 {offsets = [0, 128], sizes = [8, 128], strides = [1, 1]} : vector<8x384xf32> to vector<8x128xf32>
    %357 = vector.extract_strided_slice %347 {offsets = [0, 128], sizes = [8, 128], strides = [1, 1]} : vector<8x384xf32> to vector<8x128xf32>
    %358 = arith.addf %356, %357 : vector<8x128xf32>
    %359 = arith.negf %358 : vector<8x128xf32>
    %360 = math.exp %359 : vector<8x128xf32>
    %cst_85 = arith.constant 1.000000e+00 : f32
    %361 = vector.broadcast %cst_85 : f32 to vector<8x128xf32>
    %362 = arith.addf %361, %360 : vector<8x128xf32>
    %363 = arith.divf %361, %362 : vector<8x128xf32>
    %364 = vector.extract_strided_slice %346 {offsets = [0, 256], sizes = [8, 128], strides = [1, 1]} : vector<8x384xf32> to vector<8x128xf32>
    %365 = vector.extract_strided_slice %347 {offsets = [0, 256], sizes = [8, 128], strides = [1, 1]} : vector<8x384xf32> to vector<8x128xf32>
    %366 = arith.mulf %355, %365 : vector<8x128xf32>
    %367 = arith.addf %364, %366 : vector<8x128xf32>
    %368 = math.tanh %367 : vector<8x128xf32>
    %cst_86 = arith.constant 1.000000e+00 : f32
    %369 = vector.broadcast %cst_86 : f32 to vector<8x128xf32>
    %370 = arith.subf %369, %363 : vector<8x128xf32>
    %371 = arith.mulf %370, %368 : vector<8x128xf32>
    %372 = arith.mulf %363, %299 : vector<8x128xf32>
    %373 = arith.addf %371, %372 : vector<8x128xf32>
    %374 = arith.index_cast %c4_i32 : i32 to index
    %c0_87 = arith.constant 0 : index
    %c0_88 = arith.constant 0 : index
    %375 = vector.load %arg6[%374, %c0_87, %c0_88] : memref<8x8x256xf32, #tpu.memory_space<vmem>>, vector<1x8x128xf32>
    %376 = vector.shape_cast %375 : vector<1x8x128xf32> to vector<8x128xf32>
    %377 = vector.shape_cast %343 : vector<8x128xf32> to vector<1x8x128xf32>
    tpu.vector_store %arg6[%374, %c0_87, %c0_88], %377 {strides = array<i32>} : memref<8x8x256xf32, #tpu.memory_space<vmem>>, vector<1x8x128xf32>,
    %378 = arith.index_cast %308 : i32 to index
    %c0_89 = arith.constant 0 : index
    %c128_90 = arith.constant 128 : index
    %379 = vector.load %arg6[%378, %c0_89, %c128_90] : memref<8x8x256xf32, #tpu.memory_space<vmem>>, vector<1x8x128xf32>
    %380 = vector.shape_cast %379 : vector<1x8x128xf32> to vector<8x128xf32>
    %381 = vector.shape_cast %373 : vector<8x128xf32> to vector<1x8x128xf32>
    tpu.vector_store %arg6[%378, %c0_89, %c128_90], %381 {strides = array<i32>} : memref<8x8x256xf32, #tpu.memory_space<vmem>>, vector<1x8x128xf32>,
    %c5_i32 = arith.constant 5 : i32
    %c7_i32_91 = arith.constant 7 : i32
    %382 = arith.subi %c7_i32_91, %c5_i32 : i32
    %383 = tpu.concatenate %343, %373 in 1 : vector<8x128xf32>, vector<8x128xf32> -> vector<8x256xf32>
    %384 = arith.truncf %383 : vector<8x256xf32> to vector<8x256xbf16>
    %cst_92 = arith.constant dense<0.000000e+00> : vector<8x768xf32>
    %385 = tpu.matmul %384, %9, %cst_92 {dimension_numbers = #tpu.dot_dimension_numbers<[1], [0], [0], [1], [0, 0, 1, 1], [], []>} : vector<8x256xbf16>, vector<256x768xbf16>, vector<8x768xf32> -> vector<8x768xf32>
    %386 = vector.broadcast %10 : vector<1x768xf32> to vector<8x768xf32>
    %387 = arith.addf %385, %386 : vector<8x768xf32>
    %388 = arith.index_cast %c5_i32 : i32 to index
    %c0_93 = arith.constant 0 : index
    %c0_94 = arith.constant 0 : index
    %389 = vector.load %arg9[%388, %c0_93, %c0_94] : memref<8x8x768xf32, #tpu.memory_space<vmem>>, vector<1x8x384xf32>
    %390 = vector.shape_cast %389 : vector<1x8x384xf32> to vector<8x384xf32>
    %391 = vector.extract_strided_slice %387 {offsets = [0, 0], sizes = [8, 384], strides = [1, 1]} : vector<8x768xf32> to vector<8x384xf32>
    %392 = vector.extract_strided_slice %390 {offsets = [0, 0], sizes = [8, 128], strides = [1, 1]} : vector<8x384xf32> to vector<8x128xf32>
    %393 = vector.extract_strided_slice %391 {offsets = [0, 0], sizes = [8, 128], strides = [1, 1]} : vector<8x384xf32> to vector<8x128xf32>
    %394 = arith.addf %392, %393 : vector<8x128xf32>
    %395 = arith.negf %394 : vector<8x128xf32>
    %396 = math.exp %395 : vector<8x128xf32>
    %cst_95 = arith.constant 1.000000e+00 : f32
    %397 = vector.broadcast %cst_95 : f32 to vector<8x128xf32>
    %398 = arith.addf %397, %396 : vector<8x128xf32>
    %399 = arith.divf %397, %398 : vector<8x128xf32>
    %400 = vector.extract_strided_slice %390 {offsets = [0, 128], sizes = [8, 128], strides = [1, 1]} : vector<8x384xf32> to vector<8x128xf32>
    %401 = vector.extract_strided_slice %391 {offsets = [0, 128], sizes = [8, 128], strides = [1, 1]} : vector<8x384xf32> to vector<8x128xf32>
    %402 = arith.addf %400, %401 : vector<8x128xf32>
    %403 = arith.negf %402 : vector<8x128xf32>
    %404 = math.exp %403 : vector<8x128xf32>
    %cst_96 = arith.constant 1.000000e+00 : f32
    %405 = vector.broadcast %cst_96 : f32 to vector<8x128xf32>
    %406 = arith.addf %405, %404 : vector<8x128xf32>
    %407 = arith.divf %405, %406 : vector<8x128xf32>
    %408 = vector.extract_strided_slice %390 {offsets = [0, 256], sizes = [8, 128], strides = [1, 1]} : vector<8x384xf32> to vector<8x128xf32>
    %409 = vector.extract_strided_slice %391 {offsets = [0, 256], sizes = [8, 128], strides = [1, 1]} : vector<8x384xf32> to vector<8x128xf32>
    %410 = arith.mulf %399, %409 : vector<8x128xf32>
    %411 = arith.addf %408, %410 : vector<8x128xf32>
    %412 = math.tanh %411 : vector<8x128xf32>
    %cst_97 = arith.constant 1.000000e+00 : f32
    %413 = vector.broadcast %cst_97 : f32 to vector<8x128xf32>
    %414 = arith.subf %413, %407 : vector<8x128xf32>
    %415 = arith.mulf %414, %412 : vector<8x128xf32>
    %416 = arith.mulf %407, %343 : vector<8x128xf32>
    %417 = arith.addf %415, %416 : vector<8x128xf32>
    %418 = arith.index_cast %382 : i32 to index
    %c0_98 = arith.constant 0 : index
    %c384_99 = arith.constant 384 : index
    %419 = vector.load %arg9[%418, %c0_98, %c384_99] : memref<8x8x768xf32, #tpu.memory_space<vmem>>, vector<1x8x384xf32>
    %420 = vector.shape_cast %419 : vector<1x8x384xf32> to vector<8x384xf32>
    %421 = vector.extract_strided_slice %387 {offsets = [0, 384], sizes = [8, 384], strides = [1, 1]} : vector<8x768xf32> to vector<8x384xf32>
    %422 = vector.extract_strided_slice %420 {offsets = [0, 0], sizes = [8, 128], strides = [1, 1]} : vector<8x384xf32> to vector<8x128xf32>
    %423 = vector.extract_strided_slice %421 {offsets = [0, 0], sizes = [8, 128], strides = [1, 1]} : vector<8x384xf32> to vector<8x128xf32>
    %424 = arith.addf %422, %423 : vector<8x128xf32>
    %425 = arith.negf %424 : vector<8x128xf32>
    %426 = math.exp %425 : vector<8x128xf32>
    %cst_100 = arith.constant 1.000000e+00 : f32
    %427 = vector.broadcast %cst_100 : f32 to vector<8x128xf32>
    %428 = arith.addf %427, %426 : vector<8x128xf32>
    %429 = arith.divf %427, %428 : vector<8x128xf32>
    %430 = vector.extract_strided_slice %420 {offsets = [0, 128], sizes = [8, 128], strides = [1, 1]} : vector<8x384xf32> to vector<8x128xf32>
    %431 = vector.extract_strided_slice %421 {offsets = [0, 128], sizes = [8, 128], strides = [1, 1]} : vector<8x384xf32> to vector<8x128xf32>
    %432 = arith.addf %430, %431 : vector<8x128xf32>
    %433 = arith.negf %432 : vector<8x128xf32>
    %434 = math.exp %433 : vector<8x128xf32>
    %cst_101 = arith.constant 1.000000e+00 : f32
    %435 = vector.broadcast %cst_101 : f32 to vector<8x128xf32>
    %436 = arith.addf %435, %434 : vector<8x128xf32>
    %437 = arith.divf %435, %436 : vector<8x128xf32>
    %438 = vector.extract_strided_slice %420 {offsets = [0, 256], sizes = [8, 128], strides = [1, 1]} : vector<8x384xf32> to vector<8x128xf32>
    %439 = vector.extract_strided_slice %421 {offsets = [0, 256], sizes = [8, 128], strides = [1, 1]} : vector<8x384xf32> to vector<8x128xf32>
    %440 = arith.mulf %429, %439 : vector<8x128xf32>
    %441 = arith.addf %438, %440 : vector<8x128xf32>
    %442 = math.tanh %441 : vector<8x128xf32>
    %cst_102 = arith.constant 1.000000e+00 : f32
    %443 = vector.broadcast %cst_102 : f32 to vector<8x128xf32>
    %444 = arith.subf %443, %437 : vector<8x128xf32>
    %445 = arith.mulf %444, %442 : vector<8x128xf32>
    %446 = arith.mulf %437, %373 : vector<8x128xf32>
    %447 = arith.addf %445, %446 : vector<8x128xf32>
    %448 = arith.index_cast %c5_i32 : i32 to index
    %c0_103 = arith.constant 0 : index
    %c0_104 = arith.constant 0 : index
    %449 = vector.load %arg6[%448, %c0_103, %c0_104] : memref<8x8x256xf32, #tpu.memory_space<vmem>>, vector<1x8x128xf32>
    %450 = vector.shape_cast %449 : vector<1x8x128xf32> to vector<8x128xf32>
    %451 = vector.shape_cast %417 : vector<8x128xf32> to vector<1x8x128xf32>
    tpu.vector_store %arg6[%448, %c0_103, %c0_104], %451 {strides = array<i32>} : memref<8x8x256xf32, #tpu.memory_space<vmem>>, vector<1x8x128xf32>,
    %452 = arith.index_cast %382 : i32 to index
    %c0_105 = arith.constant 0 : index
    %c128_106 = arith.constant 128 : index
    %453 = vector.load %arg6[%452, %c0_105, %c128_106] : memref<8x8x256xf32, #tpu.memory_space<vmem>>, vector<1x8x128xf32>
    %454 = vector.shape_cast %453 : vector<1x8x128xf32> to vector<8x128xf32>
    %455 = vector.shape_cast %447 : vector<8x128xf32> to vector<1x8x128xf32>
    tpu.vector_store %arg6[%452, %c0_105, %c128_106], %455 {strides = array<i32>} : memref<8x8x256xf32, #tpu.memory_space<vmem>>, vector<1x8x128xf32>,
    %c6_i32 = arith.constant 6 : i32
    %c7_i32_107 = arith.constant 7 : i32
    %456 = arith.subi %c7_i32_107, %c6_i32 : i32
    %457 = tpu.concatenate %417, %447 in 1 : vector<8x128xf32>, vector<8x128xf32> -> vector<8x256xf32>
    %458 = arith.truncf %457 : vector<8x256xf32> to vector<8x256xbf16>
    %cst_108 = arith.constant dense<0.000000e+00> : vector<8x768xf32>
    %459 = tpu.matmul %458, %9, %cst_108 {dimension_numbers = #tpu.dot_dimension_numbers<[1], [0], [0], [1], [0, 0, 1, 1], [], []>} : vector<8x256xbf16>, vector<256x768xbf16>, vector<8x768xf32> -> vector<8x768xf32>
    %460 = vector.broadcast %10 : vector<1x768xf32> to vector<8x768xf32>
    %461 = arith.addf %459, %460 : vector<8x768xf32>
    %462 = arith.index_cast %c6_i32 : i32 to index
    %c0_109 = arith.constant 0 : index
    %c0_110 = arith.constant 0 : index
    %463 = vector.load %arg9[%462, %c0_109, %c0_110] : memref<8x8x768xf32, #tpu.memory_space<vmem>>, vector<1x8x384xf32>
    %464 = vector.shape_cast %463 : vector<1x8x384xf32> to vector<8x384xf32>
    %465 = vector.extract_strided_slice %461 {offsets = [0, 0], sizes = [8, 384], strides = [1, 1]} : vector<8x768xf32> to vector<8x384xf32>
    %466 = vector.extract_strided_slice %464 {offsets = [0, 0], sizes = [8, 128], strides = [1, 1]} : vector<8x384xf32> to vector<8x128xf32>
    %467 = vector.extract_strided_slice %465 {offsets = [0, 0], sizes = [8, 128], strides = [1, 1]} : vector<8x384xf32> to vector<8x128xf32>
    %468 = arith.addf %466, %467 : vector<8x128xf32>
    %469 = arith.negf %468 : vector<8x128xf32>
    %470 = math.exp %469 : vector<8x128xf32>
    %cst_111 = arith.constant 1.000000e+00 : f32
    %471 = vector.broadcast %cst_111 : f32 to vector<8x128xf32>
    %472 = arith.addf %471, %470 : vector<8x128xf32>
    %473 = arith.divf %471, %472 : vector<8x128xf32>
    %474 = vector.extract_strided_slice %464 {offsets = [0, 128], sizes = [8, 128], strides = [1, 1]} : vector<8x384xf32> to vector<8x128xf32>
    %475 = vector.extract_strided_slice %465 {offsets = [0, 128], sizes = [8, 128], strides = [1, 1]} : vector<8x384xf32> to vector<8x128xf32>
    %476 = arith.addf %474, %475 : vector<8x128xf32>
    %477 = arith.negf %476 : vector<8x128xf32>
    %478 = math.exp %477 : vector<8x128xf32>
    %cst_112 = arith.constant 1.000000e+00 : f32
    %479 = vector.broadcast %cst_112 : f32 to vector<8x128xf32>
    %480 = arith.addf %479, %478 : vector<8x128xf32>
    %481 = arith.divf %479, %480 : vector<8x128xf32>
    %482 = vector.extract_strided_slice %464 {offsets = [0, 256], sizes = [8, 128], strides = [1, 1]} : vector<8x384xf32> to vector<8x128xf32>
    %483 = vector.extract_strided_slice %465 {offsets = [0, 256], sizes = [8, 128], strides = [1, 1]} : vector<8x384xf32> to vector<8x128xf32>
    %484 = arith.mulf %473, %483 : vector<8x128xf32>
    %485 = arith.addf %482, %484 : vector<8x128xf32>
    %486 = math.tanh %485 : vector<8x128xf32>
    %cst_113 = arith.constant 1.000000e+00 : f32
    %487 = vector.broadcast %cst_113 : f32 to vector<8x128xf32>
    %488 = arith.subf %487, %481 : vector<8x128xf32>
    %489 = arith.mulf %488, %486 : vector<8x128xf32>
    %490 = arith.mulf %481, %417 : vector<8x128xf32>
    %491 = arith.addf %489, %490 : vector<8x128xf32>
    %492 = arith.index_cast %456 : i32 to index
    %c0_114 = arith.constant 0 : index
    %c384_115 = arith.constant 384 : index
    %493 = vector.load %arg9[%492, %c0_114, %c384_115] : memref<8x8x768xf32, #tpu.memory_space<vmem>>, vector<1x8x384xf32>
    %494 = vector.shape_cast %493 : vector<1x8x384xf32> to vector<8x384xf32>
    %495 = vector.extract_strided_slice %461 {offsets = [0, 384], sizes = [8, 384], strides = [1, 1]} : vector<8x768xf32> to vector<8x384xf32>
    %496 = vector.extract_strided_slice %494 {offsets = [0, 0], sizes = [8, 128], strides = [1, 1]} : vector<8x384xf32> to vector<8x128xf32>
    %497 = vector.extract_strided_slice %495 {offsets = [0, 0], sizes = [8, 128], strides = [1, 1]} : vector<8x384xf32> to vector<8x128xf32>
    %498 = arith.addf %496, %497 : vector<8x128xf32>
    %499 = arith.negf %498 : vector<8x128xf32>
    %500 = math.exp %499 : vector<8x128xf32>
    %cst_116 = arith.constant 1.000000e+00 : f32
    %501 = vector.broadcast %cst_116 : f32 to vector<8x128xf32>
    %502 = arith.addf %501, %500 : vector<8x128xf32>
    %503 = arith.divf %501, %502 : vector<8x128xf32>
    %504 = vector.extract_strided_slice %494 {offsets = [0, 128], sizes = [8, 128], strides = [1, 1]} : vector<8x384xf32> to vector<8x128xf32>
    %505 = vector.extract_strided_slice %495 {offsets = [0, 128], sizes = [8, 128], strides = [1, 1]} : vector<8x384xf32> to vector<8x128xf32>
    %506 = arith.addf %504, %505 : vector<8x128xf32>
    %507 = arith.negf %506 : vector<8x128xf32>
    %508 = math.exp %507 : vector<8x128xf32>
    %cst_117 = arith.constant 1.000000e+00 : f32
    %509 = vector.broadcast %cst_117 : f32 to vector<8x128xf32>
    %510 = arith.addf %509, %508 : vector<8x128xf32>
    %511 = arith.divf %509, %510 : vector<8x128xf32>
    %512 = vector.extract_strided_slice %494 {offsets = [0, 256], sizes = [8, 128], strides = [1, 1]} : vector<8x384xf32> to vector<8x128xf32>
    %513 = vector.extract_strided_slice %495 {offsets = [0, 256], sizes = [8, 128], strides = [1, 1]} : vector<8x384xf32> to vector<8x128xf32>
    %514 = arith.mulf %503, %513 : vector<8x128xf32>
    %515 = arith.addf %512, %514 : vector<8x128xf32>
    %516 = math.tanh %515 : vector<8x128xf32>
    %cst_118 = arith.constant 1.000000e+00 : f32
    %517 = vector.broadcast %cst_118 : f32 to vector<8x128xf32>
    %518 = arith.subf %517, %511 : vector<8x128xf32>
    %519 = arith.mulf %518, %516 : vector<8x128xf32>
    %520 = arith.mulf %511, %447 : vector<8x128xf32>
    %521 = arith.addf %519, %520 : vector<8x128xf32>
    %522 = arith.index_cast %c6_i32 : i32 to index
    %c0_119 = arith.constant 0 : index
    %c0_120 = arith.constant 0 : index
    %523 = vector.load %arg6[%522, %c0_119, %c0_120] : memref<8x8x256xf32, #tpu.memory_space<vmem>>, vector<1x8x128xf32>
    %524 = vector.shape_cast %523 : vector<1x8x128xf32> to vector<8x128xf32>
    %525 = vector.shape_cast %491 : vector<8x128xf32> to vector<1x8x128xf32>
    tpu.vector_store %arg6[%522, %c0_119, %c0_120], %525 {strides = array<i32>} : memref<8x8x256xf32, #tpu.memory_space<vmem>>, vector<1x8x128xf32>,
    %526 = arith.index_cast %456 : i32 to index
    %c0_121 = arith.constant 0 : index
    %c128_122 = arith.constant 128 : index
    %527 = vector.load %arg6[%526, %c0_121, %c128_122] : memref<8x8x256xf32, #tpu.memory_space<vmem>>, vector<1x8x128xf32>
    %528 = vector.shape_cast %527 : vector<1x8x128xf32> to vector<8x128xf32>
    %529 = vector.shape_cast %521 : vector<8x128xf32> to vector<1x8x128xf32>
    tpu.vector_store %arg6[%526, %c0_121, %c128_122], %529 {strides = array<i32>} : memref<8x8x256xf32, #tpu.memory_space<vmem>>, vector<1x8x128xf32>,
    %c7_i32_123 = arith.constant 7 : i32
    %c7_i32_124 = arith.constant 7 : i32
    %530 = arith.subi %c7_i32_124, %c7_i32_123 : i32
    %531 = tpu.concatenate %491, %521 in 1 : vector<8x128xf32>, vector<8x128xf32> -> vector<8x256xf32>
    %532 = arith.truncf %531 : vector<8x256xf32> to vector<8x256xbf16>
    %cst_125 = arith.constant dense<0.000000e+00> : vector<8x768xf32>
    %533 = tpu.matmul %532, %9, %cst_125 {dimension_numbers = #tpu.dot_dimension_numbers<[1], [0], [0], [1], [0, 0, 1, 1], [], []>} : vector<8x256xbf16>, vector<256x768xbf16>, vector<8x768xf32> -> vector<8x768xf32>
    %534 = vector.broadcast %10 : vector<1x768xf32> to vector<8x768xf32>
    %535 = arith.addf %533, %534 : vector<8x768xf32>
    %536 = arith.index_cast %c7_i32_123 : i32 to index
    %c0_126 = arith.constant 0 : index
    %c0_127 = arith.constant 0 : index
    %537 = vector.load %arg9[%536, %c0_126, %c0_127] : memref<8x8x768xf32, #tpu.memory_space<vmem>>, vector<1x8x384xf32>
    %538 = vector.shape_cast %537 : vector<1x8x384xf32> to vector<8x384xf32>
    %539 = vector.extract_strided_slice %535 {offsets = [0, 0], sizes = [8, 384], strides = [1, 1]} : vector<8x768xf32> to vector<8x384xf32>
    %540 = vector.extract_strided_slice %538 {offsets = [0, 0], sizes = [8, 128], strides = [1, 1]} : vector<8x384xf32> to vector<8x128xf32>
    %541 = vector.extract_strided_slice %539 {offsets = [0, 0], sizes = [8, 128], strides = [1, 1]} : vector<8x384xf32> to vector<8x128xf32>
    %542 = arith.addf %540, %541 : vector<8x128xf32>
    %543 = arith.negf %542 : vector<8x128xf32>
    %544 = math.exp %543 : vector<8x128xf32>
    %cst_128 = arith.constant 1.000000e+00 : f32
    %545 = vector.broadcast %cst_128 : f32 to vector<8x128xf32>
    %546 = arith.addf %545, %544 : vector<8x128xf32>
    %547 = arith.divf %545, %546 : vector<8x128xf32>
    %548 = vector.extract_strided_slice %538 {offsets = [0, 128], sizes = [8, 128], strides = [1, 1]} : vector<8x384xf32> to vector<8x128xf32>
    %549 = vector.extract_strided_slice %539 {offsets = [0, 128], sizes = [8, 128], strides = [1, 1]} : vector<8x384xf32> to vector<8x128xf32>
    %550 = arith.addf %548, %549 : vector<8x128xf32>
    %551 = arith.negf %550 : vector<8x128xf32>
    %552 = math.exp %551 : vector<8x128xf32>
    %cst_129 = arith.constant 1.000000e+00 : f32
    %553 = vector.broadcast %cst_129 : f32 to vector<8x128xf32>
    %554 = arith.addf %553, %552 : vector<8x128xf32>
    %555 = arith.divf %553, %554 : vector<8x128xf32>
    %556 = vector.extract_strided_slice %538 {offsets = [0, 256], sizes = [8, 128], strides = [1, 1]} : vector<8x384xf32> to vector<8x128xf32>
    %557 = vector.extract_strided_slice %539 {offsets = [0, 256], sizes = [8, 128], strides = [1, 1]} : vector<8x384xf32> to vector<8x128xf32>
    %558 = arith.mulf %547, %557 : vector<8x128xf32>
    %559 = arith.addf %556, %558 : vector<8x128xf32>
    %560 = math.tanh %559 : vector<8x128xf32>
    %cst_130 = arith.constant 1.000000e+00 : f32
    %561 = vector.broadcast %cst_130 : f32 to vector<8x128xf32>
    %562 = arith.subf %561, %555 : vector<8x128xf32>
    %563 = arith.mulf %562, %560 : vector<8x128xf32>
    %564 = arith.mulf %555, %491 : vector<8x128xf32>
    %565 = arith.addf %563, %564 : vector<8x128xf32>
    %566 = arith.index_cast %530 : i32 to index
    %c0_131 = arith.constant 0 : index
    %c384_132 = arith.constant 384 : index
    %567 = vector.load %arg9[%566, %c0_131, %c384_132] : memref<8x8x768xf32, #tpu.memory_space<vmem>>, vector<1x8x384xf32>
    %568 = vector.shape_cast %567 : vector<1x8x384xf32> to vector<8x384xf32>
    %569 = vector.extract_strided_slice %535 {offsets = [0, 384], sizes = [8, 384], strides = [1, 1]} : vector<8x768xf32> to vector<8x384xf32>
    %570 = vector.extract_strided_slice %568 {offsets = [0, 0], sizes = [8, 128], strides = [1, 1]} : vector<8x384xf32> to vector<8x128xf32>
    %571 = vector.extract_strided_slice %569 {offsets = [0, 0], sizes = [8, 128], strides = [1, 1]} : vector<8x384xf32> to vector<8x128xf32>
    %572 = arith.addf %570, %571 : vector<8x128xf32>
    %573 = arith.negf %572 : vector<8x128xf32>
    %574 = math.exp %573 : vector<8x128xf32>
    %cst_133 = arith.constant 1.000000e+00 : f32
    %575 = vector.broadcast %cst_133 : f32 to vector<8x128xf32>
    %576 = arith.addf %575, %574 : vector<8x128xf32>
    %577 = arith.divf %575, %576 : vector<8x128xf32>
    %578 = vector.extract_strided_slice %568 {offsets = [0, 128], sizes = [8, 128], strides = [1, 1]} : vector<8x384xf32> to vector<8x128xf32>
    %579 = vector.extract_strided_slice %569 {offsets = [0, 128], sizes = [8, 128], strides = [1, 1]} : vector<8x384xf32> to vector<8x128xf32>
    %580 = arith.addf %578, %579 : vector<8x128xf32>
    %581 = arith.negf %580 : vector<8x128xf32>
    %582 = math.exp %581 : vector<8x128xf32>
    %cst_134 = arith.constant 1.000000e+00 : f32
    %583 = vector.broadcast %cst_134 : f32 to vector<8x128xf32>
    %584 = arith.addf %583, %582 : vector<8x128xf32>
    %585 = arith.divf %583, %584 : vector<8x128xf32>
    %586 = vector.extract_strided_slice %568 {offsets = [0, 256], sizes = [8, 128], strides = [1, 1]} : vector<8x384xf32> to vector<8x128xf32>
    %587 = vector.extract_strided_slice %569 {offsets = [0, 256], sizes = [8, 128], strides = [1, 1]} : vector<8x384xf32> to vector<8x128xf32>
    %588 = arith.mulf %577, %587 : vector<8x128xf32>
    %589 = arith.addf %586, %588 : vector<8x128xf32>
    %590 = math.tanh %589 : vector<8x128xf32>
    %cst_135 = arith.constant 1.000000e+00 : f32
    %591 = vector.broadcast %cst_135 : f32 to vector<8x128xf32>
    %592 = arith.subf %591, %585 : vector<8x128xf32>
    %593 = arith.mulf %592, %590 : vector<8x128xf32>
    %594 = arith.mulf %585, %521 : vector<8x128xf32>
    %595 = arith.addf %593, %594 : vector<8x128xf32>
    %596 = arith.index_cast %c7_i32_123 : i32 to index
    %c0_136 = arith.constant 0 : index
    %c0_137 = arith.constant 0 : index
    %597 = vector.load %arg6[%596, %c0_136, %c0_137] : memref<8x8x256xf32, #tpu.memory_space<vmem>>, vector<1x8x128xf32>
    %598 = vector.shape_cast %597 : vector<1x8x128xf32> to vector<8x128xf32>
    %599 = vector.shape_cast %565 : vector<8x128xf32> to vector<1x8x128xf32>
    tpu.vector_store %arg6[%596, %c0_136, %c0_137], %599 {strides = array<i32>} : memref<8x8x256xf32, #tpu.memory_space<vmem>>, vector<1x8x128xf32>,
    %600 = arith.index_cast %530 : i32 to index
    %c0_138 = arith.constant 0 : index
    %c128_139 = arith.constant 128 : index
    %601 = vector.load %arg6[%600, %c0_138, %c128_139] : memref<8x8x256xf32, #tpu.memory_space<vmem>>, vector<1x8x128xf32>
    %602 = vector.shape_cast %601 : vector<1x8x128xf32> to vector<8x128xf32>
    %603 = vector.shape_cast %595 : vector<8x128xf32> to vector<1x8x128xf32>
    tpu.vector_store %arg6[%600, %c0_138, %c128_139], %603 {strides = array<i32>} : memref<8x8x256xf32, #tpu.memory_space<vmem>>, vector<1x8x128xf32>,
    %c8_i32 = arith.constant 8 : i32
    %c0_140 = arith.constant 0 : index
    %c0_141 = arith.constant 0 : index
    %604 = vector.load %arg7[%c0_140, %c0_141] : memref<8x256xf32, #tpu.memory_space<vmem>>, vector<8x128xf32>
    tpu.vector_store %arg7[%c0_140, %c0_141], %565 {strides = array<i32>} : memref<8x256xf32, #tpu.memory_space<vmem>>, vector<8x128xf32>,
    %c0_142 = arith.constant 0 : index
    %c128_143 = arith.constant 128 : index
    %605 = vector.load %arg7[%c0_142, %c128_143] : memref<8x256xf32, #tpu.memory_space<vmem>>, vector<8x128xf32>
    tpu.vector_store %arg7[%c0_142, %c128_143], %595 {strides = array<i32>} : memref<8x256xf32, #tpu.memory_space<vmem>>, vector<8x128xf32>,
    %c0_144 = arith.constant 0 : index
    %c0_145 = arith.constant 0 : index
    %c0_146 = arith.constant 0 : index
    %606 = vector.load %arg6[%c0_144, %c0_145, %c0_146] : memref<8x8x256xf32, #tpu.memory_space<vmem>>, vector<8x8x256xf32>
    %607 = vector.shape_cast %606 : vector<8x8x256xf32> to vector<64x256xf32>
    %608 = arith.truncf %607 : vector<64x256xf32> to vector<64x256xbf16>
    %c0_147 = arith.constant 0 : index
    %c0_148 = arith.constant 0 : index
    %609 = vector.load %arg5[%c0_147, %c0_148] : memref<256x128xbf16, #tpu.memory_space<vmem>>, vector<256x128xbf16>
    %cst_149 = arith.constant dense<0.000000e+00> : vector<64x128xf32>
    %610 = tpu.matmul %608, %609, %cst_149 {dimension_numbers = #tpu.dot_dimension_numbers<[1], [0], [0], [1], [0, 0, 1, 1], [], []>} : vector<64x256xbf16>, vector<256x128xbf16>, vector<64x128xf32> -> vector<64x128xf32>
    %611 = vector.shape_cast %610 : vector<64x128xf32> to vector<8x8x128xf32>
    %c0_150 = arith.constant 0 : index
    %c0_151 = arith.constant 0 : index
    %c0_152 = arith.constant 0 : index
    %612 = vector.load %arg8[%c0_150, %c0_151, %c0_152] : memref<8x8x128xf32, #tpu.memory_space<vmem>>, vector<8x8x128xf32>
    tpu.vector_store %arg8[%c0_150, %c0_151, %c0_152], %611 {strides = array<i32>} : memref<8x8x128xf32, #tpu.memory_space<vmem>>, vector<8x8x128xf32>,
    return
  }
}

</mosaic_0001>

<bundles_post_ra>
// kernel: tpu_custom_call.1
= control target key start
LH: loop header
LB: loop body
LE: loop exit
PB: predicated region body
PF: predicated region fallthrough
CT: control target
= control target key end

     0   :  { %14 = vsyncpa [#allocation4], 0  ;;  %s6448_s0 = inlined_call_operand.hbm [shape: bf16[8,8,128], index: 0, kind: input, shape index: {}]   ;;  %s6449_s1 = inlined_call_operand.hbm [shape: bf16[128,768], index: 1, kind: input, shape index: {}]   ;;  %s6450_s2 = inlined_call_operand.hbm [shape: bf16[256,768], index: 2, kind: input, shape index: {}]   ;;  %s6451_s3 = inlined_call_operand.hbm [shape: f32[1,768], index: 3, kind: input, shape index: {}]   ;;  %s6452_s4 = inlined_call_operand.hbm [shape: f32[1,768], index: 4, kind: input, shape index: {}]   ;;  %s6453_s5 = inlined_call_operand.hbm [shape: bf16[256,128], index: 5, kind: input, shape index: {}]   ;;  %s6454_s6 = inlined_call_operand.hbm [shape: f32[8,8,256], index: 6, kind: output, shape index: {0}]   ;;  %s6455_s7 = inlined_call_operand.hbm [shape: f32[8,256], index: 7, kind: output, shape index: {1}]   ;;  %s6456_s8 = inlined_call_operand.hbm [shape: f32[8,8,128], index: 8, kind: output, shape index: {2}]  }
   0x1   :  { %15 = vsyncpa [#allocation7], 0 }
   0x2   :  { %16 = vsyncpa [#allocation10], 0 }
   0x3   :  { %17 = vsyncpa [#allocation13], 0 }
   0x4   :  { %18 = vsyncpa [#allocation5], 0  ;;  %s37_s29 = sshll.u32 %s6449_s1, 4  ;;  %s38_s29 = int_to_ptr.hbm [resolvable:$true] %s37_s29 }
   0x5   :  { %19 = vsyncpa [#allocation16], 0  ;;  %s4906_s30 = smov [#allocation6]   ;;  %s64_s12 = sshll.u32 %s6451_s3, 4  ;;  %s65_s12 = int_to_ptr.hbm [resolvable:$true] %s64_s12 }
   0x6   :  { %s39_s9 = sshll.u32 %s4906_s30, 4  ;;  %s4907_s13 = smov 384   ;;  %s40_s9 = int_to_ptr.vmem [resolvable:$true] %s39_s9 }
   0x7   :  { %s4908_s14 = smov 24   ;;  %s4909_s15 = smov [#allocation9]  }
   0x8   :  { %45 = dma.hbm_to_vmem [thread:$0]  %s38_s29, 6144, %s40_s9, [#allocation7], %s4907_s13, %s4907_s13, %s4908_s14  }
   0x9   :  { %s66_s16 = sshll.u32 %s4909_s15, 4  ;;  %s24_s19 = sshll.u32 %s6448_s0, 4  ;;  %s67_s16 = int_to_ptr.vmem [resolvable:$true] %s66_s16  ;;  %s25_s19 = int_to_ptr.hbm [resolvable:$true] %s24_s19 }
   0xa   :  { %69 = dma.hbm_to_vmem [thread:$0]  %s65_s12, 96, %s67_s16, [#allocation10]  }
   0xb   :  { %s4910_s1 = smov [#allocation3]   ;;  %s50_s3 = sshll.u32 %s6450_s2, 4  ;;  %s51_s3 = int_to_ptr.hbm [resolvable:$true] %s50_s3 }
   0xc   :  { %s26_s20 = sshll.u32 %s4910_s1, 4  ;;  %s4911_s23 = smov 64   ;;  %s27_s20 = int_to_ptr.vmem [resolvable:$true] %s26_s20 }
   0xd   :  { %s4912_s24 = smov 4   ;;  %s4913_s25 = smov [#allocation8]  }
   0xe   :  { %32 = dma.hbm_to_vmem [thread:$0]  %s25_s19, 512, %s27_s20, [#allocation4], %s4911_s23, %s4911_s23, %s4912_s24  }
   0xf   :  { %s52_s26 = sshll.u32 %s4913_s25, 4  ;;  %s75_s0 = sshll.u32 %s6452_s4, 4  ;;  %s53_s26 = int_to_ptr.vmem [resolvable:$true] %s52_s26  ;;  %s76_s0 = int_to_ptr.hbm [resolvable:$true] %s75_s0 }
  0x10   :  { %58 = dma.hbm_to_vmem [thread:$0]  %s51_s3, 12288, %s53_s26, [#allocation7], %s4907_s13, %s4907_s13, %s4908_s14  }
  0x11   :  { %s85_s9 = sshll.u32 %s6453_s5, 4  ;;  %s4914_s10 = smov [#allocation11]   ;;  %s86_s9 = int_to_ptr.hbm [resolvable:$true] %s85_s9 }
  0x12   :  { %s77_s11 = sshll.u32 %s4914_s10, 4  ;;  %s4915_s2 = smov [#allocation12]   ;;  %s78_s11 = int_to_ptr.vmem [resolvable:$true] %s77_s11 }
  0x13   :  { %80 = dma.hbm_to_vmem [thread:$0]  %s76_s0, 96, %s78_s11, [#allocation10]  }
  0x14   :  { %s87_s12 = sshll.u32 %s4915_s2, 4  ;;  %s88_s12 = int_to_ptr.vmem [resolvable:$true] %s87_s12 }
  0x15   :  { %93 = dma.hbm_to_vmem [thread:$0]  %s86_s9, 2048, %s88_s12, [#allocation13], %s4911_s23, %s4911_s23, %s4912_s24  }
  0x16   :  { %4894 = dma.done.wait [#allocation4], 512  }
  0x17   :  { %4895 = vsyncadd [#allocation4], 4294966784 }
  0x18   :  { %4896 = dma.done.wait [#allocation7], 18432  }
  0x19   :  { %4897 = vsyncadd [#allocation7], 4294948864 }
  0x1a   :  { %4898 = dma.done.wait [#allocation10], 192  }
  0x1b   :  { %4899 = vsyncadd [#allocation10], 4294967104 }
  0x1c   :  { %4900 = dma.done.wait [#allocation13], 2048  }
  0x1d   :  { %4901 = vsyncadd [#allocation13], 4294965248  ;;  %v3818_v0 = vld [vmem:[#allocation6 + $0x150] sm:$0xf]  ;;  %v4369_v1 = vld [vmem:[#allocation6 + $0x164] sm:$0xf0] }
  0x1e   :  { %v4366_v2 = vld [vmem:[#allocation6 + $0x154] sm:$0xf]  ;;  %v3819_v3 = vor.u32 %v4369_v1, %v3818_v0  ;;  %v3820_v4 = vld [vmem:[#allocation6 + $0x168] sm:$0xf0]  ;;  %v3794_v5 = vld [vmem:[#allocation6 + $0x120] sm:$0xf] }
  0x1f   :  { %v4363_v6 = vld [vmem:[#allocation6 + $0x134] sm:$0xf0]  ;;  %v3823_v7 = vor.u32 %v4366_v2, %v3820_v4  ;;  %v4360_v8 = vld [vmem:[#allocation6 + $0x124] sm:$0xf]  ;;  %v3796_v9 = vld [vmem:[#allocation6 + $0x138] sm:$0xf0] }
  0x20   :  { %452 = vmatpush.bf16.msra.mxu0 %v3819_v3  ;;  %4484 = vmatpush.bf16.msra.mxu2 %v3819_v3  ;;  %v3795_v10 = vor.u32 %v4363_v6, %v3794_v5  ;;  %v3799_v11 = vor.u32 %v4360_v8, %v3796_v9  ;;  %v3770_v12 = vld [vmem:[#allocation6 + $0xf0] sm:$0xf]  ;;  %v4357_v13 = vld [vmem:[#allocation6 + $0x104] sm:$0xf0]  ;;  %v4354_v14 = vld [vmem:[#allocation6 + $0xf4] sm:$0xf] }
  0x21   :  { %4492 = vmatpush.bf16.msra.mxu3 %v3823_v7  ;;  %481 = vmatpush.bf16.msra.mxu1 %v3823_v7  ;;  %v3772_v15 = vld [vmem:[#allocation6 + $0x108] sm:$0xf0]  ;;  %v3771_v16 = vor.u32 %v4357_v13, %v3770_v12  ;;  %v3746_v18 = vld [vmem:[#allocation6 + $0xc0] sm:$0xf]  ;;  %v4351_v19 = vld [vmem:[#allocation6 + $0xd4] sm:$0xf0] }
  0x22   :  { %v3775_v17 = vor.u32 %v4354_v14, %v3772_v15  ;;  %v4348_v20 = vld [vmem:[#allocation6 + $0xc4] sm:$0xf]  ;;  %v3748_v21 = vld [vmem:[#allocation6 + $0xd8] sm:$0xf0]  ;;  %v3747_v22 = vor.u32 %v4351_v19, %v3746_v18  ;;  %v3722_v24 = vld [vmem:[#allocation6 + $0x90] sm:$0xf] }
  0x23   :  { %v3751_v23 = vor.u32 %v4348_v20, %v3748_v21  ;;  %v4345_v25 = vld [vmem:[#allocation6 + $0xa4] sm:$0xf0]  ;;  %v4342_v26 = vld [vmem:[#allocation6 + $0x94] sm:$0xf]  ;;  %v3724_v27 = vld [vmem:[#allocation6 + $0xa8] sm:$0xf0] }
  0x24   :  { %453 = vmatpush.bf16.msra.mxu0 %v3795_v10  ;;  %4485 = vmatpush.bf16.msra.mxu2 %v3795_v10  ;;  %v3723_v28 = vor.u32 %v4345_v25, %v3722_v24  ;;  %v3727_v29 = vor.u32 %v4342_v26, %v3724_v27  ;;  %v3698_v30 = vld [vmem:[#allocation6 + $0x60] sm:$0xf]  ;;  %v4339_v31 = vld [vmem:[#allocation6 + $0x74] sm:$0xf0]  ;;  %v4336_v32 = vld [vmem:[#allocation6 + $0x64] sm:$0xf] }
  0x25   :  { %4493 = vmatpush.bf16.msra.mxu3 %v3799_v11  ;;  %482 = vmatpush.bf16.msra.mxu1 %v3799_v11  ;;  %v3700_v33 = vld [vmem:[#allocation6 + $0x78] sm:$0xf0]  ;;  %v3699_v34 = vor.u32 %v4339_v31, %v3698_v30  ;;  %v3674_v36 = vld [vmem:[#allocation6 + $0x30] sm:$0xf]  ;;  %v4333_v37 = vld [vmem:[#allocation6 + $0x44] sm:$0xf0] }
  0x26   :  { %v3703_v35 = vor.u32 %v4336_v32, %v3700_v33  ;;  %v4330_v38 = vld [vmem:[#allocation6 + $0x34] sm:$0xf]  ;;  %v3676_v39 = vld [vmem:[#allocation6 + $0x48] sm:$0xf0]  ;;  %v3675_v40 = vor.u32 %v4333_v37, %v3674_v36  ;;  %v3650_v42 = vld [vmem:[#allocation6] sm:$0xf] }
  0x27   :  { %v3679_v41 = vor.u32 %v4330_v38, %v3676_v39  ;;  %v4327_v43 = vld [vmem:[#allocation6 + $0x14] sm:$0xf0]  ;;  %v4324_v44 = vld [vmem:[#allocation6 + $0x4] sm:$0xf]  ;;  %v3652_v45 = vld [vmem:[#allocation6 + $0x18] sm:$0xf0] }
  0x28   :  { %454 = vmatpush.bf16.msra.mxu0 %v3771_v16  ;;  %4486 = vmatpush.bf16.msra.mxu2 %v3771_v16  ;;  %v3826_v46 = vld [vmem:[#allocation6 + $0x158] sm:$0xf]  ;;  %v4370_v47 = vld [vmem:[#allocation6 + $0x16c] sm:$0xf0]  ;;  %v4367_v48 = vld [vmem:[#allocation6 + $0x15c] sm:$0xf]  ;;  %v3651_v50 = vor.u32 %v4327_v43, %v3650_v42  ;;  %v3655_v51 = vor.u32 %v4324_v44, %v3652_v45 }
  0x29   :  { %4494 = vmatpush.bf16.msra.mxu3 %v3775_v17  ;;  %483 = vmatpush.bf16.msra.mxu1 %v3775_v17  ;;  %v3828_v49 = vld [vmem:[#allocation6 + $0x170] sm:$0xf0]  ;;  %v3834_v52 = vld [vmem:[#allocation6 + $0x160] sm:$0xf]  ;;  %v4371_v53 = vld [vmem:[#allocation6 + $0x174] sm:$0xf0]  ;;  %v3827_v56 = vor.u32 %v4370_v47, %v3826_v46 }
  0x2a   :  { %v4987_v54 = vld [vmem:[#allocation3] sm:$0xff]  ;;  %v4989_v55 = vld [vmem:[#allocation3 + $0x10] sm:$0xff]  ;;  %v3831_v57 = vor.u32 %v4367_v48, %v3828_v49  ;;  %v3836_v59 = vld [vmem:[#allocation6 + $0x178] sm:$0xf0]  ;;  %v3835_v62 = vor.u32 %v4371_v53, %v3834_v52  ;;  %s4917_s4 = smov [#allocation15]   ;;  %s3597_s15 = sshll.u32 %s6455_s7, 4  ;;  %s3598_s15 = int_to_ptr.hbm [resolvable:$true] %s3597_s15 }
  0x2b   :  { %v4368_v58 = vld [vmem:[#allocation6 + $0x164] sm:$0xf]  ;;  %v3802_v60 = vld [vmem:[#allocation6 + $0x128] sm:$0xf]  ;;  %v4364_v61 = vld [vmem:[#allocation6 + $0x13c] sm:$0xf0] }
  0x2c   :  { %455 = vmatpush.bf16.msra.mxu0 %v3747_v22  ;;  %4487 = vmatpush.bf16.msra.mxu2 %v3747_v22  ;;  %v4361_v63 = vld [vmem:[#allocation6 + $0x12c] sm:$0xf]  ;;  %v3804_v0 = vld [vmem:[#allocation6 + $0x140] sm:$0xf0]  ;;  %v3810_v1 = vld [vmem:[#allocation6 + $0x130] sm:$0xf]  ;;  %v3839_v3 = vor.u32 %v4368_v58, %v3836_v59  ;;  %v3803_v4 = vor.u32 %v4364_v61, %v3802_v60 }
  0x2d   :  { %4495 = vmatpush.bf16.msra.mxu3 %v3751_v23  ;;  %484 = vmatpush.bf16.msra.mxu1 %v3751_v23  ;;  %v4365_v2 = vld [vmem:[#allocation6 + $0x144] sm:$0xf0]  ;;  %v4362_v5 = vld [vmem:[#allocation6 + $0x134] sm:$0xf]  ;;  %v3807_v6 = vor.u32 %v4361_v63, %v3804_v0  ;;  %v3812_v7 = vld [vmem:[#allocation6 + $0x148] sm:$0xf0] }
  0x2e   :  { %v3778_v8 = vld [vmem:[#allocation6 + $0xf8] sm:$0xf]  ;;  %v4358_v9 = vld [vmem:[#allocation6 + $0x10c] sm:$0xf0]  ;;  %v3811_v10 = vor.u32 %v4365_v2, %v3810_v1  ;;  %v4355_v11 = vld [vmem:[#allocation6 + $0xfc] sm:$0xf]  ;;  %v3815_v15 = vor.u32 %v4362_v5, %v3812_v7 }
  0x2f   :  { %v3780_v12 = vld [vmem:[#allocation6 + $0x110] sm:$0xf0]  ;;  %v3786_v13 = vld [vmem:[#allocation6 + $0x100] sm:$0xf]  ;;  %v4359_v14 = vld [vmem:[#allocation6 + $0x114] sm:$0xf0]  ;;  %v3779_v16 = vor.u32 %v4358_v9, %v3778_v8 }
  0x30   :  { %456 = vmatpush.bf16.msra.mxu0 %v3723_v28  ;;  %4488 = vmatpush.bf16.msra.mxu2 %v3723_v28  ;;  %v4356_v17 = vld [vmem:[#allocation6 + $0x104] sm:$0xf]  ;;  %v3783_v18 = vor.u32 %v4355_v11, %v3780_v12  ;;  %v3788_v19 = vld [vmem:[#allocation6 + $0x118] sm:$0xf0]  ;;  %v3754_v20 = vld [vmem:[#allocation6 + $0xc8] sm:$0xf]  ;;  %v3787_v22 = vor.u32 %v4359_v14, %v3786_v13 }
  0x31   :  { %4496 = vmatpush.bf16.msra.mxu3 %v3727_v29  ;;  %485 = vmatpush.bf16.msra.mxu1 %v3727_v29  ;;  %v4352_v21 = vld [vmem:[#allocation6 + $0xdc] sm:$0xf0]  ;;  %v4349_v23 = vld [vmem:[#allocation6 + $0xcc] sm:$0xf]  ;;  %v3756_v24 = vld [vmem:[#allocation6 + $0xe0] sm:$0xf0]  ;;  %v3791_v27 = vor.u32 %v4356_v17, %v3788_v19 }
  0x32   :  { %v3762_v25 = vld [vmem:[#allocation6 + $0xd0] sm:$0xf]  ;;  %v4353_v26 = vld [vmem:[#allocation6 + $0xe4] sm:$0xf0]  ;;  %v3755_v28 = vor.u32 %v4352_v21, %v3754_v20  ;;  %v4350_v29 = vld [vmem:[#allocation6 + $0xd4] sm:$0xf]  ;;  %v3759_v30 = vor.u32 %v4349_v23, %v3756_v24 }
  0x33   :  { %v3764_v31 = vld [vmem:[#allocation6 + $0xe8] sm:$0xf0]  ;;  %v3730_v32 = vld [vmem:[#allocation6 + $0x98] sm:$0xf]  ;;  %v4346_v33 = vld [vmem:[#allocation6 + $0xac] sm:$0xf0] }
  0x34   :  { %457 = vmatpush.bf16.msra.mxu0 %v3699_v34  ;;  %4489 = vmatpush.bf16.msra.mxu2 %v3699_v34  ;;  %v3763_v34 = vor.u32 %v4353_v26, %v3762_v25  ;;  %v4997_v36 = vld [vmem:[#allocation3 + $0x18] sm:$0xff]  ;;  %v3738_v37 = vld [vmem:[#allocation6 + $0xa0] sm:$0xf]  ;;  %v3767_v39 = vor.u32 %v4350_v29, %v3764_v31  ;;  %v3732_v42 = vld [vmem:[#allocation6 + $0xb0] sm:$0xf0]  ;;  %s3595_s5 = sshll.u32 %s4917_s4, 4  ;;  %s3596_s5 = int_to_ptr.vmem [resolvable:$true] %s3595_s5 }
  0x35   :  { %4497 = vmatpush.bf16.msra.mxu3 %v3703_v35  ;;  %486 = vmatpush.bf16.msra.mxu1 %v3703_v35  ;;  %v4995_v35 = vld [vmem:[#allocation3 + $0x8] sm:$0xff]  ;;  %v4347_v38 = vld [vmem:[#allocation6 + $0xb4] sm:$0xf0]  ;;  %v4344_v43 = vld [vmem:[#allocation6 + $0xa4] sm:$0xf]  ;;  %s3583_s18 = sshll.u32 %s6454_s6, 4  ;;  %s3584_s18 = int_to_ptr.hbm [resolvable:$true] %s3583_s18 }
  0x36   :  { %v3740_v44 = vld [vmem:[#allocation6 + $0xb8] sm:$0xf0]  ;;  %v3706_v45 = vld [vmem:[#allocation6 + $0x68] sm:$0xf]  ;;  %v4340_v46 = vld [vmem:[#allocation6 + $0x7c] sm:$0xf0]  ;;  %v3739_v47 = vor.u32 %v4347_v38, %v3738_v37 }
  0x37   :  { %v3714_v49 = vld [vmem:[#allocation6 + $0x70] sm:$0xf]  ;;  %v3707_v52 = vor.u32 %v4340_v46, %v3706_v45  ;;  %v4337_v53 = vld [vmem:[#allocation6 + $0x6c] sm:$0xf]  ;;  %v3682_v59 = vld [vmem:[#allocation6 + $0x38] sm:$0xf] }
  0x38   :  { %458 = vmatpush.bf16.msra.mxu0 %v3675_v40  ;;  %4490 = vmatpush.bf16.msra.mxu2 %v3675_v40  ;;  %v3731_v40 = vor.u32 %v4346_v33, %v3730_v32  ;;  %v3716_v58 = vld [vmem:[#allocation6 + $0x88] sm:$0xf0]  ;;  %v4334_v60 = vld [vmem:[#allocation6 + $0x4c] sm:$0xf0]  ;;  %v3690_v63 = vld [vmem:[#allocation6 + $0x40] sm:$0xf] }
  0x39   :  { %4498 = vmatpush.bf16.msra.mxu3 %v3679_v41  ;;  %487 = vmatpush.bf16.msra.mxu1 %v3679_v41  ;;  %v4343_v41 = vld [vmem:[#allocation6 + $0x9c] sm:$0xf]  ;;  %v4335_v0 = vld [vmem:[#allocation6 + $0x54] sm:$0xf0]  ;;  %v3683_v2 = vor.u32 %v4334_v60, %v3682_v59  ;;  %v4332_v5 = vld [vmem:[#allocation6 + $0x44] sm:$0xf] }
  0x3a   :  { %v3735_v48 = vor.u32 %v4343_v41, %v3732_v42  ;;  %v3658_v7 = vld [vmem:[#allocation6 + $0x8] sm:$0xf]  ;;  %v4328_v8 = vld [vmem:[#allocation6 + $0x1c] sm:$0xf0]  ;;  %v3691_v9 = vor.u32 %v4335_v0, %v3690_v63  ;;  %v4010_v11 = vld [vmem:[#allocation8 + $0x150] sm:$0xf] }
  0x3b   :  { %v4417_v12 = vld [vmem:[#allocation8 + $0x164] sm:$0xf0]  ;;  %v3660_v14 = vld [vmem:[#allocation6 + $0x20] sm:$0xf0]  ;;  %v4326_v19 = vld [vmem:[#allocation6 + $0x14] sm:$0xf] }
  0x3c   :  { %459 = vmatpush.bf16.msra.mxu0 %v3651_v50  ;;  %4491 = vmatpush.bf16.msra.mxu2 %v3651_v50  ;;  %v4341_v50 = vld [vmem:[#allocation6 + $0x84] sm:$0xf0]  ;;  %v4018_v20 = vld [vmem:[#allocation8 + $0x158] sm:$0xf]  ;;  %v4418_v21 = vld [vmem:[#allocation8 + $0x16c] sm:$0xf0]  ;;  %v5003_v23 = vor.u32 %v4417_v12, %v4010_v11 }
  0x3d   :  { %4499 = vmatpush.bf16.msra.mxu3 %v3655_v51  ;;  %488 = vmatpush.bf16.msra.mxu1 %v3655_v51  ;;  %v3743_v51 = vor.u32 %v4344_v43, %v3740_v44  ;;  %v3715_v61 = vor.u32 %v4341_v50, %v3714_v49  ;;  %v4202_v24 = vld [vmem:[#allocation8 + $0x2d0] sm:$0xf]  ;;  %v4465_v25 = vld [vmem:[#allocation8 + $0x2e4] sm:$0xf0]  ;;  %v4411_v29 = vld [vmem:[#allocation8 + $0x134] sm:$0xf0] }
  0x3e   :  { %6645 = vst [vmem:[#allocation24_spill] sm:$0xff] %v5003_v23  ;;  %v5007_v32 = vor.u32 %v4465_v25, %v4202_v24  ;;  %v4178_v33 = vld [vmem:[#allocation8 + $0x2a0] sm:$0xf]  ;;  %v4459_v38 = vld [vmem:[#allocation8 + $0x2b4] sm:$0xf0]  ;;  %s4918_s19 = smov [#allocation14]  }
  0x3f   :  { %460 = vmatmul.bf16.vlgmr.msra.gmra.mxu0 %v4987_v54  ;;  %470 = vmatmul.bf16.vlgmr.msra.gmra.mxu2 %v4989_v55  ;;  %v4412_v37 = vld [vmem:[#allocation8 + $0x13c] sm:$0xf0]  ;;  %v3962_v42 = vld [vmem:[#allocation8 + $0xf0] sm:$0xf]  ;;  %v4405_v43 = vld [vmem:[#allocation8 + $0x104] sm:$0xf0]  ;;  %v5016_v45 = vor.u32 %v4459_v38, %v4178_v33 }
  0x40   :  { %510 = vmatpush.bf16.msrb.mxu2 %v3827_v56  ;;  %499 = vmatmul.bf16.vlgmr.msra.gmra.mxu3 %v4989_v55  ;;  %v3708_v56 = vld [vmem:[#allocation6 + $0x80] sm:$0xf0]  ;;  %6647 = vst [vmem:[#allocation26_spill] sm:$0xff] %v5007_v32  ;;  %v4154_v46 = vld [vmem:[#allocation8 + $0x270] sm:$0xf]  ;;  %s3581_s1 = sshll.u32 %s4918_s19, 4  ;;  %s3582_s1 = int_to_ptr.vmem [resolvable:$true] %s3581_s1 }
  0x41   :  { %539 = vmatpush.bf16.msrb.mxu3 %v3831_v57  ;;  %568 = vmatpush.bf16.msrb.mxu0 %v3835_v62  ;;  %v4338_v57 = vld [vmem:[#allocation6 + $0x74] sm:$0xf]  ;;  %v3711_v62 = vor.u32 %v4337_v53, %v3708_v56  ;;  %6650 = vst [vmem:[#allocation29_spill] sm:$0xff] %v5016_v45  ;;  %v4406_v49 = vld [vmem:[#allocation8 + $0x10c] sm:$0xf0]  ;;  %v5024_v53 = vor.u32 %v4405_v43, %v3962_v42  ;;  %s4919_s20 = smov 256  }
  0x42   :  { %489 = vmatmul.bf16.vlgmr.msra.gmra.mxu1 %v4987_v54  ;;  %v3719_v1 = vor.u32 %v4338_v57, %v3716_v58  ;;  %v4453_v50 = vld [vmem:[#allocation8 + $0x284] sm:$0xf0]  ;;  %v3938_v56 = vld [vmem:[#allocation8 + $0xc0] sm:$0xf]  ;;  %v4399_v57 = vld [vmem:[#allocation8 + $0xd4] sm:$0xf0] }
  0x43   :  { %597 = vmatpush.bf16.msrb.mxu1 %v3839_v3  ;;  %v4331_v3 = vld [vmem:[#allocation6 + $0x3c] sm:$0xf]  ;;  %6652 = vst [vmem:[#allocation31_spill] sm:$0xff] %v5024_v53  ;;  %v5031_v59 = vor.u32 %v4453_v50, %v4154_v46  ;;  %v4130_v60 = vld [vmem:[#allocation8 + $0x240] sm:$0xf]  ;;  %s4920_s21 = smov 16  }
  0x44   :  { %511 = vmatpush.bf16.msrb.mxu2 %v3803_v4  ;;  %v3684_v4 = vld [vmem:[#allocation6 + $0x50] sm:$0xf0]  ;;  %v4400_v63 = vld [vmem:[#allocation8 + $0xdc] sm:$0xf0]  ;;  %v4447_v0 = vld [vmem:[#allocation8 + $0x254] sm:$0xf0] }
  0x45   :  { %540 = vmatpush.bf16.msrb.mxu3 %v3807_v6  ;;  %569 = vmatpush.bf16.msrb.mxu0 %v3811_v10  ;;  %v3692_v6 = vld [vmem:[#allocation6 + $0x58] sm:$0xf0]  ;;  %v4325_v10 = vld [vmem:[#allocation6 + $0xc] sm:$0xf]  ;;  %v3687_v13 = vor.u32 %v4331_v3, %v3684_v4  ;;  %6654 = vst [vmem:[#allocation33_spill] sm:$0xff] %v5031_v59  ;;  %s4921_s6 = smov [#allocation17]  }
  0x46   :  { %v3695_v17 = vor.u32 %v4332_v5, %v3692_v6  ;;  %v3914_v3 = vld [vmem:[#allocation8 + $0x90] sm:$0xf]  ;;  %v4393_v4 = vld [vmem:[#allocation8 + $0xa4] sm:$0xf0]  ;;  %v5043_v6 = vor.u32 %v4447_v0, %v4130_v60  ;;  %v4435_v24 = vld [vmem:[#allocation8 + $0x1f4] sm:$0xf0] }
  0x47   :  { %598 = vmatpush.bf16.msrb.mxu1 %v3815_v15  ;;  %v3666_v15 = vld [vmem:[#allocation6 + $0x10] sm:$0xf]  ;;  %v4441_v11 = vld [vmem:[#allocation8 + $0x224] sm:$0xf0]  ;;  %v4114_v25 = vld [vmem:[#allocation8 + $0x218] sm:$0xf] }
  0x48   :  { %512 = vmatpush.bf16.msrb.mxu2 %v3779_v16  ;;  %v4329_v16 = vld [vmem:[#allocation6 + $0x24] sm:$0xf0]  ;;  %6658 = vst [vmem:[#allocation37_spill] sm:$0xff] %v5043_v6  ;;  %v3874_v38 = vld [vmem:[#allocation8 + $0x38] sm:$0xf]  ;;  %s3605_s7 = sshll.u32 %s4921_s6, 4  ;;  %s3606_s7 = int_to_ptr.vmem [resolvable:$true] %s3605_s7 }
  0x49   :  { %541 = vmatpush.bf16.msrb.mxu3 %v3783_v18  ;;  %570 = vmatpush.bf16.msrb.mxu0 %v3787_v22  ;;  %v3659_v18 = vor.u32 %v4328_v8, %v3658_v7  ;;  %v3668_v22 = vld [vmem:[#allocation6 + $0x28] sm:$0xf0]  ;;  %v3667_v26 = vor.u32 %v4329_v16, %v3666_v15  ;;  %v4106_v7 = vld [vmem:[#allocation8 + $0x210] sm:$0xf]  ;;  %v4138_v12 = vld [vmem:[#allocation8 + $0x248] sm:$0xf] }
  0x4a   :  { %v3671_v31 = vor.u32 %v4326_v19, %v3668_v22  ;;  %v3890_v15 = vld [vmem:[#allocation8 + $0x60] sm:$0xf]  ;;  %v4387_v16 = vld [vmem:[#allocation8 + $0x74] sm:$0xf0]  ;;  %v4090_v42 = vld [vmem:[#allocation8 + $0x1e8] sm:$0xf] }
  0x4b   :  { %599 = vmatpush.bf16.msrb.mxu1 %v3791_v27  ;;  %v3663_v27 = vor.u32 %v4325_v10, %v3660_v14  ;;  %v4394_v10 = vld [vmem:[#allocation8 + $0xac] sm:$0xf0]  ;;  %v5049_v14 = vor.u32 %v4393_v4, %v3914_v3  ;;  %v4082_v19 = vld [vmem:[#allocation8 + $0x1e0] sm:$0xf]  ;;  %v4012_v60 = vld [vmem:[#allocation8 + $0x168] sm:$0xf0] }
  0x4c   :  { %513 = vmatpush.bf16.msrb.mxu2 %v3755_v28  ;;  %v3986_v28 = vld [vmem:[#allocation8 + $0x120] sm:$0xf]  ;;  %v5067_v33 = vor.u32 %v4435_v24, %v4082_v19  ;;  %v4204_v4 = vld [vmem:[#allocation8 + $0x2e8] sm:$0xf0]  ;;  %s3607_s23 = sshll.u32 %s6456_s8, 4  ;;  %s4922_s24 = smov 128   ;;  %s3608_s23 = int_to_ptr.hbm [resolvable:$true] %s3607_s23 }
  0x4d   :  { %542 = vmatpush.bf16.msrb.mxu3 %v3759_v30  ;;  %571 = vmatpush.bf16.msrb.mxu0 %v3763_v34  ;;  %v5005_v30 = vor.u32 %v4418_v21, %v4018_v20  ;;  %v3994_v34 = vld [vmem:[#allocation8 + $0x128] sm:$0xf]  ;;  %v5010_v41 = vor.u32 %v4411_v29, %v3986_v28  ;;  %6660 = vst [vmem:[#allocation39_spill] sm:$0xff] %v5049_v14  ;;  %v4388_v22 = vld [vmem:[#allocation8 + $0x7c] sm:$0xf0]  ;;  %s4923_s25 = smov 8  }
  0x4e   :  { %v5013_v44 = vor.u32 %v4412_v37, %v3994_v34  ;;  %v3898_v21 = vld [vmem:[#allocation8 + $0x68] sm:$0xf]  ;;  %v3866_v28 = vld [vmem:[#allocation8 + $0x30] sm:$0xf]  ;;  %6666 = vst [vmem:[#allocation45_spill] sm:$0xff] %v5067_v33 }
  0x4f   :  { %600 = vmatpush.bf16.msrb.mxu1 %v3767_v39  ;;  %465 = vmatmul.bf16.gmra.mxu0 %v4995_v35  ;;  %6646 = vst [vmem:[#allocation25_spill] sm:$0xff] %v5005_v30  ;;  %v4210_v39 = vld [vmem:[#allocation8 + $0x2d8] sm:$0xf]  ;;  %v4381_v29 = vld [vmem:[#allocation8 + $0x44] sm:$0xf0] }
  0x50   :  { %514 = vmatpush.bf16.msrb.mxu2 %v3731_v40  ;;  %504 = vmatmul.bf16.gmra.mxu3 %v4997_v36  ;;  %v4466_v40 = vld [vmem:[#allocation8 + $0x2ec] sm:$0xf0]  ;;  %6648 = vst [vmem:[#allocation27_spill] sm:$0xff] %v5010_v41  ;;  %v4436_v43 = vld [vmem:[#allocation8 + $0x1fc] sm:$0xf0]  ;;  %v5076_v46 = vor.u32 %v4381_v29, %v3866_v28 }
  0x51   :  { %475 = vmatmul.bf16.gmra.mxu2 %v4997_v36  ;;  %572 = vmatpush.bf16.msrb.mxu0 %v3739_v47  ;;  %6649 = vst [vmem:[#allocation28_spill] sm:$0xff] %v5013_v44  ;;  %v5018_v47 = vor.u32 %v4466_v40, %v4210_v39  ;;  %v4058_v34 = vld [vmem:[#allocation8 + $0x1b0] sm:$0xf]  ;;  %v4429_v40 = vld [vmem:[#allocation8 + $0x1c4] sm:$0xf0] }
  0x52   :  { %543 = vmatpush.bf16.msrb.mxu3 %v3735_v48  ;;  %494 = vmatmul.bf16.gmra.mxu1 %v4995_v35  ;;  %v3970_v48 = vld [vmem:[#allocation8 + $0xf8] sm:$0xf]  ;;  %v4382_v39 = vld [vmem:[#allocation8 + $0x4c] sm:$0xf0]  ;;  %6668 = vst [vmem:[#allocation47_spill] sm:$0xff] %v5076_v46 }
  0x53   :  { %601 = vmatpush.bf16.msrb.mxu1 %v3743_v51  ;;  %6651 = vst [vmem:[#allocation30_spill] sm:$0xff] %v5018_v47  ;;  %v4186_v51 = vld [vmem:[#allocation8 + $0x2a8] sm:$0xf]  ;;  %v5028_v58 = vor.u32 %v4406_v49, %v3970_v48  ;;  %v3842_v48 = vld [vmem:[#allocation8] sm:$0xf] }
  0x54   :  { %515 = vmatpush.bf16.msrb.mxu2 %v3707_v52  ;;  %v4460_v52 = vld [vmem:[#allocation8 + $0x2bc] sm:$0xf0]  ;;  %v4375_v49 = vld [vmem:[#allocation8 + $0x14] sm:$0xf0]  ;;  %v4456_v29 = vld [vmem:[#allocation8 + $0x2a4] sm:$0xf] }
  0x55   :  { %573 = vmatpush.bf16.msrb.mxu0 %v3715_v61  ;;  %6653 = vst [vmem:[#allocation32_spill] sm:$0xff] %v5028_v58  ;;  %v5034_v61 = vor.u32 %v4460_v52, %v4186_v51  ;;  %v4034_v50 = vld [vmem:[#allocation8 + $0x180] sm:$0xf]  ;;  %v4423_v51 = vld [vmem:[#allocation8 + $0x194] sm:$0xf0]  ;;  %v5089_v3 = vor.u32 %v4375_v49, %v3842_v48 }
  0x56   :  { %544 = vmatpush.bf16.msrb.mxu3 %v3711_v62  ;;  %v3946_v62 = vld [vmem:[#allocation8 + $0xc8] sm:$0xf]  ;;  %v4414_v52 = vld [vmem:[#allocation8 + $0x154] sm:$0xf]  ;;  %v4376_v0 = vld [vmem:[#allocation8 + $0x1c] sm:$0xf0] }
  0x57   :  { %602 = vmatpush.bf16.msrb.mxu1 %v3719_v1  ;;  %6655 = vst [vmem:[#allocation34_spill] sm:$0xff] %v5034_v61  ;;  %v4162_v1 = vld [vmem:[#allocation8 + $0x278] sm:$0xf]  ;;  %v5040_v5 = vor.u32 %v4400_v63, %v3946_v62  ;;  %v5086_v62 = vor.u32 %v4436_v43, %v4090_v42  ;;  %v3850_v63 = vld [vmem:[#allocation8 + $0x8] sm:$0xf] }
  0x58   :  { %516 = vmatpush.bf16.msrb.mxu2 %v3683_v2  ;;  %v5037_v2 = vor.u32 %v4399_v57, %v3938_v56  ;;  %v5080_v56 = vor.u32 %v4382_v39, %v3874_v38  ;;  %v5083_v57 = vor.u32 %v4429_v40, %v4058_v34  ;;  %6672 = vst [vmem:[#allocation51_spill] sm:$0xff] %v5089_v3  ;;  %v4424_v24 = vld [vmem:[#allocation8 + $0x19c] sm:$0xf0]  ;;  %v4467_v28 = vld [vmem:[#allocation8 + $0x2f4] sm:$0xf0] }
  0x59   :  { %574 = vmatpush.bf16.msrb.mxu0 %v3691_v9  ;;  %6657 = vst [vmem:[#allocation36_spill] sm:$0xff] %v5040_v5  ;;  %v3922_v9 = vld [vmem:[#allocation8 + $0x98] sm:$0xf]  ;;  %v4180_v34 = vld [vmem:[#allocation8 + $0x2b8] sm:$0xf0] }
  0x5a   :  { %545 = vmatpush.bf16.msrb.mxu3 %v3687_v13  ;;  %6656 = vst [vmem:[#allocation35_spill] sm:$0xff] %v5037_v2  ;;  %v4448_v13 = vld [vmem:[#allocation8 + $0x25c] sm:$0xf0]  ;;  %v4402_v38 = vld [vmem:[#allocation8 + $0xf4] sm:$0xf]  ;;  %v5120_v49 = vor.u32 %v4456_v29, %v4180_v34 }
  0x5b   :  { %603 = vmatpush.bf16.msrb.mxu1 %v3695_v17  ;;  %v5052_v17 = vor.u32 %v4394_v10, %v3922_v9  ;;  %v5058_v20 = vor.u32 %v4448_v13, %v4138_v12  ;;  %6669 = vst [vmem:[#allocation48_spill] sm:$0xff] %v5080_v56  ;;  %v4419_v9 = vld [vmem:[#allocation8 + $0x174] sm:$0xf0]  ;;  %v5091_v10 = vor.u32 %v4414_v52, %v4012_v60  ;;  %v4408_v13 = vld [vmem:[#allocation8 + $0x124] sm:$0xf] }
  0x5c   :  { %517 = vmatpush.bf16.msrb.mxu2 %v3659_v18  ;;  %v5055_v18 = vor.u32 %v4441_v11, %v4106_v7  ;;  %6670 = vst [vmem:[#allocation49_spill] sm:$0xff] %v5083_v57  ;;  %v4026_v7 = vld [vmem:[#allocation8 + $0x160] sm:$0xf]  ;;  %v5094_v11 = vor.u32 %v4376_v0, %v3850_v63  ;;  %v5097_v12 = vor.u32 %v4423_v51, %v4034_v50  ;;  %v3964_v40 = vld [vmem:[#allocation8 + $0x108] sm:$0xf0] }
  0x5d   :  { %575 = vmatpush.bf16.msrb.mxu0 %v3667_v26  ;;  %6661 = vst [vmem:[#allocation40_spill] sm:$0xff] %v5052_v17  ;;  %v4442_v26 = vld [vmem:[#allocation8 + $0x22c] sm:$0xf0]  ;;  %v4413_v43 = vld [vmem:[#allocation8 + $0x144] sm:$0xf0]  ;;  %v5122_v52 = vor.u32 %v4402_v38, %v3964_v40 }
  0x5e   :  { %546 = vmatpush.bf16.msrb.mxu3 %v3663_v27  ;;  %6662 = vst [vmem:[#allocation41_spill] sm:$0xff] %v5055_v18  ;;  %v5061_v27 = vor.u32 %v4387_v16, %v3890_v15  ;;  %v5070_v37 = vor.u32 %v4442_v26, %v4114_v25  ;;  %v3988_v15 = vld [vmem:[#allocation8 + $0x138] sm:$0xf0]  ;;  %v4218_v26 = vld [vmem:[#allocation8 + $0x2e0] sm:$0xf] }
  0x5f   :  { %604 = vmatpush.bf16.msrb.mxu1 %v3671_v31  ;;  %6663 = vst [vmem:[#allocation42_spill] sm:$0xff] %v5058_v20  ;;  %v5064_v31 = vor.u32 %v4388_v22, %v3898_v21  ;;  %v5104_v21 = vor.u32 %v4419_v9, %v4026_v7  ;;  %v4042_v22 = vld [vmem:[#allocation8 + $0x188] sm:$0xf]  ;;  %v5108_v25 = vor.u32 %v4408_v13, %v3988_v15  ;;  %v4002_v42 = vld [vmem:[#allocation8 + $0x130] sm:$0xf] }
  0x60   :  { %1265 = vmatpush.bf16.msra.mxu2 %v5003_v23  ;;  %576 = vmatmul.bf16.vlgmr.msrb.gmra.mxu0 %v4987_v54  ;;  %6664 = vst [vmem:[#allocation43_spill] sm:$0xff] %v5061_v27  ;;  %v5113_v39 = vor.u32 %v4424_v24, %v4042_v22  ;;  %v5117_v48 = vor.u32 %v4467_v28, %v4218_v26  ;;  %v4194_v50 = vld [vmem:[#allocation8 + $0x2b0] sm:$0xf]  ;;  %v4461_v51 = vld [vmem:[#allocation8 + $0x2c4] sm:$0xf0] }
  0x61   :  { %1317 = vmatpush.bf16.msra.mxu0 %v5005_v30  ;;  %518 = vmatmul.bf16.vlgmr.msrb.gmra.mxu2 %v4987_v54  ;;  %6665 = vst [vmem:[#allocation44_spill] sm:$0xff] %v5064_v31  ;;  %v4450_v60 = vld [vmem:[#allocation8 + $0x274] sm:$0xf]  ;;  %v4156_v63 = vld [vmem:[#allocation8 + $0x288] sm:$0xf0]  ;;  %v5131_v7 = vor.u32 %v4461_v51, %v4194_v50 }
  0x62   :  { %1278 = vmatpush.bf16.msra.mxu3 %v5007_v32  ;;  %605 = vmatmul.bf16.vlgmr.msrb.gmra.mxu1 %v4987_v54  ;;  %6667 = vst [vmem:[#allocation46_spill] sm:$0xff] %v5070_v37  ;;  %v4396_v0 = vld [vmem:[#allocation8 + $0xc4] sm:$0xf]  ;;  %v5135_v9 = vor.u32 %v4450_v60, %v4156_v63  ;;  %v4170_v13 = vld [vmem:[#allocation8 + $0x280] sm:$0xf] }
  0x63   :  { %547 = vmatmul.bf16.vlgmr.msrb.gmra.mxu3 %v4987_v54  ;;  %1330 = vmatpush.bf16.msra.mxu1 %v5018_v47  ;;  %v4454_v54 = vld [vmem:[#allocation8 + $0x28c] sm:$0xf0]  ;;  %6671 = vst [vmem:[#allocation50_spill] sm:$0xff] %v5086_v62  ;;  %v4455_v15 = vld [vmem:[#allocation8 + $0x294] sm:$0xf0] }
  0x64   :  { %1266 = vmatpush.bf16.msra.mxu2 %v5010_v41  ;;  %v5046_v8 = vor.u32 %v4454_v54, %v4162_v1  ;;  %v4462_v1 = vld [vmem:[#allocation8 + $0x2d4] sm:$0xf]  ;;  %v4430_v54 = vld [vmem:[#allocation8 + $0x1cc] sm:$0xf0]  ;;  %6673 = vst [vmem:[#allocation52_spill] sm:$0xff] %v5094_v11  ;;  %v5144_v40 = vor.u32 %v4455_v15, %v4170_v13 }
  0x65   :  { %1318 = vmatpush.bf16.msra.mxu0 %v5013_v44  ;;  %6674 = vst [vmem:[#allocation53_spill] sm:$0xff] %v5097_v12  ;;  %v5102_v19 = vor.u32 %v4462_v1, %v4204_v4  ;;  %v5125_v1 = vor.u32 %v4413_v43, %v4002_v42  ;;  %v4407_v4 = vld [vmem:[#allocation8 + $0x114] sm:$0xf0]  ;;  %v4444_v24 = vld [vmem:[#allocation8 + $0x244] sm:$0xf] }
  0x66   :  { %1279 = vmatpush.bf16.msra.mxu3 %v5016_v45  ;;  %6659 = vst [vmem:[#allocation38_spill] sm:$0xff] %v5046_v8  ;;  %v4132_v26 = vld [vmem:[#allocation8 + $0x258] sm:$0xf0]  ;;  %v4390_v28 = vld [vmem:[#allocation8 + $0x94] sm:$0xf] }
  0x67   :  { %1331 = vmatpush.bf16.msra.mxu1 %v5034_v61  ;;  %6676 = vst [vmem:[#allocation55_spill] sm:$0xff] %v5102_v19  ;;  %v3916_v34 = vld [vmem:[#allocation8 + $0xa8] sm:$0xf0]  ;;  %v3954_v38 = vld [vmem:[#allocation8 + $0xd0] sm:$0xf]  ;;  %v5147_v42 = vor.u32 %v4444_v24, %v4132_v26 }
  0x68   :  { %1267 = vmatpush.bf16.msra.mxu2 %v5024_v53  ;;  %6677 = vst [vmem:[#allocation56_spill] sm:$0xff] %v5104_v21  ;;  %v4146_v43 = vld [vmem:[#allocation8 + $0x250] sm:$0xf]  ;;  %v4449_v50 = vld [vmem:[#allocation8 + $0x264] sm:$0xf0]  ;;  %v5150_v51 = vor.u32 %v4390_v28, %v3916_v34 }
  0x69   :  { %1319 = vmatpush.bf16.msra.mxu0 %v5028_v58  ;;  %6678 = vst [vmem:[#allocation57_spill] sm:$0xff] %v5113_v39  ;;  %v4438_v60 = vld [vmem:[#allocation8 + $0x214] sm:$0xf]  ;;  %v4108_v63 = vld [vmem:[#allocation8 + $0x228] sm:$0xf0]  ;;  %v5156_v15 = vor.u32 %v4449_v50, %v4146_v43 }
  0x6a   :  { %1280 = vmatpush.bf16.msra.mxu3 %v5031_v59  ;;  %6679 = vst [vmem:[#allocation58_spill] sm:$0xff] %v5117_v48  ;;  %v4395_v13 = vld [vmem:[#allocation8 + $0xb4] sm:$0xf0]  ;;  %v5159_v24 = vor.u32 %v4438_v60, %v4108_v63  ;;  %v4122_v26 = vld [vmem:[#allocation8 + $0x220] sm:$0xf] }
  0x6b   :  { %1332 = vmatpush.bf16.msra.mxu1 %v5046_v8  ;;  %6680 = vst [vmem:[#allocation59_spill] sm:$0xff] %v5120_v49  ;;  %v4443_v28 = vld [vmem:[#allocation8 + $0x234] sm:$0xf0]  ;;  %v3906_v43 = vld [vmem:[#allocation8 + $0x70] sm:$0xf] }
  0x6c   :  { %1268 = vmatpush.bf16.msra.mxu2 %v5037_v2  ;;  %6681 = vst [vmem:[#allocation60_spill] sm:$0xff] %v5125_v1  ;;  %v4389_v50 = vld [vmem:[#allocation8 + $0x84] sm:$0xf0]  ;;  %v5168_v60 = vor.u32 %v4443_v28, %v4122_v26  ;;  %v3844_v26 = vld [vmem:[#allocation8 + $0x18] sm:$0xf0] }
  0x6d   :  { %1320 = vmatpush.bf16.msra.mxu0 %v5040_v5  ;;  %6682 = vst [vmem:[#allocation61_spill] sm:$0xff] %v5131_v7  ;;  %v4383_v28 = vld [vmem:[#allocation8 + $0x54] sm:$0xf0] }
  0x6e   :  { %1281 = vmatpush.bf16.msra.mxu3 %v5043_v6  ;;  %6683 = vst [vmem:[#allocation62_spill] sm:$0xff] %v5135_v9 }
  0x6f   :  { %1333 = vmatpush.bf16.msra.mxu1 %v5058_v20  ;;  %6686 = vst [vmem:[#allocation65_spill] sm:$0xff] %v5144_v40 }
  0x70   :  { %1269 = vmatpush.bf16.msra.mxu2 %v5049_v14  ;;  %581 = vmatmul.bf16.gmra.mxu0 %v4995_v35  ;;  %6687 = vst [vmem:[#allocation66_spill] sm:$0xff] %v5147_v42 }
  0x71   :  { %1321 = vmatpush.bf16.msra.mxu0 %v5052_v17  ;;  %523 = vmatmul.bf16.gmra.mxu2 %v4995_v35  ;;  %6688 = vst [vmem:[#allocation67_spill] sm:$0xff] %v5150_v51 }
  0x72   :  { %1282 = vmatpush.bf16.msra.mxu3 %v5055_v18  ;;  %610 = vmatmul.bf16.gmra.mxu1 %v4995_v35  ;;  %6690 = vst [vmem:[#allocation69_spill] sm:$0xff] %v5156_v15 }
  0x73   :  { %552 = vmatmul.bf16.gmra.mxu3 %v4995_v35  ;;  %1334 = vmatpush.bf16.msra.mxu1 %v5070_v37  ;;  %v4066_v35 = vld [vmem:[#allocation8 + $0x1b8] sm:$0xf]  ;;  %6691 = vst [vmem:[#allocation70_spill] sm:$0xff] %v5159_v24 }
  0x74   :  { %1270 = vmatpush.bf16.msra.mxu2 %v5061_v27  ;;  %v5100_v16 = vor.u32 %v4430_v54, %v4066_v35  ;;  %v3940_v35 = vld [vmem:[#allocation8 + $0xd8] sm:$0xf0]  ;;  %v3978_v54 = vld [vmem:[#allocation8 + $0x100] sm:$0xf]  ;;  %6694 = vst [vmem:[#allocation73_spill] sm:$0xff] %v5168_v60 }
  0x75   :  { %1322 = vmatpush.bf16.msra.mxu0 %v5064_v31  ;;  %v5138_v22 = vor.u32 %v4396_v0, %v3940_v35  ;;  %v5141_v29 = vor.u32 %v4407_v4, %v3978_v54  ;;  %v4384_v0 = vld [vmem:[#allocation8 + $0x64] sm:$0xf]  ;;  %v3892_v54 = vld [vmem:[#allocation8 + $0x78] sm:$0xf0]  ;;  %v3930_v4 = vld [vmem:[#allocation8 + $0xa0] sm:$0xf] }
  0x76   :  { %1283 = vmatpush.bf16.msra.mxu3 %v5067_v33  ;;  %6675 = vst [vmem:[#allocation54_spill] sm:$0xff] %v5100_v16  ;;  %v5162_v34 = vor.u32 %v4384_v0, %v3892_v54  ;;  %v4098_v0 = vld [vmem:[#allocation8 + $0x1f0] sm:$0xf]  ;;  %v4437_v54 = vld [vmem:[#allocation8 + $0x204] sm:$0xf0] }
  0x77   :  { %1335 = vmatpush.bf16.msra.mxu1 %v5086_v62  ;;  %6684 = vst [vmem:[#allocation63_spill] sm:$0xff] %v5138_v22 }
  0x78   :  { %1271 = vmatpush.bf16.msra.mxu2 %v5076_v46  ;;  %6685 = vst [vmem:[#allocation64_spill] sm:$0xff] %v5141_v29 }
  0x79   :  { %1323 = vmatpush.bf16.msra.mxu0 %v5080_v56  ;;  %6692 = vst [vmem:[#allocation71_spill] sm:$0xff] %v5162_v34 }
  0x7a   :  { %1284 = vmatpush.bf16.msra.mxu3 %v5083_v57 }
  0x7b   :  { %1336 = vmatpush.bf16.msra.mxu1 %v5100_v16 }
  0x7c   :  { %1272 = vmatpush.bf16.msra.mxu2 %v5089_v3 }
  0x7d   :  { %1324 = vmatpush.bf16.msra.mxu0 %v5094_v11 }
  0x7e   :  { %1285 = vmatpush.bf16.msra.mxu3 %v5097_v12 }
  0x7f   :  { %1337 = vmatpush.bf16.msra.mxu1 %v5113_v39 }
  0x80   :  { %1291 = vmatpush.bf16.msrb.mxu2 %v5091_v10  ;;  %586 = vmatmul.bf16.gmra.mxu0 %v4989_v55 }
  0x81   :  { %1369 = vmatpush.bf16.msrb.mxu0 %v5104_v21  ;;  %528 = vmatmul.bf16.gmra.mxu2 %v4989_v55 }
  0x82   :  { %1304 = vmatpush.bf16.msrb.mxu3 %v5102_v19  ;;  %615 = vmatmul.bf16.gmra.mxu1 %v4989_v55 }
  0x83   :  { %557 = vmatmul.bf16.gmra.mxu3 %v4989_v55  ;;  %1382 = vmatpush.bf16.msrb.mxu1 %v5117_v48  ;;  %v4401_v55 = vld [vmem:[#allocation8 + $0xe4] sm:$0xf0]  ;;  %v5165_v48 = vor.u32 %v4395_v13, %v3930_v4  ;;  %v4060_v4 = vld [vmem:[#allocation8 + $0x1c8] sm:$0xf0]  ;;  %v4372_v13 = vld [vmem:[#allocation8 + $0x4] sm:$0xf] }
  0x84   :  { %1292 = vmatpush.bf16.msrb.mxu2 %v5108_v25  ;;  %v5153_v35 = vor.u32 %v4401_v55, %v3954_v38  ;;  %v4084_v38 = vld [vmem:[#allocation8 + $0x1f8] sm:$0xf0]  ;;  %v4378_v55 = vld [vmem:[#allocation8 + $0x34] sm:$0xf] }
  0x85   :  { %1370 = vmatpush.bf16.msrb.mxu0 %v5125_v1  ;;  %6693 = vst [vmem:[#allocation72_spill] sm:$0xff] %v5165_v48  ;;  %v5177_v1 = vor.u32 %v4389_v50, %v3906_v43  ;;  %v4431_v43 = vld [vmem:[#allocation8 + $0x1d4] sm:$0xf0]  ;;  %v5190_v50 = vor.u32 %v4372_v13, %v3844_v26 }
  0x86   :  { %1305 = vmatpush.bf16.msrb.mxu3 %v5120_v49  ;;  %6689 = vst [vmem:[#allocation68_spill] sm:$0xff] %v5153_v35 }
  0x87   :  { %1383 = vmatpush.bf16.msrb.mxu1 %v5131_v7  ;;  %v4432_v7 = vld [vmem:[#allocation8 + $0x1e4] sm:$0xf]  ;;  %6697 = vst [vmem:[#allocation76_spill] sm:$0xff] %v5177_v1 }
  0x88   :  { %1293 = vmatpush.bf16.msrb.mxu2 %v5122_v52  ;;  %v5171_v63 = vor.u32 %v4432_v7, %v4084_v38  ;;  %v3882_v7 = vld [vmem:[#allocation8 + $0x40] sm:$0xf]  ;;  %6700 = vst [vmem:[#allocation79_spill] sm:$0xff] %v5190_v50 }
  0x89   :  { %1371 = vmatpush.bf16.msrb.mxu0 %v5141_v29  ;;  %v5193_v21 = vor.u32 %v4383_v28, %v3882_v7  ;;  %v4415_v7 = vld [vmem:[#allocation8 + $0x15c] sm:$0xf]  ;;  %v4020_v28 = vld [vmem:[#allocation8 + $0x170] sm:$0xf0] }
  0x8a   :  { %1306 = vmatpush.bf16.msrb.mxu3 %v5135_v9  ;;  %6695 = vst [vmem:[#allocation74_spill] sm:$0xff] %v5171_v63 }
  0x8b   :  { %1384 = vmatpush.bf16.msrb.mxu1 %v5144_v40  ;;  %v3868_v40 = vld [vmem:[#allocation8 + $0x48] sm:$0xf0]  ;;  %6701 = vst [vmem:[#allocation80_spill] sm:$0xff] %v5193_v21 }
  0x8c   :  { %1294 = vmatpush.bf16.msrb.mxu2 %v5138_v22  ;;  %v5174_v29 = vor.u32 %v4378_v55, %v3868_v40  ;;  %v5183_v40 = vor.u32 %v4437_v54, %v4098_v0  ;;  %v4074_v55 = vld [vmem:[#allocation8 + $0x1c0] sm:$0xf]  ;;  %v3858_v0 = vld [vmem:[#allocation8 + $0x10] sm:$0xf]  ;;  %v4377_v54 = vld [vmem:[#allocation8 + $0x24] sm:$0xf0] }
  0x8d   :  { %1372 = vmatpush.bf16.msrb.mxu0 %v5153_v35  ;;  %v4426_v35 = vld [vmem:[#allocation8 + $0x1b4] sm:$0xf]  ;;  %v5203_v13 = vor.u32 %v4377_v54, %v3858_v0  ;;  %v4409_v0 = vld [vmem:[#allocation8 + $0x12c] sm:$0xf]  ;;  %v3996_v54 = vld [vmem:[#allocation8 + $0x140] sm:$0xf0] }
  0x8e   :  { %1307 = vmatpush.bf16.msrb.mxu3 %v5147_v42  ;;  %6696 = vst [vmem:[#allocation75_spill] sm:$0xff] %v5174_v29  ;;  %v5187_v38 = vor.u32 %v4426_v35, %v4060_v4  ;;  %v4050_v4 = vld [vmem:[#allocation8 + $0x190] sm:$0xf] }
  0x8f   :  { %1385 = vmatpush.bf16.msrb.mxu1 %v5156_v15  ;;  %6698 = vst [vmem:[#allocation77_spill] sm:$0xff] %v5183_v40  ;;  %v4420_v15 = vld [vmem:[#allocation8 + $0x184] sm:$0xf] }
  0x90   :  { %1295 = vmatpush.bf16.msrb.mxu2 %v5150_v51  ;;  %591 = vmatmul.bf16.gmra.mxu0 %v4997_v36  ;;  %6699 = vst [vmem:[#allocation78_spill] sm:$0xff] %v5187_v38 }
  0x91   :  { %1373 = vmatpush.bf16.msrb.mxu0 %v5165_v48  ;;  %533 = vmatmul.bf16.gmra.mxu2 %v4997_v36  ;;  %v4036_v48 = vld [vmem:[#allocation8 + $0x198] sm:$0xf0]  ;;  %6704 = vst [vmem:[#allocation83_spill] sm:$0xff] %v5203_v13 }
  0x92   :  { %1308 = vmatpush.bf16.msrb.mxu3 %v5159_v24  ;;  %620 = vmatmul.bf16.gmra.mxu1 %v4997_v36  ;;  %v5199_v35 = vor.u32 %v4420_v15, %v4036_v48  ;;  %v5210_v48 = vor.u32 %v4415_v7, %v4020_v28  ;;  %v4403_v28 = vld [vmem:[#allocation8 + $0xfc] sm:$0xf] }
  0x93   :  { %562 = vmatmul.bf16.gmra.mxu3 %v4997_v36  ;;  %1386 = vmatpush.bf16.msrb.mxu1 %v5168_v60  ;;  %v5196_v36 = vor.u32 %v4431_v43, %v4074_v55  ;;  %v4425_v60 = vld [vmem:[#allocation8 + $0x1a4] sm:$0xf0]  ;;  %v4463_v55 = vld [vmem:[#allocation8 + $0x2dc] sm:$0xf]  ;;  %v4212_v43 = vld [vmem:[#allocation8 + $0x2f0] sm:$0xf0] }
  0x94   :  { %1296 = vmatpush.bf16.msrb.mxu2 %v5162_v34  ;;  %6703 = vst [vmem:[#allocation82_spill] sm:$0xff] %v5199_v35  ;;  %v5206_v26 = vor.u32 %v4425_v60, %v4050_v4  ;;  %v5213_v15 = vor.u32 %v4463_v55, %v4212_v43  ;;  %v6485_v60 = vmov 0.0|0.0   ;;  %v5219_v4 = vor.u32 %v4409_v0, %v3996_v54  ;;  %v3972_v55 = vld [vmem:[#allocation8 + $0x110] sm:$0xf0]  ;;  %v4451_v43 = vld [vmem:[#allocation8 + $0x27c] sm:$0xf] }
  0x95   :  { %1374 = vmatpush.bf16.msrb.mxu0 %v5177_v1  ;;  %6702 = vst [vmem:[#allocation81_spill] sm:$0xff] %v5196_v36  ;;  %v4397_v54 = vld [vmem:[#allocation8 + $0xcc] sm:$0xf]  ;;  %v4416_v1 = vld [vmem:[#allocation8 + $0x164] sm:$0xf] }
  0x96   :  { %1309 = vmatpush.bf16.msrb.mxu3 %v5171_v63  ;;  %6705 = vst [vmem:[#allocation84_spill] sm:$0xff] %v5206_v26 }
  0x97   :  { %1387 = vmatpush.bf16.msrb.mxu1 %v5183_v40  ;;  %6706 = vst [vmem:[#allocation85_spill] sm:$0xff] %v5210_v48  ;;  %v4457_v40 = vld [vmem:[#allocation8 + $0x2ac] sm:$0xf] }
  0x98   :  { %1297 = vmatpush.bf16.msrb.mxu2 %v5174_v29  ;;  %6707 = vst [vmem:[#allocation86_spill] sm:$0xff] %v5213_v15 }
  0x99   :  { %1375 = vmatpush.bf16.msrb.mxu0 %v5193_v21  ;;  %6708 = vst [vmem:[#allocation87_spill] sm:$0xff] %v5219_v4  ;;  %v6716_v21 = vmov 0.0|0.0  }
  0x9a   :  { %1310 = vmatpush.bf16.msrb.mxu3 %v5187_v38 }
  0x9b   :  { %1388 = vmatpush.bf16.msrb.mxu1 %v5196_v36  ;;  %v4188_v36 = vld [vmem:[#allocation8 + $0x2c0] sm:$0xf0] }
  0x9c   :  { %1298 = vmatpush.bf16.msrb.mxu2 %v5190_v50  ;;  %v5223_v7 = vor.u32 %v4457_v40, %v4188_v36  ;;  %v4445_v40 = vld [vmem:[#allocation8 + $0x24c] sm:$0xf]  ;;  %v4140_v36 = vld [vmem:[#allocation8 + $0x260] sm:$0xf0] }
  0x9d   :  { %1376 = vmatpush.bf16.msrb.mxu0 %v5203_v13  ;;  %v5228_v13 = vor.u32 %v4403_v28, %v3972_v55  ;;  %v5239_v28 = vor.u32 %v4445_v40, %v4140_v36  ;;  %v4391_v55 = vld [vmem:[#allocation8 + $0x9c] sm:$0xf]  ;;  %v4433_v40 = vld [vmem:[#allocation8 + $0x1ec] sm:$0xf]  ;;  %v4092_v36 = vld [vmem:[#allocation8 + $0x200] sm:$0xf0] }
  0x9e   :  { %1311 = vmatpush.bf16.msrb.mxu3 %v5199_v35  ;;  %6709 = vst [vmem:[#allocation88_spill] sm:$0xff] %v5223_v7 }
  0x9f   :  { %1389 = vmatpush.bf16.msrb.mxu1 %v5206_v26  ;;  %v4164_v26 = vld [vmem:[#allocation8 + $0x290] sm:$0xf0]  ;;  %6710 = vst [vmem:[#allocation89_spill] sm:$0xff] %v5228_v13 }
  0xa0   :  { %1325 = vmatmul.bf16.vlgmr.msra.gmra.mxu0 %v6485_v60  ;;  %v5231_v0 = vor.u32 %v4451_v43, %v4164_v26  ;;  %6713 = vst [vmem:[#allocation92_spill] sm:$0xff] %v5239_v28  ;;  %v4439_v26 = vld [vmem:[#allocation8 + $0x21c] sm:$0xf]  ;;  %v4116_v43 = vld [vmem:[#allocation8 + $0x230] sm:$0xf0] }
  0xa1   :  { %1273 = vmatmul.bf16.vlgmr.msra.gmra.mxu2 %v6485_v60  ;;  %1527 = vmatpush.bf16.msra.mxu0 %v5003_v23 }
  0xa2   :  { %1343 = vmatpush.bf16.msra.mxu2 %v5210_v48  ;;  %1338 = vmatmul.bf16.vlgmr.msra.gmra.mxu1 %v6485_v60  ;;  %6711 = vst [vmem:[#allocation90_spill] sm:$0xff] %v5231_v0 }
  0xa3   :  { %1286 = vmatmul.bf16.vlgmr.msra.gmra.mxu3 %v6485_v60  ;;  %1540 = vmatpush.bf16.msra.mxu1 %v5007_v32  ;;  %v3948_v60 = vld [vmem:[#allocation8 + $0xe0] sm:$0xf0]  ;;  %v3924_v32 = vld [vmem:[#allocation8 + $0xb0] sm:$0xf0] }
  0xa4   :  { %1356 = vmatpush.bf16.msra.mxu3 %v5213_v15  ;;  %v5236_v23 = vor.u32 %v4397_v54, %v3948_v60  ;;  %v5247_v60 = vor.u32 %v4439_v26, %v4116_v43  ;;  %v4385_v54 = vld [vmem:[#allocation8 + $0x6c] sm:$0xf]  ;;  %v4379_v26 = vld [vmem:[#allocation8 + $0x3c] sm:$0xf]  ;;  %v3876_v43 = vld [vmem:[#allocation8 + $0x50] sm:$0xf0] }
  0xa5   :  { %1528 = vmatpush.bf16.msra.mxu0 %v5010_v41  ;;  %v5244_v41 = vor.u32 %v4391_v55, %v3924_v32  ;;  %v5259_v55 = vor.u32 %v4433_v40, %v4092_v36  ;;  %v4421_v40 = vld [vmem:[#allocation8 + $0x18c] sm:$0xf]  ;;  %v4044_v36 = vld [vmem:[#allocation8 + $0x1a0] sm:$0xf0] }
  0xa6   :  { %1344 = vmatpush.bf16.msra.mxu2 %v5219_v4  ;;  %6712 = vst [vmem:[#allocation91_spill] sm:$0xff] %v5236_v23 }
  0xa7   :  { %1541 = vmatpush.bf16.msra.mxu1 %v5016_v45  ;;  %6714 = vst [vmem:[#allocation93_spill] sm:$0xff] %v5244_v41  ;;  %v3900_v45 = vld [vmem:[#allocation8 + $0x80] sm:$0xf0] }
  0xa8   :  { %1357 = vmatpush.bf16.msra.mxu3 %v5223_v7  ;;  %6715 = vst [vmem:[#allocation94_spill] sm:$0xff] %v5247_v60  ;;  %v5255_v32 = vor.u32 %v4385_v54, %v3900_v45  ;;  %v4373_v54 = vld [vmem:[#allocation8 + $0xc] sm:$0xf] }
  0xa9   :  { %1529 = vmatpush.bf16.msra.mxu0 %v5024_v53  ;;  %6718 = vst [vmem:[#allocation96_spill] sm:$0xff] %v5259_v55  ;;  %v3852_v53 = vld [vmem:[#allocation8 + $0x20] sm:$0xf0] }
  0xaa   :  { %1345 = vmatpush.bf16.msra.mxu2 %v5228_v13  ;;  %6717 = vst [vmem:[#allocation95_spill] sm:$0xff] %v5255_v32 }
  0xab   :  { %1542 = vmatpush.bf16.msra.mxu1 %v5031_v59  ;;  %v4427_v59 = vld [vmem:[#allocation8 + $0x1bc] sm:$0xf] }
  0xac   :  { %1358 = vmatpush.bf16.msra.mxu3 %v5231_v0 }
  0xad   :  { %1530 = vmatpush.bf16.msra.mxu0 %v5037_v2  ;;  %v5264_v2 = vor.u32 %v4379_v26, %v3876_v43  ;;  %v5272_v26 = vor.u32 %v4373_v54, %v3852_v53  ;;  %v5284_v53 = vld [vmem:[#allocation9] sm:$0x3f] }
  0xae   :  { %1346 = vmatpush.bf16.msra.mxu2 %v5236_v23 }
  0xaf   :  { %1543 = vmatpush.bf16.msra.mxu1 %v5043_v6  ;;  %v4068_v6 = vld [vmem:[#allocation8 + $0x1d0] sm:$0xf0]  ;;  %6719 = vst [vmem:[#allocation97_spill] sm:$0xff] %v5264_v2 }
  0xb0   :  { %1359 = vmatpush.bf16.msra.mxu3 %v5239_v28  ;;  %1377 = vmatmul.bf16.vlgmr.msrb.gmra.mxu0 %v6716_v21  ;;  %v5267_v45 = vor.u32 %v4427_v59, %v4068_v6  ;;  %6721 = vst [vmem:[#allocation99_spill] sm:$0xff] %v5272_v26  ;;  %v5275_v59 = vor.u32 %v4421_v40, %v4044_v36  ;;  %v3980_v40 = vld [vmem:[#allocation8 + $0x118] sm:$0xf0]  ;;  %v5299_v36 = vperm.slane %v5284_v53, 0 }
  0xb1   :  { %1299 = vmatmul.bf16.vlgmr.msrb.gmra.mxu2 %v6716_v21  ;;  %1531 = vmatpush.bf16.msra.mxu0 %v5049_v14  ;;  %v4464_v14 = vld [vmem:[#allocation8 + $0x2e4] sm:$0xf] }
  0xb2   :  { %1347 = vmatpush.bf16.msra.mxu2 %v5244_v41  ;;  %1390 = vmatmul.bf16.vlgmr.msrb.gmra.mxu1 %v6716_v21  ;;  %6720 = vst [vmem:[#allocation98_spill] sm:$0xff] %v5267_v45 }
  0xb3   :  { %1312 = vmatmul.bf16.vlgmr.msrb.gmra.mxu3 %v6716_v21  ;;  %1544 = vmatpush.bf16.msra.mxu1 %v5055_v18  ;;  %v4220_v18 = vld [vmem:[#allocation8 + $0x2f8] sm:$0xf0]  ;;  %6722 = vst [vmem:[#allocation100_spill] sm:$0xff] %v5275_v59 }
  0xb4   :  { %1360 = vmatpush.bf16.msra.mxu3 %v5247_v60  ;;  %v4028_v60 = vld [vmem:[#allocation8 + $0x178] sm:$0xf0]  ;;  %v5279_v43 = vor.u32 %v4464_v14, %v4220_v18  ;;  %6727 = vst [vmem:[#allocation105_spill] sm:$0xff] %v5299_v36 }
  0xb5   :  { %1532 = vmatpush.bf16.msra.mxu0 %v5061_v27  ;;  %v5277_v6 = vor.u32 %v4416_v1, %v4028_v60  ;;  %v4196_v27 = vld [vmem:[#allocation8 + $0x2c8] sm:$0xf0]  ;;  %v4404_v60 = vld [vmem:[#allocation8 + $0x104] sm:$0xf] }
  0xb6   :  { %1348 = vmatpush.bf16.msra.mxu2 %v5255_v32  ;;  %6724 = vst [vmem:[#allocation102_spill] sm:$0xff] %v5279_v43  ;;  %v4004_v32 = vld [vmem:[#allocation8 + $0x148] sm:$0xf0] }
  0xb7   :  { %1545 = vmatpush.bf16.msra.mxu1 %v5067_v33  ;;  %6723 = vst [vmem:[#allocation101_spill] sm:$0xff] %v5277_v6  ;;  %v4458_v33 = vld [vmem:[#allocation8 + $0x2b4] sm:$0xf] }
  0xb8   :  { %1361 = vmatpush.bf16.msra.mxu3 %v5259_v55  ;;  %v4410_v55 = vld [vmem:[#allocation8 + $0x134] sm:$0xf]  ;;  %v5295_v1 = vor.u32 %v4458_v33, %v4196_v27  ;;  %v5309_v27 = vor.u32 %v4404_v60, %v3980_v40 }
  0xb9   :  { %1533 = vmatpush.bf16.msra.mxu0 %v5076_v46  ;;  %v5290_v14 = vor.u32 %v4410_v55, %v4004_v32  ;;  %v4172_v46 = vld [vmem:[#allocation8 + $0x298] sm:$0xf0]  ;;  %v5304_v32 = vperm.slane %v5284_v53, 1 }
  0xba   :  { %1349 = vmatpush.bf16.msra.mxu2 %v5264_v2 }
  0xbb   :  { %1546 = vmatpush.bf16.msra.mxu1 %v5083_v57  ;;  %v4452_v57 = vld [vmem:[#allocation8 + $0x284] sm:$0xf]  ;;  %6728 = vst [vmem:[#allocation106_spill] sm:$0xff] %v5304_v32 }
  0xbc   :  { %1362 = vmatpush.bf16.msra.mxu3 %v5267_v45  ;;  %v5286_v54 = vpop.f32.mrf.mxu0  ;;  %v5313_v55 = vor.u32 %v4452_v57, %v4172_v46 }
  0xbd   :  { %6725 = vst [vmem:[#allocation103_spill] sm:$0xff] %v5286_v54  ;;  %1534 = vmatpush.bf16.msra.mxu0 %v5089_v3  ;;  %v4398_v3 = vld [vmem:[#allocation8 + $0xd4] sm:$0xf]  ;;  %v4148_v54 = vld [vmem:[#allocation8 + $0x268] sm:$0xf0] }
  0xbe   :  { %1350 = vmatpush.bf16.msra.mxu2 %v5272_v26 }
  0xbf   :  { %v5293_v18 = vpop.f32.mrf.mxu1  ;;  %1547 = vmatpush.bf16.msra.mxu1 %v5097_v12  ;;  %v4440_v12 = vld [vmem:[#allocation8 + $0x224] sm:$0xf] }
  0xc0   :  { %1363 = vmatpush.bf16.msra.mxu3 %v5275_v59  ;;  %6726 = vst [vmem:[#allocation104_spill] sm:$0xff] %v5293_v18  ;;  %v4446_v18 = vld [vmem:[#allocation8 + $0x254] sm:$0xf] }
  0xc1   :  { %1351 = vmatmul.bf16.vlgmr.msra.gmra.mxu2 %v6716_v21  ;;  %1579 = vmatpush.bf16.msrb.mxu0 %v5005_v30  ;;  %v3956_v30 = vld [vmem:[#allocation8 + $0xe8] sm:$0xf0]  ;;  %v5331_v57 = vor.u32 %v4446_v18, %v4148_v54  ;;  %v4386_v54 = vld [vmem:[#allocation8 + $0x74] sm:$0xf] }
  0xc2   :  { %1395 = vmatpush.bf16.msrb.mxu2 %v5277_v6  ;;  %v471_v33 = vpop.f32.mrf.mxu2  ;;  %v3908_v18 = vld [vmem:[#allocation8 + $0x88] sm:$0xf0] }
  0xc3   :  { %1364 = vmatmul.bf16.vlgmr.msra.gmra.mxu3 %v6716_v21  ;;  %1592 = vmatpush.bf16.msrb.mxu1 %v5018_v47  ;;  %v500_v6 = vpop.f32.mrf.mxu3  ;;  %v5325_v47 = vor.u32 %v4398_v3, %v3956_v30 }
  0xc4   :  { %1408 = vmatpush.bf16.msrb.mxu3 %v5279_v43  ;;  %v5316_v43 = vadd.f32 %v471_v33, %v5299_v36  ;;  %v5320_v60 = vadd.f32 %v500_v6, %v5304_v32  ;;  %v5322_v40 = vpop.f32.mrf.mxu0  ;;  %v4392_v33 = vld [vmem:[#allocation8 + $0xa4] sm:$0xf] }
  0xc5   :  { %1580 = vmatpush.bf16.msrb.mxu0 %v5013_v44  ;;  %6731 = vst [vmem:[#allocation109_spill] sm:$0xff] %v5322_v40  ;;  %v4124_v44 = vld [vmem:[#allocation8 + $0x238] sm:$0xf0]  ;;  %v4100_v40 = vld [vmem:[#allocation8 + $0x208] sm:$0xf0] }
  0xc6   :  { %1396 = vmatpush.bf16.msrb.mxu2 %v5290_v14  ;;  %6729 = vst [vmem:[#allocation107_spill] sm:$0xff] %v5316_v43  ;;  %v3932_v43 = vld [vmem:[#allocation8 + $0xb8] sm:$0xf0]  ;;  %v5341_v3 = vor.u32 %v4440_v12, %v4124_v44 }
  0xc7   :  { %6730 = vst [vmem:[#allocation108_spill] sm:$0xff] %v5320_v60  ;;  %1593 = vmatpush.bf16.msrb.mxu1 %v5034_v61  ;;  %v5329_v46 = vpop.f32.mrf.mxu1  ;;  %v5335_v6 = vor.u32 %v4392_v33, %v3932_v43  ;;  %v5350_v33 = vor.u32 %v4386_v54, %v3908_v18  ;;  %v3860_v18 = vld [vmem:[#allocation8 + $0x28] sm:$0xf0] }
  0xc8   :  { %1409 = vmatpush.bf16.msrb.mxu3 %v5295_v1  ;;  %6732 = vst [vmem:[#allocation110_spill] sm:$0xff] %v5329_v46  ;;  %v4434_v46 = vld [vmem:[#allocation8 + $0x1f4] sm:$0xf] }
  0xc9   :  { %1581 = vmatpush.bf16.msrb.mxu0 %v5028_v58  ;;  %v5354_v12 = vor.u32 %v4434_v46, %v4100_v40  ;;  %v4076_v58 = vld [vmem:[#allocation8 + $0x1d8] sm:$0xf0]  ;;  %v4374_v46 = vld [vmem:[#allocation8 + $0x14] sm:$0xf] }
  0xca   :  { %1397 = vmatpush.bf16.msrb.mxu2 %v5309_v27  ;;  %v5339_v30 = vpop.f32.mrf.mxu2 }
  0xcb   :  { %1594 = vmatpush.bf16.msrb.mxu1 %v5046_v8  ;;  %6733 = vst [vmem:[#allocation111_spill] sm:$0xff] %v5339_v30  ;;  %v5343_v60 = vpop.f32.mrf.mxu3  ;;  %v3884_v30 = vld [vmem:[#allocation8 + $0x58] sm:$0xf0] }
  0xcc   :  { %1410 = vmatpush.bf16.msrb.mxu3 %v5313_v55  ;;  %6734 = vst [vmem:[#allocation112_spill] sm:$0xff] %v5343_v60  ;;  %v466_v61 = vpop.f32.mrf.mxu0  ;;  %v4380_v60 = vld [vmem:[#allocation8 + $0x44] sm:$0xf] }
  0xcd   :  { %1582 = vmatpush.bf16.msrb.mxu0 %v5040_v5  ;;  %v5347_v43 = vadd.f32 %v466_v61, %v5299_v36  ;;  %6736 = vst [vmem:[#allocation114_spill] sm:$0xff] %v5354_v12  ;;  %v4428_v5 = vld [vmem:[#allocation8 + $0x1c4] sm:$0xf]  ;;  %v5361_v61 = vor.u32 %v4380_v60, %v3884_v30 }
  0xce   :  { %1398 = vmatpush.bf16.msrb.mxu2 %v5325_v47  ;;  %v5365_v40 = vor.u32 %v4428_v5, %v4076_v58 }
  0xcf   :  { %6735 = vst [vmem:[#allocation113_spill] sm:$0xff] %v5347_v43  ;;  %1595 = vmatpush.bf16.msrb.mxu1 %v5058_v20  ;;  %v495_v44 = vpop.f32.mrf.mxu1  ;;  %v4422_v43 = vld [vmem:[#allocation8 + $0x194] sm:$0xf]  ;;  %v4052_v20 = vld [vmem:[#allocation8 + $0x1a8] sm:$0xf0] }
  0xd0   :  { %1411 = vmatpush.bf16.msrb.mxu3 %v5331_v57  ;;  %v5357_v8 = vadd.f32 %v495_v44, %v5304_v32  ;;  %6738 = vst [vmem:[#allocation116_spill] sm:$0xff] %v5365_v40  ;;  %v5383_v5 = vor.u32 %v4422_v43, %v4052_v20  ;;  %v5398_v20 = vperm.slane %v5284_v53, 5 }
  0xd1   :  { %1583 = vmatpush.bf16.msrb.mxu0 %v5052_v17 }
  0xd2   :  { %1399 = vmatpush.bf16.msrb.mxu2 %v5335_v6  ;;  %6737 = vst [vmem:[#allocation115_spill] sm:$0xff] %v5357_v8 }
  0xd3   :  { %1596 = vmatpush.bf16.msrb.mxu1 %v5070_v37  ;;  %v505_v8 = vpop.f32.mrf.mxu3  ;;  %v5377_v37 = vor.u32 %v4374_v46, %v3860_v18  ;;  %6743 = vst [vmem:[#allocation121_spill] sm:$0xff] %v5383_v5 }
  0xd4   :  { %1412 = vmatpush.bf16.msrb.mxu3 %v5341_v3  ;;  %v476_v54 = vpop.f32.mrf.mxu2  ;;  %v5372_v60 = vadd.f32 %v505_v8, %v5304_v32  ;;  %v5374_v30 = vpop.f32.mrf.mxu0  ;;  %v5388_v8 = vperm.slane %v5284_v53, 4  ;;  %6747 = vst [vmem:[#allocation125_spill] sm:$0xff] %v5398_v20 }
  0xd5   :  { %v5368_v44 = vadd.f32 %v476_v54, %v5299_v36  ;;  %1584 = vmatpush.bf16.msrb.mxu0 %v5064_v31  ;;  %6741 = vst [vmem:[#allocation119_spill] sm:$0xff] %v5374_v30 }
  0xd6   :  { %1400 = vmatpush.bf16.msrb.mxu2 %v5350_v33  ;;  %6740 = vst [vmem:[#allocation118_spill] sm:$0xff] %v5372_v60  ;;  %v5414_v60 = vperm.slane %v5284_v53, 3 }
  0xd7   :  { %6739 = vst [vmem:[#allocation117_spill] sm:$0xff] %v5368_v44  ;;  %1597 = vmatpush.bf16.msrb.mxu1 %v5086_v62  ;;  %v5381_v58 = vpop.f32.mrf.mxu1  ;;  %v6775_v62 = vld [vmem:[#allocation96_spill] sm:$0xff] }
  0xd8   :  { %1413 = vmatpush.bf16.msrb.mxu3 %v5354_v12  ;;  %6742 = vst [vmem:[#allocation120_spill] sm:$0xff] %v5381_v58 }
  0xd9   :  { %1585 = vmatpush.bf16.msrb.mxu0 %v5080_v56  ;;  %6744 = vst [vmem:[#allocation122_spill] sm:$0xff] %v5388_v8 }
  0xda   :  { %1401 = vmatpush.bf16.msrb.mxu2 %v5361_v61  ;;  %6750 = vst [vmem:[#allocation128_spill] sm:$0xff] %v5414_v60 }
  0xdb   :  { %1598 = vmatpush.bf16.msrb.mxu1 %v5100_v16  ;;  %v5395_v46 = vpop.f32.mrf.mxu3 }
  0xdc   :  { %1414 = vmatpush.bf16.msrb.mxu3 %v5365_v40  ;;  %v5392_v54 = vpop.f32.mrf.mxu2  ;;  %6746 = vst [vmem:[#allocation124_spill] sm:$0xff] %v5395_v46 }
  0xdd   :  { %6745 = vst [vmem:[#allocation123_spill] sm:$0xff] %v5392_v54  ;;  %1586 = vmatpush.bf16.msrb.mxu0 %v5094_v11  ;;  %v577_v43 = vpop.f32.mrf.mxu0 }
  0xde   :  { %1402 = vmatpush.bf16.msrb.mxu2 %v5377_v37  ;;  %v5405_v18 = vadd.f32 %v577_v43, %v5388_v8 }
  0xdf   :  { %1599 = vmatpush.bf16.msrb.mxu1 %v5113_v39  ;;  %v606_v54 = vpop.f32.mrf.mxu1 }
  0xe0   :  { %1415 = vmatpush.bf16.msrb.mxu3 %v5383_v5  ;;  %6748 = vst [vmem:[#allocation126_spill] sm:$0xff] %v5405_v18  ;;  %v5410_v46 = vadd.f32 %v606_v54, %v5398_v20 }
  0xe1   :  { %1403 = vmatmul.bf16.vlgmr.msrb.gmra.mxu2 %v6716_v21 }
  0xe2   :  { %1553 = vmatpush.bf16.msra.mxu2 %v5091_v10  ;;  %6749 = vst [vmem:[#allocation127_spill] sm:$0xff] %v5410_v46 }
  0xe3   :  { %1416 = vmatmul.bf16.vlgmr.msrb.gmra.mxu3 %v6716_v21 }
  0xe4   :  { %1566 = vmatpush.bf16.msra.mxu3 %v5102_v19  ;;  %v5416_v44 = vpop.f32.mrf.mxu2 }
  0xe5   :  { %v5423_v18 = vpop.f32.mrf.mxu0 }
  0xe6   :  { %1554 = vmatpush.bf16.msra.mxu2 %v5108_v25  ;;  %v548_v21 = vpop.f32.mrf.mxu3  ;;  %6752 = vst [vmem:[#allocation130_spill] sm:$0xff] %v5423_v18  ;;  %v5444_v18 = vperm.slane %v5284_v53, 2 }
  0xe7   :  { %v5421_v43 = vadd.f32 %v548_v21, %v5414_v60  ;;  %v5425_v58 = vpop.f32.mrf.mxu1 }
  0xe8   :  { %1567 = vmatpush.bf16.msra.mxu3 %v5120_v49  ;;  %6753 = vst [vmem:[#allocation131_spill] sm:$0xff] %v5425_v58 }
  0xe9   :  { %6751 = vst [vmem:[#allocation129_spill] sm:$0xff] %v5421_v43 }
  0xea   :  { %1555 = vmatpush.bf16.msra.mxu2 %v5122_v52  ;;  %6758 = vst [vmem:[#allocation136_spill] sm:$0xff] %v5444_v18 }
  0xec   :  { %1568 = vmatpush.bf16.msra.mxu3 %v5135_v9  ;;  %v5429_v54 = vpop.f32.mrf.mxu2 }
  0xed   :  { %6754 = vst [vmem:[#allocation132_spill] sm:$0xff] %v5429_v54  ;;  %v582_v30 = vpop.f32.mrf.mxu0 }
  0xee   :  { %1556 = vmatpush.bf16.msra.mxu2 %v5138_v22  ;;  %v5432_v46 = vpop.f32.mrf.mxu3  ;;  %v5436_v21 = vadd.f32 %v582_v30, %v5388_v8 }
  0xef   :  { %6755 = vst [vmem:[#allocation133_spill] sm:$0xff] %v5432_v46  ;;  %v611_v43 = vpop.f32.mrf.mxu1 }
  0xf0   :  { %1569 = vmatpush.bf16.msra.mxu3 %v5147_v42  ;;  %6756 = vst [vmem:[#allocation134_spill] sm:$0xff] %v5436_v21  ;;  %v5440_v58 = vadd.f32 %v611_v43, %v5398_v20 }
  0xf2   :  { %1557 = vmatpush.bf16.msra.mxu2 %v5150_v51  ;;  %6757 = vst [vmem:[#allocation135_spill] sm:$0xff] %v5440_v58 }
  0xf4   :  { %1570 = vmatpush.bf16.msra.mxu3 %v5159_v24  ;;  %v524_v54 = vpop.f32.mrf.mxu2 }
  0xf5   :  { %v5448_v46 = vadd.f32 %v524_v54, %v5444_v18  ;;  %v5454_v21 = vpop.f32.mrf.mxu0 }
  0xf6   :  { %1558 = vmatpush.bf16.msra.mxu2 %v5162_v34  ;;  %v553_v39 = vpop.f32.mrf.mxu3  ;;  %6761 = vst [vmem:[#allocation139_spill] sm:$0xff] %v5454_v21 }
  0xf7   :  { %6759 = vst [vmem:[#allocation137_spill] sm:$0xff] %v5448_v46  ;;  %v5452_v30 = vadd.f32 %v553_v39, %v5414_v60  ;;  %v5456_v43 = vpop.f32.mrf.mxu1 }
  0xf8   :  { %1571 = vmatpush.bf16.msra.mxu3 %v5171_v63  ;;  %6762 = vst [vmem:[#allocation140_spill] sm:$0xff] %v5456_v43 }
  0xf9   :  { %6760 = vst [vmem:[#allocation138_spill] sm:$0xff] %v5452_v30 }
  0xfa   :  { %1559 = vmatpush.bf16.msra.mxu2 %v5174_v29 }
  0xfc   :  { %1572 = vmatpush.bf16.msra.mxu3 %v5187_v38  ;;  %v5462_v53 = vpop.f32.mrf.mxu2 }
  0xfd   :  { %6763 = vst [vmem:[#allocation141_spill] sm:$0xff] %v5462_v53  ;;  %v587_v39 = vpop.f32.mrf.mxu0 }
  0xfe   :  { %1560 = vmatpush.bf16.msra.mxu2 %v5190_v50  ;;  %v5464_v54 = vpop.f32.mrf.mxu3  ;;  %v5469_v58 = vadd.f32 %v587_v39, %v5388_v8 }
  0xff   :  { %6764 = vst [vmem:[#allocation142_spill] sm:$0xff] %v5464_v54  ;;  %v616_v30 = vpop.f32.mrf.mxu1 }
 0x100   :  { %1573 = vmatpush.bf16.msra.mxu3 %v5199_v35  ;;  %6765 = vst [vmem:[#allocation143_spill] sm:$0xff] %v5469_v58  ;;  %v5472_v43 = vadd.f32 %v616_v30, %v5398_v20 }
 0x102   :  { %1605 = vmatpush.bf16.msrb.mxu2 %v5210_v48  ;;  %6766 = vst [vmem:[#allocation144_spill] sm:$0xff] %v5472_v43  ;;  %v6771_v43 = vld [vmem:[#allocation94_spill] sm:$0xff] }
 0x104   :  { %1618 = vmatpush.bf16.msrb.mxu3 %v5213_v15  ;;  %v529_v21 = vpop.f32.mrf.mxu2 }
 0x105   :  { %v5477_v53 = vadd.f32 %v529_v21, %v5444_v18  ;;  %v5483_v39 = vpop.f32.mrf.mxu0 }
 0x106   :  { %1606 = vmatpush.bf16.msrb.mxu2 %v5219_v4  ;;  %v558_v54 = vpop.f32.mrf.mxu3  ;;  %6769 = vst [vmem:[#allocation147_spill] sm:$0xff] %v5483_v39 }
 0x107   :  { %6767 = vst [vmem:[#allocation145_spill] sm:$0xff] %v5477_v53  ;;  %v5481_v46 = vadd.f32 %v558_v54, %v5414_v60  ;;  %v5486_v30 = vpop.f32.mrf.mxu1  ;;  %v6774_v53 = vld [vmem:[#allocation95_spill] sm:$0xff] }
 0x108   :  { %1619 = vmatpush.bf16.msrb.mxu3 %v5223_v7  ;;  %6770 = vst [vmem:[#allocation148_spill] sm:$0xff] %v5486_v30 }
 0x109   :  { %6768 = vst [vmem:[#allocation146_spill] sm:$0xff] %v5481_v46 }
 0x10a   :  { %1607 = vmatpush.bf16.msrb.mxu2 %v5228_v13 }
 0x10c   :  { %1620 = vmatpush.bf16.msrb.mxu3 %v5231_v0  ;;  %v5490_v58 = vpop.f32.mrf.mxu2 }
 0x10d   :  { %6772 = vst [vmem:[#allocation149_spill] sm:$0xff] %v5490_v58  ;;  %v592_v16 = vpop.f32.mrf.mxu0 }
 0x10e   :  { %1608 = vmatpush.bf16.msrb.mxu2 %v5236_v23  ;;  %v5492_v21 = vpop.f32.mrf.mxu3  ;;  %v5497_v54 = vadd.f32 %v592_v16, %v5388_v8 }
 0x10f   :  { %6773 = vst [vmem:[#allocation150_spill] sm:$0xff] %v5492_v21  ;;  %v621_v46 = vpop.f32.mrf.mxu1 }
 0x110   :  { %1621 = vmatpush.bf16.msrb.mxu3 %v5239_v28  ;;  %6776 = vst [vmem:[#allocation151_spill] sm:$0xff] %v5497_v54  ;;  %v5500_v39 = vadd.f32 %v621_v46, %v5398_v20 }
 0x112   :  { %1609 = vmatpush.bf16.msrb.mxu2 %v5244_v41  ;;  %6777 = vst [vmem:[#allocation152_spill] sm:$0xff] %v5500_v39 }
 0x114   :  { %1622 = vmatpush.bf16.msrb.mxu3 %v6771_v43  ;;  %v534_v30 = vpop.f32.mrf.mxu2 }
 0x115   :  { %v5505_v58 = vadd.f32 %v534_v30, %v5444_v18  ;;  %v594_v16 = vpop.f32.mrf.mxu0 }
 0x116   :  { %1610 = vmatpush.bf16.msrb.mxu2 %v6774_v53  ;;  %v563_v21 = vpop.f32.mrf.mxu3 }
 0x117   :  { %6778 = vst [vmem:[#allocation153_spill] sm:$0xff] %v5505_v58  ;;  %v5512_v54 = vpop.f32.mrf.mxu1 }
 0x118   :  { %1623 = vmatpush.bf16.msrb.mxu3 %v6775_v62  ;;  %v5509_v62 = vadd.f32 %v563_v21, %v5414_v60 }
 0x11a   :  { %1611 = vmatpush.bf16.msrb.mxu2 %v5264_v2  ;;  %6779 = vst [vmem:[#allocation154_spill] sm:$0xff] %v5509_v62 }
 0x11c   :  { %1624 = vmatpush.bf16.msrb.mxu3 %v5267_v45  ;;  %v5514_v46 = vpop.f32.mrf.mxu2  ;;  %v5518_v45 = vld [vmem:[#allocation11] sm:$0x3f] }
 0x11d   :  { %6780 = vst [vmem:[#allocation155_spill] sm:$0xff] %v5514_v46  ;;  %v1326_v43 = vpop.f32.mrf.mxu0  ;;  %v5521_v58 = vperm.slane %v5518_v45, 0  ;;  %v5527_v53 = vperm.slane %v5518_v45, 4  ;;  %v5530_v38 = vperm.slane %v5518_v45, 1 }
 0x11e   :  { %1612 = vmatpush.bf16.msrb.mxu2 %v5272_v26  ;;  %v5516_v39 = vpop.f32.mrf.mxu3 }
 0x11f   :  { %v1339_v30 = vpop.f32.mrf.mxu1  ;;  %6781 = vst [vmem:[#allocation156_spill] sm:$0xff] %v5521_v58 }
 0x120   :  { %1625 = vmatpush.bf16.msrb.mxu3 %v5275_v59  ;;  %v6782_v59 = vld [vmem:[#allocation103_spill] sm:$0xff]  ;;  %6784 = vst [vmem:[#allocation157_spill] sm:$0xff] %v5530_v38 }
 0x121   :  { %v462_v26 = vadd.f32 %v6782_v59, %v5299_v36  ;;  %6783 = vst [vmem:[#allocation103_spill] sm:$0xff] %v5527_v53  ;;  %v595_v36 = vadd.f32 %v594_v16, %v5388_v8  ;;  %v5542_v16 = vperm.slane %v5518_v45, 3  ;;  %v6811_v8 = vld [vmem:[#allocation84_spill] sm:$0xff] }
 0x123   :  { %6787 = vst [vmem:[#allocation158_spill] sm:$0xff] %v5542_v16 }
 0x124   :  { %v1274_v28 = vpop.f32.mrf.mxu2 }
 0x125   :  { %v1275_v21 = vadd.f32 %v1274_v28, %v5521_v58  ;;  %v1328_v0 = vpop.f32.mrf.mxu0 }
 0x126   :  { %v1287_v62 = vpop.f32.mrf.mxu3 }
 0x127   :  { %v1288_v11 = vadd.f32 %v1287_v62, %v1275_v21  ;;  %v1341_v7 = vpop.f32.mrf.mxu1 }
 0x129   :  { %v1424_v46 = vadd.f32 %v1288_v11, %v462_v26 }
 0x12b   :  { %v4224_v2 = vmul.f32 -1.442695, %v1424_v46 }
 0x12c   :  { %v1276_v56 = vpop.f32.mrf.mxu2 }
 0x12d   :  { %4518 = vpow2.f32 %v4224_v2  ;;  %v1378_v35 = vpop.f32.mrf.mxu0  ;;  %v6785_v2 = vld [vmem:[#allocation104_spill] sm:$0xff] }
 0x12e   :  { %v1289_v15 = vpop.f32.mrf.mxu3  ;;  %v1379_v58 = vadd.f32 %v1378_v35, %v5527_v53 }
 0x12f   :  { %v1391_v31 = vpop.f32.mrf.mxu1  ;;  %v491_v15 = vadd.f32 %v6785_v2, %v5304_v32 }
 0x130   :  { %v1392_v26 = vadd.f32 %v1391_v31, %v1379_v58 }
 0x132   :  { %v1495_v35 = vadd.f32 %v1392_v26, %v595_v36 }
 0x133   :  { %v4519_v28 = vpop.eup %4518 }
 0x134   :  { %v1428_v0 = vadd.f32 1.0, %v4519_v28  ;;  %v1300_v59 = vpop.f32.mrf.mxu2  ;;  %v5538_v28 = vperm.slane %v5518_v45, 2 }
 0x135   :  { %v1301_v62 = vadd.f32 %v1300_v59, %v5530_v38  ;;  %v1380_v56 = vpop.f32.mrf.mxu0 }
 0x136   :  { %v1313_v11 = vpop.f32.mrf.mxu3  ;;  %4520 = vrcp.f32 %v1428_v0  ;;  %6786 = vst [vmem:[#allocation104_spill] sm:$0xff] %v5538_v28  ;;  %v1327_v63 = vadd.f32 %v1326_v43, %v5538_v28  ;;  %v1440_v2 = vand.u32 2147483648, %v1428_v0  ;;  %v1438_v58 = vand.u32 2147483647, %v1428_v0 }
 0x137   :  { %v1314_v7 = vadd.f32 %v1313_v11, %v1301_v62  ;;  %v1393_v46 = vpop.f32.mrf.mxu1  ;;  %v4227_v62 = vmul.f32 -1.442695, %v1495_v35  ;;  %vm1434_vm1 = vweird.f32 %v1428_v0 }
 0x138   :  { %v1441_v36 = vor.u32 1.1754944e-38, %v1440_v2  ;;  %vm1439_vm3 = vcmp.eq.f32.partialorder %v1438_v58, 8.507059e+37 }
 0x139   :  { %v1444_v21 = vadd.f32 %v1314_v7, %v491_v15 }
 0x13b   :  { %v4225_v41 = vmul.f32 -1.442695, %v1444_v21  ;;  %v520_v21 = vadd.f32 %v5416_v44, %v5444_v18 }
 0x13c   :  { %v4521_v17 = vpop.eup %4520  ;;  %v1302_v53 = vpop.f32.mrf.mxu2 }
 0x13d   :  { %v1430_v59 = vmul.f32 %v4521_v17, %v1428_v0  ;;  %4522 = vpow2.f32 %v4225_v41  ;;  %vm1435_vm0 = vweird.f32 %v4521_v17  ;;  %v566_v0 = vadd.f32 %v5516_v39, %v5414_v60  ;;  %v6812_v60 = vld [vmem:[#allocation26_spill] sm:$0xff] }
 0x13e   :  { %v1315_v38 = vpop.f32.mrf.mxu3  ;;  %vm1436_vm2 = vmor %vm1434_vm1, %vm1435_vm0  ;;  %4524 = vpow2.f32 %v4227_v62 }
 0x13f   :  { %v1431_v56 = vsub.f32 1.0, %v1430_v59  ;;  %v1340_v38 = vadd.f32 %v1339_v30, %v1327_v63 }
 0x141   :  { %v1432_v31 = vmul.f32 %v4521_v17, %v1431_v56 }
 0x143   :  { %v4523_v11 = vpop.eup %4522  ;;  %v1433_v15 = vadd.f32 %v4521_v17, %v1432_v31 }
 0x144   :  { %v1448_v53 = vadd.f32 1.0, %v4523_v11  ;;  %v1352_v41 = vpop.f32.mrf.mxu2  ;;  %v4525_v2 = vpop.eup %4524 }
 0x145   :  { %v1437_v7 = vsel %vm1436_vm2, %v4521_v17, %v1433_v15  ;;  %v1353_v43 = vadd.f32 %v1352_v41, %v5542_v16  ;;  %v5549_v30 = vadd.f32 1.0, %v4525_v2 }
 0x146   :  { %v1365_v26 = vpop.f32.mrf.mxu3  ;;  %v1442_v46 = vsel %vm1439_vm3, %v1441_v36, %v1437_v7  ;;  %4526 = vrcp.f32 %v1448_v53  ;;  %v1460_v36 = vand.u32 2147483648, %v1448_v53  ;;  %v1458_v41 = vand.u32 2147483647, %v1448_v53 }
 0x147   :  { %v1464_v35 = vmul.f32 %v1442_v46, %v1340_v38  ;;  %v1366_v59 = vadd.f32 %v1365_v26, %v1353_v43  ;;  %vm1454_vm5 = vweird.f32 %v1448_v53  ;;  %vm1505_vm13 = vweird.f32 %v5549_v30 }
 0x148   :  { %v1461_v7 = vor.u32 1.1754944e-38, %v1460_v36  ;;  %vm1459_vm7 = vcmp.eq.f32.partialorder %v1458_v41, 8.507059e+37  ;;  %v6789_v36 = vld [vmem:[#allocation101_spill] sm:$0xff] }
 0x149   :  { %v1465_v56 = vadd.f32 %v1464_v35, %v520_v21  ;;  %v1475_v62 = vadd.f32 %v1366_v59, %v566_v0 }
 0x14b   :  { %v4226_v63 = vmul.f32 -1.442695, %v1475_v62 }
 0x14c   :  { %v4527_v31 = vpop.eup %4526  ;;  %v1354_v17 = vpop.f32.mrf.mxu2 }
 0x14d   :  { %v1450_v58 = vmul.f32 %v4527_v31, %v1448_v53  ;;  %4528 = vpow2.f32 %v4226_v63  ;;  %vm1455_vm4 = vweird.f32 %v4527_v31 }
 0x14e   :  { %v1367_v11 = vpop.f32.mrf.mxu3  ;;  %4530 = vrcp.f32 %v5549_v30  ;;  %vm1456_vm6 = vmor %vm1454_vm5, %vm1455_vm4 }
 0x14f   :  { %v1451_v15 = vsub.f32 1.0, %v1450_v58  ;;  %4532 = vtanh.f32 %v1465_v56 }
 0x151   :  { %v1452_v44 = vmul.f32 %v4527_v31, %v1451_v15  ;;  %v6788_v15 = vld [vmem:[#allocation56_spill] sm:$0xff] }
 0x153   :  { %v1453_v39 = vadd.f32 %v4527_v31, %v1452_v44  ;;  %v4529_v38 = vpop.eup %4528 }
 0x154   :  { %v1479_v26 = vadd.f32 1.0, %v4529_v38  ;;  %v4531_v21 = vpop.eup %4530 }
 0x155   :  { %v1457_v43 = vsel %vm1456_vm6, %v4527_v31, %v1453_v39  ;;  %v4533_v0 = vpop.eup %4532  ;;  %v1501_v62 = vmul.f32 %v4531_v21, %v5549_v30  ;;  %v5561_v31 = vperm.slane %v5518_v45, 5  ;;  %vm1506_vm12 = vweird.f32 %v4531_v21 }
 0x156   :  { %v1462_v46 = vsel %vm1459_vm7, %v1461_v7, %v1457_v43  ;;  %4534 = vrcp.f32 %v1479_v26  ;;  %v1491_v41 = vand.u32 2147483648, %v1479_v26  ;;  %v1489_v45 = vand.u32 2147483647, %v1479_v26  ;;  %vm1507_vm14 = vmor %vm1505_vm13, %vm1506_vm12 }
 0x157   :  { %v1467_v35 = vsub.f32 1.0, %v1462_v46  ;;  %v1469_v2 = vmul.f32 0.0, %v1462_v46  ;;  %v1502_v58 = vsub.f32 1.0, %v1501_v62  ;;  %vm1485_vm9 = vweird.f32 %v1479_v26 }
 0x158   :  { %vm1490_vm11 = vcmp.eq.f32.partialorder %v1489_v45, 8.507059e+37 }
 0x159   :  { %v1468_v59 = vmul.f32 %v4533_v0, %v1467_v35  ;;  %v1503_v43 = vmul.f32 %v4531_v21, %v1502_v58  ;;  %v6790_v0 = vld [vmem:[#allocation60_spill] sm:$0xff] }
 0x15b   :  { %v5553_v63 = vadd.f32 %v1469_v2, %v1468_v59  ;;  %v1492_v59 = vor.u32 1.1754944e-38, %v1491_v41 }
 0x15c   :  { %v4535_v56 = vpop.eup %4534 }
 0x15d   :  { %1522 = vst [vmem:[#allocation14] sm:$0xff] %v5553_v63  ;;  %v5558_v53 = vpack.c.bf16 %v5553_v63, %v5553_v63  ;;  %v1481_v17 = vmul.f32 %v4535_v56, %v1479_v26  ;;  %vm1486_vm8 = vweird.f32 %v4535_v56  ;;  %v1509_v26 = vand.u32 2147483647, %v5549_v30 }
 0x15e   :  { %vm1487_vm10 = vmor %vm1485_vm9, %vm1486_vm8 }
 0x15f   :  { %1535 = vmatmul.bf16.vlgmr.msra.gmra.mxu0 %v5558_v53  ;;  %1561 = vmatmul.bf16.vlgmr.msra.gmra.mxu2 %v5558_v53  ;;  %v1482_v11 = vsub.f32 1.0, %v1481_v17  ;;  %v1504_v17 = vadd.f32 %v4531_v21, %v1503_v43  ;;  %v6792_v43 = vld [vmem:[#allocation68_spill] sm:$0xff]  ;;  %vm1510_vm15 = vcmp.eq.f32.partialorder %v1509_v26, 8.507059e+37  ;;  %v6798_v26 = vld [vmem:[#allocation83_spill] sm:$0xff] }
 0x160   :  { %1631 = vmatpush.bf16.msra.mxu0 %v6788_v15  ;;  %1657 = vmatpush.bf16.msra.mxu2 %v6789_v36 }
 0x161   :  { %v1483_v7 = vmul.f32 %v4535_v56, %v1482_v11  ;;  %v624_v11 = vadd.f32 %v5512_v54, %v5398_v20  ;;  %v6810_v20 = vld [vmem:[#allocation43_spill] sm:$0xff] }
 0x163   :  { %v1484_v35 = vadd.f32 %v4535_v56, %v1483_v7  ;;  %v1508_v7 = vsel %vm1507_vm14, %v4531_v21, %v1504_v17 }
 0x164   :  { %v1404_v44 = vpop.f32.mrf.mxu2  ;;  %1632 = vmatpush.bf16.msra.mxu0 %v6790_v0  ;;  %1658 = vmatpush.bf16.msra.mxu2 %v5290_v14 }
 0x165   :  { %v1405_v39 = vadd.f32 %v1404_v44, %v5561_v31  ;;  %v1488_v2 = vsel %vm1487_vm10, %v4535_v56, %v1484_v35  ;;  %v1511_v44 = vand.u32 2147483648, %v5549_v30 }
 0x166   :  { %v1417_v38 = vpop.f32.mrf.mxu3  ;;  %v1493_v62 = vsel %vm1490_vm11, %v1492_v59, %v1488_v2  ;;  %v6794_v2 = vld [vmem:[#allocation76_spill] sm:$0xff] }
 0x167   :  { %v1418_v46 = vadd.f32 %v1417_v38, %v1405_v39  ;;  %v6791_v39 = vld [vmem:[#allocation64_spill] sm:$0xff]  ;;  %v1512_v45 = vor.u32 1.1754944e-38, %v1511_v44  ;;  %v6796_v44 = vld [vmem:[#allocation58_spill] sm:$0xff] }
 0x168   :  { %1633 = vmatpush.bf16.msra.mxu0 %v6791_v39  ;;  %1659 = vmatpush.bf16.msra.mxu2 %v5309_v27 }
 0x169   :  { %v1515_v58 = vmul.f32 %v1493_v62, %v1418_v46  ;;  %v1513_v54 = vsel %vm1510_vm15, %v1512_v45, %v1508_v7  ;;  %v6793_v46 = vld [vmem:[#allocation72_spill] sm:$0xff]  ;;  %v6802_v7 = vld [vmem:[#allocation65_spill] sm:$0xff]  ;;  %v6803_v45 = vld [vmem:[#allocation31_spill] sm:$0xff] }
 0x16a   :  { %v1518_v30 = vsub.f32 1.0, %v1513_v54  ;;  %v1520_v21 = vmul.f32 0.0, %v1513_v54  ;;  %v6804_v54 = vld [vmem:[#allocation69_spill] sm:$0xff] }
 0x16b   :  { %v1516_v56 = vadd.f32 %v1515_v58, %v624_v11  ;;  %v6795_v11 = vld [vmem:[#allocation80_spill] sm:$0xff]  ;;  %v6797_v58 = vld [vmem:[#allocation102_spill] sm:$0xff] }
 0x16c   :  { %v1406_v41 = vpop.f32.mrf.mxu2  ;;  %1634 = vmatpush.bf16.msra.mxu0 %v6792_v43  ;;  %1660 = vmatpush.bf16.msra.mxu2 %v5325_v47 }
 0x16d   :  { %4536 = vtanh.f32 %v1516_v56  ;;  %v6799_v41 = vld [vmem:[#allocation24_spill] sm:$0xff]  ;;  %v6800_v56 = vld [vmem:[#allocation61_spill] sm:$0xff] }
 0x16e   :  { %v1419_v38 = vpop.f32.mrf.mxu3 }
 0x16f   :  { %1587 = vmatmul.bf16.vlgmr.msrb.gmra.mxu0 %v5558_v53  ;;  %1613 = vmatmul.bf16.vlgmr.msrb.gmra.mxu2 %v5558_v53  ;;  %v6801_v38 = vld [vmem:[#allocation27_spill] sm:$0xff] }
 0x170   :  { %1635 = vmatpush.bf16.msra.mxu0 %v6793_v46  ;;  %1661 = vmatpush.bf16.msra.mxu2 %v5335_v6 }
 0x173   :  { %v4537_v35 = vpop.eup %4536 }
 0x174   :  { %v1519_v59 = vmul.f32 %v4537_v35, %v1518_v30  ;;  %1636 = vmatpush.bf16.msra.mxu0 %v6794_v2  ;;  %1662 = vmatpush.bf16.msra.mxu2 %v5350_v33  ;;  %v6805_v30 = vld [vmem:[#allocation73_spill] sm:$0xff] }
 0x175   :  { %v6807_v35 = vld [vmem:[#allocation77_spill] sm:$0xff] }
 0x176   :  { %v5585_v62 = vadd.f32 %v1520_v21, %v1519_v59  ;;  %v6808_v59 = vld [vmem:[#allocation39_spill] sm:$0xff]  ;;  %v6809_v21 = vld [vmem:[#allocation81_spill] sm:$0xff] }
 0x178   :  { %1524 = vst [vmem:[#allocation14 + $0x78] sm:$0xff] %v5585_v62  ;;  %v1526_v17 = vpack.c.bf16 %v5585_v62, %v5585_v62  ;;  %1637 = vmatpush.bf16.msra.mxu0 %v6795_v11  ;;  %1663 = vmatpush.bf16.msra.mxu2 %v5361_v61 }
 0x17a   :  { %1548 = vmatmul.bf16.vlgmr.msra.gmra.mxu1 %v1526_v17  ;;  %1574 = vmatmul.bf16.vlgmr.msra.gmra.mxu3 %v1526_v17 }
 0x17b   :  { %1644 = vmatpush.bf16.msra.mxu1 %v6796_v44  ;;  %1670 = vmatpush.bf16.msra.mxu3 %v6797_v58 }
 0x17c   :  { %1638 = vmatpush.bf16.msra.mxu0 %v6798_v26  ;;  %1664 = vmatpush.bf16.msra.mxu2 %v5377_v37 }
 0x17f   :  { %1645 = vmatpush.bf16.msra.mxu1 %v6800_v56  ;;  %1671 = vmatpush.bf16.msra.mxu3 %v5295_v1 }
 0x180   :  { %1791 = vmatpush.bf16.msrb.mxu0 %v6799_v41  ;;  %1817 = vmatpush.bf16.msrb.mxu2 %v5091_v10 }
 0x181   :  { %1639 = vmatmul.bf16.vlgmr.msra.gmra.mxu0 %v5558_v53  ;;  %1665 = vmatmul.bf16.vlgmr.msra.gmra.mxu2 %v5558_v53  ;;  %v6806_v53 = vld [vmem:[#allocation35_spill] sm:$0xff] }
 0x183   :  { %1646 = vmatpush.bf16.msra.mxu1 %v6802_v7  ;;  %1672 = vmatpush.bf16.msra.mxu3 %v5313_v55 }
 0x184   :  { %1792 = vmatpush.bf16.msrb.mxu0 %v6801_v38  ;;  %1818 = vmatpush.bf16.msrb.mxu2 %v5108_v25 }
 0x187   :  { %1647 = vmatpush.bf16.msra.mxu1 %v6804_v54  ;;  %1673 = vmatpush.bf16.msra.mxu3 %v5331_v57 }
 0x188   :  { %1793 = vmatpush.bf16.msrb.mxu0 %v6803_v45  ;;  %1819 = vmatpush.bf16.msrb.mxu2 %v5122_v52 }
 0x18a   :  { %1600 = vmatmul.bf16.vlgmr.msrb.gmra.mxu1 %v1526_v17  ;;  %1626 = vmatmul.bf16.vlgmr.msrb.gmra.mxu3 %v1526_v17 }
 0x18b   :  { %1648 = vmatpush.bf16.msra.mxu1 %v6805_v30  ;;  %1674 = vmatpush.bf16.msra.mxu3 %v5341_v3 }
 0x18c   :  { %1794 = vmatpush.bf16.msrb.mxu0 %v6806_v53  ;;  %1820 = vmatpush.bf16.msrb.mxu2 %v5138_v22  ;;  %v6813_v22 = vld [vmem:[#allocation47_spill] sm:$0xff] }
 0x18f   :  { %1649 = vmatpush.bf16.msra.mxu1 %v6807_v35  ;;  %1675 = vmatpush.bf16.msra.mxu3 %v5354_v12 }
 0x190   :  { %1795 = vmatpush.bf16.msrb.mxu0 %v6808_v59  ;;  %1821 = vmatpush.bf16.msrb.mxu2 %v5150_v51  ;;  %v6814_v51 = vld [vmem:[#allocation29_spill] sm:$0xff] }
 0x193   :  { %1650 = vmatpush.bf16.msra.mxu1 %v6809_v21  ;;  %1676 = vmatpush.bf16.msra.mxu3 %v5365_v40 }
 0x194   :  { %1796 = vmatpush.bf16.msrb.mxu0 %v6810_v20  ;;  %1822 = vmatpush.bf16.msrb.mxu2 %v5162_v34  ;;  %v6815_v20 = vld [vmem:[#allocation51_spill] sm:$0xff]  ;;  %v6816_v34 = vld [vmem:[#allocation25_spill] sm:$0xff] }
 0x197   :  { %1651 = vmatpush.bf16.msra.mxu1 %v6811_v8  ;;  %1677 = vmatpush.bf16.msra.mxu3 %v5383_v5  ;;  %v6856_v8 = vld [vmem:[#allocation157_spill] sm:$0xff] }
 0x198   :  { %1797 = vmatpush.bf16.msrb.mxu0 %v6813_v22  ;;  %1823 = vmatpush.bf16.msrb.mxu2 %v5174_v29  ;;  %v6818_v22 = vld [vmem:[#allocation28_spill] sm:$0xff]  ;;  %v6854_v29 = vld [vmem:[#allocation105_spill] sm:$0xff] }
 0x19a   :  { %1652 = vmatmul.bf16.vlgmr.msra.gmra.mxu1 %v1526_v17  ;;  %1678 = vmatmul.bf16.vlgmr.msra.gmra.mxu3 %v1526_v17  ;;  %v6819_v17 = vld [vmem:[#allocation37_spill] sm:$0xff] }
 0x19b   :  { %1804 = vmatpush.bf16.msrb.mxu1 %v6812_v60  ;;  %1830 = vmatpush.bf16.msrb.mxu3 %v5102_v19  ;;  %v6817_v60 = vld [vmem:[#allocation33_spill] sm:$0xff] }
 0x19c   :  { %1798 = vmatpush.bf16.msrb.mxu0 %v6815_v20  ;;  %1824 = vmatpush.bf16.msrb.mxu2 %v5190_v50  ;;  %v6821_v50 = vld [vmem:[#allocation41_spill] sm:$0xff] }
 0x19f   :  { %1805 = vmatpush.bf16.msrb.mxu1 %v6814_v51  ;;  %1831 = vmatpush.bf16.msrb.mxu3 %v5120_v49  ;;  %v6820_v49 = vld [vmem:[#allocation32_spill] sm:$0xff] }
 0x1a0   :  { %1843 = vmatpush.bf16.msra.mxu0 %v6816_v34  ;;  %1869 = vmatpush.bf16.msra.mxu2 %v5210_v48  ;;  %v6822_v48 = vld [vmem:[#allocation36_spill] sm:$0xff] }
 0x1a3   :  { %1806 = vmatpush.bf16.msrb.mxu1 %v6817_v60  ;;  %1832 = vmatpush.bf16.msrb.mxu3 %v5135_v9  ;;  %v6823_v9 = vld [vmem:[#allocation45_spill] sm:$0xff] }
 0x1a4   :  { %1844 = vmatpush.bf16.msra.mxu0 %v6818_v22  ;;  %1870 = vmatpush.bf16.msra.mxu2 %v5219_v4  ;;  %v6824_v22 = vld [vmem:[#allocation74_spill] sm:$0xff]  ;;  %v6825_v4 = vld [vmem:[#allocation40_spill] sm:$0xff] }
 0x1a7   :  { %1807 = vmatpush.bf16.msrb.mxu1 %v6819_v17  ;;  %1833 = vmatpush.bf16.msrb.mxu3 %v5147_v42  ;;  %v6826_v17 = vld [vmem:[#allocation93_spill] sm:$0xff] }
 0x1a8   :  { %1845 = vmatpush.bf16.msra.mxu0 %v6820_v49  ;;  %1871 = vmatpush.bf16.msra.mxu2 %v5228_v13  ;;  %v6827_v42 = vld [vmem:[#allocation49_spill] sm:$0xff]  ;;  %v6828_v49 = vld [vmem:[#allocation78_spill] sm:$0xff]  ;;  %v6829_v13 = vld [vmem:[#allocation44_spill] sm:$0xff] }
 0x1ab   :  { %1808 = vmatpush.bf16.msrb.mxu1 %v6821_v50  ;;  %1834 = vmatpush.bf16.msrb.mxu3 %v5159_v24  ;;  %v6830_v50 = vld [vmem:[#allocation95_spill] sm:$0xff]  ;;  %v6831_v24 = vld [vmem:[#allocation53_spill] sm:$0xff] }
 0x1ac   :  { %1846 = vmatpush.bf16.msra.mxu0 %v6822_v48  ;;  %1872 = vmatpush.bf16.msra.mxu2 %v5236_v23  ;;  %v6832_v48 = vld [vmem:[#allocation82_spill] sm:$0xff] }
 0x1ad   :  { %v6833_v23 = vld [vmem:[#allocation30_spill] sm:$0xff] }
 0x1af   :  { %1809 = vmatpush.bf16.msrb.mxu1 %v6823_v9  ;;  %1835 = vmatpush.bf16.msrb.mxu3 %v6824_v22  ;;  %v6834_v9 = vld [vmem:[#allocation86_spill] sm:$0xff]  ;;  %v6835_v22 = vld [vmem:[#allocation48_spill] sm:$0xff] }
 0x1b0   :  { %1847 = vmatpush.bf16.msra.mxu0 %v6825_v4  ;;  %1873 = vmatpush.bf16.msra.mxu2 %v6826_v17  ;;  %v6836_v4 = vld [vmem:[#allocation97_spill] sm:$0xff]  ;;  %v6837_v17 = vld [vmem:[#allocation34_spill] sm:$0xff] }
 0x1b3   :  { %1810 = vmatpush.bf16.msrb.mxu1 %v6827_v42  ;;  %1836 = vmatpush.bf16.msrb.mxu3 %v6828_v49  ;;  %v6838_v42 = vld [vmem:[#allocation88_spill] sm:$0xff] }
 0x1b4   :  { %1848 = vmatpush.bf16.msra.mxu0 %v6829_v13  ;;  %1874 = vmatpush.bf16.msra.mxu2 %v6830_v50  ;;  %v6839_v49 = vld [vmem:[#allocation52_spill] sm:$0xff]  ;;  %v6840_v13 = vld [vmem:[#allocation99_spill] sm:$0xff]  ;;  %v6841_v50 = vld [vmem:[#allocation38_spill] sm:$0xff] }
 0x1b7   :  { %1811 = vmatpush.bf16.msrb.mxu1 %v6831_v24  ;;  %1837 = vmatpush.bf16.msrb.mxu3 %v6832_v48  ;;  %v6842_v24 = vld [vmem:[#allocation90_spill] sm:$0xff] }
 0x1b8   :  { %1849 = vmatpush.bf16.msra.mxu0 %v6835_v22  ;;  %1875 = vmatpush.bf16.msra.mxu2 %v6836_v4  ;;  %v6843_v48 = vld [vmem:[#allocation42_spill] sm:$0xff] }
 0x1b9   :  { %v6846_v22 = vld [vmem:[#allocation94_spill] sm:$0xff] }
 0x1ba   :  { %v6847_v4 = vld [vmem:[#allocation50_spill] sm:$0xff] }
 0x1bb   :  { %1856 = vmatpush.bf16.msra.mxu1 %v6833_v23  ;;  %1882 = vmatpush.bf16.msra.mxu3 %v6834_v9  ;;  %v6844_v23 = vld [vmem:[#allocation92_spill] sm:$0xff]  ;;  %v6845_v9 = vld [vmem:[#allocation46_spill] sm:$0xff] }
 0x1bc   :  { %1850 = vmatpush.bf16.msra.mxu0 %v6839_v49  ;;  %1876 = vmatpush.bf16.msra.mxu2 %v6840_v13  ;;  %v6850_v49 = vld [vmem:[#allocation98_spill] sm:$0xff]  ;;  %v6851_v13 = vld [vmem:[#allocation57_spill] sm:$0xff] }
 0x1bf   :  { %1857 = vmatpush.bf16.msra.mxu1 %v6837_v17  ;;  %1883 = vmatpush.bf16.msra.mxu3 %v6838_v42  ;;  %v6848_v17 = vld [vmem:[#allocation96_spill] sm:$0xff]  ;;  %v6849_v42 = vld [vmem:[#allocation54_spill] sm:$0xff] }
 0x1c3   :  { %1858 = vmatpush.bf16.msra.mxu1 %v6841_v50  ;;  %1884 = vmatpush.bf16.msra.mxu3 %v6842_v24  ;;  %v6852_v50 = vld [vmem:[#allocation100_spill] sm:$0xff] }
 0x1c7   :  { %1859 = vmatpush.bf16.msra.mxu1 %v6843_v48  ;;  %1885 = vmatpush.bf16.msra.mxu3 %v6844_v23 }
 0x1cb   :  { %1860 = vmatpush.bf16.msra.mxu1 %v6845_v9  ;;  %1886 = vmatpush.bf16.msra.mxu3 %v6846_v22  ;;  %v6853_v22 = vld [vmem:[#allocation156_spill] sm:$0xff] }
 0x1cf   :  { %1861 = vmatpush.bf16.msra.mxu1 %v6847_v4  ;;  %1887 = vmatpush.bf16.msra.mxu3 %v6848_v17  ;;  %v6855_v17 = vld [vmem:[#allocation109_spill] sm:$0xff] }
 0x1d0   :  { %v464_v19 = vadd.f32 %v6855_v17, %v6854_v29 }
 0x1d3   :  { %1862 = vmatpush.bf16.msra.mxu1 %v6849_v42  ;;  %1888 = vmatpush.bf16.msra.mxu3 %v6850_v49 }
 0x1d7   :  { %1863 = vmatpush.bf16.msra.mxu1 %v6851_v13  ;;  %1889 = vmatpush.bf16.msra.mxu3 %v6852_v50 }
 0x1dc   :  { %v1536_v24 = vpop.f32.mrf.mxu0 }
 0x1dd   :  { %v1537_v51 = vadd.f32 %v1536_v24, %v6853_v22 }
 0x1e2   :  { %v1562_v48 = vpop.f32.mrf.mxu2 }
 0x1e3   :  { %v1563_v13 = vadd.f32 %v1562_v48, %v6856_v8 }
 0x1e4   :  { %v1538_v60 = vpop.f32.mrf.mxu0 }
 0x1e5   :  { %v6857_v60 = vld [vmem:[#allocation110_spill] sm:$0xff] }
 0x1ea   :  { %v1564_v23 = vpop.f32.mrf.mxu2 }
 0x1eb   :  { %v493_v23 = vadd.f32 %v6857_v60, %v5304_v32 }
 0x1ec   :  { %v1588_v34 = vpop.f32.mrf.mxu0 }
 0x1f2   :  { %v1614_v9 = vpop.f32.mrf.mxu2 }
 0x1f3   :  { %v1615_v17 = vadd.f32 %v1614_v9, %v5542_v16  ;;  %v6859_v9 = vld [vmem:[#allocation103_spill] sm:$0xff] }
 0x1f4   :  { %v1590_v20 = vpop.f32.mrf.mxu0 }
 0x1f7   :  { %v1549_v4 = vpop.f32.mrf.mxu1 }
 0x1f8   :  { %v1550_v42 = vadd.f32 %v1549_v4, %v1537_v51 }
 0x1fa   :  { %v1687_v5 = vadd.f32 %v1550_v42, %v464_v19  ;;  %v1616_v49 = vpop.f32.mrf.mxu2 }
 0x1fc   :  { %v4228_v59 = vmul.f32 -1.442695, %v1687_v5 }
 0x1fd   :  { %v1575_v50 = vpop.f32.mrf.mxu3 }
 0x1fe   :  { %v1640_v40 = vpop.f32.mrf.mxu0  ;;  %4538 = vpow2.f32 %v4228_v59  ;;  %v1576_v21 = vadd.f32 %v1575_v50, %v1563_v13 }
 0x1ff   :  { %v1551_v20 = vpop.f32.mrf.mxu1  ;;  %v1641_v16 = vadd.f32 %v1640_v40, %v6859_v9 }
 0x200   :  { %v1707_v53 = vadd.f32 %v1576_v21, %v493_v23  ;;  %v6858_v23 = vld [vmem:[#allocation154_spill] sm:$0xff] }
 0x202   :  { %v4229_v24 = vmul.f32 -1.442695, %v1707_v53 }
 0x204   :  { %v5682_v22 = vpop.f32.mrf.mxu2  ;;  %v4539_v12 = vpop.eup %4538  ;;  %4540 = vpow2.f32 %v4229_v24 }
 0x205   :  { %v1691_v51 = vadd.f32 1.0, %v4539_v12  ;;  %v1577_v19 = vpop.f32.mrf.mxu3 }
 0x206   :  { %v1642_v49 = vpop.f32.mrf.mxu0 }
 0x207   :  { %4542 = vrcp.f32 %v1691_v51  ;;  %v1601_v42 = vpop.f32.mrf.mxu1  ;;  %v1703_v24 = vand.u32 2147483648, %v1691_v51  ;;  %v1701_v19 = vand.u32 2147483647, %v1691_v51  ;;  %vm1697_vm1 = vweird.f32 %v1691_v51 }
 0x209   :  { %vm1702_vm3 = vcmp.eq.f32.partialorder %v1701_v19, 8.507059e+37 }
 0x20a   :  { %v4541_v48 = vpop.eup %4540 }
 0x20b   :  { %v1711_v4 = vadd.f32 1.0, %v4541_v48  ;;  %v1589_v48 = vadd.f32 %v1588_v34, %v5538_v28 }
 0x20c   :  { %v1668_v5 = vpop.f32.mrf.mxu2 }
 0x20d   :  { %v4543_v60 = vpop.eup %4542  ;;  %4544 = vrcp.f32 %v1711_v4  ;;  %v1627_v50 = vpop.f32.mrf.mxu3  ;;  %vm1717_vm5 = vweird.f32 %v1711_v4 }
 0x20e   :  { %v1693_v13 = vmul.f32 %v4543_v60, %v1691_v51  ;;  %v1628_v59 = vadd.f32 %v1627_v50, %v1615_v17  ;;  %vm1698_vm0 = vweird.f32 %v4543_v60  ;;  %v1704_v17 = vor.u32 1.1754944e-38, %v1703_v24 }
 0x20f   :  { %v1603_v53 = vpop.f32.mrf.mxu1  ;;  %vm1699_vm2 = vmor %vm1697_vm1, %vm1698_vm0 }
 0x210   :  { %v1694_v21 = vsub.f32 1.0, %v1693_v13  ;;  %v1738_v20 = vadd.f32 %v1628_v59, %v6858_v23  ;;  %v1602_v53 = vadd.f32 %v1601_v42, %v1589_v48 }
 0x212   :  { %v1695_v12 = vmul.f32 %v4543_v60, %v1694_v21  ;;  %v4230_v49 = vmul.f32 -1.442695, %v1738_v20  ;;  %v6860_v21 = vld [vmem:[#allocation132_spill] sm:$0xff]  ;;  %v1723_v20 = vand.u32 2147483648, %v1711_v4 }
 0x213   :  { %v4545_v32 = vpop.eup %4544  ;;  %v522_v23 = vadd.f32 %v6860_v21, %v5444_v18  ;;  %v6890_v18 = vld [vmem:[#allocation66_spill] sm:$0xff] }
 0x214   :  { %v1713_v5 = vmul.f32 %v4545_v32, %v1711_v4  ;;  %v1696_v29 = vadd.f32 %v4543_v60, %v1695_v12  ;;  %4546 = vpow2.f32 %v4230_v49  ;;  %vm1718_vm4 = vweird.f32 %v4545_v32 }
 0x215   :  { %v1629_v50 = vpop.f32.mrf.mxu3  ;;  %v1721_v49 = vand.u32 2147483647, %v1711_v4  ;;  %vm1719_vm6 = vmor %vm1717_vm5, %vm1718_vm4  ;;  %v1724_v42 = vor.u32 1.1754944e-38, %v1723_v20 }
 0x216   :  { %v1714_v13 = vsub.f32 1.0, %v1713_v5  ;;  %v1700_v59 = vsel %vm1699_vm2, %v4543_v60, %v1696_v29  ;;  %v6861_v50 = vld [vmem:[#allocation151_spill] sm:$0xff] }
 0x217   :  { %v1705_v8 = vsel %vm1702_vm3, %v1704_v17, %v1700_v59  ;;  %v1653_v35 = vpop.f32.mrf.mxu1  ;;  %vm1722_vm7 = vcmp.eq.f32.partialorder %v1721_v49, 8.507059e+37 }
 0x218   :  { %v1715_v34 = vmul.f32 %v4545_v32, %v1714_v13  ;;  %v1727_v12 = vmul.f32 %v1705_v8, %v1602_v53  ;;  %v1654_v51 = vadd.f32 %v1653_v35, %v1641_v16 }
 0x21a   :  { %v4547_v28 = vpop.eup %4546  ;;  %v1716_v40 = vadd.f32 %v4545_v32, %v1715_v34  ;;  %v1728_v24 = vadd.f32 %v1727_v12, %v522_v23  ;;  %v1758_v5 = vadd.f32 %v1654_v51, %v6861_v50 }
 0x21b   :  { %v1742_v29 = vadd.f32 1.0, %v4547_v28 }
 0x21c   :  { %v1720_v60 = vsel %vm1719_vm6, %v4545_v32, %v1716_v40  ;;  %4548 = vtanh.f32 %v1728_v24  ;;  %v4231_v19 = vmul.f32 -1.442695, %v1758_v5 }
 0x21d   :  { %4550 = vrcp.f32 %v1742_v29  ;;  %v1679_v48 = vpop.f32.mrf.mxu3  ;;  %v1725_v17 = vsel %vm1722_vm7, %v1724_v42, %v1720_v60  ;;  %v1754_v34 = vand.u32 2147483648, %v1742_v29  ;;  %v1752_v51 = vand.u32 2147483647, %v1742_v29 }
 0x21e   :  { %4552 = vpow2.f32 %v4231_v19  ;;  %v1730_v16 = vsub.f32 1.0, %v1725_v17  ;;  %v1732_v53 = vmul.f32 %v1725_v17, %v5553_v63  ;;  %v1667_v63 = vadd.f32 %v5682_v22, %v5561_v31 }
 0x21f   :  { %v1655_v8 = vpop.f32.mrf.mxu1  ;;  %vm1748_vm9 = vweird.f32 %v1742_v29  ;;  %v1755_v24 = vor.u32 1.1754944e-38, %v1754_v34  ;;  %vm1753_vm11 = vcmp.eq.f32.partialorder %v1752_v51, 8.507059e+37  ;;  %v6864_v51 = vld [vmem:[#allocation114_spill] sm:$0xff] }
 0x220   :  { %v1680_v50 = vadd.f32 %v1679_v48, %v1667_v63  ;;  %v6866_v63 = vld [vmem:[#allocation63_spill] sm:$0xff] }
 0x222   :  { %v4549_v35 = vpop.eup %4548 }
 0x223   :  { %v4551_v13 = vpop.eup %4550  ;;  %v1731_v4 = vmul.f32 %v4549_v35, %v1730_v16 }
 0x224   :  { %v4553_v59 = vpop.eup %4552  ;;  %v1744_v21 = vmul.f32 %v4551_v13, %v1742_v29  ;;  %vm1749_vm8 = vweird.f32 %v4551_v13  ;;  %v6862_v29 = vld [vmem:[#allocation152_spill] sm:$0xff] }
 0x225   :  { %v5692_v23 = vadd.f32 %v1732_v53, %v1731_v4  ;;  %v1762_v28 = vadd.f32 1.0, %v4553_v59  ;;  %v1681_v32 = vpop.f32.mrf.mxu3  ;;  %vm1750_vm10 = vmor %vm1748_vm9, %vm1749_vm8 }
 0x226   :  { %v1745_v20 = vsub.f32 1.0, %v1744_v21 }
 0x227   :  { %1786 = vst [vmem:[#allocation14 + $0x10] sm:$0xff] %v5692_v23  ;;  %4554 = vrcp.f32 %v1762_v28  ;;  %v5697_v49 = vpack.c.bf16 %v5692_v23, %v5692_v23  ;;  %v1774_v16 = vand.u32 2147483648, %v1762_v28  ;;  %v1772_v4 = vand.u32 2147483647, %v1762_v28 }
 0x228   :  { %v1746_v12 = vmul.f32 %v4551_v13, %v1745_v20  ;;  %vm1768_vm13 = vweird.f32 %v1762_v28 }
 0x229   :  { %1799 = vmatmul.bf16.vlgmr.msrb.gmra.mxu0 %v5697_v49  ;;  %1825 = vmatmul.bf16.vlgmr.msrb.gmra.mxu2 %v5697_v49  ;;  %vm1773_vm15 = vcmp.eq.f32.partialorder %v1772_v4, 8.507059e+37  ;;  %v6880_v4 = vld [vmem:[#allocation59_spill] sm:$0xff] }
 0x22a   :  { %v1747_v40 = vadd.f32 %v4551_v13, %v1746_v12  ;;  %1895 = vmatpush.bf16.msrb.mxu0 %v6788_v15  ;;  %1921 = vmatpush.bf16.msrb.mxu2 %v6789_v36 }
 0x22c   :  { %v1751_v5 = vsel %vm1750_vm10, %v4551_v13, %v1747_v40  ;;  %v1775_v13 = vor.u32 1.1754944e-38, %v1774_v16  ;;  %v6867_v40 = vld [vmem:[#allocation81_spill] sm:$0xff]  ;;  %v6878_v16 = vld [vmem:[#allocation75_spill] sm:$0xff] }
 0x22d   :  { %v4555_v42 = vpop.eup %4554  ;;  %v1756_v60 = vsel %vm1753_vm11, %v1755_v24, %v1751_v5  ;;  %v6868_v24 = vld [vmem:[#allocation116_spill] sm:$0xff]  ;;  %v6870_v5 = vld [vmem:[#allocation67_spill] sm:$0xff] }
 0x22e   :  { %v1764_v19 = vmul.f32 %v4555_v42, %v1762_v28  ;;  %v1778_v17 = vmul.f32 %v1756_v60, %v1680_v50  ;;  %1896 = vmatpush.bf16.msrb.mxu0 %v6790_v0  ;;  %1922 = vmatpush.bf16.msrb.mxu2 %v5290_v14  ;;  %vm1769_vm12 = vweird.f32 %v4555_v42  ;;  %v6869_v50 = vld [vmem:[#allocation39_spill] sm:$0xff]  ;;  %v6872_v60 = vld [vmem:[#allocation121_spill] sm:$0xff] }
 0x22f   :  { %vm1770_vm14 = vmor %vm1768_vm13, %vm1769_vm12 }
 0x230   :  { %v1765_v22 = vsub.f32 1.0, %v1764_v19  ;;  %v1779_v8 = vadd.f32 %v1778_v17, %v6862_v29  ;;  %v6873_v19 = vld [vmem:[#allocation43_spill] sm:$0xff] }
 0x231   :  { %v6874_v17 = vld [vmem:[#allocation71_spill] sm:$0xff] }
 0x232   :  { %v1766_v35 = vmul.f32 %v4555_v42, %v1765_v22  ;;  %4556 = vtanh.f32 %v1779_v8  ;;  %1897 = vmatpush.bf16.msrb.mxu0 %v6791_v39  ;;  %1923 = vmatpush.bf16.msrb.mxu2 %v5309_v27  ;;  %v6875_v22 = vld [vmem:[#allocation26_spill] sm:$0xff]  ;;  %v6876_v29 = vld [vmem:[#allocation55_spill] sm:$0xff] }
 0x233   :  { %v6877_v8 = vld [vmem:[#allocation47_spill] sm:$0xff] }
 0x234   :  { %v1767_v48 = vadd.f32 %v4555_v42, %v1766_v35  ;;  %v6879_v35 = vld [vmem:[#allocation29_spill] sm:$0xff] }
 0x236   :  { %v1771_v53 = vsel %vm1770_vm14, %v4555_v42, %v1767_v48  ;;  %1898 = vmatpush.bf16.msrb.mxu0 %v6792_v43  ;;  %1924 = vmatpush.bf16.msrb.mxu2 %v5325_v47  ;;  %v6871_v42 = vld [vmem:[#allocation84_spill] sm:$0xff]  ;;  %v6881_v48 = vld [vmem:[#allocation51_spill] sm:$0xff] }
 0x237   :  { %v1776_v59 = vsel %vm1773_vm15, %v1775_v13, %v1771_v53  ;;  %v6882_v13 = vld [vmem:[#allocation79_spill] sm:$0xff]  ;;  %v6883_v53 = vld [vmem:[#allocation25_spill] sm:$0xff] }
 0x238   :  { %v4557_v21 = vpop.eup %4556  ;;  %v1781_v32 = vsub.f32 1.0, %v1776_v59  ;;  %v1783_v34 = vmul.f32 %v1776_v59, %v5585_v62  ;;  %v6863_v62 = vld [vmem:[#allocation77_spill] sm:$0xff] }
 0x239   :  { %1851 = vmatmul.bf16.vlgmr.msra.gmra.mxu0 %v5697_v49  ;;  %1877 = vmatmul.bf16.vlgmr.msra.gmra.mxu2 %v5697_v49  ;;  %v6884_v59 = vld [vmem:[#allocation85_spill] sm:$0xff] }
 0x23a   :  { %v1782_v20 = vmul.f32 %v4557_v21, %v1781_v32  ;;  %1899 = vmatpush.bf16.msrb.mxu0 %v6793_v46  ;;  %1925 = vmatpush.bf16.msrb.mxu2 %v5335_v6  ;;  %v6885_v21 = vld [vmem:[#allocation33_spill] sm:$0xff]  ;;  %v6886_v32 = vld [vmem:[#allocation62_spill] sm:$0xff] }
 0x23c   :  { %v5717_v28 = vadd.f32 %v1783_v34, %v1782_v20  ;;  %v6887_v20 = vld [vmem:[#allocation28_spill] sm:$0xff]  ;;  %v6888_v34 = vld [vmem:[#allocation87_spill] sm:$0xff] }
 0x23e   :  { %1788 = vst [vmem:[#allocation14 + $0x68] sm:$0xff] %v5717_v28  ;;  %v1790_v12 = vpack.c.bf16 %v5717_v28, %v5717_v28  ;;  %1900 = vmatpush.bf16.msrb.mxu0 %v6794_v2  ;;  %1926 = vmatpush.bf16.msrb.mxu2 %v5350_v33 }
 0x240   :  { %1812 = vmatmul.bf16.vlgmr.msrb.gmra.mxu1 %v1790_v12  ;;  %1838 = vmatmul.bf16.vlgmr.msrb.gmra.mxu3 %v1790_v12 }
 0x241   :  { %1908 = vmatpush.bf16.msrb.mxu1 %v6796_v44  ;;  %1934 = vmatpush.bf16.msrb.mxu3 %v6797_v58 }
 0x242   :  { %1901 = vmatpush.bf16.msrb.mxu0 %v6795_v11  ;;  %1927 = vmatpush.bf16.msrb.mxu2 %v5361_v61 }
 0x245   :  { %1909 = vmatpush.bf16.msrb.mxu1 %v6800_v56  ;;  %1935 = vmatpush.bf16.msrb.mxu3 %v5295_v1 }
 0x246   :  { %1902 = vmatpush.bf16.msrb.mxu0 %v6798_v26  ;;  %1928 = vmatpush.bf16.msrb.mxu2 %v5377_v37 }
 0x249   :  { %1910 = vmatpush.bf16.msrb.mxu1 %v6802_v7  ;;  %1936 = vmatpush.bf16.msrb.mxu3 %v5313_v55 }
 0x24a   :  { %2055 = vmatpush.bf16.msra.mxu0 %v6799_v41  ;;  %2081 = vmatpush.bf16.msra.mxu2 %v5091_v10 }
 0x24b   :  { %1903 = vmatmul.bf16.vlgmr.msrb.gmra.mxu0 %v5697_v49  ;;  %1929 = vmatmul.bf16.vlgmr.msrb.gmra.mxu2 %v5697_v49  ;;  %v6865_v49 = vld [vmem:[#allocation35_spill] sm:$0xff] }
 0x24d   :  { %1911 = vmatpush.bf16.msrb.mxu1 %v6804_v54  ;;  %1937 = vmatpush.bf16.msrb.mxu3 %v5331_v57 }
 0x24e   :  { %2056 = vmatpush.bf16.msra.mxu0 %v6801_v38  ;;  %2082 = vmatpush.bf16.msra.mxu2 %v5108_v25 }
 0x250   :  { %1864 = vmatmul.bf16.vlgmr.msra.gmra.mxu1 %v1790_v12  ;;  %1890 = vmatmul.bf16.vlgmr.msra.gmra.mxu3 %v1790_v12 }
 0x251   :  { %1912 = vmatpush.bf16.msrb.mxu1 %v6805_v30  ;;  %1938 = vmatpush.bf16.msrb.mxu3 %v5341_v3 }
 0x252   :  { %2057 = vmatpush.bf16.msra.mxu0 %v6803_v45  ;;  %2083 = vmatpush.bf16.msra.mxu2 %v5122_v52 }
 0x255   :  { %1913 = vmatpush.bf16.msrb.mxu1 %v6863_v62  ;;  %1939 = vmatpush.bf16.msrb.mxu3 %v6864_v51 }
 0x256   :  { %2058 = vmatpush.bf16.msra.mxu0 %v6865_v49  ;;  %2084 = vmatpush.bf16.msra.mxu2 %v6866_v63  ;;  %v6934_v49 = vld [vmem:[#allocation104_spill] sm:$0xff] }
 0x259   :  { %1914 = vmatpush.bf16.msrb.mxu1 %v6867_v40  ;;  %1940 = vmatpush.bf16.msrb.mxu3 %v6868_v24 }
 0x25a   :  { %2059 = vmatpush.bf16.msra.mxu0 %v6869_v50  ;;  %2085 = vmatpush.bf16.msra.mxu2 %v6870_v5  ;;  %v6930_v5 = vld [vmem:[#allocation115_spill] sm:$0xff] }
 0x25d   :  { %1915 = vmatpush.bf16.msrb.mxu1 %v6871_v42  ;;  %1941 = vmatpush.bf16.msrb.mxu3 %v6872_v60 }
 0x25e   :  { %2060 = vmatpush.bf16.msra.mxu0 %v6873_v19  ;;  %2086 = vmatpush.bf16.msra.mxu2 %v6874_v17 }
 0x260   :  { %1916 = vmatmul.bf16.vlgmr.msrb.gmra.mxu1 %v1790_v12  ;;  %1942 = vmatmul.bf16.vlgmr.msrb.gmra.mxu3 %v1790_v12  ;;  %v6889_v12 = vld [vmem:[#allocation37_spill] sm:$0xff] }
 0x261   :  { %2068 = vmatpush.bf16.msra.mxu1 %v6875_v22  ;;  %2094 = vmatpush.bf16.msra.mxu3 %v6876_v29 }
 0x262   :  { %2061 = vmatpush.bf16.msra.mxu0 %v6877_v8  ;;  %2087 = vmatpush.bf16.msra.mxu2 %v6878_v16 }
 0x265   :  { %2069 = vmatpush.bf16.msra.mxu1 %v6879_v35  ;;  %2095 = vmatpush.bf16.msra.mxu3 %v6880_v4  ;;  %v6891_v4 = vld [vmem:[#allocation32_spill] sm:$0xff] }
 0x266   :  { %2062 = vmatpush.bf16.msra.mxu0 %v6881_v48  ;;  %2088 = vmatpush.bf16.msra.mxu2 %v6882_v13  ;;  %v6892_v48 = vld [vmem:[#allocation89_spill] sm:$0xff] }
 0x267   :  { %v6893_v13 = vld [vmem:[#allocation41_spill] sm:$0xff] }
 0x269   :  { %2070 = vmatpush.bf16.msra.mxu1 %v6885_v21  ;;  %2096 = vmatpush.bf16.msra.mxu3 %v6886_v32  ;;  %v6896_v21 = vld [vmem:[#allocation91_spill] sm:$0xff]  ;;  %v6897_v32 = vld [vmem:[#allocation45_spill] sm:$0xff] }
 0x26a   :  { %2107 = vmatpush.bf16.msrb.mxu0 %v6883_v53  ;;  %2133 = vmatpush.bf16.msrb.mxu2 %v6884_v59  ;;  %v6894_v53 = vld [vmem:[#allocation70_spill] sm:$0xff]  ;;  %v6895_v59 = vld [vmem:[#allocation36_spill] sm:$0xff] }
 0x26d   :  { %2071 = vmatpush.bf16.msra.mxu1 %v6889_v12  ;;  %2097 = vmatpush.bf16.msra.mxu3 %v6890_v18  ;;  %v6900_v12 = vld [vmem:[#allocation93_spill] sm:$0xff] }
 0x26e   :  { %2108 = vmatpush.bf16.msrb.mxu0 %v6887_v20  ;;  %2134 = vmatpush.bf16.msrb.mxu2 %v6888_v34  ;;  %v6898_v20 = vld [vmem:[#allocation74_spill] sm:$0xff]  ;;  %v6899_v34 = vld [vmem:[#allocation40_spill] sm:$0xff]  ;;  %v6901_v18 = vld [vmem:[#allocation49_spill] sm:$0xff] }
 0x271   :  { %2072 = vmatpush.bf16.msra.mxu1 %v6893_v13  ;;  %2098 = vmatpush.bf16.msra.mxu3 %v6894_v53  ;;  %v6904_v13 = vld [vmem:[#allocation95_spill] sm:$0xff]  ;;  %v6905_v53 = vld [vmem:[#allocation53_spill] sm:$0xff] }
 0x272   :  { %2109 = vmatpush.bf16.msrb.mxu0 %v6891_v4  ;;  %2135 = vmatpush.bf16.msrb.mxu2 %v6892_v48  ;;  %v6902_v4 = vld [vmem:[#allocation78_spill] sm:$0xff]  ;;  %v6903_v48 = vld [vmem:[#allocation44_spill] sm:$0xff] }
 0x275   :  { %2073 = vmatpush.bf16.msra.mxu1 %v6897_v32  ;;  %2099 = vmatpush.bf16.msra.mxu3 %v6898_v20  ;;  %v6908_v32 = vld [vmem:[#allocation86_spill] sm:$0xff]  ;;  %v6909_v20 = vld [vmem:[#allocation48_spill] sm:$0xff] }
 0x276   :  { %2110 = vmatpush.bf16.msrb.mxu0 %v6895_v59  ;;  %2136 = vmatpush.bf16.msrb.mxu2 %v6896_v21  ;;  %v6906_v59 = vld [vmem:[#allocation82_spill] sm:$0xff] }
 0x277   :  { %v6907_v21 = vld [vmem:[#allocation30_spill] sm:$0xff] }
 0x279   :  { %2074 = vmatpush.bf16.msra.mxu1 %v6901_v18  ;;  %2100 = vmatpush.bf16.msra.mxu3 %v6902_v4  ;;  %v6912_v18 = vld [vmem:[#allocation88_spill] sm:$0xff] }
 0x27a   :  { %2111 = vmatpush.bf16.msrb.mxu0 %v6899_v34  ;;  %2137 = vmatpush.bf16.msrb.mxu2 %v6900_v12  ;;  %v6910_v34 = vld [vmem:[#allocation97_spill] sm:$0xff]  ;;  %v6911_v12 = vld [vmem:[#allocation34_spill] sm:$0xff]  ;;  %v6913_v4 = vld [vmem:[#allocation52_spill] sm:$0xff] }
 0x27d   :  { %2075 = vmatpush.bf16.msra.mxu1 %v6905_v53  ;;  %2101 = vmatpush.bf16.msra.mxu3 %v6906_v59  ;;  %v6916_v53 = vld [vmem:[#allocation90_spill] sm:$0xff] }
 0x27e   :  { %2112 = vmatpush.bf16.msrb.mxu0 %v6903_v48  ;;  %2138 = vmatpush.bf16.msrb.mxu2 %v6904_v13  ;;  %v6914_v48 = vld [vmem:[#allocation99_spill] sm:$0xff]  ;;  %v6915_v13 = vld [vmem:[#allocation38_spill] sm:$0xff] }
 0x27f   :  { %v6917_v59 = vld [vmem:[#allocation42_spill] sm:$0xff] }
 0x281   :  { %2120 = vmatpush.bf16.msrb.mxu1 %v6907_v21  ;;  %2146 = vmatpush.bf16.msrb.mxu3 %v6908_v32  ;;  %v6918_v21 = vld [vmem:[#allocation92_spill] sm:$0xff]  ;;  %v6919_v32 = vld [vmem:[#allocation46_spill] sm:$0xff] }
 0x282   :  { %2113 = vmatpush.bf16.msrb.mxu0 %v6909_v20  ;;  %2139 = vmatpush.bf16.msrb.mxu2 %v6910_v34  ;;  %v6920_v20 = vld [vmem:[#allocation94_spill] sm:$0xff] }
 0x283   :  { %v6921_v34 = vld [vmem:[#allocation50_spill] sm:$0xff] }
 0x285   :  { %2121 = vmatpush.bf16.msrb.mxu1 %v6911_v12  ;;  %2147 = vmatpush.bf16.msrb.mxu3 %v6912_v18  ;;  %v6922_v12 = vld [vmem:[#allocation96_spill] sm:$0xff]  ;;  %v6923_v18 = vld [vmem:[#allocation54_spill] sm:$0xff] }
 0x286   :  { %2114 = vmatpush.bf16.msrb.mxu0 %v6913_v4  ;;  %2140 = vmatpush.bf16.msrb.mxu2 %v6914_v48  ;;  %v6924_v4 = vld [vmem:[#allocation98_spill] sm:$0xff]  ;;  %v6925_v48 = vld [vmem:[#allocation57_spill] sm:$0xff] }
 0x289   :  { %2122 = vmatpush.bf16.msrb.mxu1 %v6915_v13  ;;  %2148 = vmatpush.bf16.msrb.mxu3 %v6916_v53  ;;  %v6926_v13 = vld [vmem:[#allocation100_spill] sm:$0xff] }
 0x28d   :  { %2123 = vmatpush.bf16.msrb.mxu1 %v6917_v59  ;;  %2149 = vmatpush.bf16.msrb.mxu3 %v6918_v21 }
 0x291   :  { %2124 = vmatpush.bf16.msrb.mxu1 %v6919_v32  ;;  %2150 = vmatpush.bf16.msrb.mxu3 %v6920_v20  ;;  %v6927_v32 = vld [vmem:[#allocation156_spill] sm:$0xff] }
 0x295   :  { %2125 = vmatpush.bf16.msrb.mxu1 %v6921_v34  ;;  %2151 = vmatpush.bf16.msrb.mxu3 %v6922_v12  ;;  %v6928_v12 = vld [vmem:[#allocation113_spill] sm:$0xff] }
 0x299   :  { %2126 = vmatpush.bf16.msrb.mxu1 %v6923_v18  ;;  %2152 = vmatpush.bf16.msrb.mxu3 %v6924_v4  ;;  %v6929_v18 = vld [vmem:[#allocation157_spill] sm:$0xff] }
 0x29d   :  { %2127 = vmatpush.bf16.msrb.mxu1 %v6925_v48  ;;  %2153 = vmatpush.bf16.msrb.mxu3 %v6926_v13 }
 0x2a6   :  { %v1800_v53 = vpop.f32.mrf.mxu0 }
 0x2a7   :  { %v1801_v8 = vadd.f32 %v1800_v53, %v6927_v32 }
 0x2ac   :  { %v1826_v59 = vpop.f32.mrf.mxu2 }
 0x2ad   :  { %v1827_v19 = vadd.f32 %v1826_v59, %v6929_v18 }
 0x2ae   :  { %v1802_v35 = vpop.f32.mrf.mxu0 }
 0x2b4   :  { %v1828_v21 = vpop.f32.mrf.mxu2 }
 0x2b6   :  { %v1852_v16 = vpop.f32.mrf.mxu0 }
 0x2bc   :  { %v1878_v20 = vpop.f32.mrf.mxu2 }
 0x2bd   :  { %v1813_v29 = vpop.f32.mrf.mxu1 }
 0x2be   :  { %v1814_v34 = vadd.f32 %v1813_v29, %v1801_v8  ;;  %v1854_v22 = vpop.f32.mrf.mxu0 }
 0x2c0   :  { %v1951_v17 = vadd.f32 %v1814_v34, %v6928_v12  ;;  %v6931_v34 = vld [vmem:[#allocation158_spill] sm:$0xff] }
 0x2c2   :  { %v4232_v4 = vmul.f32 -1.442695, %v1951_v17 }
 0x2c3   :  { %v1839_v60 = vpop.f32.mrf.mxu3 }
 0x2c4   :  { %4558 = vpow2.f32 %v4232_v4  ;;  %v1840_v48 = vadd.f32 %v1839_v60, %v1827_v19  ;;  %v1880_v13 = vpop.f32.mrf.mxu2  ;;  %v1879_v4 = vadd.f32 %v1878_v20, %v6931_v34  ;;  %v6932_v19 = vld [vmem:[#allocation128_spill] sm:$0xff]  ;;  %v1853_v20 = vadd.f32 %v1852_v16, %v6934_v49 }
 0x2c5   :  { %v1815_v42 = vpop.f32.mrf.mxu1 }
 0x2c6   :  { %v1971_v35 = vadd.f32 %v1840_v48, %v6930_v5  ;;  %v6933_v5 = vld [vmem:[#allocation150_spill] sm:$0xff] }
 0x2c7   :  { %v561_v48 = vadd.f32 %v6933_v5, %v6932_v19 }
 0x2c8   :  { %v1904_v21 = vpop.f32.mrf.mxu0  ;;  %v4233_v50 = vmul.f32 -1.442695, %v1971_v35 }
 0x2c9   :  { %v1905_v5 = vadd.f32 %v1904_v21, %v6859_v9 }
 0x2ca   :  { %v4559_v24 = vpop.eup %4558  ;;  %4560 = vpow2.f32 %v4233_v50 }
 0x2cb   :  { %v1955_v53 = vadd.f32 1.0, %v4559_v24  ;;  %v1841_v32 = vpop.f32.mrf.mxu3 }
 0x2cd   :  { %4562 = vrcp.f32 %v1955_v53  ;;  %v1865_v29 = vpop.f32.mrf.mxu1  ;;  %v1967_v18 = vand.u32 2147483648, %v1955_v53  ;;  %vm1961_vm1 = vweird.f32 %v1955_v53 }
 0x2ce   :  { %v5814_v22 = vpop.f32.mrf.mxu2 }
 0x2d0   :  { %v1906_v8 = vpop.f32.mrf.mxu0  ;;  %v4561_v59 = vpop.eup %4560 }
 0x2d1   :  { %v1975_v17 = vadd.f32 1.0, %v4561_v59  ;;  %v1965_v8 = vand.u32 2147483647, %v1955_v53 }
 0x2d3   :  { %v4563_v60 = vpop.eup %4562  ;;  %4564 = vrcp.f32 %v1975_v17  ;;  %v1891_v42 = vpop.f32.mrf.mxu3  ;;  %vm1966_vm3 = vcmp.eq.f32.partialorder %v1965_v8, 8.507059e+37  ;;  %vm1981_vm5 = vweird.f32 %v1975_v17 }
 0x2d4   :  { %v1957_v13 = vmul.f32 %v4563_v60, %v1955_v53  ;;  %v1892_v12 = vadd.f32 %v1891_v42, %v1879_v4  ;;  %vm1962_vm0 = vweird.f32 %v4563_v60  ;;  %v1968_v4 = vor.u32 1.1754944e-38, %v1967_v18  ;;  %v6937_v18 = vld [vmem:[#allocation137_spill] sm:$0xff] }
 0x2d5   :  { %v1867_v24 = vpop.f32.mrf.mxu1  ;;  %vm1963_vm2 = vmor %vm1961_vm1, %vm1962_vm0 }
 0x2d6   :  { %v1932_v50 = vpop.f32.mrf.mxu2  ;;  %v1958_v32 = vsub.f32 1.0, %v1957_v13  ;;  %v2002_v35 = vadd.f32 %v1892_v12, %v561_v48  ;;  %v1866_v13 = vadd.f32 %v1865_v29, %v1853_v20  ;;  %v6935_v12 = vld [vmem:[#allocation122_spill] sm:$0xff]  ;;  %v6936_v24 = vld [vmem:[#allocation147_spill] sm:$0xff] }
 0x2d8   :  { %v1959_v40 = vmul.f32 %v4563_v60, %v1958_v32  ;;  %v4234_v63 = vmul.f32 -1.442695, %v2002_v35  ;;  %v590_v32 = vadd.f32 %v6936_v24, %v6935_v12  ;;  %v1987_v35 = vand.u32 2147483648, %v1975_v17  ;;  %v6967_v12 = vld [vmem:[#allocation66_spill] sm:$0xff] }
 0x2d9   :  { %v4565_v59 = vpop.eup %4564 }
 0x2da   :  { %v1977_v34 = vmul.f32 %v4565_v59, %v1975_v17  ;;  %v1960_v51 = vadd.f32 %v4563_v60, %v1959_v40  ;;  %4566 = vpow2.f32 %v4234_v63  ;;  %vm1982_vm4 = vweird.f32 %v4565_v59 }
 0x2db   :  { %v1893_v42 = vpop.f32.mrf.mxu3  ;;  %v1985_v63 = vand.u32 2147483647, %v1975_v17  ;;  %vm1983_vm6 = vmor %vm1981_vm5, %vm1982_vm4  ;;  %v1988_v29 = vor.u32 1.1754944e-38, %v1987_v35 }
 0x2dc   :  { %v1978_v50 = vsub.f32 1.0, %v1977_v34  ;;  %v1964_v48 = vsel %vm1963_vm2, %v4563_v60, %v1960_v51 }
 0x2dd   :  { %v1969_v19 = vsel %vm1966_vm3, %v1968_v4, %v1964_v48  ;;  %v1917_v62 = vpop.f32.mrf.mxu1  ;;  %vm1986_vm7 = vcmp.eq.f32.partialorder %v1985_v63, 8.507059e+37 }
 0x2de   :  { %v1979_v16 = vmul.f32 %v4565_v59, %v1978_v50  ;;  %v1991_v40 = vmul.f32 %v1969_v19, %v1866_v13  ;;  %v1918_v53 = vadd.f32 %v1917_v62, %v1905_v5 }
 0x2e0   :  { %v4567_v49 = vpop.eup %4566  ;;  %v1980_v21 = vadd.f32 %v4565_v59, %v1979_v16  ;;  %v1992_v42 = vadd.f32 %v1991_v40, %v6937_v18  ;;  %v2022_v34 = vadd.f32 %v1918_v53, %v590_v32 }
 0x2e1   :  { %v2006_v51 = vadd.f32 1.0, %v4567_v49 }
 0x2e2   :  { %v1984_v60 = vsel %vm1983_vm6, %v4565_v59, %v1980_v21  ;;  %4568 = vtanh.f32 %v1992_v42  ;;  %v4235_v8 = vmul.f32 -1.442695, %v2022_v34 }
 0x2e3   :  { %4570 = vrcp.f32 %v2006_v51  ;;  %v1943_v20 = vpop.f32.mrf.mxu3  ;;  %v1989_v4 = vsel %vm1986_vm7, %v1988_v29, %v1984_v60  ;;  %v2018_v16 = vand.u32 2147483648, %v2006_v51  ;;  %v2016_v53 = vand.u32 2147483647, %v2006_v51 }
 0x2e4   :  { %4572 = vpow2.f32 %v4235_v8  ;;  %v1994_v62 = vsub.f32 1.0, %v1989_v4  ;;  %v1996_v13 = vmul.f32 %v1989_v4, %v5692_v23  ;;  %v1931_v23 = vadd.f32 %v5814_v22, %v5561_v31  ;;  %v6938_v8 = vld [vmem:[#allocation125_spill] sm:$0xff]  ;;  %v6939_v4 = vld [vmem:[#allocation148_spill] sm:$0xff] }
 0x2e5   :  { %v1919_v19 = vpop.f32.mrf.mxu1  ;;  %vm2012_vm9 = vweird.f32 %v2006_v51  ;;  %v2019_v18 = vor.u32 1.1754944e-38, %v2018_v16  ;;  %vm2017_vm11 = vcmp.eq.f32.partialorder %v2016_v53, 8.507059e+37  ;;  %v619_v22 = vadd.f32 %v6939_v4, %v6938_v8  ;;  %v6948_v4 = vld [vmem:[#allocation84_spill] sm:$0xff]  ;;  %v6966_v8 = vld [vmem:[#allocation37_spill] sm:$0xff] }
 0x2e6   :  { %v1944_v42 = vadd.f32 %v1943_v20, %v1931_v23 }
 0x2e8   :  { %v4569_v5 = vpop.eup %4568 }
 0x2e9   :  { %v4571_v50 = vpop.eup %4570  ;;  %v1995_v17 = vmul.f32 %v4569_v5, %v1994_v62 }
 0x2ea   :  { %v4573_v48 = vpop.eup %4572  ;;  %v2008_v24 = vmul.f32 %v4571_v50, %v2006_v51  ;;  %vm2013_vm8 = vweird.f32 %v4571_v50 }
 0x2eb   :  { %v5825_v32 = vadd.f32 %v1996_v13, %v1995_v17  ;;  %v2026_v49 = vadd.f32 1.0, %v4573_v48  ;;  %v1945_v59 = vpop.f32.mrf.mxu3  ;;  %vm2014_vm10 = vmor %vm2012_vm9, %vm2013_vm8 }
 0x2ec   :  { %v2009_v35 = vsub.f32 1.0, %v2008_v24 }
 0x2ed   :  { %2050 = vst [vmem:[#allocation14 + $0x20] sm:$0xff] %v5825_v32  ;;  %4574 = vrcp.f32 %v2026_v49  ;;  %v5830_v63 = vpack.c.bf16 %v5825_v32, %v5825_v32  ;;  %v2038_v17 = vand.u32 2147483648, %v2026_v49  ;;  %v2036_v48 = vand.u32 2147483647, %v2026_v49 }
 0x2ee   :  { %v2010_v40 = vmul.f32 %v4571_v50, %v2009_v35  ;;  %vm2032_vm13 = vweird.f32 %v2026_v49 }
 0x2ef   :  { %2063 = vmatmul.bf16.vlgmr.msra.gmra.mxu0 %v5830_v63  ;;  %2089 = vmatmul.bf16.vlgmr.msra.gmra.mxu2 %v5830_v63  ;;  %vm2037_vm15 = vcmp.eq.f32.partialorder %v2036_v48, 8.507059e+37  ;;  %v6956_v48 = vld [vmem:[#allocation29_spill] sm:$0xff] }
 0x2f0   :  { %v2011_v21 = vadd.f32 %v4571_v50, %v2010_v40  ;;  %2159 = vmatpush.bf16.msra.mxu0 %v6788_v15  ;;  %2185 = vmatpush.bf16.msra.mxu2 %v6789_v36 }
 0x2f2   :  { %v2015_v34 = vsel %vm2014_vm10, %v4571_v50, %v2011_v21  ;;  %v2039_v50 = vor.u32 1.1754944e-38, %v2038_v17  ;;  %v6942_v21 = vld [vmem:[#allocation35_spill] sm:$0xff] }
 0x2f3   :  { %v4575_v29 = vpop.eup %4574  ;;  %v2020_v60 = vsel %vm2017_vm11, %v2019_v18, %v2015_v34  ;;  %v6943_v18 = vld [vmem:[#allocation63_spill] sm:$0xff]  ;;  %v6945_v34 = vld [vmem:[#allocation116_spill] sm:$0xff] }
 0x2f4   :  { %v2028_v19 = vmul.f32 %v4575_v29, %v2026_v49  ;;  %v2042_v51 = vmul.f32 %v2020_v60, %v1944_v42  ;;  %2160 = vmatpush.bf16.msra.mxu0 %v6790_v0  ;;  %2186 = vmatpush.bf16.msra.mxu2 %v5290_v14  ;;  %vm2033_vm12 = vweird.f32 %v4575_v29  ;;  %v6944_v42 = vld [vmem:[#allocation81_spill] sm:$0xff]  ;;  %v6947_v60 = vld [vmem:[#allocation67_spill] sm:$0xff] }
 0x2f5   :  { %vm2034_vm14 = vmor %vm2032_vm13, %vm2033_vm12  ;;  %v6954_v17 = vld [vmem:[#allocation47_spill] sm:$0xff] }
 0x2f6   :  { %v2029_v62 = vsub.f32 1.0, %v2028_v19  ;;  %v2043_v5 = vadd.f32 %v2042_v51, %v619_v22  ;;  %v6949_v22 = vld [vmem:[#allocation121_spill] sm:$0xff]  ;;  %v6950_v19 = vld [vmem:[#allocation43_spill] sm:$0xff] }
 0x2f7   :  { %v6951_v51 = vld [vmem:[#allocation71_spill] sm:$0xff] }
 0x2f8   :  { %v2030_v13 = vmul.f32 %v4575_v29, %v2029_v62  ;;  %4576 = vtanh.f32 %v2043_v5  ;;  %2161 = vmatpush.bf16.msra.mxu0 %v6791_v39  ;;  %2187 = vmatpush.bf16.msra.mxu2 %v5309_v27  ;;  %v6952_v62 = vld [vmem:[#allocation26_spill] sm:$0xff]  ;;  %v6953_v5 = vld [vmem:[#allocation55_spill] sm:$0xff] }
 0x2fa   :  { %v2031_v20 = vadd.f32 %v4575_v29, %v2030_v13  ;;  %v6955_v13 = vld [vmem:[#allocation75_spill] sm:$0xff] }
 0x2fc   :  { %v2035_v24 = vsel %vm2034_vm14, %v4575_v29, %v2031_v20  ;;  %2162 = vmatpush.bf16.msra.mxu0 %v6792_v43  ;;  %2188 = vmatpush.bf16.msra.mxu2 %v5325_v47  ;;  %v6946_v29 = vld [vmem:[#allocation39_spill] sm:$0xff] }
 0x2fd   :  { %v2040_v59 = vsel %vm2037_vm15, %v2039_v50, %v2035_v24  ;;  %v6957_v20 = vld [vmem:[#allocation59_spill] sm:$0xff] }
 0x2fe   :  { %v4577_v35 = vpop.eup %4576  ;;  %v2045_v16 = vsub.f32 1.0, %v2040_v59  ;;  %v2047_v53 = vmul.f32 %v2040_v59, %v5717_v28  ;;  %v6940_v28 = vld [vmem:[#allocation77_spill] sm:$0xff]  ;;  %v6958_v50 = vld [vmem:[#allocation51_spill] sm:$0xff] }
 0x2ff   :  { %2115 = vmatmul.bf16.vlgmr.msrb.gmra.mxu0 %v5830_v63  ;;  %2141 = vmatmul.bf16.vlgmr.msrb.gmra.mxu2 %v5830_v63  ;;  %v6959_v24 = vld [vmem:[#allocation79_spill] sm:$0xff]  ;;  %v6960_v59 = vld [vmem:[#allocation25_spill] sm:$0xff] }
 0x300   :  { %v2046_v40 = vmul.f32 %v4577_v35, %v2045_v16  ;;  %2163 = vmatpush.bf16.msra.mxu0 %v6793_v46  ;;  %2189 = vmatpush.bf16.msra.mxu2 %v5335_v6  ;;  %v6961_v35 = vld [vmem:[#allocation85_spill] sm:$0xff] }
 0x301   :  { %v6962_v16 = vld [vmem:[#allocation33_spill] sm:$0xff] }
 0x302   :  { %v5851_v49 = vadd.f32 %v2047_v53, %v2046_v40  ;;  %v6963_v40 = vld [vmem:[#allocation62_spill] sm:$0xff]  ;;  %v6964_v53 = vld [vmem:[#allocation28_spill] sm:$0xff] }
 0x304   :  { %2052 = vst [vmem:[#allocation14 + $0x58] sm:$0xff] %v5851_v49  ;;  %v2054_v23 = vpack.c.bf16 %v5851_v49, %v5851_v49  ;;  %2164 = vmatpush.bf16.msra.mxu0 %v6794_v2  ;;  %2190 = vmatpush.bf16.msra.mxu2 %v5350_v33 }
 0x306   :  { %2076 = vmatmul.bf16.vlgmr.msra.gmra.mxu1 %v2054_v23  ;;  %2102 = vmatmul.bf16.vlgmr.msra.gmra.mxu3 %v2054_v23 }
 0x307   :  { %2172 = vmatpush.bf16.msra.mxu1 %v6796_v44  ;;  %2198 = vmatpush.bf16.msra.mxu3 %v6797_v58 }
 0x308   :  { %2165 = vmatpush.bf16.msra.mxu0 %v6795_v11  ;;  %2191 = vmatpush.bf16.msra.mxu2 %v5361_v61 }
 0x30b   :  { %2173 = vmatpush.bf16.msra.mxu1 %v6800_v56  ;;  %2199 = vmatpush.bf16.msra.mxu3 %v5295_v1 }
 0x30c   :  { %2166 = vmatpush.bf16.msra.mxu0 %v6798_v26  ;;  %2192 = vmatpush.bf16.msra.mxu2 %v5377_v37 }
 0x30f   :  { %2174 = vmatpush.bf16.msra.mxu1 %v6802_v7  ;;  %2200 = vmatpush.bf16.msra.mxu3 %v5313_v55 }
 0x310   :  { %2319 = vmatpush.bf16.msrb.mxu0 %v6799_v41  ;;  %2345 = vmatpush.bf16.msrb.mxu2 %v5091_v10 }
 0x311   :  { %2167 = vmatmul.bf16.vlgmr.msra.gmra.mxu0 %v5830_v63  ;;  %2193 = vmatmul.bf16.vlgmr.msra.gmra.mxu2 %v5830_v63  ;;  %v6941_v63 = vld [vmem:[#allocation114_spill] sm:$0xff] }
 0x313   :  { %2175 = vmatpush.bf16.msra.mxu1 %v6804_v54  ;;  %2201 = vmatpush.bf16.msra.mxu3 %v5331_v57 }
 0x314   :  { %2320 = vmatpush.bf16.msrb.mxu0 %v6801_v38  ;;  %2346 = vmatpush.bf16.msrb.mxu2 %v5108_v25 }
 0x316   :  { %2128 = vmatmul.bf16.vlgmr.msrb.gmra.mxu1 %v2054_v23  ;;  %2154 = vmatmul.bf16.vlgmr.msrb.gmra.mxu3 %v2054_v23 }
 0x317   :  { %2176 = vmatpush.bf16.msra.mxu1 %v6805_v30  ;;  %2202 = vmatpush.bf16.msra.mxu3 %v5341_v3 }
 0x318   :  { %2321 = vmatpush.bf16.msrb.mxu0 %v6803_v45  ;;  %2347 = vmatpush.bf16.msrb.mxu2 %v5122_v52 }
 0x31b   :  { %2177 = vmatpush.bf16.msra.mxu1 %v6940_v28  ;;  %2203 = vmatpush.bf16.msra.mxu3 %v6941_v63 }
 0x31c   :  { %2322 = vmatpush.bf16.msrb.mxu0 %v6942_v21  ;;  %2348 = vmatpush.bf16.msrb.mxu2 %v6943_v18 }
 0x31f   :  { %2178 = vmatpush.bf16.msra.mxu1 %v6944_v42  ;;  %2204 = vmatpush.bf16.msra.mxu3 %v6945_v34 }
 0x320   :  { %2323 = vmatpush.bf16.msrb.mxu0 %v6946_v29  ;;  %2349 = vmatpush.bf16.msrb.mxu2 %v6947_v60  ;;  %v7009_v60 = vld [vmem:[#allocation120_spill] sm:$0xff] }
 0x323   :  { %2179 = vmatpush.bf16.msra.mxu1 %v6948_v4  ;;  %2205 = vmatpush.bf16.msra.mxu3 %v6949_v22 }
 0x324   :  { %2324 = vmatpush.bf16.msrb.mxu0 %v6950_v19  ;;  %2350 = vmatpush.bf16.msrb.mxu2 %v6951_v51 }
 0x326   :  { %2180 = vmatmul.bf16.vlgmr.msra.gmra.mxu1 %v2054_v23  ;;  %2206 = vmatmul.bf16.vlgmr.msra.gmra.mxu3 %v2054_v23  ;;  %v6965_v23 = vld [vmem:[#allocation87_spill] sm:$0xff] }
 0x327   :  { %2332 = vmatpush.bf16.msrb.mxu1 %v6952_v62  ;;  %2358 = vmatpush.bf16.msrb.mxu3 %v6953_v5  ;;  %v7006_v62 = vld [vmem:[#allocation119_spill] sm:$0xff] }
 0x328   :  { %2325 = vmatpush.bf16.msrb.mxu0 %v6954_v17  ;;  %2351 = vmatpush.bf16.msrb.mxu2 %v6955_v13 }
 0x32b   :  { %2333 = vmatpush.bf16.msrb.mxu1 %v6956_v48  ;;  %2359 = vmatpush.bf16.msrb.mxu3 %v6957_v20  ;;  %v6968_v20 = vld [vmem:[#allocation32_spill] sm:$0xff] }
 0x32c   :  { %2326 = vmatpush.bf16.msrb.mxu0 %v6958_v50  ;;  %2352 = vmatpush.bf16.msrb.mxu2 %v6959_v24  ;;  %v6969_v50 = vld [vmem:[#allocation89_spill] sm:$0xff] }
 0x32d   :  { %v6970_v24 = vld [vmem:[#allocation41_spill] sm:$0xff] }
 0x32f   :  { %2334 = vmatpush.bf16.msrb.mxu1 %v6962_v16  ;;  %2360 = vmatpush.bf16.msrb.mxu3 %v6963_v40  ;;  %v6973_v16 = vld [vmem:[#allocation91_spill] sm:$0xff]  ;;  %v6974_v40 = vld [vmem:[#allocation45_spill] sm:$0xff] }
 0x330   :  { %2371 = vmatpush.bf16.msra.mxu0 %v6960_v59  ;;  %2397 = vmatpush.bf16.msra.mxu2 %v6961_v35  ;;  %v6971_v59 = vld [vmem:[#allocation70_spill] sm:$0xff]  ;;  %v6972_v35 = vld [vmem:[#allocation36_spill] sm:$0xff] }
 0x333   :  { %2335 = vmatpush.bf16.msrb.mxu1 %v6966_v8  ;;  %2361 = vmatpush.bf16.msrb.mxu3 %v6967_v12  ;;  %v6977_v8 = vld [vmem:[#allocation93_spill] sm:$0xff] }
 0x334   :  { %2372 = vmatpush.bf16.msra.mxu0 %v6964_v53  ;;  %2398 = vmatpush.bf16.msra.mxu2 %v6965_v23  ;;  %v6975_v53 = vld [vmem:[#allocation74_spill] sm:$0xff]  ;;  %v6976_v23 = vld [vmem:[#allocation40_spill] sm:$0xff]  ;;  %v6978_v12 = vld [vmem:[#allocation49_spill] sm:$0xff] }
 0x337   :  { %2336 = vmatpush.bf16.msrb.mxu1 %v6970_v24  ;;  %2362 = vmatpush.bf16.msrb.mxu3 %v6971_v59  ;;  %v6981_v24 = vld [vmem:[#allocation95_spill] sm:$0xff]  ;;  %v6982_v59 = vld [vmem:[#allocation53_spill] sm:$0xff] }
 0x338   :  { %2373 = vmatpush.bf16.msra.mxu0 %v6968_v20  ;;  %2399 = vmatpush.bf16.msra.mxu2 %v6969_v50  ;;  %v6979_v20 = vld [vmem:[#allocation78_spill] sm:$0xff]  ;;  %v6980_v50 = vld [vmem:[#allocation44_spill] sm:$0xff] }
 0x33b   :  { %2337 = vmatpush.bf16.msrb.mxu1 %v6974_v40  ;;  %2363 = vmatpush.bf16.msrb.mxu3 %v6975_v53  ;;  %v6985_v40 = vld [vmem:[#allocation86_spill] sm:$0xff]  ;;  %v6986_v53 = vld [vmem:[#allocation48_spill] sm:$0xff] }
 0x33c   :  { %2374 = vmatpush.bf16.msra.mxu0 %v6972_v35  ;;  %2400 = vmatpush.bf16.msra.mxu2 %v6973_v16  ;;  %v6983_v35 = vld [vmem:[#allocation82_spill] sm:$0xff] }
 0x33d   :  { %v6984_v16 = vld [vmem:[#allocation30_spill] sm:$0xff] }
 0x33f   :  { %2338 = vmatpush.bf16.msrb.mxu1 %v6978_v12  ;;  %2364 = vmatpush.bf16.msrb.mxu3 %v6979_v20  ;;  %v6989_v12 = vld [vmem:[#allocation88_spill] sm:$0xff] }
 0x340   :  { %2375 = vmatpush.bf16.msra.mxu0 %v6976_v23  ;;  %2401 = vmatpush.bf16.msra.mxu2 %v6977_v8  ;;  %v6987_v23 = vld [vmem:[#allocation97_spill] sm:$0xff]  ;;  %v6988_v8 = vld [vmem:[#allocation34_spill] sm:$0xff]  ;;  %v6990_v20 = vld [vmem:[#allocation52_spill] sm:$0xff] }
 0x343   :  { %2339 = vmatpush.bf16.msrb.mxu1 %v6982_v59  ;;  %2365 = vmatpush.bf16.msrb.mxu3 %v6983_v35  ;;  %v6993_v59 = vld [vmem:[#allocation90_spill] sm:$0xff] }
 0x344   :  { %2376 = vmatpush.bf16.msra.mxu0 %v6980_v50  ;;  %2402 = vmatpush.bf16.msra.mxu2 %v6981_v24  ;;  %v6991_v50 = vld [vmem:[#allocation99_spill] sm:$0xff]  ;;  %v6992_v24 = vld [vmem:[#allocation38_spill] sm:$0xff] }
 0x345   :  { %v6994_v35 = vld [vmem:[#allocation42_spill] sm:$0xff] }
 0x347   :  { %2384 = vmatpush.bf16.msra.mxu1 %v6984_v16  ;;  %2410 = vmatpush.bf16.msra.mxu3 %v6985_v40  ;;  %v6995_v16 = vld [vmem:[#allocation92_spill] sm:$0xff]  ;;  %v6996_v40 = vld [vmem:[#allocation46_spill] sm:$0xff] }
 0x348   :  { %2377 = vmatpush.bf16.msra.mxu0 %v6986_v53  ;;  %2403 = vmatpush.bf16.msra.mxu2 %v6987_v23  ;;  %v6997_v53 = vld [vmem:[#allocation94_spill] sm:$0xff] }
 0x349   :  { %v6998_v23 = vld [vmem:[#allocation50_spill] sm:$0xff] }
 0x34b   :  { %2385 = vmatpush.bf16.msra.mxu1 %v6988_v8  ;;  %2411 = vmatpush.bf16.msra.mxu3 %v6989_v12  ;;  %v6999_v8 = vld [vmem:[#allocation96_spill] sm:$0xff]  ;;  %v7000_v12 = vld [vmem:[#allocation54_spill] sm:$0xff] }
 0x34c   :  { %2378 = vmatpush.bf16.msra.mxu0 %v6990_v20  ;;  %2404 = vmatpush.bf16.msra.mxu2 %v6991_v50  ;;  %v7001_v20 = vld [vmem:[#allocation98_spill] sm:$0xff]  ;;  %v7002_v50 = vld [vmem:[#allocation57_spill] sm:$0xff] }
 0x34f   :  { %2386 = vmatpush.bf16.msra.mxu1 %v6992_v24  ;;  %2412 = vmatpush.bf16.msra.mxu3 %v6993_v59  ;;  %v7003_v24 = vld [vmem:[#allocation100_spill] sm:$0xff] }
 0x353   :  { %2387 = vmatpush.bf16.msra.mxu1 %v6994_v35  ;;  %2413 = vmatpush.bf16.msra.mxu3 %v6995_v16 }
 0x357   :  { %2388 = vmatpush.bf16.msra.mxu1 %v6996_v40  ;;  %2414 = vmatpush.bf16.msra.mxu3 %v6997_v53  ;;  %v7004_v40 = vld [vmem:[#allocation156_spill] sm:$0xff] }
 0x35b   :  { %2389 = vmatpush.bf16.msra.mxu1 %v6998_v23  ;;  %2415 = vmatpush.bf16.msra.mxu3 %v6999_v8  ;;  %v7005_v23 = vld [vmem:[#allocation105_spill] sm:$0xff] }
 0x35c   :  { %v469_v8 = vadd.f32 %v7006_v62, %v7005_v23 }
 0x35f   :  { %2390 = vmatpush.bf16.msra.mxu1 %v7000_v12  ;;  %2416 = vmatpush.bf16.msra.mxu3 %v7001_v20  ;;  %v7007_v20 = vld [vmem:[#allocation157_spill] sm:$0xff] }
 0x363   :  { %2391 = vmatpush.bf16.msra.mxu1 %v7002_v50  ;;  %2417 = vmatpush.bf16.msra.mxu3 %v7003_v24  ;;  %v7008_v24 = vld [vmem:[#allocation106_spill] sm:$0xff] }
 0x364   :  { %v498_v29 = vadd.f32 %v7009_v60, %v7008_v24 }
 0x36c   :  { %v2064_v59 = vpop.f32.mrf.mxu0 }
 0x36d   :  { %v2065_v17 = vadd.f32 %v2064_v59, %v7004_v40 }
 0x372   :  { %v2090_v35 = vpop.f32.mrf.mxu2 }
 0x373   :  { %v2091_v22 = vadd.f32 %v2090_v35, %v7007_v20  ;;  %v7010_v35 = vld [vmem:[#allocation158_spill] sm:$0xff]  ;;  %v7012_v20 = vld [vmem:[#allocation104_spill] sm:$0xff] }
 0x374   :  { %v2066_v48 = vpop.f32.mrf.mxu0 }
 0x37a   :  { %v2092_v16 = vpop.f32.mrf.mxu2 }
 0x37c   :  { %v2116_v13 = vpop.f32.mrf.mxu0 }
 0x382   :  { %v2142_v53 = vpop.f32.mrf.mxu2 }
 0x383   :  { %v2077_v5 = vpop.f32.mrf.mxu1  ;;  %v2143_v60 = vadd.f32 %v2142_v53, %v7010_v35 }
 0x384   :  { %v2078_v51 = vadd.f32 %v2077_v5, %v2065_v17  ;;  %v2118_v12 = vpop.f32.mrf.mxu0 }
 0x386   :  { %v2215_v19 = vadd.f32 %v2078_v51, %v469_v8 }
 0x388   :  { %v4236_v50 = vmul.f32 -1.442695, %v2215_v19 }
 0x389   :  { %v2103_v4 = vpop.f32.mrf.mxu3 }
 0x38a   :  { %4578 = vpow2.f32 %v4236_v50  ;;  %v2104_v48 = vadd.f32 %v2103_v4, %v2091_v22  ;;  %v2144_v16 = vpop.f32.mrf.mxu2 }
 0x38b   :  { %v2079_v34 = vpop.f32.mrf.mxu1 }
 0x38c   :  { %v2235_v59 = vadd.f32 %v2104_v48, %v498_v29 }
 0x38e   :  { %v2168_v40 = vpop.f32.mrf.mxu0  ;;  %v4237_v42 = vmul.f32 -1.442695, %v2235_v59 }
 0x38f   :  { %v2169_v35 = vadd.f32 %v2168_v40, %v6859_v9 }
 0x390   :  { %v4579_v18 = vpop.eup %4578  ;;  %4580 = vpow2.f32 %v4237_v42  ;;  %v7011_v42 = vld [vmem:[#allocation146_spill] sm:$0xff] }
 0x391   :  { %v2219_v62 = vadd.f32 1.0, %v4579_v18  ;;  %v2105_v5 = vpop.f32.mrf.mxu3 }
 0x393   :  { %4582 = vrcp.f32 %v2219_v62  ;;  %v2129_v8 = vpop.f32.mrf.mxu1  ;;  %v2231_v59 = vand.u32 2147483648, %v2219_v62  ;;  %v2229_v24 = vand.u32 2147483647, %v2219_v62  ;;  %vm2225_vm1 = vweird.f32 %v2219_v62 }
 0x394   :  { %v5950_v12 = vpop.f32.mrf.mxu2 }
 0x395   :  { %vm2230_vm3 = vcmp.eq.f32.partialorder %v2229_v24, 8.507059e+37 }
 0x396   :  { %v2170_v19 = vpop.f32.mrf.mxu0  ;;  %v4581_v51 = vpop.eup %4580 }
 0x397   :  { %v2239_v17 = vadd.f32 1.0, %v4581_v51  ;;  %v2117_v51 = vadd.f32 %v2116_v13, %v7012_v20 }
 0x399   :  { %v4583_v50 = vpop.eup %4582  ;;  %4584 = vrcp.f32 %v2239_v17  ;;  %v2155_v4 = vpop.f32.mrf.mxu3  ;;  %vm2245_vm5 = vweird.f32 %v2239_v17 }
 0x39a   :  { %v2221_v34 = vmul.f32 %v4583_v50, %v2219_v62  ;;  %v2156_v29 = vadd.f32 %v2155_v4, %v2143_v60  ;;  %vm2226_vm0 = vweird.f32 %v4583_v50  ;;  %v2232_v60 = vor.u32 1.1754944e-38, %v2231_v59 }
 0x39b   :  { %v2131_v48 = vpop.f32.mrf.mxu1  ;;  %vm2227_vm2 = vmor %vm2225_vm1, %vm2226_vm0 }
 0x39c   :  { %v2196_v22 = vpop.f32.mrf.mxu2  ;;  %v2222_v16 = vsub.f32 1.0, %v2221_v34  ;;  %v2266_v18 = vadd.f32 %v2156_v29, %v7011_v42  ;;  %v7013_v48 = vld [vmem:[#allocation136_spill] sm:$0xff] }
 0x39d   :  { %v2130_v22 = vadd.f32 %v2129_v8, %v2117_v51 }
 0x39e   :  { %v2223_v5 = vmul.f32 %v4583_v50, %v2222_v16  ;;  %v4238_v23 = vmul.f32 -1.442695, %v2266_v18  ;;  %v7014_v16 = vld [vmem:[#allocation141_spill] sm:$0xff]  ;;  %v2251_v18 = vand.u32 2147483648, %v2239_v17 }
 0x39f   :  { %v4585_v19 = vpop.eup %4584  ;;  %v527_v42 = vadd.f32 %v7014_v16, %v7013_v48  ;;  %v7044_v48 = vld [vmem:[#allocation66_spill] sm:$0xff] }
 0x3a0   :  { %v2241_v21 = vmul.f32 %v4585_v19, %v2239_v17  ;;  %v2224_v53 = vadd.f32 %v4583_v50, %v2223_v5  ;;  %4586 = vpow2.f32 %v4238_v23  ;;  %vm2246_vm4 = vweird.f32 %v4585_v19 }
 0x3a1   :  { %v2157_v4 = vpop.f32.mrf.mxu3  ;;  %v2249_v23 = vand.u32 2147483647, %v2239_v17  ;;  %vm2247_vm6 = vmor %vm2245_vm5, %vm2246_vm4  ;;  %v2252_v24 = vor.u32 1.1754944e-38, %v2251_v18 }
 0x3a2   :  { %v2242_v34 = vsub.f32 1.0, %v2241_v21  ;;  %v2228_v29 = vsel %vm2227_vm2, %v4583_v50, %v2224_v53  ;;  %v7015_v4 = vld [vmem:[#allocation143_spill] sm:$0xff] }
 0x3a3   :  { %v2233_v63 = vsel %vm2230_vm3, %v2232_v60, %v2228_v29  ;;  %v2181_v28 = vpop.f32.mrf.mxu1  ;;  %vm2250_vm7 = vcmp.eq.f32.partialorder %v2249_v23, 8.507059e+37 }
 0x3a4   :  { %v2243_v13 = vmul.f32 %v4585_v19, %v2242_v34  ;;  %v2255_v5 = vmul.f32 %v2233_v63, %v2130_v22  ;;  %v2182_v62 = vadd.f32 %v2181_v28, %v2169_v35 }
 0x3a6   :  { %v4587_v20 = vpop.eup %4586  ;;  %v2244_v40 = vadd.f32 %v4585_v19, %v2243_v13  ;;  %v2256_v59 = vadd.f32 %v2255_v5, %v527_v42  ;;  %v2286_v21 = vadd.f32 %v2182_v62, %v7015_v4 }
 0x3a7   :  { %v2270_v8 = vadd.f32 1.0, %v4587_v20 }
 0x3a8   :  { %v2248_v50 = vsel %vm2247_vm6, %v4585_v19, %v2244_v40  ;;  %4588 = vtanh.f32 %v2256_v59  ;;  %v4239_v51 = vmul.f32 -1.442695, %v2286_v21 }
 0x3a9   :  { %4590 = vrcp.f32 %v2270_v8  ;;  %v2207_v53 = vpop.f32.mrf.mxu3  ;;  %v2253_v60 = vsel %vm2250_vm7, %v2252_v24, %v2248_v50  ;;  %v2282_v13 = vand.u32 2147483648, %v2270_v8  ;;  %v2280_v62 = vand.u32 2147483647, %v2270_v8 }
 0x3aa   :  { %4592 = vpow2.f32 %v4239_v51  ;;  %v2258_v28 = vsub.f32 1.0, %v2253_v60  ;;  %v2260_v22 = vmul.f32 %v2253_v60, %v5825_v32  ;;  %v2195_v32 = vadd.f32 %v5950_v12, %v5561_v31 }
 0x3ab   :  { %v2183_v63 = vpop.f32.mrf.mxu1  ;;  %vm2276_vm9 = vweird.f32 %v2270_v8  ;;  %v2283_v59 = vor.u32 1.1754944e-38, %v2282_v13  ;;  %vm2281_vm11 = vcmp.eq.f32.partialorder %v2280_v62, 8.507059e+37  ;;  %v7018_v62 = vld [vmem:[#allocation114_spill] sm:$0xff] }
 0x3ac   :  { %v2208_v4 = vadd.f32 %v2207_v53, %v2195_v32  ;;  %v7020_v32 = vld [vmem:[#allocation63_spill] sm:$0xff] }
 0x3ae   :  { %v4589_v35 = vpop.eup %4588 }
 0x3af   :  { %v4591_v34 = vpop.eup %4590  ;;  %v2259_v17 = vmul.f32 %v4589_v35, %v2258_v28 }
 0x3b0   :  { %v4593_v29 = vpop.eup %4592  ;;  %v2272_v16 = vmul.f32 %v4591_v34, %v2270_v8  ;;  %vm2277_vm8 = vweird.f32 %v4591_v34  ;;  %v7016_v8 = vld [vmem:[#allocation144_spill] sm:$0xff] }
 0x3b1   :  { %v5960_v42 = vadd.f32 %v2260_v22, %v2259_v17  ;;  %v2290_v20 = vadd.f32 1.0, %v4593_v29  ;;  %v2209_v19 = vpop.f32.mrf.mxu3  ;;  %vm2278_vm10 = vmor %vm2276_vm9, %vm2277_vm8 }
 0x3b2   :  { %v2273_v18 = vsub.f32 1.0, %v2272_v16 }
 0x3b3   :  { %2314 = vst [vmem:[#allocation14 + $0x30] sm:$0xff] %v5960_v42  ;;  %4594 = vrcp.f32 %v2290_v20  ;;  %v5965_v23 = vpack.c.bf16 %v5960_v42, %v5960_v42  ;;  %v2302_v28 = vand.u32 2147483648, %v2290_v20  ;;  %v2300_v17 = vand.u32 2147483647, %v2290_v20 }
 0x3b4   :  { %v2274_v5 = vmul.f32 %v4591_v34, %v2273_v18  ;;  %vm2296_vm13 = vweird.f32 %v2290_v20 }
 0x3b5   :  { %2327 = vmatmul.bf16.vlgmr.msrb.gmra.mxu0 %v5965_v23  ;;  %2353 = vmatmul.bf16.vlgmr.msrb.gmra.mxu2 %v5965_v23  ;;  %vm2301_vm15 = vcmp.eq.f32.partialorder %v2300_v17, 8.507059e+37  ;;  %v7034_v17 = vld [vmem:[#allocation59_spill] sm:$0xff] }
 0x3b6   :  { %v2275_v40 = vadd.f32 %v4591_v34, %v2274_v5  ;;  %2423 = vmatpush.bf16.msrb.mxu0 %v6788_v15  ;;  %2449 = vmatpush.bf16.msrb.mxu2 %v6789_v36 }
 0x3b8   :  { %v2279_v21 = vsel %vm2278_vm10, %v4591_v34, %v2275_v40  ;;  %v2303_v34 = vor.u32 1.1754944e-38, %v2302_v28  ;;  %v7021_v40 = vld [vmem:[#allocation81_spill] sm:$0xff]  ;;  %v7032_v28 = vld [vmem:[#allocation75_spill] sm:$0xff] }
 0x3b9   :  { %v4595_v24 = vpop.eup %4594  ;;  %v2284_v50 = vsel %vm2281_vm11, %v2283_v59, %v2279_v21  ;;  %v7022_v59 = vld [vmem:[#allocation116_spill] sm:$0xff]  ;;  %v7024_v21 = vld [vmem:[#allocation67_spill] sm:$0xff] }
 0x3ba   :  { %v2292_v51 = vmul.f32 %v4595_v24, %v2290_v20  ;;  %v2306_v60 = vmul.f32 %v2284_v50, %v2208_v4  ;;  %2424 = vmatpush.bf16.msrb.mxu0 %v6790_v0  ;;  %2450 = vmatpush.bf16.msrb.mxu2 %v5290_v14  ;;  %vm2297_vm12 = vweird.f32 %v4595_v24  ;;  %v7023_v4 = vld [vmem:[#allocation39_spill] sm:$0xff]  ;;  %v7026_v50 = vld [vmem:[#allocation121_spill] sm:$0xff] }
 0x3bb   :  { %vm2298_vm14 = vmor %vm2296_vm13, %vm2297_vm12 }
 0x3bc   :  { %v2293_v12 = vsub.f32 1.0, %v2292_v51  ;;  %v2307_v63 = vadd.f32 %v2306_v60, %v7016_v8  ;;  %v7027_v51 = vld [vmem:[#allocation43_spill] sm:$0xff] }
 0x3bd   :  { %v7028_v60 = vld [vmem:[#allocation71_spill] sm:$0xff] }
 0x3be   :  { %v2294_v35 = vmul.f32 %v4595_v24, %v2293_v12  ;;  %4596 = vtanh.f32 %v2307_v63  ;;  %2425 = vmatpush.bf16.msrb.mxu0 %v6791_v39  ;;  %2451 = vmatpush.bf16.msrb.mxu2 %v5309_v27  ;;  %v7029_v12 = vld [vmem:[#allocation26_spill] sm:$0xff]  ;;  %v7030_v8 = vld [vmem:[#allocation55_spill] sm:$0xff] }
 0x3bf   :  { %v7031_v63 = vld [vmem:[#allocation47_spill] sm:$0xff] }
 0x3c0   :  { %v2295_v53 = vadd.f32 %v4595_v24, %v2294_v35  ;;  %v7033_v35 = vld [vmem:[#allocation29_spill] sm:$0xff] }
 0x3c2   :  { %v2299_v22 = vsel %vm2298_vm14, %v4595_v24, %v2295_v53  ;;  %2426 = vmatpush.bf16.msrb.mxu0 %v6792_v43  ;;  %2452 = vmatpush.bf16.msrb.mxu2 %v5325_v47  ;;  %v7025_v24 = vld [vmem:[#allocation84_spill] sm:$0xff]  ;;  %v7035_v53 = vld [vmem:[#allocation51_spill] sm:$0xff] }
 0x3c3   :  { %v2304_v29 = vsel %vm2301_vm15, %v2303_v34, %v2299_v22  ;;  %v7036_v34 = vld [vmem:[#allocation79_spill] sm:$0xff]  ;;  %v7037_v22 = vld [vmem:[#allocation25_spill] sm:$0xff] }
 0x3c4   :  { %v4597_v16 = vpop.eup %4596  ;;  %v2309_v19 = vsub.f32 1.0, %v2304_v29  ;;  %v2311_v13 = vmul.f32 %v2304_v29, %v5851_v49  ;;  %v7017_v49 = vld [vmem:[#allocation77_spill] sm:$0xff] }
 0x3c5   :  { %2379 = vmatmul.bf16.vlgmr.msra.gmra.mxu0 %v5965_v23  ;;  %2405 = vmatmul.bf16.vlgmr.msra.gmra.mxu2 %v5965_v23  ;;  %v7038_v29 = vld [vmem:[#allocation85_spill] sm:$0xff] }
 0x3c6   :  { %v2310_v18 = vmul.f32 %v4597_v16, %v2309_v19  ;;  %2427 = vmatpush.bf16.msrb.mxu0 %v6793_v46  ;;  %2453 = vmatpush.bf16.msrb.mxu2 %v5335_v6  ;;  %v7039_v16 = vld [vmem:[#allocation33_spill] sm:$0xff]  ;;  %v7040_v19 = vld [vmem:[#allocation62_spill] sm:$0xff] }
 0x3c8   :  { %v5985_v20 = vadd.f32 %v2311_v13, %v2310_v18  ;;  %v7041_v18 = vld [vmem:[#allocation28_spill] sm:$0xff]  ;;  %v7042_v13 = vld [vmem:[#allocation87_spill] sm:$0xff] }
 0x3ca   :  { %2316 = vst [vmem:[#allocation14 + $0x48] sm:$0xff] %v5985_v20  ;;  %v2318_v5 = vpack.c.bf16 %v5985_v20, %v5985_v20  ;;  %2428 = vmatpush.bf16.msrb.mxu0 %v6794_v2  ;;  %2454 = vmatpush.bf16.msrb.mxu2 %v5350_v33 }
 0x3cc   :  { %2340 = vmatmul.bf16.vlgmr.msrb.gmra.mxu1 %v2318_v5  ;;  %2366 = vmatmul.bf16.vlgmr.msrb.gmra.mxu3 %v2318_v5 }
 0x3cd   :  { %2436 = vmatpush.bf16.msrb.mxu1 %v6796_v44  ;;  %2462 = vmatpush.bf16.msrb.mxu3 %v6797_v58 }
 0x3ce   :  { %2429 = vmatpush.bf16.msrb.mxu0 %v6795_v11  ;;  %2455 = vmatpush.bf16.msrb.mxu2 %v5361_v61 }
 0x3d1   :  { %2437 = vmatpush.bf16.msrb.mxu1 %v6800_v56  ;;  %2463 = vmatpush.bf16.msrb.mxu3 %v5295_v1 }
 0x3d2   :  { %2430 = vmatpush.bf16.msrb.mxu0 %v6798_v26  ;;  %2456 = vmatpush.bf16.msrb.mxu2 %v5377_v37 }
 0x3d5   :  { %2438 = vmatpush.bf16.msrb.mxu1 %v6802_v7  ;;  %2464 = vmatpush.bf16.msrb.mxu3 %v5313_v55 }
 0x3d6   :  { %2579 = vmatpush.bf16.msra.mxu0 %v6799_v41  ;;  %2605 = vmatpush.bf16.msra.mxu2 %v5091_v10 }
 0x3d7   :  { %2431 = vmatmul.bf16.vlgmr.msrb.gmra.mxu0 %v5965_v23  ;;  %2457 = vmatmul.bf16.vlgmr.msrb.gmra.mxu2 %v5965_v23  ;;  %v7019_v23 = vld [vmem:[#allocation35_spill] sm:$0xff] }
 0x3d9   :  { %2439 = vmatpush.bf16.msrb.mxu1 %v6804_v54  ;;  %2465 = vmatpush.bf16.msrb.mxu3 %v5331_v57 }
 0x3da   :  { %2580 = vmatpush.bf16.msra.mxu0 %v6801_v38  ;;  %2606 = vmatpush.bf16.msra.mxu2 %v5108_v25 }
 0x3dc   :  { %2392 = vmatmul.bf16.vlgmr.msra.gmra.mxu1 %v2318_v5  ;;  %2418 = vmatmul.bf16.vlgmr.msra.gmra.mxu3 %v2318_v5 }
 0x3dd   :  { %2440 = vmatpush.bf16.msrb.mxu1 %v6805_v30  ;;  %2466 = vmatpush.bf16.msrb.mxu3 %v5341_v3 }
 0x3de   :  { %2581 = vmatpush.bf16.msra.mxu0 %v6803_v45  ;;  %2607 = vmatpush.bf16.msra.mxu2 %v5122_v52 }
 0x3e1   :  { %2441 = vmatpush.bf16.msrb.mxu1 %v7017_v49  ;;  %2467 = vmatpush.bf16.msrb.mxu3 %v7018_v62 }
 0x3e2   :  { %2582 = vmatpush.bf16.msra.mxu0 %v7019_v23  ;;  %2608 = vmatpush.bf16.msra.mxu2 %v7020_v32  ;;  %v7088_v23 = vld [vmem:[#allocation104_spill] sm:$0xff] }
 0x3e5   :  { %2442 = vmatpush.bf16.msrb.mxu1 %v7021_v40  ;;  %2468 = vmatpush.bf16.msrb.mxu3 %v7022_v59 }
 0x3e6   :  { %2583 = vmatpush.bf16.msra.mxu0 %v7023_v4  ;;  %2609 = vmatpush.bf16.msra.mxu2 %v7024_v21  ;;  %v7084_v21 = vld [vmem:[#allocation108_spill] sm:$0xff] }
 0x3e9   :  { %2443 = vmatpush.bf16.msrb.mxu1 %v7025_v24  ;;  %2469 = vmatpush.bf16.msrb.mxu3 %v7026_v50 }
 0x3ea   :  { %2584 = vmatpush.bf16.msra.mxu0 %v7027_v51  ;;  %2610 = vmatpush.bf16.msra.mxu2 %v7028_v60 }
 0x3ec   :  { %2444 = vmatmul.bf16.vlgmr.msrb.gmra.mxu1 %v2318_v5  ;;  %2470 = vmatmul.bf16.vlgmr.msrb.gmra.mxu3 %v2318_v5  ;;  %v7043_v5 = vld [vmem:[#allocation37_spill] sm:$0xff] }
 0x3ed   :  { %2592 = vmatpush.bf16.msra.mxu1 %v7029_v12  ;;  %2618 = vmatpush.bf16.msra.mxu3 %v7030_v8 }
 0x3ee   :  { %2585 = vmatpush.bf16.msra.mxu0 %v7031_v63  ;;  %2611 = vmatpush.bf16.msra.mxu2 %v7032_v28 }
 0x3f1   :  { %2593 = vmatpush.bf16.msra.mxu1 %v7033_v35  ;;  %2619 = vmatpush.bf16.msra.mxu3 %v7034_v17  ;;  %v7045_v17 = vld [vmem:[#allocation32_spill] sm:$0xff] }
 0x3f2   :  { %2586 = vmatpush.bf16.msra.mxu0 %v7035_v53  ;;  %2612 = vmatpush.bf16.msra.mxu2 %v7036_v34  ;;  %v7046_v53 = vld [vmem:[#allocation89_spill] sm:$0xff] }
 0x3f3   :  { %v7047_v34 = vld [vmem:[#allocation41_spill] sm:$0xff] }
 0x3f5   :  { %2594 = vmatpush.bf16.msra.mxu1 %v7039_v16  ;;  %2620 = vmatpush.bf16.msra.mxu3 %v7040_v19  ;;  %v7050_v16 = vld [vmem:[#allocation91_spill] sm:$0xff]  ;;  %v7051_v19 = vld [vmem:[#allocation45_spill] sm:$0xff] }
 0x3f6   :  { %2631 = vmatpush.bf16.msrb.mxu0 %v7037_v22  ;;  %2657 = vmatpush.bf16.msrb.mxu2 %v7038_v29  ;;  %v7048_v22 = vld [vmem:[#allocation70_spill] sm:$0xff]  ;;  %v7049_v29 = vld [vmem:[#allocation36_spill] sm:$0xff] }
 0x3f9   :  { %2595 = vmatpush.bf16.msra.mxu1 %v7043_v5  ;;  %2621 = vmatpush.bf16.msra.mxu3 %v7044_v48  ;;  %v7054_v5 = vld [vmem:[#allocation93_spill] sm:$0xff] }
 0x3fa   :  { %2632 = vmatpush.bf16.msrb.mxu0 %v7041_v18  ;;  %2658 = vmatpush.bf16.msrb.mxu2 %v7042_v13  ;;  %v7052_v18 = vld [vmem:[#allocation74_spill] sm:$0xff]  ;;  %v7053_v13 = vld [vmem:[#allocation40_spill] sm:$0xff]  ;;  %v7055_v48 = vld [vmem:[#allocation49_spill] sm:$0xff] }
 0x3fd   :  { %2596 = vmatpush.bf16.msra.mxu1 %v7047_v34  ;;  %2622 = vmatpush.bf16.msra.mxu3 %v7048_v22  ;;  %v7058_v34 = vld [vmem:[#allocation95_spill] sm:$0xff]  ;;  %v7059_v22 = vld [vmem:[#allocation53_spill] sm:$0xff] }
 0x3fe   :  { %2633 = vmatpush.bf16.msrb.mxu0 %v7045_v17  ;;  %2659 = vmatpush.bf16.msrb.mxu2 %v7046_v53  ;;  %v7056_v17 = vld [vmem:[#allocation78_spill] sm:$0xff]  ;;  %v7057_v53 = vld [vmem:[#allocation44_spill] sm:$0xff] }
 0x401   :  { %2597 = vmatpush.bf16.msra.mxu1 %v7051_v19  ;;  %2623 = vmatpush.bf16.msra.mxu3 %v7052_v18  ;;  %v7062_v19 = vld [vmem:[#allocation86_spill] sm:$0xff]  ;;  %v7063_v18 = vld [vmem:[#allocation48_spill] sm:$0xff] }
 0x402   :  { %2634 = vmatpush.bf16.msrb.mxu0 %v7049_v29  ;;  %2660 = vmatpush.bf16.msrb.mxu2 %v7050_v16  ;;  %v7060_v29 = vld [vmem:[#allocation82_spill] sm:$0xff] }
 0x403   :  { %v7061_v16 = vld [vmem:[#allocation30_spill] sm:$0xff] }
 0x405   :  { %2598 = vmatpush.bf16.msra.mxu1 %v7055_v48  ;;  %2624 = vmatpush.bf16.msra.mxu3 %v7056_v17  ;;  %v7066_v48 = vld [vmem:[#allocation88_spill] sm:$0xff] }
 0x406   :  { %2635 = vmatpush.bf16.msrb.mxu0 %v7053_v13  ;;  %2661 = vmatpush.bf16.msrb.mxu2 %v7054_v5  ;;  %v7064_v13 = vld [vmem:[#allocation97_spill] sm:$0xff]  ;;  %v7065_v5 = vld [vmem:[#allocation34_spill] sm:$0xff]  ;;  %v7067_v17 = vld [vmem:[#allocation52_spill] sm:$0xff] }
 0x409   :  { %2599 = vmatpush.bf16.msra.mxu1 %v7059_v22  ;;  %2625 = vmatpush.bf16.msra.mxu3 %v7060_v29  ;;  %v7070_v22 = vld [vmem:[#allocation90_spill] sm:$0xff] }
 0x40a   :  { %2636 = vmatpush.bf16.msrb.mxu0 %v7057_v53  ;;  %2662 = vmatpush.bf16.msrb.mxu2 %v7058_v34  ;;  %v7068_v53 = vld [vmem:[#allocation99_spill] sm:$0xff]  ;;  %v7069_v34 = vld [vmem:[#allocation38_spill] sm:$0xff] }
 0x40b   :  { %v7071_v29 = vld [vmem:[#allocation42_spill] sm:$0xff] }
 0x40d   :  { %2644 = vmatpush.bf16.msrb.mxu1 %v7061_v16  ;;  %2670 = vmatpush.bf16.msrb.mxu3 %v7062_v19  ;;  %v7072_v16 = vld [vmem:[#allocation92_spill] sm:$0xff]  ;;  %v7073_v19 = vld [vmem:[#allocation46_spill] sm:$0xff] }
 0x40e   :  { %2637 = vmatpush.bf16.msrb.mxu0 %v7063_v18  ;;  %2663 = vmatpush.bf16.msrb.mxu2 %v7064_v13  ;;  %v7074_v18 = vld [vmem:[#allocation94_spill] sm:$0xff] }
 0x40f   :  { %v7075_v13 = vld [vmem:[#allocation50_spill] sm:$0xff] }
 0x411   :  { %2645 = vmatpush.bf16.msrb.mxu1 %v7065_v5  ;;  %2671 = vmatpush.bf16.msrb.mxu3 %v7066_v48  ;;  %v7076_v5 = vld [vmem:[#allocation96_spill] sm:$0xff]  ;;  %v7077_v48 = vld [vmem:[#allocation54_spill] sm:$0xff] }
 0x412   :  { %2638 = vmatpush.bf16.msrb.mxu0 %v7067_v17  ;;  %2664 = vmatpush.bf16.msrb.mxu2 %v7068_v53  ;;  %v7078_v17 = vld [vmem:[#allocation98_spill] sm:$0xff]  ;;  %v7079_v53 = vld [vmem:[#allocation57_spill] sm:$0xff] }
 0x415   :  { %2646 = vmatpush.bf16.msrb.mxu1 %v7069_v34  ;;  %2672 = vmatpush.bf16.msrb.mxu3 %v7070_v22  ;;  %v7080_v34 = vld [vmem:[#allocation100_spill] sm:$0xff] }
 0x419   :  { %2647 = vmatpush.bf16.msrb.mxu1 %v7071_v29  ;;  %2673 = vmatpush.bf16.msrb.mxu3 %v7072_v16 }
 0x41d   :  { %2648 = vmatpush.bf16.msrb.mxu1 %v7073_v19  ;;  %2674 = vmatpush.bf16.msrb.mxu3 %v7074_v18  ;;  %v7081_v19 = vld [vmem:[#allocation156_spill] sm:$0xff] }
 0x421   :  { %2649 = vmatpush.bf16.msrb.mxu1 %v7075_v13  ;;  %2675 = vmatpush.bf16.msrb.mxu3 %v7076_v5  ;;  %v7082_v5 = vld [vmem:[#allocation107_spill] sm:$0xff] }
 0x425   :  { %2650 = vmatpush.bf16.msrb.mxu1 %v7077_v48  ;;  %2676 = vmatpush.bf16.msrb.mxu3 %v7078_v17  ;;  %v7083_v48 = vld [vmem:[#allocation157_spill] sm:$0xff] }
 0x429   :  { %2651 = vmatpush.bf16.msrb.mxu1 %v7079_v53  ;;  %2677 = vmatpush.bf16.msrb.mxu3 %v7080_v34 }
 0x432   :  { %v2328_v22 = vpop.f32.mrf.mxu0 }
 0x433   :  { %v2329_v63 = vadd.f32 %v2328_v22, %v7081_v19 }
 0x438   :  { %v2354_v29 = vpop.f32.mrf.mxu2 }
 0x439   :  { %v2355_v51 = vadd.f32 %v2354_v29, %v7083_v48 }
 0x43a   :  { %v2330_v35 = vpop.f32.mrf.mxu0 }
 0x440   :  { %v2356_v16 = vpop.f32.mrf.mxu2 }
 0x442   :  { %v2380_v28 = vpop.f32.mrf.mxu0 }
 0x448   :  { %v2406_v18 = vpop.f32.mrf.mxu2 }
 0x449   :  { %v2341_v8 = vpop.f32.mrf.mxu1 }
 0x44a   :  { %v2342_v13 = vadd.f32 %v2341_v8, %v2329_v63  ;;  %v2382_v12 = vpop.f32.mrf.mxu0 }
 0x44c   :  { %v2478_v60 = vadd.f32 %v2342_v13, %v7082_v5  ;;  %v7085_v13 = vld [vmem:[#allocation158_spill] sm:$0xff] }
 0x44e   :  { %v4240_v17 = vmul.f32 -1.442695, %v2478_v60 }
 0x44f   :  { %v2367_v50 = vpop.f32.mrf.mxu3 }
 0x450   :  { %4598 = vpow2.f32 %v4240_v17  ;;  %v2368_v53 = vadd.f32 %v2367_v50, %v2355_v51  ;;  %v2408_v34 = vpop.f32.mrf.mxu2  ;;  %v2407_v17 = vadd.f32 %v2406_v18, %v7085_v13  ;;  %v7086_v51 = vld [vmem:[#allocation128_spill] sm:$0xff]  ;;  %v2381_v18 = vadd.f32 %v2380_v28, %v7088_v23 }
 0x451   :  { %v2343_v24 = vpop.f32.mrf.mxu1 }
 0x452   :  { %v2498_v35 = vadd.f32 %v2368_v53, %v7084_v21  ;;  %v7087_v21 = vld [vmem:[#allocation142_spill] sm:$0xff] }
 0x453   :  { %v556_v53 = vadd.f32 %v7087_v21, %v7086_v51 }
 0x454   :  { %v2432_v16 = vpop.f32.mrf.mxu0  ;;  %v4241_v4 = vmul.f32 -1.442695, %v2498_v35 }
 0x455   :  { %v2433_v21 = vadd.f32 %v2432_v16, %v6859_v9 }
 0x456   :  { %v4599_v59 = vpop.eup %4598  ;;  %4600 = vpow2.f32 %v4241_v4 }
 0x457   :  { %v2482_v22 = vadd.f32 1.0, %v4599_v59  ;;  %v2369_v19 = vpop.f32.mrf.mxu3 }
 0x459   :  { %4602 = vrcp.f32 %v2482_v22  ;;  %v2393_v8 = vpop.f32.mrf.mxu1  ;;  %v2494_v48 = vand.u32 2147483648, %v2482_v22  ;;  %vm2488_vm1 = vweird.f32 %v2482_v22 }
 0x45a   :  { %v6082_v12 = vpop.f32.mrf.mxu2 }
 0x45c   :  { %v2434_v63 = vpop.f32.mrf.mxu0  ;;  %v4601_v29 = vpop.eup %4600 }
 0x45d   :  { %v2502_v60 = vadd.f32 1.0, %v4601_v29  ;;  %v2492_v63 = vand.u32 2147483647, %v2482_v22 }
 0x45f   :  { %v4603_v50 = vpop.eup %4602  ;;  %4604 = vrcp.f32 %v2502_v60  ;;  %v2419_v24 = vpop.f32.mrf.mxu3  ;;  %vm2493_vm3 = vcmp.eq.f32.partialorder %v2492_v63, 8.507059e+37  ;;  %vm2508_vm5 = vweird.f32 %v2502_v60 }
 0x460   :  { %v2484_v34 = vmul.f32 %v4603_v50, %v2482_v22  ;;  %v2420_v5 = vadd.f32 %v2419_v24, %v2407_v17  ;;  %vm2489_vm0 = vweird.f32 %v4603_v50  ;;  %v2495_v17 = vor.u32 1.1754944e-38, %v2494_v48  ;;  %v7091_v48 = vld [vmem:[#allocation145_spill] sm:$0xff] }
 0x461   :  { %v2395_v59 = vpop.f32.mrf.mxu1  ;;  %vm2490_vm2 = vmor %vm2488_vm1, %vm2489_vm0 }
 0x462   :  { %v2460_v4 = vpop.f32.mrf.mxu2  ;;  %v2485_v19 = vsub.f32 1.0, %v2484_v34  ;;  %v2528_v35 = vadd.f32 %v2420_v5, %v556_v53  ;;  %v2394_v34 = vadd.f32 %v2393_v8, %v2381_v18  ;;  %v7089_v5 = vld [vmem:[#allocation122_spill] sm:$0xff]  ;;  %v7090_v59 = vld [vmem:[#allocation139_spill] sm:$0xff] }
 0x464   :  { %v2486_v40 = vmul.f32 %v4603_v50, %v2485_v19  ;;  %v4242_v32 = vmul.f32 -1.442695, %v2528_v35  ;;  %v585_v19 = vadd.f32 %v7090_v59, %v7089_v5  ;;  %v2514_v35 = vand.u32 2147483648, %v2502_v60  ;;  %v7121_v5 = vld [vmem:[#allocation66_spill] sm:$0xff] }
 0x465   :  { %v4605_v29 = vpop.eup %4604 }
 0x466   :  { %v2504_v13 = vmul.f32 %v4605_v29, %v2502_v60  ;;  %v2487_v62 = vadd.f32 %v4603_v50, %v2486_v40  ;;  %4606 = vpow2.f32 %v4242_v32  ;;  %vm2509_vm4 = vweird.f32 %v4605_v29 }
 0x467   :  { %v2421_v24 = vpop.f32.mrf.mxu3  ;;  %v2512_v32 = vand.u32 2147483647, %v2502_v60  ;;  %vm2510_vm6 = vmor %vm2508_vm5, %vm2509_vm4  ;;  %v2515_v8 = vor.u32 1.1754944e-38, %v2514_v35 }
 0x468   :  { %v2505_v4 = vsub.f32 1.0, %v2504_v13  ;;  %v2491_v53 = vsel %vm2490_vm2, %v4603_v50, %v2487_v62 }
 0x469   :  { %v2496_v51 = vsel %vm2493_vm3, %v2495_v17, %v2491_v53  ;;  %v2445_v49 = vpop.f32.mrf.mxu1  ;;  %vm2513_vm7 = vcmp.eq.f32.partialorder %v2512_v32, 8.507059e+37 }
 0x46a   :  { %v2506_v28 = vmul.f32 %v4605_v29, %v2505_v4  ;;  %v2518_v40 = vmul.f32 %v2496_v51, %v2394_v34  ;;  %v2446_v22 = vadd.f32 %v2445_v49, %v2433_v21 }
 0x46c   :  { %v4607_v23 = vpop.eup %4606  ;;  %v2507_v16 = vadd.f32 %v4605_v29, %v2506_v28  ;;  %v2519_v24 = vadd.f32 %v2518_v40, %v7091_v48  ;;  %v2548_v13 = vadd.f32 %v2446_v22, %v585_v19 }
 0x46d   :  { %v2532_v62 = vadd.f32 1.0, %v4607_v23 }
 0x46e   :  { %v2511_v50 = vsel %vm2510_vm6, %v4605_v29, %v2507_v16  ;;  %4608 = vtanh.f32 %v2519_v24  ;;  %v4243_v63 = vmul.f32 -1.442695, %v2548_v13 }
 0x46f   :  { %4610 = vrcp.f32 %v2532_v62  ;;  %v2471_v18 = vpop.f32.mrf.mxu3  ;;  %v2516_v17 = vsel %vm2513_vm7, %v2515_v8, %v2511_v50  ;;  %v2544_v28 = vand.u32 2147483648, %v2532_v62  ;;  %v2542_v22 = vand.u32 2147483647, %v2532_v62 }
 0x470   :  { %4612 = vpow2.f32 %v4243_v63  ;;  %v2521_v49 = vsub.f32 1.0, %v2516_v17  ;;  %v2523_v34 = vmul.f32 %v2516_v17, %v5960_v42  ;;  %v2459_v42 = vadd.f32 %v6082_v12, %v5561_v31  ;;  %v7092_v63 = vld [vmem:[#allocation125_spill] sm:$0xff]  ;;  %v7093_v17 = vld [vmem:[#allocation140_spill] sm:$0xff] }
 0x471   :  { %v2447_v51 = vpop.f32.mrf.mxu1  ;;  %vm2538_vm9 = vweird.f32 %v2532_v62  ;;  %v2545_v48 = vor.u32 1.1754944e-38, %v2544_v28  ;;  %vm2543_vm11 = vcmp.eq.f32.partialorder %v2542_v22, 8.507059e+37  ;;  %v614_v12 = vadd.f32 %v7093_v17, %v7092_v63  ;;  %v7102_v17 = vld [vmem:[#allocation84_spill] sm:$0xff]  ;;  %v7120_v63 = vld [vmem:[#allocation37_spill] sm:$0xff] }
 0x472   :  { %v2472_v24 = vadd.f32 %v2471_v18, %v2459_v42 }
 0x474   :  { %v4609_v21 = vpop.eup %4608 }
 0x475   :  { %v4611_v4 = vpop.eup %4610  ;;  %v2522_v60 = vmul.f32 %v4609_v21, %v2521_v49 }
 0x476   :  { %v4613_v53 = vpop.eup %4612  ;;  %v2534_v59 = vmul.f32 %v4611_v4, %v2532_v62  ;;  %vm2539_vm8 = vweird.f32 %v4611_v4 }
 0x477   :  { %v6093_v19 = vadd.f32 %v2523_v34, %v2522_v60  ;;  %v2552_v23 = vadd.f32 1.0, %v4613_v53  ;;  %v2473_v29 = vpop.f32.mrf.mxu3  ;;  %vm2540_vm10 = vmor %vm2538_vm9, %vm2539_vm8 }
 0x478   :  { %v2535_v35 = vsub.f32 1.0, %v2534_v59 }
 0x479   :  { %2575 = vst [vmem:[#allocation14 + $0x40] sm:$0xff] %v6093_v19  ;;  %4614 = vrcp.f32 %v2552_v23  ;;  %v6098_v32 = vpack.c.bf16 %v6093_v19, %v6093_v19  ;;  %v2564_v60 = vand.u32 2147483648, %v2552_v23  ;;  %v2562_v53 = vand.u32 2147483647, %v2552_v23 }
 0x47a   :  { %v2536_v40 = vmul.f32 %v4611_v4, %v2535_v35  ;;  %vm2558_vm13 = vweird.f32 %v2552_v23 }
 0x47b   :  { %2587 = vmatmul.bf16.vlgmr.msra.gmra.mxu0 %v6098_v32  ;;  %2613 = vmatmul.bf16.vlgmr.msra.gmra.mxu2 %v6098_v32  ;;  %vm2563_vm15 = vcmp.eq.f32.partialorder %v2562_v53, 8.507059e+37  ;;  %v7110_v53 = vld [vmem:[#allocation29_spill] sm:$0xff] }
 0x47c   :  { %v2537_v16 = vadd.f32 %v4611_v4, %v2536_v40  ;;  %2683 = vmatpush.bf16.msra.mxu0 %v6788_v15  ;;  %2709 = vmatpush.bf16.msra.mxu2 %v6789_v36 }
 0x47e   :  { %v2541_v13 = vsel %vm2540_vm10, %v4611_v4, %v2537_v16  ;;  %v2565_v4 = vor.u32 1.1754944e-38, %v2564_v60  ;;  %v7096_v16 = vld [vmem:[#allocation35_spill] sm:$0xff] }
 0x47f   :  { %v4615_v8 = vpop.eup %4614  ;;  %v2546_v50 = vsel %vm2543_vm11, %v2545_v48, %v2541_v13  ;;  %v7097_v48 = vld [vmem:[#allocation63_spill] sm:$0xff]  ;;  %v7099_v13 = vld [vmem:[#allocation116_spill] sm:$0xff] }
 0x480   :  { %v2554_v51 = vmul.f32 %v4615_v8, %v2552_v23  ;;  %v2568_v62 = vmul.f32 %v2546_v50, %v2472_v24  ;;  %2684 = vmatpush.bf16.msra.mxu0 %v6790_v0  ;;  %2710 = vmatpush.bf16.msra.mxu2 %v5290_v14  ;;  %vm2559_vm12 = vweird.f32 %v4615_v8  ;;  %v7098_v24 = vld [vmem:[#allocation81_spill] sm:$0xff]  ;;  %v7101_v50 = vld [vmem:[#allocation67_spill] sm:$0xff] }
 0x481   :  { %vm2560_vm14 = vmor %vm2558_vm13, %vm2559_vm12  ;;  %v7108_v60 = vld [vmem:[#allocation47_spill] sm:$0xff] }
 0x482   :  { %v2555_v49 = vsub.f32 1.0, %v2554_v51  ;;  %v2569_v21 = vadd.f32 %v2568_v62, %v614_v12  ;;  %v7103_v12 = vld [vmem:[#allocation121_spill] sm:$0xff]  ;;  %v7104_v51 = vld [vmem:[#allocation43_spill] sm:$0xff] }
 0x483   :  { %v7105_v62 = vld [vmem:[#allocation71_spill] sm:$0xff] }
 0x484   :  { %v2556_v34 = vmul.f32 %v4615_v8, %v2555_v49  ;;  %4616 = vtanh.f32 %v2569_v21  ;;  %2685 = vmatpush.bf16.msra.mxu0 %v6791_v39  ;;  %2711 = vmatpush.bf16.msra.mxu2 %v5309_v27  ;;  %v7106_v49 = vld [vmem:[#allocation26_spill] sm:$0xff]  ;;  %v7107_v21 = vld [vmem:[#allocation55_spill] sm:$0xff] }
 0x486   :  { %v2557_v18 = vadd.f32 %v4615_v8, %v2556_v34  ;;  %v7109_v34 = vld [vmem:[#allocation75_spill] sm:$0xff] }
 0x488   :  { %v2561_v59 = vsel %vm2560_vm14, %v4615_v8, %v2557_v18  ;;  %2686 = vmatpush.bf16.msra.mxu0 %v6792_v43  ;;  %2712 = vmatpush.bf16.msra.mxu2 %v5325_v47  ;;  %v7100_v8 = vld [vmem:[#allocation39_spill] sm:$0xff] }
 0x489   :  { %v2566_v29 = vsel %vm2563_vm15, %v2565_v4, %v2561_v59  ;;  %v7111_v18 = vld [vmem:[#allocation59_spill] sm:$0xff] }
 0x48a   :  { %v4617_v35 = vpop.eup %4616  ;;  %v2571_v28 = vsub.f32 1.0, %v2566_v29  ;;  %v2573_v22 = vmul.f32 %v2566_v29, %v5985_v20  ;;  %v7094_v20 = vld [vmem:[#allocation77_spill] sm:$0xff]  ;;  %v7112_v4 = vld [vmem:[#allocation51_spill] sm:$0xff] }
 0x48b   :  { %2639 = vmatmul.bf16.vlgmr.msrb.gmra.mxu0 %v6098_v32  ;;  %2665 = vmatmul.bf16.vlgmr.msrb.gmra.mxu2 %v6098_v32  ;;  %v7113_v59 = vld [vmem:[#allocation79_spill] sm:$0xff]  ;;  %v7114_v29 = vld [vmem:[#allocation25_spill] sm:$0xff] }
 0x48c   :  { %v2572_v40 = vmul.f32 %v4617_v35, %v2571_v28  ;;  %2687 = vmatpush.bf16.msra.mxu0 %v6793_v46  ;;  %2713 = vmatpush.bf16.msra.mxu2 %v5335_v6  ;;  %v7115_v35 = vld [vmem:[#allocation85_spill] sm:$0xff] }
 0x48d   :  { %v7116_v28 = vld [vmem:[#allocation33_spill] sm:$0xff] }
 0x48e   :  { %v6119_v23 = vadd.f32 %v2573_v22, %v2572_v40  ;;  %v7117_v40 = vld [vmem:[#allocation62_spill] sm:$0xff]  ;;  %v7118_v22 = vld [vmem:[#allocation28_spill] sm:$0xff] }
 0x490   :  { %2576 = vst [vmem:[#allocation14 + $0x38] sm:$0xff] %v6119_v23  ;;  %v2578_v42 = vpack.c.bf16 %v6119_v23, %v6119_v23  ;;  %2688 = vmatpush.bf16.msra.mxu0 %v6794_v2  ;;  %2714 = vmatpush.bf16.msra.mxu2 %v5350_v33 }
 0x492   :  { %2600 = vmatmul.bf16.vlgmr.msra.gmra.mxu1 %v2578_v42  ;;  %2626 = vmatmul.bf16.vlgmr.msra.gmra.mxu3 %v2578_v42 }
 0x493   :  { %2696 = vmatpush.bf16.msra.mxu1 %v6796_v44  ;;  %2722 = vmatpush.bf16.msra.mxu3 %v6797_v58 }
 0x494   :  { %2689 = vmatpush.bf16.msra.mxu0 %v6795_v11  ;;  %2715 = vmatpush.bf16.msra.mxu2 %v5361_v61 }
 0x497   :  { %2697 = vmatpush.bf16.msra.mxu1 %v6800_v56  ;;  %2723 = vmatpush.bf16.msra.mxu3 %v5295_v1 }
 0x498   :  { %2690 = vmatpush.bf16.msra.mxu0 %v6798_v26  ;;  %2716 = vmatpush.bf16.msra.mxu2 %v5377_v37 }
 0x49b   :  { %2698 = vmatpush.bf16.msra.mxu1 %v6802_v7  ;;  %2724 = vmatpush.bf16.msra.mxu3 %v5313_v55 }
 0x49c   :  { %2839 = vmatpush.bf16.msrb.mxu0 %v6799_v41  ;;  %2865 = vmatpush.bf16.msrb.mxu2 %v5091_v10 }
 0x49d   :  { %2691 = vmatmul.bf16.vlgmr.msra.gmra.mxu0 %v6098_v32  ;;  %2717 = vmatmul.bf16.vlgmr.msra.gmra.mxu2 %v6098_v32  ;;  %v7095_v32 = vld [vmem:[#allocation114_spill] sm:$0xff] }
 0x49f   :  { %2699 = vmatpush.bf16.msra.mxu1 %v6804_v54  ;;  %2725 = vmatpush.bf16.msra.mxu3 %v5331_v57 }
 0x4a0   :  { %2840 = vmatpush.bf16.msrb.mxu0 %v6801_v38  ;;  %2866 = vmatpush.bf16.msrb.mxu2 %v5108_v25 }
 0x4a2   :  { %2652 = vmatmul.bf16.vlgmr.msrb.gmra.mxu1 %v2578_v42  ;;  %2678 = vmatmul.bf16.vlgmr.msrb.gmra.mxu3 %v2578_v42 }
 0x4a3   :  { %2700 = vmatpush.bf16.msra.mxu1 %v6805_v30  ;;  %2726 = vmatpush.bf16.msra.mxu3 %v5341_v3 }
 0x4a4   :  { %2841 = vmatpush.bf16.msrb.mxu0 %v6803_v45  ;;  %2867 = vmatpush.bf16.msrb.mxu2 %v5122_v52 }
 0x4a7   :  { %2701 = vmatpush.bf16.msra.mxu1 %v7094_v20  ;;  %2727 = vmatpush.bf16.msra.mxu3 %v7095_v32 }
 0x4a8   :  { %2842 = vmatpush.bf16.msrb.mxu0 %v7096_v16  ;;  %2868 = vmatpush.bf16.msrb.mxu2 %v7097_v48 }
 0x4ab   :  { %2702 = vmatpush.bf16.msra.mxu1 %v7098_v24  ;;  %2728 = vmatpush.bf16.msra.mxu3 %v7099_v13 }
 0x4ac   :  { %2843 = vmatpush.bf16.msrb.mxu0 %v7100_v8  ;;  %2869 = vmatpush.bf16.msrb.mxu2 %v7101_v50  ;;  %v7163_v50 = vld [vmem:[#allocation112_spill] sm:$0xff] }
 0x4af   :  { %2703 = vmatpush.bf16.msra.mxu1 %v7102_v17  ;;  %2729 = vmatpush.bf16.msra.mxu3 %v7103_v12 }
 0x4b0   :  { %2844 = vmatpush.bf16.msrb.mxu0 %v7104_v51  ;;  %2870 = vmatpush.bf16.msrb.mxu2 %v7105_v62 }
 0x4b2   :  { %2704 = vmatmul.bf16.vlgmr.msra.gmra.mxu1 %v2578_v42  ;;  %2730 = vmatmul.bf16.vlgmr.msra.gmra.mxu3 %v2578_v42  ;;  %v7119_v42 = vld [vmem:[#allocation87_spill] sm:$0xff] }
 0x4b3   :  { %2852 = vmatpush.bf16.msrb.mxu1 %v7106_v49  ;;  %2878 = vmatpush.bf16.msrb.mxu3 %v7107_v21  ;;  %v7160_v49 = vld [vmem:[#allocation111_spill] sm:$0xff] }
 0x4b4   :  { %2845 = vmatpush.bf16.msrb.mxu0 %v7108_v60  ;;  %2871 = vmatpush.bf16.msrb.mxu2 %v7109_v34 }
 0x4b7   :  { %2853 = vmatpush.bf16.msrb.mxu1 %v7110_v53  ;;  %2879 = vmatpush.bf16.msrb.mxu3 %v7111_v18  ;;  %v7122_v18 = vld [vmem:[#allocation32_spill] sm:$0xff] }
 0x4b8   :  { %2846 = vmatpush.bf16.msrb.mxu0 %v7112_v4  ;;  %2872 = vmatpush.bf16.msrb.mxu2 %v7113_v59  ;;  %v7123_v4 = vld [vmem:[#allocation89_spill] sm:$0xff] }
 0x4b9   :  { %v7124_v59 = vld [vmem:[#allocation41_spill] sm:$0xff] }
 0x4bb   :  { %2854 = vmatpush.bf16.msrb.mxu1 %v7116_v28  ;;  %2880 = vmatpush.bf16.msrb.mxu3 %v7117_v40  ;;  %v7127_v28 = vld [vmem:[#allocation91_spill] sm:$0xff]  ;;  %v7128_v40 = vld [vmem:[#allocation45_spill] sm:$0xff] }
 0x4bc   :  { %2891 = vmatpush.bf16.msra.mxu0 %v7114_v29  ;;  %2917 = vmatpush.bf16.msra.mxu2 %v7115_v35  ;;  %v7125_v29 = vld [vmem:[#allocation70_spill] sm:$0xff]  ;;  %v7126_v35 = vld [vmem:[#allocation36_spill] sm:$0xff] }
 0x4bf   :  { %2855 = vmatpush.bf16.msrb.mxu1 %v7120_v63  ;;  %2881 = vmatpush.bf16.msrb.mxu3 %v7121_v5  ;;  %v7131_v63 = vld [vmem:[#allocation93_spill] sm:$0xff] }
 0x4c0   :  { %2892 = vmatpush.bf16.msra.mxu0 %v7118_v22  ;;  %2918 = vmatpush.bf16.msra.mxu2 %v7119_v42  ;;  %v7129_v22 = vld [vmem:[#allocation74_spill] sm:$0xff]  ;;  %v7130_v42 = vld [vmem:[#allocation40_spill] sm:$0xff]  ;;  %v7132_v5 = vld [vmem:[#allocation49_spill] sm:$0xff] }
 0x4c3   :  { %2856 = vmatpush.bf16.msrb.mxu1 %v7124_v59  ;;  %2882 = vmatpush.bf16.msrb.mxu3 %v7125_v29  ;;  %v7135_v59 = vld [vmem:[#allocation95_spill] sm:$0xff]  ;;  %v7136_v29 = vld [vmem:[#allocation53_spill] sm:$0xff] }
 0x4c4   :  { %2893 = vmatpush.bf16.msra.mxu0 %v7122_v18  ;;  %2919 = vmatpush.bf16.msra.mxu2 %v7123_v4  ;;  %v7133_v18 = vld [vmem:[#allocation78_spill] sm:$0xff]  ;;  %v7134_v4 = vld [vmem:[#allocation44_spill] sm:$0xff] }
 0x4c7   :  { %2857 = vmatpush.bf16.msrb.mxu1 %v7128_v40  ;;  %2883 = vmatpush.bf16.msrb.mxu3 %v7129_v22  ;;  %v7139_v40 = vld [vmem:[#allocation86_spill] sm:$0xff]  ;;  %v7140_v22 = vld [vmem:[#allocation48_spill] sm:$0xff] }
 0x4c8   :  { %2894 = vmatpush.bf16.msra.mxu0 %v7126_v35  ;;  %2920 = vmatpush.bf16.msra.mxu2 %v7127_v28  ;;  %v7137_v35 = vld [vmem:[#allocation82_spill] sm:$0xff] }
 0x4c9   :  { %v7138_v28 = vld [vmem:[#allocation30_spill] sm:$0xff] }
 0x4cb   :  { %2858 = vmatpush.bf16.msrb.mxu1 %v7132_v5  ;;  %2884 = vmatpush.bf16.msrb.mxu3 %v7133_v18  ;;  %v7143_v5 = vld [vmem:[#allocation88_spill] sm:$0xff] }
 0x4cc   :  { %2895 = vmatpush.bf16.msra.mxu0 %v7130_v42  ;;  %2921 = vmatpush.bf16.msra.mxu2 %v7131_v63  ;;  %v7141_v42 = vld [vmem:[#allocation97_spill] sm:$0xff]  ;;  %v7142_v63 = vld [vmem:[#allocation34_spill] sm:$0xff]  ;;  %v7144_v18 = vld [vmem:[#allocation52_spill] sm:$0xff] }
 0x4cf   :  { %2859 = vmatpush.bf16.msrb.mxu1 %v7136_v29  ;;  %2885 = vmatpush.bf16.msrb.mxu3 %v7137_v35  ;;  %v7147_v29 = vld [vmem:[#allocation90_spill] sm:$0xff] }
 0x4d0   :  { %2896 = vmatpush.bf16.msra.mxu0 %v7134_v4  ;;  %2922 = vmatpush.bf16.msra.mxu2 %v7135_v59  ;;  %v7145_v4 = vld [vmem:[#allocation99_spill] sm:$0xff]  ;;  %v7146_v59 = vld [vmem:[#allocation38_spill] sm:$0xff] }
 0x4d1   :  { %v7148_v35 = vld [vmem:[#allocation42_spill] sm:$0xff] }
 0x4d3   :  { %2904 = vmatpush.bf16.msra.mxu1 %v7138_v28  ;;  %2930 = vmatpush.bf16.msra.mxu3 %v7139_v40  ;;  %v7149_v28 = vld [vmem:[#allocation92_spill] sm:$0xff]  ;;  %v7150_v40 = vld [vmem:[#allocation46_spill] sm:$0xff] }
 0x4d4   :  { %2897 = vmatpush.bf16.msra.mxu0 %v7140_v22  ;;  %2923 = vmatpush.bf16.msra.mxu2 %v7141_v42  ;;  %v7151_v22 = vld [vmem:[#allocation94_spill] sm:$0xff] }
 0x4d5   :  { %v7152_v42 = vld [vmem:[#allocation50_spill] sm:$0xff] }
 0x4d7   :  { %2905 = vmatpush.bf16.msra.mxu1 %v7142_v63  ;;  %2931 = vmatpush.bf16.msra.mxu3 %v7143_v5  ;;  %v7153_v63 = vld [vmem:[#allocation96_spill] sm:$0xff]  ;;  %v7154_v5 = vld [vmem:[#allocation54_spill] sm:$0xff] }
 0x4d8   :  { %2898 = vmatpush.bf16.msra.mxu0 %v7144_v18  ;;  %2924 = vmatpush.bf16.msra.mxu2 %v7145_v4  ;;  %v7155_v18 = vld [vmem:[#allocation98_spill] sm:$0xff]  ;;  %v7156_v4 = vld [vmem:[#allocation57_spill] sm:$0xff] }
 0x4db   :  { %2906 = vmatpush.bf16.msra.mxu1 %v7146_v59  ;;  %2932 = vmatpush.bf16.msra.mxu3 %v7147_v29  ;;  %v7157_v59 = vld [vmem:[#allocation100_spill] sm:$0xff] }
 0x4df   :  { %2907 = vmatpush.bf16.msra.mxu1 %v7148_v35  ;;  %2933 = vmatpush.bf16.msra.mxu3 %v7149_v28 }
 0x4e3   :  { %2908 = vmatpush.bf16.msra.mxu1 %v7150_v40  ;;  %2934 = vmatpush.bf16.msra.mxu3 %v7151_v22  ;;  %v7158_v40 = vld [vmem:[#allocation156_spill] sm:$0xff] }
 0x4e7   :  { %2909 = vmatpush.bf16.msra.mxu1 %v7152_v42  ;;  %2935 = vmatpush.bf16.msra.mxu3 %v7153_v63  ;;  %v7159_v42 = vld [vmem:[#allocation105_spill] sm:$0xff] }
 0x4e8   :  { %v474_v63 = vadd.f32 %v7160_v49, %v7159_v42 }
 0x4eb   :  { %2910 = vmatpush.bf16.msra.mxu1 %v7154_v5  ;;  %2936 = vmatpush.bf16.msra.mxu3 %v7155_v18  ;;  %v7161_v18 = vld [vmem:[#allocation157_spill] sm:$0xff] }
 0x4ef   :  { %2911 = vmatpush.bf16.msra.mxu1 %v7156_v4  ;;  %2937 = vmatpush.bf16.msra.mxu3 %v7157_v59  ;;  %v7162_v59 = vld [vmem:[#allocation106_spill] sm:$0xff] }
 0x4f0   :  { %v503_v8 = vadd.f32 %v7163_v50, %v7162_v59 }
 0x4f8   :  { %v2588_v29 = vpop.f32.mrf.mxu0 }
 0x4f9   :  { %v2589_v60 = vadd.f32 %v2588_v29, %v7158_v40 }
 0x4fe   :  { %v2614_v35 = vpop.f32.mrf.mxu2 }
 0x4ff   :  { %v2615_v12 = vadd.f32 %v2614_v35, %v7161_v18  ;;  %v7164_v35 = vld [vmem:[#allocation158_spill] sm:$0xff]  ;;  %v7166_v18 = vld [vmem:[#allocation104_spill] sm:$0xff] }
 0x500   :  { %v2590_v53 = vpop.f32.mrf.mxu0 }
 0x506   :  { %v2616_v28 = vpop.f32.mrf.mxu2 }
 0x508   :  { %v2640_v34 = vpop.f32.mrf.mxu0 }
 0x50e   :  { %v2666_v22 = vpop.f32.mrf.mxu2 }
 0x50f   :  { %v2601_v21 = vpop.f32.mrf.mxu1  ;;  %v2667_v50 = vadd.f32 %v2666_v22, %v7164_v35 }
 0x510   :  { %v2602_v62 = vadd.f32 %v2601_v21, %v2589_v60  ;;  %v2642_v5 = vpop.f32.mrf.mxu0 }
 0x512   :  { %v2738_v51 = vadd.f32 %v2602_v62, %v474_v63 }
 0x514   :  { %v4244_v4 = vmul.f32 -1.442695, %v2738_v51 }
 0x515   :  { %v2627_v17 = vpop.f32.mrf.mxu3 }
 0x516   :  { %4618 = vpow2.f32 %v4244_v4  ;;  %v2628_v53 = vadd.f32 %v2627_v17, %v2615_v12  ;;  %v2668_v28 = vpop.f32.mrf.mxu2 }
 0x517   :  { %v2603_v13 = vpop.f32.mrf.mxu1 }
 0x518   :  { %v2758_v29 = vadd.f32 %v2628_v53, %v503_v8 }
 0x51a   :  { %v2692_v40 = vpop.f32.mrf.mxu0  ;;  %v4245_v24 = vmul.f32 -1.442695, %v2758_v29 }
 0x51b   :  { %v2693_v35 = vadd.f32 %v2692_v40, %v6859_v9 }
 0x51c   :  { %v4619_v48 = vpop.eup %4618  ;;  %4620 = vpow2.f32 %v4245_v24  ;;  %v7165_v24 = vld [vmem:[#allocation138_spill] sm:$0xff] }
 0x51d   :  { %v2742_v49 = vadd.f32 1.0, %v4619_v48  ;;  %v2629_v21 = vpop.f32.mrf.mxu3 }
 0x51f   :  { %4622 = vrcp.f32 %v2742_v49  ;;  %v2653_v63 = vpop.f32.mrf.mxu1  ;;  %v2754_v29 = vand.u32 2147483648, %v2742_v49  ;;  %v2752_v59 = vand.u32 2147483647, %v2742_v49  ;;  %vm2748_vm1 = vweird.f32 %v2742_v49 }
 0x520   :  { %v6218_v5 = vpop.f32.mrf.mxu2 }
 0x521   :  { %vm2753_vm3 = vcmp.eq.f32.partialorder %v2752_v59, 8.507059e+37 }
 0x522   :  { %v2694_v51 = vpop.f32.mrf.mxu0  ;;  %v4621_v62 = vpop.eup %4620 }
 0x523   :  { %v2762_v60 = vadd.f32 1.0, %v4621_v62  ;;  %v2641_v62 = vadd.f32 %v2640_v34, %v7166_v18 }
 0x525   :  { %v4623_v4 = vpop.eup %4622  ;;  %4624 = vrcp.f32 %v2762_v60  ;;  %v2679_v17 = vpop.f32.mrf.mxu3  ;;  %vm2768_vm5 = vweird.f32 %v2762_v60 }
 0x526   :  { %v2744_v13 = vmul.f32 %v4623_v4, %v2742_v49  ;;  %v2680_v8 = vadd.f32 %v2679_v17, %v2667_v50  ;;  %vm2749_vm0 = vweird.f32 %v4623_v4  ;;  %v2755_v50 = vor.u32 1.1754944e-38, %v2754_v29 }
 0x527   :  { %v2655_v53 = vpop.f32.mrf.mxu1  ;;  %vm2750_vm2 = vmor %vm2748_vm1, %vm2749_vm0 }
 0x528   :  { %v2720_v12 = vpop.f32.mrf.mxu2  ;;  %v2745_v28 = vsub.f32 1.0, %v2744_v13  ;;  %v2788_v48 = vadd.f32 %v2680_v8, %v7165_v24  ;;  %v7167_v53 = vld [vmem:[#allocation136_spill] sm:$0xff] }
 0x529   :  { %v2654_v12 = vadd.f32 %v2653_v63, %v2641_v62 }
 0x52a   :  { %v2746_v21 = vmul.f32 %v4623_v4, %v2745_v28  ;;  %v4246_v42 = vmul.f32 -1.442695, %v2788_v48  ;;  %v7168_v28 = vld [vmem:[#allocation149_spill] sm:$0xff]  ;;  %v2774_v48 = vand.u32 2147483648, %v2762_v60 }
 0x52b   :  { %v4625_v51 = vpop.eup %4624  ;;  %v532_v24 = vadd.f32 %v7168_v28, %v7167_v53  ;;  %v7242_v53 = vld [vmem:[#allocation104_spill] sm:$0xff] }
 0x52c   :  { %v2764_v16 = vmul.f32 %v4625_v51, %v2762_v60  ;;  %v2747_v22 = vadd.f32 %v4623_v4, %v2746_v21  ;;  %4626 = vpow2.f32 %v4246_v42  ;;  %vm2769_vm4 = vweird.f32 %v4625_v51 }
 0x52d   :  { %v2681_v17 = vpop.f32.mrf.mxu3  ;;  %v2772_v42 = vand.u32 2147483647, %v2762_v60  ;;  %vm2770_vm6 = vmor %vm2768_vm5, %vm2769_vm4  ;;  %v2775_v59 = vor.u32 1.1754944e-38, %v2774_v48 }
 0x52e   :  { %v2765_v13 = vsub.f32 1.0, %v2764_v16  ;;  %v2751_v8 = vsel %vm2750_vm2, %v4623_v4, %v2747_v22  ;;  %v7169_v17 = vld [vmem:[#allocation134_spill] sm:$0xff] }
 0x52f   :  { %v2756_v32 = vsel %vm2753_vm3, %v2755_v50, %v2751_v8  ;;  %v2705_v20 = vpop.f32.mrf.mxu1  ;;  %vm2773_vm7 = vcmp.eq.f32.partialorder %v2772_v42, 8.507059e+37 }
 0x530   :  { %v2766_v34 = vmul.f32 %v4625_v51, %v2765_v13  ;;  %v2778_v21 = vmul.f32 %v2756_v32, %v2654_v12  ;;  %v2706_v49 = vadd.f32 %v2705_v20, %v2693_v35 }
 0x532   :  { %v4627_v18 = vpop.eup %4626  ;;  %v2767_v40 = vadd.f32 %v4625_v51, %v2766_v34  ;;  %v2779_v29 = vadd.f32 %v2778_v21, %v532_v24  ;;  %v2808_v16 = vadd.f32 %v2706_v49, %v7169_v17 }
 0x533   :  { %v2792_v63 = vadd.f32 1.0, %v4627_v18 }
 0x534   :  { %v2771_v4 = vsel %vm2770_vm6, %v4625_v51, %v2767_v40  ;;  %4628 = vtanh.f32 %v2779_v29  ;;  %v4247_v62 = vmul.f32 -1.442695, %v2808_v16 }
 0x535   :  { %4630 = vrcp.f32 %v2792_v63  ;;  %v2731_v22 = vpop.f32.mrf.mxu3  ;;  %v2776_v50 = vsel %vm2773_vm7, %v2775_v59, %v2771_v4  ;;  %v2804_v34 = vand.u32 2147483648, %v2792_v63  ;;  %v2802_v49 = vand.u32 2147483647, %v2792_v63 }
 0x536   :  { %4632 = vpow2.f32 %v4247_v62  ;;  %v2781_v20 = vsub.f32 1.0, %v2776_v50  ;;  %v2783_v12 = vmul.f32 %v2776_v50, %v6093_v19  ;;  %v2719_v19 = vadd.f32 %v6218_v5, %v5561_v31 }
 0x537   :  { %v2707_v32 = vpop.f32.mrf.mxu1  ;;  %vm2798_vm9 = vweird.f32 %v2792_v63  ;;  %v2805_v29 = vor.u32 1.1754944e-38, %v2804_v34  ;;  %vm2803_vm11 = vcmp.eq.f32.partialorder %v2802_v49, 8.507059e+37  ;;  %v7176_v49 = vld [vmem:[#allocation116_spill] sm:$0xff] }
 0x538   :  { %v2732_v17 = vadd.f32 %v2731_v22, %v2719_v19  ;;  %v7178_v19 = vld [vmem:[#allocation67_spill] sm:$0xff] }
 0x53a   :  { %v4629_v35 = vpop.eup %4628 }
 0x53b   :  { %v4631_v13 = vpop.eup %4630  ;;  %v2782_v60 = vmul.f32 %v4629_v35, %v2781_v20 }
 0x53c   :  { %v4633_v8 = vpop.eup %4632  ;;  %v2794_v28 = vmul.f32 %v4631_v13, %v2792_v63  ;;  %vm2799_vm8 = vweird.f32 %v4631_v13  ;;  %v7170_v63 = vld [vmem:[#allocation135_spill] sm:$0xff] }
 0x53d   :  { %v6228_v24 = vadd.f32 %v2783_v12, %v2782_v60  ;;  %v2812_v18 = vadd.f32 1.0, %v4633_v8  ;;  %v2733_v51 = vpop.f32.mrf.mxu3  ;;  %vm2800_vm10 = vmor %vm2798_vm9, %vm2799_vm8 }
 0x53e   :  { %v2795_v48 = vsub.f32 1.0, %v2794_v28 }
 0x53f   :  { %2835 = vst [vmem:[#allocation14 + $0x50] sm:$0xff] %v6228_v24  ;;  %4634 = vrcp.f32 %v2812_v18  ;;  %v6233_v42 = vpack.c.bf16 %v6228_v24, %v6228_v24  ;;  %v2824_v20 = vand.u32 2147483648, %v2812_v18  ;;  %v2822_v60 = vand.u32 2147483647, %v2812_v18 }
 0x540   :  { %v2796_v21 = vmul.f32 %v4631_v13, %v2795_v48  ;;  %vm2818_vm13 = vweird.f32 %v2812_v18 }
 0x541   :  { %2847 = vmatmul.bf16.vlgmr.msrb.gmra.mxu0 %v6233_v42  ;;  %2873 = vmatmul.bf16.vlgmr.msrb.gmra.mxu2 %v6233_v42  ;;  %vm2823_vm15 = vcmp.eq.f32.partialorder %v2822_v60, 8.507059e+37  ;;  %v7194_v60 = vld [vmem:[#allocation62_spill] sm:$0xff] }
 0x542   :  { %v2797_v40 = vadd.f32 %v4631_v13, %v2796_v21  ;;  %2943 = vmatpush.bf16.msrb.mxu0 %v6788_v15  ;;  %2969 = vmatpush.bf16.msrb.mxu2 %v6789_v36 }
 0x544   :  { %v2801_v16 = vsel %vm2800_vm10, %v4631_v13, %v2797_v40  ;;  %v2825_v13 = vor.u32 1.1754944e-38, %v2824_v20  ;;  %v7179_v40 = vld [vmem:[#allocation84_spill] sm:$0xff]  ;;  %v7192_v20 = vld [vmem:[#allocation85_spill] sm:$0xff] }
 0x545   :  { %v4635_v59 = vpop.eup %4634  ;;  %v2806_v4 = vsel %vm2803_vm11, %v2805_v29, %v2801_v16  ;;  %v7182_v29 = vld [vmem:[#allocation71_spill] sm:$0xff] }
 0x546   :  { %v2814_v62 = vmul.f32 %v4635_v59, %v2812_v18  ;;  %v2828_v50 = vmul.f32 %v2806_v4, %v2732_v17  ;;  %2944 = vmatpush.bf16.msrb.mxu0 %v6790_v0  ;;  %2970 = vmatpush.bf16.msrb.mxu2 %v5290_v14  ;;  %vm2819_vm12 = vweird.f32 %v4635_v59  ;;  %v7183_v17 = vld [vmem:[#allocation26_spill] sm:$0xff]  ;;  %v7184_v16 = vld [vmem:[#allocation55_spill] sm:$0xff] }
 0x547   :  { %vm2820_vm14 = vmor %vm2818_vm13, %vm2819_vm12  ;;  %v7186_v4 = vld [vmem:[#allocation75_spill] sm:$0xff] }
 0x548   :  { %v2815_v5 = vsub.f32 1.0, %v2814_v62  ;;  %v2829_v32 = vadd.f32 %v2828_v50, %v7170_v63  ;;  %v7187_v62 = vld [vmem:[#allocation29_spill] sm:$0xff]  ;;  %v7188_v50 = vld [vmem:[#allocation59_spill] sm:$0xff] }
 0x549   :  { %v7190_v63 = vld [vmem:[#allocation79_spill] sm:$0xff] }
 0x54a   :  { %v2816_v35 = vmul.f32 %v4635_v59, %v2815_v5  ;;  %4636 = vtanh.f32 %v2829_v32  ;;  %2945 = vmatpush.bf16.msrb.mxu0 %v6791_v39  ;;  %2971 = vmatpush.bf16.msrb.mxu2 %v5309_v27  ;;  %v7189_v5 = vld [vmem:[#allocation51_spill] sm:$0xff]  ;;  %v7191_v32 = vld [vmem:[#allocation25_spill] sm:$0xff] }
 0x54c   :  { %v2817_v22 = vadd.f32 %v4635_v59, %v2816_v35  ;;  %v7193_v35 = vld [vmem:[#allocation33_spill] sm:$0xff] }
 0x54e   :  { %v2821_v12 = vsel %vm2820_vm14, %v4635_v59, %v2817_v22  ;;  %2946 = vmatpush.bf16.msrb.mxu0 %v6792_v43  ;;  %2972 = vmatpush.bf16.msrb.mxu2 %v5325_v47  ;;  %v7185_v59 = vld [vmem:[#allocation47_spill] sm:$0xff]  ;;  %v7195_v22 = vld [vmem:[#allocation28_spill] sm:$0xff] }
 0x54f   :  { %v2826_v8 = vsel %vm2823_vm15, %v2825_v13, %v2821_v12  ;;  %v7196_v13 = vld [vmem:[#allocation87_spill] sm:$0xff]  ;;  %v7197_v12 = vld [vmem:[#allocation37_spill] sm:$0xff] }
 0x550   :  { %v4637_v28 = vpop.eup %4636  ;;  %v2831_v51 = vsub.f32 1.0, %v2826_v8  ;;  %v2833_v34 = vmul.f32 %v2826_v8, %v6119_v23  ;;  %v7175_v23 = vld [vmem:[#allocation81_spill] sm:$0xff]  ;;  %v7198_v8 = vld [vmem:[#allocation66_spill] sm:$0xff] }
 0x551   :  { %2899 = vmatmul.bf16.vlgmr.msra.gmra.mxu0 %v6233_v42  ;;  %2925 = vmatmul.bf16.vlgmr.msra.gmra.mxu2 %v6233_v42 }
 0x552   :  { %v2832_v48 = vmul.f32 %v4637_v28, %v2831_v51  ;;  %2947 = vmatpush.bf16.msrb.mxu0 %v6793_v46  ;;  %2973 = vmatpush.bf16.msrb.mxu2 %v5335_v6  ;;  %v7199_v28 = vld [vmem:[#allocation32_spill] sm:$0xff]  ;;  %v7200_v51 = vld [vmem:[#allocation89_spill] sm:$0xff] }
 0x554   :  { %v6253_v18 = vadd.f32 %v2833_v34, %v2832_v48  ;;  %v7201_v48 = vld [vmem:[#allocation41_spill] sm:$0xff]  ;;  %v7202_v34 = vld [vmem:[#allocation70_spill] sm:$0xff] }
 0x556   :  { %2836 = vst [vmem:[#allocation14 + $0x28] sm:$0xff] %v6253_v18  ;;  %v2838_v21 = vpack.c.bf16 %v6253_v18, %v6253_v18  ;;  %2948 = vmatpush.bf16.msrb.mxu0 %v6794_v2  ;;  %2974 = vmatpush.bf16.msrb.mxu2 %v5350_v33 }
 0x558   :  { %2860 = vmatmul.bf16.vlgmr.msrb.gmra.mxu1 %v2838_v21  ;;  %2886 = vmatmul.bf16.vlgmr.msrb.gmra.mxu3 %v2838_v21 }
 0x559   :  { %2956 = vmatpush.bf16.msrb.mxu1 %v6796_v44  ;;  %2982 = vmatpush.bf16.msrb.mxu3 %v6797_v58 }
 0x55a   :  { %2949 = vmatpush.bf16.msrb.mxu0 %v6795_v11  ;;  %2975 = vmatpush.bf16.msrb.mxu2 %v5361_v61 }
 0x55d   :  { %2957 = vmatpush.bf16.msrb.mxu1 %v6800_v56  ;;  %2983 = vmatpush.bf16.msrb.mxu3 %v5295_v1 }
 0x55e   :  { %2950 = vmatpush.bf16.msrb.mxu0 %v6798_v26  ;;  %2976 = vmatpush.bf16.msrb.mxu2 %v5377_v37 }
 0x561   :  { %2958 = vmatpush.bf16.msrb.mxu1 %v6802_v7  ;;  %2984 = vmatpush.bf16.msrb.mxu3 %v5313_v55 }
 0x562   :  { %3099 = vmatpush.bf16.msra.mxu0 %v6799_v41  ;;  %3125 = vmatpush.bf16.msra.mxu2 %v5091_v10  ;;  %v7171_v10 = vld [vmem:[#allocation77_spill] sm:$0xff]  ;;  %v7172_v41 = vld [vmem:[#allocation114_spill] sm:$0xff] }
 0x563   :  { %2951 = vmatmul.bf16.vlgmr.msrb.gmra.mxu0 %v6233_v42  ;;  %2977 = vmatmul.bf16.vlgmr.msrb.gmra.mxu2 %v6233_v42  ;;  %v7177_v42 = vld [vmem:[#allocation39_spill] sm:$0xff] }
 0x565   :  { %2959 = vmatpush.bf16.msrb.mxu1 %v6804_v54  ;;  %2985 = vmatpush.bf16.msrb.mxu3 %v5331_v57 }
 0x566   :  { %3100 = vmatpush.bf16.msra.mxu0 %v6801_v38  ;;  %3126 = vmatpush.bf16.msra.mxu2 %v5108_v25  ;;  %v7173_v38 = vld [vmem:[#allocation35_spill] sm:$0xff] }
 0x567   :  { %v7174_v25 = vld [vmem:[#allocation63_spill] sm:$0xff] }
 0x568   :  { %2912 = vmatmul.bf16.vlgmr.msra.gmra.mxu1 %v2838_v21  ;;  %2938 = vmatmul.bf16.vlgmr.msra.gmra.mxu3 %v2838_v21 }
 0x569   :  { %2960 = vmatpush.bf16.msrb.mxu1 %v6805_v30  ;;  %2986 = vmatpush.bf16.msrb.mxu3 %v5341_v3 }
 0x56a   :  { %3101 = vmatpush.bf16.msra.mxu0 %v6803_v45  ;;  %3127 = vmatpush.bf16.msra.mxu2 %v5122_v52  ;;  %v7180_v45 = vld [vmem:[#allocation121_spill] sm:$0xff]  ;;  %v7181_v52 = vld [vmem:[#allocation43_spill] sm:$0xff] }
 0x56d   :  { %2961 = vmatpush.bf16.msrb.mxu1 %v7171_v10  ;;  %2987 = vmatpush.bf16.msrb.mxu3 %v7172_v41 }
 0x56e   :  { %3102 = vmatpush.bf16.msra.mxu0 %v7173_v38  ;;  %3128 = vmatpush.bf16.msra.mxu2 %v7174_v25  ;;  %v7204_v38 = vld [vmem:[#allocation91_spill] sm:$0xff]  ;;  %v7205_v25 = vld [vmem:[#allocation45_spill] sm:$0xff] }
 0x571   :  { %2962 = vmatpush.bf16.msrb.mxu1 %v7175_v23  ;;  %2988 = vmatpush.bf16.msrb.mxu3 %v7176_v49 }
 0x572   :  { %3103 = vmatpush.bf16.msra.mxu0 %v7177_v42  ;;  %3129 = vmatpush.bf16.msra.mxu2 %v7178_v19  ;;  %v7206_v42 = vld [vmem:[#allocation74_spill] sm:$0xff]  ;;  %v7207_v19 = vld [vmem:[#allocation40_spill] sm:$0xff] }
 0x575   :  { %2963 = vmatpush.bf16.msrb.mxu1 %v7179_v40  ;;  %2989 = vmatpush.bf16.msrb.mxu3 %v7180_v45 }
 0x576   :  { %3104 = vmatpush.bf16.msra.mxu0 %v7181_v52  ;;  %3130 = vmatpush.bf16.msra.mxu2 %v7182_v29  ;;  %v7208_v52 = vld [vmem:[#allocation93_spill] sm:$0xff] }
 0x577   :  { %v7209_v29 = vld [vmem:[#allocation49_spill] sm:$0xff] }
 0x578   :  { %2964 = vmatmul.bf16.vlgmr.msrb.gmra.mxu1 %v2838_v21  ;;  %2990 = vmatmul.bf16.vlgmr.msrb.gmra.mxu3 %v2838_v21  ;;  %v7203_v21 = vld [vmem:[#allocation36_spill] sm:$0xff] }
 0x579   :  { %3112 = vmatpush.bf16.msra.mxu1 %v7183_v17  ;;  %3138 = vmatpush.bf16.msra.mxu3 %v7184_v16  ;;  %v7210_v17 = vld [vmem:[#allocation78_spill] sm:$0xff]  ;;  %v7211_v16 = vld [vmem:[#allocation44_spill] sm:$0xff] }
 0x57a   :  { %3105 = vmatpush.bf16.msra.mxu0 %v7185_v59  ;;  %3131 = vmatpush.bf16.msra.mxu2 %v7186_v4  ;;  %v7212_v59 = vld [vmem:[#allocation95_spill] sm:$0xff]  ;;  %v7213_v4 = vld [vmem:[#allocation53_spill] sm:$0xff] }
 0x57d   :  { %3113 = vmatpush.bf16.msra.mxu1 %v7187_v62  ;;  %3139 = vmatpush.bf16.msra.mxu3 %v7188_v50  ;;  %v7214_v62 = vld [vmem:[#allocation82_spill] sm:$0xff] }
 0x57e   :  { %3106 = vmatpush.bf16.msra.mxu0 %v7189_v5  ;;  %3132 = vmatpush.bf16.msra.mxu2 %v7190_v63  ;;  %v7215_v50 = vld [vmem:[#allocation30_spill] sm:$0xff]  ;;  %v7217_v63 = vld [vmem:[#allocation48_spill] sm:$0xff] }
 0x57f   :  { %v7216_v5 = vld [vmem:[#allocation86_spill] sm:$0xff] }
 0x581   :  { %3114 = vmatpush.bf16.msra.mxu1 %v7193_v35  ;;  %3140 = vmatpush.bf16.msra.mxu3 %v7194_v60  ;;  %v7220_v35 = vld [vmem:[#allocation88_spill] sm:$0xff] }
 0x582   :  { %3151 = vmatpush.bf16.msrb.mxu0 %v7191_v32  ;;  %3177 = vmatpush.bf16.msrb.mxu2 %v7192_v20  ;;  %v7218_v32 = vld [vmem:[#allocation97_spill] sm:$0xff]  ;;  %v7219_v20 = vld [vmem:[#allocation34_spill] sm:$0xff]  ;;  %v7221_v60 = vld [vmem:[#allocation52_spill] sm:$0xff] }
 0x585   :  { %3115 = vmatpush.bf16.msra.mxu1 %v7197_v12  ;;  %3141 = vmatpush.bf16.msra.mxu3 %v7198_v8  ;;  %v7224_v12 = vld [vmem:[#allocation90_spill] sm:$0xff] }
 0x586   :  { %3152 = vmatpush.bf16.msrb.mxu0 %v7195_v22  ;;  %3178 = vmatpush.bf16.msrb.mxu2 %v7196_v13  ;;  %v7222_v22 = vld [vmem:[#allocation99_spill] sm:$0xff]  ;;  %v7223_v13 = vld [vmem:[#allocation38_spill] sm:$0xff] }
 0x587   :  { %v7225_v8 = vld [vmem:[#allocation42_spill] sm:$0xff] }
 0x589   :  { %3116 = vmatpush.bf16.msra.mxu1 %v7201_v48  ;;  %3142 = vmatpush.bf16.msra.mxu3 %v7202_v34  ;;  %v7228_v48 = vld [vmem:[#allocation94_spill] sm:$0xff] }
 0x58a   :  { %3153 = vmatpush.bf16.msrb.mxu0 %v7199_v28  ;;  %3179 = vmatpush.bf16.msrb.mxu2 %v7200_v51  ;;  %v7226_v28 = vld [vmem:[#allocation92_spill] sm:$0xff]  ;;  %v7227_v51 = vld [vmem:[#allocation46_spill] sm:$0xff] }
 0x58b   :  { %v7229_v34 = vld [vmem:[#allocation50_spill] sm:$0xff] }
 0x58d   :  { %3117 = vmatpush.bf16.msra.mxu1 %v7205_v25  ;;  %3143 = vmatpush.bf16.msra.mxu3 %v7206_v42  ;;  %v7232_v25 = vld [vmem:[#allocation98_spill] sm:$0xff]  ;;  %v7233_v42 = vld [vmem:[#allocation57_spill] sm:$0xff] }
 0x58e   :  { %3154 = vmatpush.bf16.msrb.mxu0 %v7203_v21  ;;  %3180 = vmatpush.bf16.msrb.mxu2 %v7204_v38  ;;  %v7230_v21 = vld [vmem:[#allocation96_spill] sm:$0xff]  ;;  %v7231_v38 = vld [vmem:[#allocation54_spill] sm:$0xff] }
 0x591   :  { %3118 = vmatpush.bf16.msra.mxu1 %v7209_v29  ;;  %3144 = vmatpush.bf16.msra.mxu3 %v7210_v17 }
 0x592   :  { %3155 = vmatpush.bf16.msrb.mxu0 %v7207_v19  ;;  %3181 = vmatpush.bf16.msrb.mxu2 %v7208_v52  ;;  %v7234_v19 = vld [vmem:[#allocation100_spill] sm:$0xff] }
 0x595   :  { %3119 = vmatpush.bf16.msra.mxu1 %v7213_v4  ;;  %3145 = vmatpush.bf16.msra.mxu3 %v7214_v62  ;;  %v7235_v4 = vld [vmem:[#allocation156_spill] sm:$0xff] }
 0x596   :  { %3156 = vmatpush.bf16.msrb.mxu0 %v7211_v16  ;;  %3182 = vmatpush.bf16.msrb.mxu2 %v7212_v59 }
 0x599   :  { %3164 = vmatpush.bf16.msrb.mxu1 %v7215_v50  ;;  %3190 = vmatpush.bf16.msrb.mxu3 %v7216_v5 }
 0x59a   :  { %3157 = vmatpush.bf16.msrb.mxu0 %v7217_v63  ;;  %3183 = vmatpush.bf16.msrb.mxu2 %v7218_v32 }
 0x59d   :  { %3165 = vmatpush.bf16.msrb.mxu1 %v7219_v20  ;;  %3191 = vmatpush.bf16.msrb.mxu3 %v7220_v35  ;;  %v7236_v20 = vld [vmem:[#allocation117_spill] sm:$0xff] }
 0x59e   :  { %3158 = vmatpush.bf16.msrb.mxu0 %v7221_v60  ;;  %3184 = vmatpush.bf16.msrb.mxu2 %v7222_v22  ;;  %v7237_v60 = vld [vmem:[#allocation157_spill] sm:$0xff] }
 0x5a1   :  { %3166 = vmatpush.bf16.msrb.mxu1 %v7223_v13  ;;  %3192 = vmatpush.bf16.msrb.mxu3 %v7224_v12 }
 0x5a5   :  { %3167 = vmatpush.bf16.msrb.mxu1 %v7225_v8  ;;  %3193 = vmatpush.bf16.msrb.mxu3 %v7226_v28 }
 0x5a9   :  { %3168 = vmatpush.bf16.msrb.mxu1 %v7227_v51  ;;  %3194 = vmatpush.bf16.msrb.mxu3 %v7228_v48  ;;  %v7238_v48 = vld [vmem:[#allocation118_spill] sm:$0xff] }
 0x5ad   :  { %3169 = vmatpush.bf16.msrb.mxu1 %v7229_v34  ;;  %3195 = vmatpush.bf16.msrb.mxu3 %v7230_v21 }
 0x5b1   :  { %3170 = vmatpush.bf16.msrb.mxu1 %v7231_v38  ;;  %3196 = vmatpush.bf16.msrb.mxu3 %v7232_v25 }
 0x5b5   :  { %3171 = vmatpush.bf16.msrb.mxu1 %v7233_v42  ;;  %3197 = vmatpush.bf16.msrb.mxu3 %v7234_v19 }
 0x5be   :  { %v2848_v52 = vpop.f32.mrf.mxu0 }
 0x5bf   :  { %v2849_v62 = vadd.f32 %v2848_v52, %v7235_v4 }
 0x5c4   :  { %v2874_v29 = vpop.f32.mrf.mxu2 }
 0x5c5   :  { %v2875_v22 = vadd.f32 %v2874_v29, %v7237_v60 }
 0x5c6   :  { %v2850_v17 = vpop.f32.mrf.mxu0 }
 0x5cc   :  { %v2876_v16 = vpop.f32.mrf.mxu2 }
 0x5ce   :  { %v2900_v59 = vpop.f32.mrf.mxu0 }
 0x5d4   :  { %v2926_v50 = vpop.f32.mrf.mxu2 }
 0x5d5   :  { %v2861_v5 = vpop.f32.mrf.mxu1 }
 0x5d6   :  { %v2862_v63 = vadd.f32 %v2861_v5, %v2849_v62  ;;  %v2902_v32 = vpop.f32.mrf.mxu0  ;;  %v7239_v5 = vld [vmem:[#allocation158_spill] sm:$0xff] }
 0x5d8   :  { %v2998_v35 = vadd.f32 %v2862_v63, %v7236_v20  ;;  %v2927_v63 = vadd.f32 %v2926_v50, %v7239_v5  ;;  %v2901_v50 = vadd.f32 %v2900_v59, %v7242_v53 }
 0x5da   :  { %v4248_v13 = vmul.f32 -1.442695, %v2998_v35  ;;  %v7240_v35 = vld [vmem:[#allocation128_spill] sm:$0xff] }
 0x5db   :  { %v2887_v12 = vpop.f32.mrf.mxu3 }
 0x5dc   :  { %4638 = vpow2.f32 %v4248_v13  ;;  %v2888_v8 = vadd.f32 %v2887_v12, %v2875_v22  ;;  %v2928_v28 = vpop.f32.mrf.mxu2  ;;  %v7241_v22 = vld [vmem:[#allocation133_spill] sm:$0xff] }
 0x5dd   :  { %v2863_v51 = vpop.f32.mrf.mxu1  ;;  %v551_v13 = vadd.f32 %v7241_v22, %v7240_v35 }
 0x5de   :  { %v3018_v34 = vadd.f32 %v2888_v8, %v7238_v48 }
 0x5e0   :  { %v2952_v21 = vpop.f32.mrf.mxu0  ;;  %v4249_v38 = vmul.f32 -1.442695, %v3018_v34 }
 0x5e1   :  { %v2953_v35 = vadd.f32 %v2952_v21, %v6859_v9 }
 0x5e2   :  { %v4639_v25 = vpop.eup %4638  ;;  %4640 = vpow2.f32 %v4249_v38 }
 0x5e3   :  { %v3002_v42 = vadd.f32 1.0, %v4639_v25  ;;  %v2889_v19 = vpop.f32.mrf.mxu3 }
 0x5e5   :  { %4642 = vrcp.f32 %v3002_v42  ;;  %v2913_v17 = vpop.f32.mrf.mxu1  ;;  %v3014_v38 = vand.u32 2147483648, %v3002_v42  ;;  %v3012_v19 = vand.u32 2147483647, %v3002_v42  ;;  %vm3008_vm1 = vweird.f32 %v3002_v42 }
 0x5e6   :  { %v6350_v52 = vpop.f32.mrf.mxu2 }
 0x5e7   :  { %vm3013_vm3 = vcmp.eq.f32.partialorder %v3012_v19, 8.507059e+37 }
 0x5e8   :  { %v2954_v16 = vpop.f32.mrf.mxu0  ;;  %v4641_v29 = vpop.eup %4640 }
 0x5e9   :  { %v3022_v62 = vadd.f32 1.0, %v4641_v29 }
 0x5eb   :  { %v4643_v32 = vpop.eup %4642  ;;  %4644 = vrcp.f32 %v3022_v62  ;;  %v2939_v20 = vpop.f32.mrf.mxu3  ;;  %vm3028_vm5 = vweird.f32 %v3022_v62 }
 0x5ec   :  { %v3004_v12 = vmul.f32 %v4643_v32, %v3002_v42  ;;  %v2940_v8 = vadd.f32 %v2939_v20, %v2927_v63  ;;  %vm3009_vm0 = vweird.f32 %v4643_v32  ;;  %v3015_v63 = vor.u32 1.1754944e-38, %v3014_v38  ;;  %v7245_v38 = vld [vmem:[#allocation153_spill] sm:$0xff] }
 0x5ed   :  { %v2915_v51 = vpop.f32.mrf.mxu1  ;;  %vm3010_vm2 = vmor %vm3008_vm1, %vm3009_vm0 }
 0x5ee   :  { %v2980_v28 = vpop.f32.mrf.mxu2  ;;  %v3005_v48 = vsub.f32 1.0, %v3004_v12  ;;  %v3048_v34 = vadd.f32 %v2940_v8, %v551_v13  ;;  %v2914_v12 = vadd.f32 %v2913_v17, %v2901_v50  ;;  %v7243_v8 = vld [vmem:[#allocation122_spill] sm:$0xff] }
 0x5ef   :  { %v7244_v28 = vld [vmem:[#allocation130_spill] sm:$0xff] }
 0x5f0   :  { %v3006_v25 = vmul.f32 %v4643_v32, %v3005_v48  ;;  %v4250_v16 = vmul.f32 -1.442695, %v3048_v34  ;;  %v580_v51 = vadd.f32 %v7244_v28, %v7243_v8  ;;  %v3034_v48 = vand.u32 2147483648, %v3022_v62 }
 0x5f1   :  { %v4645_v29 = vpop.eup %4644 }
 0x5f2   :  { %v3024_v5 = vmul.f32 %v4645_v29, %v3022_v62  ;;  %v3007_v60 = vadd.f32 %v4643_v32, %v3006_v25  ;;  %4646 = vpow2.f32 %v4250_v16  ;;  %vm3029_vm4 = vweird.f32 %v4645_v29 }
 0x5f3   :  { %v2941_v20 = vpop.f32.mrf.mxu3  ;;  %v3032_v16 = vand.u32 2147483647, %v3022_v62  ;;  %vm3030_vm6 = vmor %vm3028_vm5, %vm3029_vm4  ;;  %v3035_v17 = vor.u32 1.1754944e-38, %v3034_v48 }
 0x5f4   :  { %v3025_v22 = vsub.f32 1.0, %v3024_v5  ;;  %v3011_v13 = vsel %vm3010_vm2, %v4643_v32, %v3007_v60 }
 0x5f5   :  { %v3016_v34 = vsel %vm3013_vm3, %v3015_v63, %v3011_v13  ;;  %v2965_v4 = vpop.f32.mrf.mxu1  ;;  %vm3033_vm7 = vcmp.eq.f32.partialorder %v3032_v16, 8.507059e+37  ;;  %v2979_v16 = vadd.f32 %v6350_v52, %v5561_v31 }
 0x5f6   :  { %v3026_v59 = vmul.f32 %v4645_v29, %v3025_v22  ;;  %v3038_v25 = vmul.f32 %v3016_v34, %v2914_v12  ;;  %v2966_v42 = vadd.f32 %v2965_v4, %v2953_v35 }
 0x5f8   :  { %v4647_v53 = vpop.eup %4646  ;;  %v3027_v21 = vadd.f32 %v4645_v29, %v3026_v59  ;;  %v3039_v20 = vadd.f32 %v3038_v25, %v7245_v38  ;;  %v3068_v5 = vadd.f32 %v2966_v42, %v580_v51 }
 0x5f9   :  { %v3052_v60 = vadd.f32 1.0, %v4647_v53 }
 0x5fa   :  { %v3031_v32 = vsel %vm3030_vm6, %v4645_v29, %v3027_v21  ;;  %4648 = vtanh.f32 %v3039_v20  ;;  %v4251_v19 = vmul.f32 -1.442695, %v3068_v5 }
 0x5fb   :  { %4650 = vrcp.f32 %v3052_v60  ;;  %v2991_v50 = vpop.f32.mrf.mxu3  ;;  %v3036_v63 = vsel %vm3033_vm7, %v3035_v17, %v3031_v32  ;;  %v3064_v34 = vand.u32 2147483648, %v3052_v60  ;;  %v3062_v25 = vand.u32 2147483647, %v3052_v60 }
 0x5fc   :  { %4652 = vpow2.f32 %v4251_v19  ;;  %v3041_v4 = vsub.f32 1.0, %v3036_v63  ;;  %v3043_v13 = vmul.f32 %v3036_v63, %v6228_v24  ;;  %vm3058_vm9 = vweird.f32 %v3052_v60  ;;  %v7246_v19 = vld [vmem:[#allocation125_spill] sm:$0xff]  ;;  %v7247_v63 = vld [vmem:[#allocation131_spill] sm:$0xff] }
 0x5fd   :  { %v2967_v22 = vpop.f32.mrf.mxu1  ;;  %v3065_v38 = vor.u32 1.1754944e-38, %v3064_v34  ;;  %v2992_v20 = vadd.f32 %v2991_v50, %v2979_v16  ;;  %vm3063_vm11 = vcmp.eq.f32.partialorder %v3062_v25, 8.507059e+37  ;;  %v609_v52 = vadd.f32 %v7247_v63, %v7246_v19  ;;  %v7251_v25 = vld [vmem:[#allocation157_spill] sm:$0xff] }
 0x600   :  { %v4649_v35 = vpop.eup %4648 }
 0x601   :  { %v4651_v12 = vpop.eup %4650  ;;  %v3042_v62 = vmul.f32 %v4649_v35, %v3041_v4 }
 0x602   :  { %v4653_v8 = vpop.eup %4652  ;;  %v3054_v28 = vmul.f32 %v4651_v12, %v3052_v60  ;;  %vm3059_vm8 = vweird.f32 %v4651_v12 }
 0x603   :  { %v6361_v51 = vadd.f32 %v3043_v13, %v3042_v62  ;;  %v3072_v53 = vadd.f32 1.0, %v4653_v8  ;;  %v2993_v29 = vpop.f32.mrf.mxu3  ;;  %vm3060_vm10 = vmor %vm3058_vm9, %vm3059_vm8 }
 0x604   :  { %v3055_v48 = vsub.f32 1.0, %v3054_v28 }
 0x605   :  { %3095 = vst [vmem:[#allocation14 + $0x60] sm:$0xff] %v6361_v51  ;;  %4654 = vrcp.f32 %v3072_v53  ;;  %v6366_v42 = vpack.c.bf16 %v6361_v51, %v6361_v51  ;;  %v3084_v62 = vand.u32 2147483648, %v3072_v53  ;;  %vm3078_vm13 = vweird.f32 %v3072_v53 }
 0x606   :  { %v3056_v59 = vmul.f32 %v4651_v12, %v3055_v48 }
 0x607   :  { %3107 = vmatmul.bf16.vlgmr.msra.gmra.mxu0 %v6366_v42  ;;  %3133 = vmatmul.bf16.vlgmr.msra.gmra.mxu2 %v6366_v42 }
 0x608   :  { %v3057_v21 = vadd.f32 %v4651_v12, %v3056_v59  ;;  %3203 = vmatpush.bf16.msra.mxu0 %v6788_v15  ;;  %3229 = vmatpush.bf16.msra.mxu2 %v6789_v36  ;;  %v3082_v36 = vand.u32 2147483647, %v3072_v53 }
 0x60a   :  { %v3061_v5 = vsel %vm3060_vm10, %v4651_v12, %v3057_v21  ;;  %v3085_v12 = vor.u32 1.1754944e-38, %v3084_v62  ;;  %vm3083_vm15 = vcmp.eq.f32.partialorder %v3082_v36, 8.507059e+37  ;;  %v7252_v21 = vld [vmem:[#allocation106_spill] sm:$0xff]  ;;  %v4482_v62 = vld [vmem:[#allocation12 + $0x70] sm:$0xff] }
 0x60b   :  { %v4655_v17 = vpop.eup %4654  ;;  %v3066_v32 = vsel %vm3063_vm11, %v3065_v38, %v3061_v5  ;;  %v7253_v38 = vld [vmem:[#allocation124_spill] sm:$0xff] }
 0x60c   :  { %v3074_v22 = vmul.f32 %v4655_v17, %v3072_v53  ;;  %v3088_v60 = vmul.f32 %v3066_v32, %v2992_v20  ;;  %3204 = vmatpush.bf16.msra.mxu0 %v6790_v0  ;;  %3230 = vmatpush.bf16.msra.mxu2 %v5290_v14  ;;  %vm3079_vm12 = vweird.f32 %v4655_v17  ;;  %v508_v20 = vadd.f32 %v7253_v38, %v7252_v21  ;;  %v7259_v38 = vld [vmem:[#allocation126_spill] sm:$0xff] }
 0x60d   :  { %vm3080_vm14 = vmor %vm3078_vm13, %vm3079_vm12 }
 0x60e   :  { %v3075_v4 = vsub.f32 1.0, %v3074_v22  ;;  %v3089_v35 = vadd.f32 %v3088_v60, %v609_v52  ;;  %v4483_v52 = vld [vmem:[#allocation12 + $0x78] sm:$0xff] }
 0x610   :  { %v3076_v15 = vmul.f32 %v4655_v17, %v3075_v4  ;;  %4656 = vtanh.f32 %v3089_v35  ;;  %3205 = vmatpush.bf16.msra.mxu0 %v6791_v39  ;;  %3231 = vmatpush.bf16.msra.mxu2 %v5309_v27  ;;  %v3361_v39 = vld [vmem:[#allocation14 + $0x10] sm:$0xff] }
 0x612   :  { %v3077_v50 = vadd.f32 %v4655_v17, %v3076_v15 }
 0x614   :  { %v3081_v13 = vsel %vm3080_vm14, %v4655_v17, %v3077_v50  ;;  %3206 = vmatpush.bf16.msra.mxu0 %v6792_v43  ;;  %3232 = vmatpush.bf16.msra.mxu2 %v5325_v47  ;;  %v3359_v43 = vld [vmem:[#allocation14] sm:$0xff] }
 0x615   :  { %v3086_v0 = vsel %vm3083_vm15, %v3085_v12, %v3081_v13  ;;  %v4481_v12 = vld [vmem:[#allocation12 + $0x68] sm:$0xff] }
 0x616   :  { %v4657_v14 = vpop.eup %4656  ;;  %v3091_v8 = vsub.f32 1.0, %v3086_v0  ;;  %v3093_v29 = vmul.f32 %v3086_v0, %v6253_v18 }
 0x617   :  { %3159 = vmatmul.bf16.vlgmr.msrb.gmra.mxu0 %v6366_v42  ;;  %3185 = vmatmul.bf16.vlgmr.msrb.gmra.mxu2 %v6366_v42 }
 0x618   :  { %v3092_v28 = vmul.f32 %v4657_v14, %v3091_v8  ;;  %3207 = vmatpush.bf16.msra.mxu0 %v6793_v46  ;;  %3233 = vmatpush.bf16.msra.mxu2 %v5335_v6  ;;  %v4475_v6 = vld [vmem:[#allocation12 + $0x38] sm:$0xff]  ;;  %v3375_v46 = vpack.c.bf16 %v3361_v39, %v3359_v43  ;;  %v7254_v8 = vld [vmem:[#allocation158_spill] sm:$0xff] }
 0x619   :  { %v4479_v39 = vld [vmem:[#allocation12 + $0x58] sm:$0xff] }
 0x61a   :  { %v6387_v27 = vadd.f32 %v3093_v29, %v3092_v28  ;;  %v4480_v29 = vld [vmem:[#allocation12 + $0x60] sm:$0xff] }
 0x61c   :  { %3096 = vst [vmem:[#allocation14 + $0x18] sm:$0xff] %v6387_v27  ;;  %v3098_v47 = vpack.c.bf16 %v6387_v27, %v6387_v27  ;;  %3208 = vmatpush.bf16.msra.mxu0 %v6794_v2  ;;  %3234 = vmatpush.bf16.msra.mxu2 %v5350_v33  ;;  %v4474_v33 = vld [vmem:[#allocation12 + $0x30] sm:$0xff] }
 0x61d   :  { %v3365_v2 = vld [vmem:[#allocation14 + $0x30] sm:$0xff] }
 0x61e   :  { %3120 = vmatmul.bf16.vlgmr.msra.gmra.mxu1 %v3098_v47  ;;  %3146 = vmatmul.bf16.vlgmr.msra.gmra.mxu3 %v3098_v47 }
 0x61f   :  { %3216 = vmatpush.bf16.msra.mxu1 %v6796_v44  ;;  %3242 = vmatpush.bf16.msra.mxu3 %v6797_v58  ;;  %v3367_v58 = vld [vmem:[#allocation14 + $0x40] sm:$0xff] }
 0x620   :  { %3209 = vmatpush.bf16.msra.mxu0 %v6795_v11  ;;  %3235 = vmatpush.bf16.msra.mxu2 %v5361_v61  ;;  %v4473_v61 = vld [vmem:[#allocation12 + $0x28] sm:$0xff]  ;;  %v3363_v11 = vld [vmem:[#allocation14 + $0x20] sm:$0xff] }
 0x621   :  { %v3377_v44 = vpack.c.bf16 %v3365_v2, %v3363_v11 }
 0x623   :  { %3217 = vmatpush.bf16.msra.mxu1 %v6800_v56  ;;  %3243 = vmatpush.bf16.msra.mxu3 %v5295_v1  ;;  %v4472_v1 = vld [vmem:[#allocation12 + $0x20] sm:$0xff] }
 0x624   :  { %3210 = vmatpush.bf16.msra.mxu0 %v6798_v26  ;;  %3236 = vmatpush.bf16.msra.mxu2 %v5377_v37  ;;  %v4471_v37 = vld [vmem:[#allocation12 + $0x18] sm:$0xff]  ;;  %v3379_v26 = vpack.c.bf16 %v6228_v24, %v3367_v58 }
 0x627   :  { %3218 = vmatpush.bf16.msra.mxu1 %v6802_v7  ;;  %3244 = vmatpush.bf16.msra.mxu3 %v5313_v55  ;;  %v4470_v55 = vld [vmem:[#allocation12 + $0x10] sm:$0xff] }
 0x628   :  { %3511 = vmatpush.bf16.msrb.mxu0 %v4475_v6  ;;  %3237 = vmatmul.bf16.vlgmr.msra.gmra.mxu2 %v6366_v42 }
 0x629   :  { %3211 = vmatmul.bf16.vlgmr.msra.gmra.mxu0 %v6366_v42 }
 0x62b   :  { %3219 = vmatpush.bf16.msra.mxu1 %v6804_v54  ;;  %3245 = vmatpush.bf16.msra.mxu3 %v5331_v57  ;;  %v4469_v57 = vld [vmem:[#allocation12 + $0x8] sm:$0xff] }
 0x62c   :  { %3512 = vmatpush.bf16.msrb.mxu0 %v4474_v33 }
 0x62e   :  { %3172 = vmatmul.bf16.vlgmr.msrb.gmra.mxu1 %v3098_v47  ;;  %3198 = vmatmul.bf16.vlgmr.msrb.gmra.mxu3 %v3098_v47 }
 0x62f   :  { %3220 = vmatpush.bf16.msra.mxu1 %v6805_v30  ;;  %3246 = vmatpush.bf16.msra.mxu3 %v5341_v3  ;;  %v4468_v3 = vld [vmem:[#allocation12] sm:$0xff] }
 0x630   :  { %3513 = vmatpush.bf16.msrb.mxu0 %v4473_v61 }
 0x633   :  { %3221 = vmatpush.bf16.msra.mxu1 %v7171_v10  ;;  %3247 = vmatpush.bf16.msra.mxu3 %v7172_v41  ;;  %v7248_v10 = vld [vmem:[#allocation156_spill] sm:$0xff] }
 0x634   :  { %3514 = vmatpush.bf16.msrb.mxu0 %v4472_v1 }
 0x637   :  { %3222 = vmatpush.bf16.msra.mxu1 %v7175_v23  ;;  %3248 = vmatpush.bf16.msra.mxu3 %v7176_v49 }
 0x638   :  { %3515 = vmatpush.bf16.msrb.mxu0 %v4471_v37 }
 0x63b   :  { %3223 = vmatpush.bf16.msra.mxu1 %v7179_v40  ;;  %3249 = vmatpush.bf16.msra.mxu3 %v7180_v45  ;;  %v7249_v40 = vld [vmem:[#allocation105_spill] sm:$0xff]  ;;  %v7250_v45 = vld [vmem:[#allocation123_spill] sm:$0xff] }
 0x63c   :  { %3516 = vmatpush.bf16.msrb.mxu0 %v4470_v55  ;;  %v479_v53 = vadd.f32 %v7250_v45, %v7249_v40  ;;  %v7257_v40 = vld [vmem:[#allocation136_spill] sm:$0xff]  ;;  %v7258_v45 = vld [vmem:[#allocation155_spill] sm:$0xff] }
 0x63e   :  { %3224 = vmatmul.bf16.vlgmr.msra.gmra.mxu1 %v3098_v47  ;;  %3250 = vmatmul.bf16.vlgmr.msra.gmra.mxu3 %v3098_v47 }
 0x63f   :  { %3540 = vmatpush.bf16.msrb.mxu1 %v4483_v52  ;;  %v4476_v52 = vld [vmem:[#allocation12 + $0x40] sm:$0xff] }
 0x640   :  { %3517 = vmatpush.bf16.msrb.mxu0 %v4469_v57  ;;  %v7255_v57 = vld [vmem:[#allocation129_spill] sm:$0xff] }
 0x643   :  { %3541 = vmatpush.bf16.msrb.mxu1 %v4482_v62 }
 0x644   :  { %3518 = vmatpush.bf16.msrb.mxu0 %v4468_v3 }
 0x647   :  { %3519 = vmatmul.bf16.vlgmr.msrb.gmra.mxu0 %v3375_v46  ;;  %3542 = vmatpush.bf16.msrb.mxu1 %v4481_v12 }
 0x64b   :  { %3543 = vmatpush.bf16.msrb.mxu1 %v4480_v29 }
 0x64f   :  { %3544 = vmatpush.bf16.msrb.mxu1 %v4479_v39 }
 0x657   :  { %3524 = vmatmul.bf16.gmra.mxu0 %v3377_v44  ;;  %v7256_v44 = vld [vmem:[#allocation104_spill] sm:$0xff] }
 0x667   :  { %3529 = vmatmul.bf16.gmra.mxu0 %v3379_v26 }
 0x684   :  { %v3108_v56 = vpop.f32.mrf.mxu0 }
 0x685   :  { %v3109_v41 = vadd.f32 %v3108_v56, %v7248_v10 }
 0x68a   :  { %v3134_v7 = vpop.f32.mrf.mxu2 }
 0x68b   :  { %v3135_v42 = vadd.f32 %v3134_v7, %v7251_v25 }
 0x68c   :  { %v3110_v54 = vpop.f32.mrf.mxu0 }
 0x692   :  { %v3136_v30 = vpop.f32.mrf.mxu2 }
 0x693   :  { %v4478_v30 = vld [vmem:[#allocation12 + $0x50] sm:$0xff] }
 0x694   :  { %v3160_v18 = vpop.f32.mrf.mxu0  ;;  %3545 = vmatpush.bf16.msrb.mxu1 %v4478_v30 }
 0x695   :  { %v3161_v58 = vadd.f32 %v3160_v18, %v7256_v44 }
 0x69a   :  { %v3186_v23 = vpop.f32.mrf.mxu2 }
 0x69b   :  { %v3121_v49 = vpop.f32.mrf.mxu1  ;;  %v3187_v28 = vadd.f32 %v3186_v23, %v7254_v8 }
 0x69c   :  { %v3122_v48 = vadd.f32 %v3121_v49, %v3109_v41  ;;  %v3162_v34 = vpop.f32.mrf.mxu0 }
 0x69e   :  { %v3258_v59 = vadd.f32 %v3122_v48, %v479_v53  ;;  %v537_v53 = vadd.f32 %v7258_v45, %v7257_v40  ;;  %v3364_v45 = vld [vmem:[#allocation14 + $0x28] sm:$0xff] }
 0x6a0   :  { %v4252_v16 = vmul.f32 -1.442695, %v3258_v59 }
 0x6a1   :  { %v3147_v24 = vpop.f32.mrf.mxu3 }
 0x6a2   :  { %4658 = vpow2.f32 %v4252_v16  ;;  %v3148_v5 = vadd.f32 %v3147_v24, %v3135_v42  ;;  %v3188_v17 = vpop.f32.mrf.mxu2  ;;  %v4477_v16 = vld [vmem:[#allocation12 + $0x48] sm:$0xff] }
 0x6a3   :  { %v3123_v32 = vpop.f32.mrf.mxu1  ;;  %3546 = vmatpush.bf16.msrb.mxu1 %v4477_v16 }
 0x6a4   :  { %v3278_v19 = vadd.f32 %v3148_v5, %v508_v20 }
 0x6a6   :  { %v3212_v63 = vpop.f32.mrf.mxu0  ;;  %v4253_v22 = vmul.f32 -1.442695, %v3278_v19 }
 0x6a7   :  { %v3213_v7 = vadd.f32 %v3212_v63, %v6859_v9  ;;  %3547 = vmatpush.bf16.msrb.mxu1 %v4476_v52 }
 0x6a8   :  { %v4659_v60 = vpop.eup %4658  ;;  %4660 = vpow2.f32 %v4253_v22 }
 0x6a9   :  { %v3262_v4 = vadd.f32 1.0, %v4659_v60  ;;  %v3149_v35 = vpop.f32.mrf.mxu3 }
 0x6ab   :  { %4662 = vrcp.f32 %v3262_v4  ;;  %v6423_v15 = vpop.f32.mrf.mxu2  ;;  %v3173_v36 = vpop.f32.mrf.mxu1  ;;  %v3274_v55 = vand.u32 2147483648, %v3262_v4  ;;  %v3272_v46 = vand.u32 2147483647, %v3262_v4  ;;  %vm3268_vm1 = vweird.f32 %v3262_v4 }
 0x6ac   :  { %v3174_v41 = vadd.f32 %v3173_v36, %v3161_v58 }
 0x6ad   :  { %v3275_v54 = vor.u32 1.1754944e-38, %v3274_v55  ;;  %vm3273_vm3 = vcmp.eq.f32.partialorder %v3272_v46, 8.507059e+37 }
 0x6ae   :  { %v3214_v50 = vpop.f32.mrf.mxu0  ;;  %v4661_v13 = vpop.eup %4660 }
 0x6af   :  { %v3282_v0 = vadd.f32 1.0, %v4661_v13 }
 0x6b1   :  { %v4663_v14 = vpop.eup %4662  ;;  %4664 = vrcp.f32 %v3282_v0  ;;  %v3199_v6 = vpop.f32.mrf.mxu3  ;;  %v3294_v48 = vand.u32 2147483648, %v3282_v0  ;;  %v3292_v42 = vand.u32 2147483647, %v3282_v0  ;;  %vm3288_vm5 = vweird.f32 %v3282_v0 }
 0x6b2   :  { %v3264_v47 = vmul.f32 %v4663_v14, %v3262_v4  ;;  %v3200_v33 = vadd.f32 %v3199_v6, %v3187_v28  ;;  %vm3269_vm0 = vweird.f32 %v4663_v14 }
 0x6b3   :  { %v3240_v61 = vpop.f32.mrf.mxu2  ;;  %v3175_v1 = vpop.f32.mrf.mxu1  ;;  %vm3270_vm2 = vmor %vm3268_vm1, %vm3269_vm0  ;;  %v3295_v17 = vor.u32 1.1754944e-38, %v3294_v48  ;;  %vm3293_vm7 = vcmp.eq.f32.partialorder %v3292_v42, 8.507059e+37 }
 0x6b4   :  { %v3265_v37 = vsub.f32 1.0, %v3264_v47  ;;  %v3308_v3 = vadd.f32 %v3200_v33, %v7255_v57  ;;  %v3239_v1 = vadd.f32 %v6423_v15, %v5561_v31 }
 0x6b6   :  { %v3266_v43 = vmul.f32 %v4663_v14, %v3265_v37  ;;  %v4254_v11 = vmul.f32 -1.442695, %v3308_v3 }
 0x6b7   :  { %v4665_v2 = vpop.eup %4664 }
 0x6b8   :  { %v3284_v26 = vmul.f32 %v4665_v2, %v3282_v0  ;;  %v3267_v56 = vadd.f32 %v4663_v14, %v3266_v43  ;;  %4666 = vpow2.f32 %v4254_v11  ;;  %vm3289_vm4 = vweird.f32 %v4665_v2  ;;  %v7260_v11 = vld [vmem:[#allocation127_spill] sm:$0xff] }
 0x6b9   :  { %v3201_v49 = vpop.f32.mrf.mxu3  ;;  %vm3290_vm6 = vmor %vm3288_vm5, %vm3289_vm4 }
 0x6ba   :  { %v3285_v10 = vsub.f32 1.0, %v3284_v26  ;;  %v3271_v23 = vsel %vm3270_vm2, %v4663_v14, %v3267_v56 }
 0x6bb   :  { %v3276_v34 = vsel %vm3273_vm3, %v3275_v54, %v3271_v23  ;;  %v3225_v18 = vpop.f32.mrf.mxu1 }
 0x6bc   :  { %v3286_v59 = vmul.f32 %v4665_v2, %v3285_v10  ;;  %v3298_v25 = vmul.f32 %v3276_v34, %v3174_v41  ;;  %v3226_v9 = vadd.f32 %v3225_v18, %v3213_v7  ;;  %v3368_v34 = vld [vmem:[#allocation14 + $0x48] sm:$0xff]  ;;  %v3370_v18 = vld [vmem:[#allocation14 + $0x58] sm:$0xff] }
 0x6be   :  { %v3287_v24 = vadd.f32 %v4665_v2, %v3286_v59  ;;  %v3299_v21 = vadd.f32 %v3298_v25, %v537_v53  ;;  %v3328_v20 = vadd.f32 %v3226_v9, %v7259_v38  ;;  %v4667_v5 = vpop.eup %4666  ;;  %v3366_v53 = vld [vmem:[#allocation14 + $0x38] sm:$0xff]  ;;  %v3380_v59 = vpack.c.bf16 %v3370_v18, %v3368_v34  ;;  %v3372_v25 = vld [vmem:[#allocation14 + $0x68] sm:$0xff] }
 0x6bf   :  { %v3312_v19 = vadd.f32 1.0, %v4667_v5  ;;  %v3378_v48 = vpack.c.bf16 %v3366_v53, %v3364_v45  ;;  %v3374_v9 = vld [vmem:[#allocation14 + $0x78] sm:$0xff] }
 0x6c0   :  { %v3291_v32 = vsel %vm3290_vm6, %v4665_v2, %v3287_v24  ;;  %4668 = vtanh.f32 %v3299_v21  ;;  %v4255_v63 = vmul.f32 -1.442695, %v3328_v20  ;;  %v3382_v42 = vpack.c.bf16 %v3374_v9, %v3372_v25 }
 0x6c1   :  { %v3296_v22 = vsel %vm3293_vm7, %v3295_v17, %v3291_v32  ;;  %4670 = vrcp.f32 %v3312_v19  ;;  %v3251_v60 = vpop.f32.mrf.mxu3  ;;  %v3324_v6 = vand.u32 2147483648, %v3312_v19  ;;  %v3322_v61 = vand.u32 2147483647, %v3312_v19 }
 0x6c2   :  { %4672 = vpow2.f32 %v4255_v63  ;;  %v3301_v35 = vsub.f32 1.0, %v3296_v22  ;;  %v3303_v50 = vmul.f32 %v3296_v22, %v6361_v51  ;;  %vm3318_vm9 = vweird.f32 %v3312_v19 }
 0x6c3   :  { %v3227_v4 = vpop.f32.mrf.mxu1  ;;  %v3325_v55 = vor.u32 1.1754944e-38, %v3324_v6  ;;  %v3252_v57 = vadd.f32 %v3251_v60, %v3239_v1  ;;  %vm3323_vm11 = vcmp.eq.f32.partialorder %v3322_v61, 8.507059e+37 }
 0x6c6   :  { %v4669_v62 = vpop.eup %4668 }
 0x6c7   :  { %v3302_v36 = vmul.f32 %v4669_v62, %v3301_v35  ;;  %v4671_v12 = vpop.eup %4670 }
 0x6c8   :  { %v4673_v13 = vpop.eup %4672  ;;  %v3314_v14 = vmul.f32 %v4671_v12, %v3312_v19  ;;  %vm3319_vm8 = vweird.f32 %v4671_v12 }
 0x6c9   :  { %v3304_v0 = vadd.f32 %v3303_v50, %v3302_v36  ;;  %v3332_v8 = vadd.f32 1.0, %v4673_v13  ;;  %v3253_v28 = vpop.f32.mrf.mxu3  ;;  %vm3320_vm10 = vmor %vm3318_vm9, %vm3319_vm8 }
 0x6ca   :  { %v3315_v29 = vsub.f32 1.0, %v3314_v14 }
 0x6cb   :  { %3355 = vst [vmem:[#allocation14 + $0x70] sm:$0xff] %v3304_v0  ;;  %v3381_v47 = vpack.c.bf16 %v3304_v0, %v6361_v51  ;;  %4674 = vrcp.f32 %v3332_v8  ;;  %v3344_v58 = vand.u32 2147483648, %v3332_v8  ;;  %v3342_v56 = vand.u32 2147483647, %v3332_v8 }
 0x6cc   :  { %3357 = vst [vmem:[#allocation15] sm:$0xff] %v3304_v0  ;;  %v3316_v33 = vmul.f32 %v4671_v12, %v3315_v29  ;;  %vm3338_vm13 = vweird.f32 %v3332_v8 }
 0x6cd   :  { %3534 = vmatmul.bf16.gmra.mxu0 %v3381_v47  ;;  %v3345_v15 = vor.u32 1.1754944e-38, %v3344_v58  ;;  %vm3343_vm15 = vcmp.eq.f32.partialorder %v3342_v56, 8.507059e+37 }
 0x6ce   :  { %v3317_v37 = vadd.f32 %v4671_v12, %v3316_v33 }
 0x6d0   :  { %v3321_v3 = vsel %vm3320_vm10, %v4671_v12, %v3317_v37 }
 0x6d1   :  { %v4675_v39 = vpop.eup %4674  ;;  %v3326_v43 = vsel %vm3323_vm11, %v3325_v55, %v3321_v3 }
 0x6d2   :  { %v3334_v51 = vmul.f32 %v4675_v39, %v3332_v8  ;;  %v3348_v46 = vmul.f32 %v3326_v43, %v3252_v57  ;;  %vm3339_vm12 = vweird.f32 %v4675_v39 }
 0x6d3   :  { %vm3340_vm14 = vmor %vm3338_vm13, %vm3339_vm12 }
 0x6d4   :  { %v3335_v2 = vsub.f32 1.0, %v3334_v51  ;;  %v3349_v44 = vadd.f32 %v3348_v46, %v7260_v11 }
 0x6d6   :  { %v3336_v26 = vmul.f32 %v4675_v39, %v3335_v2  ;;  %4676 = vtanh.f32 %v3349_v44 }
 0x6d8   :  { %v3337_v31 = vadd.f32 %v4675_v39, %v3336_v26 }
 0x6da   :  { %v3341_v7 = vsel %vm3340_vm14, %v4675_v39, %v3337_v31 }
 0x6db   :  { %v3346_v54 = vsel %vm3343_vm15, %v3345_v15, %v3341_v7 }
 0x6dc   :  { %v4677_v30 = vpop.eup %4676  ;;  %v3351_v10 = vsub.f32 1.0, %v3346_v54  ;;  %v3353_v23 = vmul.f32 %v3346_v54, %v6387_v27 }
 0x6de   :  { %v3352_v41 = vmul.f32 %v4677_v30, %v3351_v10 }
 0x6e0   :  { %v3354_v49 = vadd.f32 %v3353_v23, %v3352_v41 }
 0x6e2   :  { %3356 = vst [vmem:[#allocation14 + $0x8] sm:$0xff] %v3354_v49  ;;  %v3376_v40 = vpack.c.bf16 %v6387_v27, %v3354_v49  ;;  %v3520_v27 = vpop.f32.mrf.mxu0 }
 0x6e3   :  { %3358 = vst [vmem:[#allocation15 + $0x8] sm:$0xff] %v3354_v49  ;;  %3589 = dma.vmem_to_hbm [thread:$0]  %s3582_s1, 2048, %s3584_s18, [#allocation5], %s4919_s20, %s4919_s20, %s4920_s21  }
 0x6e4   :  { %3548 = vmatmul.bf16.vlgmr.msrb.gmra.mxu1 %v3376_v40  ;;  %3600 = dma.vmem_to_hbm [thread:$0]  %s3596_s5, 256, %s3598_s15, [#allocation16]  }
 0x6ea   :  { %v3522_v16 = vpop.f32.mrf.mxu0 }
 0x6f2   :  { %v3525_v38 = vpop.f32.mrf.mxu0 }
 0x6f4   :  { %3553 = vmatmul.bf16.gmra.mxu1 %v3378_v48 }
 0x6fa   :  { %v3527_v19 = vpop.f32.mrf.mxu0 }
 0x702   :  { %v3530_v22 = vpop.f32.mrf.mxu0 }
 0x704   :  { %3558 = vmatmul.bf16.gmra.mxu1 %v3380_v59 }
 0x70a   :  { %v3532_v35 = vpop.f32.mrf.mxu0 }
 0x714   :  { %3563 = vmatmul.bf16.gmra.mxu1 %v3382_v42 }
 0x74a   :  { %v3535_v50 = vpop.f32.mrf.mxu0 }
 0x752   :  { %v3537_v0 = vpop.f32.mrf.mxu0 }
 0x761   :  { %v3549_v24 = vpop.f32.mrf.mxu1 }
 0x762   :  { %v3550_v21 = vadd.f32 %v3549_v24, %v3520_v27 }
 0x764   :  { %3569 = vst [vmem:[#allocation17] sm:$0xff] %v3550_v21 }
 0x769   :  { %v3551_v20 = vpop.f32.mrf.mxu1 }
 0x76a   :  { %v3552_v5 = vadd.f32 %v3551_v20, %v3522_v16 }
 0x76c   :  { %3570 = vst [vmem:[#allocation17 + $0x8] sm:$0xff] %v3552_v5 }
 0x771   :  { %v3554_v17 = vpop.f32.mrf.mxu1 }
 0x772   :  { %v3555_v32 = vadd.f32 %v3554_v17, %v3525_v38 }
 0x774   :  { %3571 = vst [vmem:[#allocation17 + $0x10] sm:$0xff] %v3555_v32 }
 0x779   :  { %v3556_v63 = vpop.f32.mrf.mxu1 }
 0x77a   :  { %v3557_v52 = vadd.f32 %v3556_v63, %v3527_v19 }
 0x77c   :  { %3572 = vst [vmem:[#allocation17 + $0x18] sm:$0xff] %v3557_v52 }
 0x781   :  { %v3559_v60 = vpop.f32.mrf.mxu1 }
 0x782   :  { %v3560_v4 = vadd.f32 %v3559_v60, %v3530_v22 }
 0x784   :  { %3573 = vst [vmem:[#allocation17 + $0x20] sm:$0xff] %v3560_v4 }
 0x789   :  { %v3561_v62 = vpop.f32.mrf.mxu1 }
 0x78a   :  { %v3562_v36 = vadd.f32 %v3561_v62, %v3532_v35 }
 0x78c   :  { %3574 = vst [vmem:[#allocation17 + $0x28] sm:$0xff] %v3562_v36 }
 0x791   :  { %v3564_v12 = vpop.f32.mrf.mxu1 }
 0x792   :  { %v3565_v13 = vadd.f32 %v3564_v12, %v3535_v50 }
 0x794   :  { %3575 = vst [vmem:[#allocation17 + $0x30] sm:$0xff] %v3565_v13 }
 0x799   :  { %v3566_v14 = vpop.f32.mrf.mxu1 }
 0x79a   :  { %v3567_v8 = vadd.f32 %v3566_v14, %v3537_v0 }
 0x79c   :  { %3576 = vst [vmem:[#allocation17 + $0x38] sm:$0xff] %v3567_v8 }
 0x79d   :  { %3613 = dma.vmem_to_hbm [thread:$0]  %s3606_s7, 1024, %s3608_s23, [#allocation16], %s4922_s24, %s4922_s24, %s4923_s25  }
 0x79e   :  { %4902 = dma.done.wait [#allocation5], 2048  }
 0x79f   :  { %4903 = vsyncadd [#allocation5], 4294965248 }
 0x7a0   :  { %4904 = dma.done.wait [#allocation16], 1280  }
 0x7a1   :  { %4905 = vsyncadd [#allocation16], 4294966016 }
 0x7a2   :  { %3626 = vsyncpa [#allocation4], 1 }
 0x7a3   :  { %3627 = vsyncpa [#allocation7], 1 }
 0x7a4   :  { %3628 = vsyncpa [#allocation10], 1 }
 0x7a5   :  { %3629 = vsyncpa [#allocation13], 1 }
 0x7a6   :  { %3630 = vsyncpa [#allocation5], 1 }
 0x7a7   :  { %3631 = vsyncpa [#allocation16], 1 }

</bundles_post_ra>
